<compile_context>
chip_gen: v7x
topology: tpu7x:2x2x1
jax: 0.10.0
libtpu: 0.0.40
codegen_flags: <defaults>
</compile_context>

<pallas_src>
import functools
import math

import jax
import jax.numpy as jnp
from jax.experimental import pallas as pl
from jax.experimental.pallas import tpu as pltpu

# ----------------------------- config -------------------------------------
D_MODEL = 32
NHEAD = 4
D_HEAD = D_MODEL // NHEAD
NUM_ENC_LAYERS = 2
NUM_DEC_LAYERS = 2
DIM_FFN = 64
VOCAB_ENC = 16
VOCAB_DEC = 12
GEN_PAD = 128            # lane-dense generator output width (sliced to 12 outside)
PAD_ID = 0
NEG = -1e9               # finite stand-in for -inf in additive masks
LN_EPS = 1e-5            # torch LayerNorm default
SLAB_W = 128             # lane width of the packed parameter slabs
MAX_LEN = 64             # precomputed positional-encoding length


def _vmem():
    return pl.BlockSpec(memory_space=pltpu.MemorySpace.VMEM)


# ------------------------ static parameter-slab layout ----------------------
def _build_layout():
    woff, voff = {}, {}
    wrow, vrow = 0, 0

    def addw(name, rows, cols):
        nonlocal wrow
        woff[name] = (wrow, rows, cols)
        wrow += rows                      # rows are 32/64 -> offsets stay 8-aligned

    def addv(name, cols):
        nonlocal vrow
        voff[name] = (vrow, cols)
        vrow += 1

    for l in range(NUM_ENC_LAYERS):
        p = f"e{l}_"
        addw(p + "wqkv", D_MODEL, 3 * D_MODEL); addv(p + "bqkv", 3 * D_MODEL)
        addw(p + "wo", D_MODEL, D_MODEL);       addv(p + "bo", D_MODEL)
        addv(p + "ln1g", D_MODEL); addv(p + "ln1b", D_MODEL)
        addw(p + "w1", D_MODEL, DIM_FFN);       addv(p + "b1", DIM_FFN)
        addw(p + "w2", DIM_FFN, D_MODEL);       addv(p + "b2", D_MODEL)
        addv(p + "ln2g", D_MODEL); addv(p + "ln2b", D_MODEL)
    for l in range(NUM_DEC_LAYERS):
        p = f"d{l}_"
        addw(p + "sa_wqkv", D_MODEL, 3 * D_MODEL); addv(p + "sa_bqkv", 3 * D_MODEL)
        addw(p + "sa_wo", D_MODEL, D_MODEL);       addv(p + "sa_bo", D_MODEL)
        addv(p + "ln1g", D_MODEL); addv(p + "ln1b", D_MODEL)
        addw(p + "ca_wq", D_MODEL, D_MODEL);       addv(p + "ca_bq", D_MODEL)
        addw(p + "ca_wkv", D_MODEL, 2 * D_MODEL);  addv(p + "ca_bkv", 2 * D_MODEL)
        addw(p + "ca_wo", D_MODEL, D_MODEL);       addv(p + "ca_bo", D_MODEL)
        addv(p + "ln2g", D_MODEL); addv(p + "ln2b", D_MODEL)
        addw(p + "w1", D_MODEL, DIM_FFN);          addv(p + "b1", DIM_FFN)
        addw(p + "w2", DIM_FFN, D_MODEL);          addv(p + "b2", D_MODEL)
        addv(p + "ln3g", D_MODEL); addv(p + "ln3b", D_MODEL)
    addv("encn_g", D_MODEL); addv("encn_b", D_MODEL)
    addv("decn_g", D_MODEL); addv("decn_b", D_MODEL)
    addw("gen_w", D_MODEL, GEN_PAD); addv("gen_b", GEN_PAD)

    wrows = ((wrow + 7) // 8) * 8
    vrows = ((vrow + 7) // 8) * 8
    return woff, voff, wrows, vrows


WOFF, VOFF, W_ROWS, V_ROWS = _build_layout()


# ----------------------------- fused kernel --------------------------------
def _fused_forward_kernel(xy_ref, encb_ref, decb_ref, crsb_ref, w_ref, v_ref,
                          o_ref, *, B, Ss, St):
    scale = 1.0 / math.sqrt(D_HEAD)

    def W(name):
        r0, rows, cols = WOFF[name]
        return w_ref[r0:r0 + rows, 0:cols]          # sublane-aligned static slice

    def V(name):
        r, cols = VOFF[name]
        return v_ref[r:r + 1, 0:cols]                # (1, cols) vector param

    def layer_norm(x, g, b):
        mu = jnp.mean(x, axis=-1, keepdims=True)
        var = jnp.mean((x - mu) ** 2, axis=-1, keepdims=True)
        return (x - mu) * jax.lax.rsqrt(var + LN_EPS) * g + b

    def softmax_rows(s):
        mx = jnp.max(s, axis=-1, keepdims=True)
        p = jnp.exp(s - mx)
        return p / jnp.sum(p, axis=-1, keepdims=True)   # exact (parity w/ torch)

    def attention(q_in, kv_in, wq, bq, wk, bk, wv, bv, wo, bo, bias):
        # q_in: (Nq, D), kv_in: (Nk, D); bias: (Nq, Nk) additive (cross-batch /
        # causal / padding already folded in).  Batch merged into each head's
        # matmuls; heads unrolled (NHEAD=4).  Per-head Q/K/V produced directly
        # at lane offset 0 (weight-column slices are off the critical path).
        acc = None
        for h in range(NHEAD):
            lo, hi = h * D_HEAD, (h + 1) * D_HEAD
            q_h = jnp.dot(q_in, wq[:, lo:hi],
                          preferred_element_type=jnp.float32) + bq[:, lo:hi]
            k_h = jnp.dot(kv_in, wk[:, lo:hi],
                          preferred_element_type=jnp.float32) + bk[:, lo:hi]
            v_h = jnp.dot(kv_in, wv[:, lo:hi],
                          preferred_element_type=jnp.float32) + bv[:, lo:hi]
            s = jax.lax.dot_general(
                q_h, k_h, (((1,), (1,)), ((), ())),
                preferred_element_type=jnp.float32) * scale + bias
            p = softmax_rows(s)
            pv = jnp.dot(p, v_h, preferred_element_type=jnp.float32)      # (Nq, Dh)
            # fold the head concat into the output projection (sublane-aligned Wo slice)
            o_h = jnp.dot(pv, wo[lo:hi, :], preferred_element_type=jnp.float32)
            acc = o_h if acc is None else acc + o_h
        return acc + bo

    def ffn(x, w1, b1, w2, b2):
        h = jnp.maximum(
            jnp.dot(x, w1, preferred_element_type=jnp.float32) + b1, 0.0)
        return jnp.dot(h, w2, preferred_element_type=jnp.float32) + b2

    enc_bias = encb_ref[...]    # (B*Ss, B*Ss): cross-batch + src key padding
    dec_bias = decb_ref[...]    # (B*St, B*St): cross-batch + causal
    crs_bias = crsb_ref[...]    # (B*St, B*Ss): cross-batch only

    mem = xy_ref[0:B * Ss, :]                     # (B*Ss, D)
    out = xy_ref[B * Ss:B * (Ss + St), :]         # (B*St, D)

    # ---------------- encoder ----------------
    for l in range(NUM_ENC_LAYERS):
        p = f"e{l}_"
        wqkv, bqkv = W(p + "wqkv"), V(p + "bqkv")
        sa = attention(
            mem, mem,
            wqkv[:, 0:D_MODEL], bqkv[:, 0:D_MODEL],
            wqkv[:, D_MODEL:2 * D_MODEL], bqkv[:, D_MODEL:2 * D_MODEL],
            wqkv[:, 2 * D_MODEL:3 * D_MODEL], bqkv[:, 2 * D_MODEL:3 * D_MODEL],
            W(p + "wo"), V(p + "bo"), enc_bias)
        mem = layer_norm(mem + sa, V(p + "ln1g"), V(p + "ln1b"))
        ff = ffn(mem, W(p + "w1"), V(p + "b1"), W(p + "w2"), V(p + "b2"))
        mem = layer_norm(mem + ff, V(p + "ln2g"), V(p + "ln2b"))
    mem = layer_norm(mem, V("encn_g"), V("encn_b"))

    # ---------------- decoder ----------------
    for l in range(NUM_DEC_LAYERS):
        p = f"d{l}_"
        wqkv, bqkv = W(p + "sa_wqkv"), V(p + "sa_bqkv")
        sa = attention(
            out, out,
            wqkv[:, 0:D_MODEL], bqkv[:, 0:D_MODEL],
            wqkv[:, D_MODEL:2 * D_MODEL], bqkv[:, D_MODEL:2 * D_MODEL],
            wqkv[:, 2 * D_MODEL:3 * D_MODEL], bqkv[:, 2 * D_MODEL:3 * D_MODEL],
            W(p + "sa_wo"), V(p + "sa_bo"), dec_bias)
        out = layer_norm(out + sa, V(p + "ln1g"), V(p + "ln1b"))

        wkv, bkv = W(p + "ca_wkv"), V(p + "ca_bkv")
        ca = attention(
            out, mem,
            W(p + "ca_wq"), V(p + "ca_bq"),
            wkv[:, 0:D_MODEL], bkv[:, 0:D_MODEL],
            wkv[:, D_MODEL:2 * D_MODEL], bkv[:, D_MODEL:2 * D_MODEL],
            W(p + "ca_wo"), V(p + "ca_bo"), crs_bias)
        out = layer_norm(out + ca, V(p + "ln2g"), V(p + "ln2b"))

        ff = ffn(out, W(p + "w1"), V(p + "b1"), W(p + "w2"), V(p + "b2"))
        out = layer_norm(out + ff, V(p + "ln3g"), V(p + "ln3b"))
    out = layer_norm(out, V("decn_g"), V("decn_b"))

    # ---------------- generator (lane-dense padded output) ----------------
    o_ref[...] = (jnp.dot(out, W("gen_w"), preferred_element_type=jnp.float32)
                  + V("gen_b"))


# ----------------------------- host-side glue -------------------------------
def positional_encoding(max_len, d):
    pos = jnp.arange(max_len, dtype=jnp.float32)[:, None]
    div = jnp.exp(jnp.arange(0, d, 2, dtype=jnp.float32) * (-math.log(10000.0) / d))
    pe = jnp.zeros((max_len, d), jnp.float32)
    pe = pe.at[:, 0::2].set(jnp.sin(pos * div))
    pe = pe.at[:, 1::2].set(jnp.cos(pos * div))
    return pe


def prepare(params):
    """One-time (non-jitted) packing of all weights into two lane-dense slabs."""
    wslab = jnp.zeros((W_ROWS, SLAB_W), jnp.float32)
    vslab = jnp.zeros((V_ROWS, SLAB_W), jnp.float32)

    def putw(slab, name, w):
        r0, rows, cols = WOFF[name]
        assert w.shape == (rows, cols), (name, w.shape)
        return slab.at[r0:r0 + rows, 0:cols].set(w)

    def putv(slab, name, v):
        r, cols = VOFF[name]
        v = jnp.asarray(v).reshape(-1)
        assert v.shape == (cols,), (name, v.shape)
        return slab.at[r, 0:cols].set(v)

    for l, lyr in enumerate(params["enc_layers"]):
        p = f"e{l}_"
        for k in ("wqkv", "wo", "w1", "w2"):
            wslab = putw(wslab, p + k, lyr[k])
        for k in ("bqkv", "bo", "ln1g", "ln1b", "b1", "b2", "ln2g", "ln2b"):
            vslab = putv(vslab, p + k, lyr[k])
    for l, lyr in enumerate(params["dec_layers"]):
        p = f"d{l}_"
        for k in ("sa_wqkv", "sa_wo", "ca_wq", "ca_wkv", "ca_wo", "w1", "w2"):
            wslab = putw(wslab, p + k, lyr[k])
        for k in ("sa_bqkv", "sa_bo", "ln1g", "ln1b", "ca_bq", "ca_bkv", "ca_bo",
                  "ln2g", "ln2b", "b1", "b2", "ln3g", "ln3b"):
            vslab = putv(vslab, p + k, lyr[k])
    vslab = putv(vslab, "encn_g", params["encn_g"])
    vslab = putv(vslab, "encn_b", params["encn_b"])
    vslab = putv(vslab, "decn_g", params["decn_g"])
    vslab = putv(vslab, "decn_b", params["decn_b"])

    gen_w = jnp.zeros((D_MODEL, GEN_PAD), jnp.float32).at[:, :VOCAB_DEC].set(
        params["gen_w"])
    gen_b = jnp.zeros((GEN_PAD,), jnp.float32).at[:VOCAB_DEC].set(
        params["gen_b"].reshape(-1))
    wslab = putw(wslab, "gen_w", gen_w)
    vslab = putv(vslab, "gen_b", gen_b)

    return {
        "wslab": wslab,
        "vslab": vslab,
        "emb_enc": params["emb_enc"],
        "emb_dec": params["emb_dec"],
        "pe": positional_encoding(MAX_LEN, D_MODEL),
    }


@jax.jit
def forward(prep, X_ids, y_ids):
    B, Ss = X_ids.shape
    St = y_ids.shape[1]

    # embedding gathers + positional encoding (tiny JAX glue, PE table precomputed)
    x = prep["emb_enc"][X_ids].reshape(B * Ss, D_MODEL)
    y = (prep["emb_dec"][y_ids] + prep["pe"][:St][None]).reshape(B * St, D_MODEL)
    xy = jnp.concatenate([x, y], axis=0)
    # TODO(synk): dropout (PE + transformer sublayers) omitted — eval-mode semantics.

    # additive bias matrices (16x16 scale) with cross-batch / causal / padding folded in
    bs = jnp.repeat(jnp.arange(B), Ss)
    bt = jnp.repeat(jnp.arange(B), St)
    pad = (X_ids.reshape(-1) == PAD_ID)
    pos_t = jnp.tile(jnp.arange(St), B)
    enc_bias = jnp.where((bs[:, None] != bs[None, :]) | pad[None, :],
                         NEG, 0.0).astype(jnp.float32)
    dec_bias = jnp.where((bt[:, None] != bt[None, :]) | (pos_t[None, :] > pos_t[:, None]),
                         NEG, 0.0).astype(jnp.float32)
    crs_bias = jnp.where(bt[:, None] != bs[None, :], NEG, 0.0).astype(jnp.float32)

    # Single fused, grid-less pallas_call: 6 input DMAs, whole model in VMEM.
    # TODO(synk): on v7x, a grid=(B,) batch axis with dimension_semantics=("parallel",)
    # could use the 2nd TensorCore; not worth the per-step overhead on v5e/v6e.
    logits_pad = pl.pallas_call(
        functools.partial(_fused_forward_kernel, B=B, Ss=Ss, St=St),
        out_shape=jax.ShapeDtypeStruct((B * St, GEN_PAD), jnp.float32),
        in_specs=[_vmem()] * 6,
        out_specs=_vmem(),
    )(xy, enc_bias, dec_bias, crs_bias, prep["wslab"], prep["vslab"])

    return logits_pad[:, :VOCAB_DEC].reshape(B, St, VOCAB_DEC)


# ----------------------------- parameter init ------------------------------
def init_params(seed=0):
    base = jax.random.PRNGKey(seed)
    counter = iter(range(100000))

    def nk():
        return jax.random.fold_in(base, next(counter))

    def lin(fan_in, fan_out):
        w = jax.random.normal(nk(), (fan_in, fan_out), jnp.float32) / math.sqrt(fan_in)
        b = 0.01 * jax.random.normal(nk(), (fan_out,), jnp.float32)
        return w, b

    def ln():
        return jnp.ones((D_MODEL,), jnp.float32), jnp.zeros((D_MODEL,), jnp.float32)

    def enc_layer():
        wqkv, bqkv = lin(D_MODEL, 3 * D_MODEL)
        wo, bo = lin(D_MODEL, D_MODEL)
        ln1g, ln1b = ln()
        w1, b1 = lin(D_MODEL, DIM_FFN)
        w2, b2 = lin(DIM_FFN, D_MODEL)
        ln2g, ln2b = ln()
        return dict(wqkv=wqkv, bqkv=bqkv, wo=wo, bo=bo, ln1g=ln1g, ln1b=ln1b,
                    w1=w1, b1=b1, w2=w2, b2=b2, ln2g=ln2g, ln2b=ln2b)

    def dec_layer():
        sa_wqkv, sa_bqkv = lin(D_MODEL, 3 * D_MODEL)
        sa_wo, sa_bo = lin(D_MODEL, D_MODEL)
        ln1g, ln1b = ln()
        ca_wq, ca_bq = lin(D_MODEL, D_MODEL)
        ca_wkv, ca_bkv = lin(D_MODEL, 2 * D_MODEL)
        ca_wo, ca_bo = lin(D_MODEL, D_MODEL)
        ln2g, ln2b = ln()
        w1, b1 = lin(D_MODEL, DIM_FFN)
        w2, b2 = lin(DIM_FFN, D_MODEL)
        ln3g, ln3b = ln()
        return dict(sa_wqkv=sa_wqkv, sa_bqkv=sa_bqkv, sa_wo=sa_wo, sa_bo=sa_bo,
                    ln1g=ln1g, ln1b=ln1b,
                    ca_wq=ca_wq, ca_bq=ca_bq, ca_wkv=ca_wkv, ca_bkv=ca_bkv,
                    ca_wo=ca_wo, ca_bo=ca_bo, ln2g=ln2g, ln2b=ln2b,
                    w1=w1, b1=b1, w2=w2, b2=b2, ln3g=ln3g, ln3b=ln3b)

    encn_g, encn_b = ln()
    decn_g, decn_b = ln()
    gen_w, gen_b = lin(D_MODEL, VOCAB_DEC)

    return {
        "emb_enc": 0.02 * jax.random.normal(nk(), (VOCAB_ENC, D_MODEL), jnp.float32),
        "emb_dec": 0.02 * jax.random.normal(nk(), (VOCAB_DEC, D_MODEL), jnp.float32),
        "enc_layers": [enc_layer() for _ in range(NUM_ENC_LAYERS)],
        "dec_layers": [dec_layer() for _ in range(NUM_DEC_LAYERS)],
        "encn_g": encn_g, "encn_b": encn_b,
        "decn_g": decn_g, "decn_b": decn_b,
        "gen_w": gen_w, "gen_b": gen_b,
    }


# ----------------------------- main -----------------------------------------
if __name__ == "__main__":
    params = init_params(0)
    prep = prepare(params)          # one-time packing, outside jit

    key = jax.random.PRNGKey(0)
    kx, ky = jax.random.split(key)
    B, S_SRC, S_TGT = 2, 8, 8
    X_ids = jax.random.randint(kx, (B, S_SRC), 0, VOCAB_ENC, dtype=jnp.int32)
    X_ids = X_ids.at[:, 0].set(1)   # ensure at least one non-pad key per sequence
    y_ids = jax.random.randint(ky, (B, S_TGT), 0, VOCAB_DEC, dtype=jnp.int32)

    logits = forward(prep, X_ids, y_ids)
    logits = jax.block_until_ready(logits)

    assert logits.shape == (B, S_TGT, VOCAB_DEC), logits.shape
    assert bool(jnp.isfinite(logits).all()), "non-finite logits"
    print("KERNEL_OK")
</pallas_src>

<mosaic_0001>
module attributes {stable_mosaic.version = 11 : i64} {
  func.func @_fused_forward_kernel(%arg0: memref<32x32xf32, #tpu.memory_space<vmem>>, %arg1: memref<16x16xf32, #tpu.memory_space<vmem>>, %arg2: memref<16x16xf32, #tpu.memory_space<vmem>>, %arg3: memref<16x16xf32, #tpu.memory_space<vmem>>, %arg4: memref<864x128xf32, #tpu.memory_space<vmem>>, %arg5: memref<48x128xf32, #tpu.memory_space<vmem>>, %arg6: memref<16x128xf32, #tpu.memory_space<vmem>>) attributes {dimension_semantics = [], scalar_prefetch = 0 : i64, scratch_operands = 0 : i64, tpu.core_type = #tpu.core_type<tc>} {
    %c0 = arith.constant 0 : index
    %c0_0 = arith.constant 0 : index
    %0 = vector.load %arg1[%c0, %c0_0] : memref<16x16xf32, #tpu.memory_space<vmem>>, vector<16x16xf32>
    %c0_1 = arith.constant 0 : index
    %c0_2 = arith.constant 0 : index
    %1 = vector.load %arg2[%c0_1, %c0_2] : memref<16x16xf32, #tpu.memory_space<vmem>>, vector<16x16xf32>
    %c0_3 = arith.constant 0 : index
    %c0_4 = arith.constant 0 : index
    %2 = vector.load %arg3[%c0_3, %c0_4] : memref<16x16xf32, #tpu.memory_space<vmem>>, vector<16x16xf32>
    %c0_5 = arith.constant 0 : index
    %c0_6 = arith.constant 0 : index
    %3 = vector.load %arg0[%c0_5, %c0_6] : memref<32x32xf32, #tpu.memory_space<vmem>>, vector<16x32xf32>
    %c16 = arith.constant 16 : index
    %c0_7 = arith.constant 0 : index
    %4 = vector.load %arg0[%c16, %c0_7] : memref<32x32xf32, #tpu.memory_space<vmem>>, vector<16x32xf32>
    %c0_8 = arith.constant 0 : index
    %c0_9 = arith.constant 0 : index
    %5 = vector.load %arg4[%c0_8, %c0_9] : memref<864x128xf32, #tpu.memory_space<vmem>>, vector<32x96xf32>
    %c0_10 = arith.constant 0 : index
    %c0_11 = arith.constant 0 : index
    %6 = vector.load %arg5[%c0_10, %c0_11] : memref<48x128xf32, #tpu.memory_space<vmem>>, vector<1x96xf32>
    %7 = vector.extract_strided_slice %5 {offsets = [0, 0], sizes = [32, 32], strides = [1, 1]} : vector<32x96xf32> to vector<32x32xf32>
    %8 = vector.extract_strided_slice %6 {offsets = [0, 0], sizes = [1, 32], strides = [1, 1]} : vector<1x96xf32> to vector<1x32xf32>
    %9 = vector.extract_strided_slice %5 {offsets = [0, 32], sizes = [32, 32], strides = [1, 1]} : vector<32x96xf32> to vector<32x32xf32>
    %10 = vector.extract_strided_slice %6 {offsets = [0, 32], sizes = [1, 32], strides = [1, 1]} : vector<1x96xf32> to vector<1x32xf32>
    %11 = vector.extract_strided_slice %5 {offsets = [0, 64], sizes = [32, 32], strides = [1, 1]} : vector<32x96xf32> to vector<32x32xf32>
    %12 = vector.extract_strided_slice %6 {offsets = [0, 64], sizes = [1, 32], strides = [1, 1]} : vector<1x96xf32> to vector<1x32xf32>
    %c32 = arith.constant 32 : index
    %c0_12 = arith.constant 0 : index
    %13 = vector.load %arg4[%c32, %c0_12] : memref<864x128xf32, #tpu.memory_space<vmem>>, vector<32x32xf32>
    %c1 = arith.constant 1 : index
    %c0_13 = arith.constant 0 : index
    %14 = vector.load %arg5[%c1, %c0_13] : memref<48x128xf32, #tpu.memory_space<vmem>>, vector<1x32xf32>
    %15 = vector.extract_strided_slice %7 {offsets = [0, 0], sizes = [32, 8], strides = [1, 1]} : vector<32x32xf32> to vector<32x8xf32>
    %cst = arith.constant dense<0.000000e+00> : vector<16x8xf32>
    %16 = tpu.matmul %3, %15, %cst {dimension_numbers = #tpu.dot_dimension_numbers<[1], [0], [0], [1], [0, 0, 1, 1], [], []>} : vector<16x32xf32>, vector<32x8xf32>, vector<16x8xf32> -> vector<16x8xf32>
    %17 = vector.extract_strided_slice %8 {offsets = [0, 0], sizes = [1, 8], strides = [1, 1]} : vector<1x32xf32> to vector<1x8xf32>
    %18 = vector.broadcast %17 : vector<1x8xf32> to vector<16x8xf32>
    %19 = arith.addf %16, %18 : vector<16x8xf32>
    %20 = vector.extract_strided_slice %9 {offsets = [0, 0], sizes = [32, 8], strides = [1, 1]} : vector<32x32xf32> to vector<32x8xf32>
    %cst_14 = arith.constant dense<0.000000e+00> : vector<16x8xf32>
    %21 = tpu.matmul %3, %20, %cst_14 {dimension_numbers = #tpu.dot_dimension_numbers<[1], [0], [0], [1], [0, 0, 1, 1], [], []>} : vector<16x32xf32>, vector<32x8xf32>, vector<16x8xf32> -> vector<16x8xf32>
    %22 = vector.extract_strided_slice %10 {offsets = [0, 0], sizes = [1, 8], strides = [1, 1]} : vector<1x32xf32> to vector<1x8xf32>
    %23 = vector.broadcast %22 : vector<1x8xf32> to vector<16x8xf32>
    %24 = arith.addf %21, %23 : vector<16x8xf32>
    %25 = vector.extract_strided_slice %11 {offsets = [0, 0], sizes = [32, 8], strides = [1, 1]} : vector<32x32xf32> to vector<32x8xf32>
    %cst_15 = arith.constant dense<0.000000e+00> : vector<16x8xf32>
    %26 = tpu.matmul %3, %25, %cst_15 {dimension_numbers = #tpu.dot_dimension_numbers<[1], [0], [0], [1], [0, 0, 1, 1], [], []>} : vector<16x32xf32>, vector<32x8xf32>, vector<16x8xf32> -> vector<16x8xf32>
    %27 = vector.extract_strided_slice %12 {offsets = [0, 0], sizes = [1, 8], strides = [1, 1]} : vector<1x32xf32> to vector<1x8xf32>
    %28 = vector.broadcast %27 : vector<1x8xf32> to vector<16x8xf32>
    %29 = arith.addf %26, %28 : vector<16x8xf32>
    %cst_16 = arith.constant dense<0.000000e+00> : vector<16x16xf32>
    %30 = tpu.matmul %19, %24, %cst_16 {dimension_numbers = #tpu.dot_dimension_numbers<[1], [1], [0], [0], [0, 0, 1, 0], [], []>} : vector<16x8xf32>, vector<16x8xf32>, vector<16x16xf32> -> vector<16x16xf32>
    %cst_17 = arith.constant 0.353553385 : f32
    %31 = vector.broadcast %cst_17 : f32 to vector<16x16xf32>
    %32 = arith.mulf %30, %31 : vector<16x16xf32>
    %33 = arith.addf %32, %0 : vector<16x16xf32>
    %cst_18 = arith.constant dense<0xFF800000> : vector<16xf32>
    %34 = vector.multi_reduction <maximumf>, %33, %cst_18 [1] : vector<16x16xf32> to vector<16xf32>
    %35 = vector.shape_cast %34 : vector<16xf32> to vector<16x1xf32>
    %36 = vector.broadcast %35 : vector<16x1xf32> to vector<16x16xf32>
    %37 = arith.subf %33, %36 : vector<16x16xf32>
    %38 = math.exp %37 : vector<16x16xf32>
    %cst_19 = arith.constant dense<0.000000e+00> : vector<16xf32>
    %39 = vector.multi_reduction <add>, %38, %cst_19 [1] : vector<16x16xf32> to vector<16xf32>
    %40 = vector.shape_cast %39 : vector<16xf32> to vector<16x1xf32>
    %41 = vector.broadcast %40 : vector<16x1xf32> to vector<16x16xf32>
    %42 = arith.divf %38, %41 : vector<16x16xf32>
    %cst_20 = arith.constant dense<0.000000e+00> : vector<16x8xf32>
    %43 = tpu.matmul %42, %29, %cst_20 {dimension_numbers = #tpu.dot_dimension_numbers<[1], [0], [0], [1], [0, 0, 1, 1], [], []>} : vector<16x16xf32>, vector<16x8xf32>, vector<16x8xf32> -> vector<16x8xf32>
    %44 = vector.extract_strided_slice %13 {offsets = [0, 0], sizes = [8, 32], strides = [1, 1]} : vector<32x32xf32> to vector<8x32xf32>
    %cst_21 = arith.constant dense<0.000000e+00> : vector<16x32xf32>
    %45 = tpu.matmul %43, %44, %cst_21 {dimension_numbers = #tpu.dot_dimension_numbers<[1], [0], [0], [1], [0, 0, 1, 1], [], []>} : vector<16x8xf32>, vector<8x32xf32>, vector<16x32xf32> -> vector<16x32xf32>
    %46 = vector.extract_strided_slice %7 {offsets = [0, 8], sizes = [32, 8], strides = [1, 1]} : vector<32x32xf32> to vector<32x8xf32>
    %cst_22 = arith.constant dense<0.000000e+00> : vector<16x8xf32>
    %47 = tpu.matmul %3, %46, %cst_22 {dimension_numbers = #tpu.dot_dimension_numbers<[1], [0], [0], [1], [0, 0, 1, 1], [], []>} : vector<16x32xf32>, vector<32x8xf32>, vector<16x8xf32> -> vector<16x8xf32>
    %48 = vector.extract_strided_slice %8 {offsets = [0, 8], sizes = [1, 8], strides = [1, 1]} : vector<1x32xf32> to vector<1x8xf32>
    %49 = vector.broadcast %48 : vector<1x8xf32> to vector<16x8xf32>
    %50 = arith.addf %47, %49 : vector<16x8xf32>
    %51 = vector.extract_strided_slice %9 {offsets = [0, 8], sizes = [32, 8], strides = [1, 1]} : vector<32x32xf32> to vector<32x8xf32>
    %cst_23 = arith.constant dense<0.000000e+00> : vector<16x8xf32>
    %52 = tpu.matmul %3, %51, %cst_23 {dimension_numbers = #tpu.dot_dimension_numbers<[1], [0], [0], [1], [0, 0, 1, 1], [], []>} : vector<16x32xf32>, vector<32x8xf32>, vector<16x8xf32> -> vector<16x8xf32>
    %53 = vector.extract_strided_slice %10 {offsets = [0, 8], sizes = [1, 8], strides = [1, 1]} : vector<1x32xf32> to vector<1x8xf32>
    %54 = vector.broadcast %53 : vector<1x8xf32> to vector<16x8xf32>
    %55 = arith.addf %52, %54 : vector<16x8xf32>
    %56 = vector.extract_strided_slice %11 {offsets = [0, 8], sizes = [32, 8], strides = [1, 1]} : vector<32x32xf32> to vector<32x8xf32>
    %cst_24 = arith.constant dense<0.000000e+00> : vector<16x8xf32>
    %57 = tpu.matmul %3, %56, %cst_24 {dimension_numbers = #tpu.dot_dimension_numbers<[1], [0], [0], [1], [0, 0, 1, 1], [], []>} : vector<16x32xf32>, vector<32x8xf32>, vector<16x8xf32> -> vector<16x8xf32>
    %58 = vector.extract_strided_slice %12 {offsets = [0, 8], sizes = [1, 8], strides = [1, 1]} : vector<1x32xf32> to vector<1x8xf32>
    %59 = vector.broadcast %58 : vector<1x8xf32> to vector<16x8xf32>
    %60 = arith.addf %57, %59 : vector<16x8xf32>
    %cst_25 = arith.constant dense<0.000000e+00> : vector<16x16xf32>
    %61 = tpu.matmul %50, %55, %cst_25 {dimension_numbers = #tpu.dot_dimension_numbers<[1], [1], [0], [0], [0, 0, 1, 0], [], []>} : vector<16x8xf32>, vector<16x8xf32>, vector<16x16xf32> -> vector<16x16xf32>
    %cst_26 = arith.constant 0.353553385 : f32
    %62 = vector.broadcast %cst_26 : f32 to vector<16x16xf32>
    %63 = arith.mulf %61, %62 : vector<16x16xf32>
    %64 = arith.addf %63, %0 : vector<16x16xf32>
    %cst_27 = arith.constant dense<0xFF800000> : vector<16xf32>
    %65 = vector.multi_reduction <maximumf>, %64, %cst_27 [1] : vector<16x16xf32> to vector<16xf32>
    %66 = vector.shape_cast %65 : vector<16xf32> to vector<16x1xf32>
    %67 = vector.broadcast %66 : vector<16x1xf32> to vector<16x16xf32>
    %68 = arith.subf %64, %67 : vector<16x16xf32>
    %69 = math.exp %68 : vector<16x16xf32>
    %cst_28 = arith.constant dense<0.000000e+00> : vector<16xf32>
    %70 = vector.multi_reduction <add>, %69, %cst_28 [1] : vector<16x16xf32> to vector<16xf32>
    %71 = vector.shape_cast %70 : vector<16xf32> to vector<16x1xf32>
    %72 = vector.broadcast %71 : vector<16x1xf32> to vector<16x16xf32>
    %73 = arith.divf %69, %72 : vector<16x16xf32>
    %cst_29 = arith.constant dense<0.000000e+00> : vector<16x8xf32>
    %74 = tpu.matmul %73, %60, %cst_29 {dimension_numbers = #tpu.dot_dimension_numbers<[1], [0], [0], [1], [0, 0, 1, 1], [], []>} : vector<16x16xf32>, vector<16x8xf32>, vector<16x8xf32> -> vector<16x8xf32>
    %75 = vector.extract_strided_slice %13 {offsets = [8, 0], sizes = [8, 32], strides = [1, 1]} : vector<32x32xf32> to vector<8x32xf32>
    %cst_30 = arith.constant dense<0.000000e+00> : vector<16x32xf32>
    %76 = tpu.matmul %74, %75, %cst_30 {dimension_numbers = #tpu.dot_dimension_numbers<[1], [0], [0], [1], [0, 0, 1, 1], [], []>} : vector<16x8xf32>, vector<8x32xf32>, vector<16x32xf32> -> vector<16x32xf32>
    %77 = arith.addf %45, %76 : vector<16x32xf32>
    %78 = vector.extract_strided_slice %7 {offsets = [0, 16], sizes = [32, 8], strides = [1, 1]} : vector<32x32xf32> to vector<32x8xf32>
    %cst_31 = arith.constant dense<0.000000e+00> : vector<16x8xf32>
    %79 = tpu.matmul %3, %78, %cst_31 {dimension_numbers = #tpu.dot_dimension_numbers<[1], [0], [0], [1], [0, 0, 1, 1], [], []>} : vector<16x32xf32>, vector<32x8xf32>, vector<16x8xf32> -> vector<16x8xf32>
    %80 = vector.extract_strided_slice %8 {offsets = [0, 16], sizes = [1, 8], strides = [1, 1]} : vector<1x32xf32> to vector<1x8xf32>
    %81 = vector.broadcast %80 : vector<1x8xf32> to vector<16x8xf32>
    %82 = arith.addf %79, %81 : vector<16x8xf32>
    %83 = vector.extract_strided_slice %9 {offsets = [0, 16], sizes = [32, 8], strides = [1, 1]} : vector<32x32xf32> to vector<32x8xf32>
    %cst_32 = arith.constant dense<0.000000e+00> : vector<16x8xf32>
    %84 = tpu.matmul %3, %83, %cst_32 {dimension_numbers = #tpu.dot_dimension_numbers<[1], [0], [0], [1], [0, 0, 1, 1], [], []>} : vector<16x32xf32>, vector<32x8xf32>, vector<16x8xf32> -> vector<16x8xf32>
    %85 = vector.extract_strided_slice %10 {offsets = [0, 16], sizes = [1, 8], strides = [1, 1]} : vector<1x32xf32> to vector<1x8xf32>
    %86 = vector.broadcast %85 : vector<1x8xf32> to vector<16x8xf32>
    %87 = arith.addf %84, %86 : vector<16x8xf32>
    %88 = vector.extract_strided_slice %11 {offsets = [0, 16], sizes = [32, 8], strides = [1, 1]} : vector<32x32xf32> to vector<32x8xf32>
    %cst_33 = arith.constant dense<0.000000e+00> : vector<16x8xf32>
    %89 = tpu.matmul %3, %88, %cst_33 {dimension_numbers = #tpu.dot_dimension_numbers<[1], [0], [0], [1], [0, 0, 1, 1], [], []>} : vector<16x32xf32>, vector<32x8xf32>, vector<16x8xf32> -> vector<16x8xf32>
    %90 = vector.extract_strided_slice %12 {offsets = [0, 16], sizes = [1, 8], strides = [1, 1]} : vector<1x32xf32> to vector<1x8xf32>
    %91 = vector.broadcast %90 : vector<1x8xf32> to vector<16x8xf32>
    %92 = arith.addf %89, %91 : vector<16x8xf32>
    %cst_34 = arith.constant dense<0.000000e+00> : vector<16x16xf32>
    %93 = tpu.matmul %82, %87, %cst_34 {dimension_numbers = #tpu.dot_dimension_numbers<[1], [1], [0], [0], [0, 0, 1, 0], [], []>} : vector<16x8xf32>, vector<16x8xf32>, vector<16x16xf32> -> vector<16x16xf32>
    %cst_35 = arith.constant 0.353553385 : f32
    %94 = vector.broadcast %cst_35 : f32 to vector<16x16xf32>
    %95 = arith.mulf %93, %94 : vector<16x16xf32>
    %96 = arith.addf %95, %0 : vector<16x16xf32>
    %cst_36 = arith.constant dense<0xFF800000> : vector<16xf32>
    %97 = vector.multi_reduction <maximumf>, %96, %cst_36 [1] : vector<16x16xf32> to vector<16xf32>
    %98 = vector.shape_cast %97 : vector<16xf32> to vector<16x1xf32>
    %99 = vector.broadcast %98 : vector<16x1xf32> to vector<16x16xf32>
    %100 = arith.subf %96, %99 : vector<16x16xf32>
    %101 = math.exp %100 : vector<16x16xf32>
    %cst_37 = arith.constant dense<0.000000e+00> : vector<16xf32>
    %102 = vector.multi_reduction <add>, %101, %cst_37 [1] : vector<16x16xf32> to vector<16xf32>
    %103 = vector.shape_cast %102 : vector<16xf32> to vector<16x1xf32>
    %104 = vector.broadcast %103 : vector<16x1xf32> to vector<16x16xf32>
    %105 = arith.divf %101, %104 : vector<16x16xf32>
    %cst_38 = arith.constant dense<0.000000e+00> : vector<16x8xf32>
    %106 = tpu.matmul %105, %92, %cst_38 {dimension_numbers = #tpu.dot_dimension_numbers<[1], [0], [0], [1], [0, 0, 1, 1], [], []>} : vector<16x16xf32>, vector<16x8xf32>, vector<16x8xf32> -> vector<16x8xf32>
    %107 = vector.extract_strided_slice %13 {offsets = [16, 0], sizes = [8, 32], strides = [1, 1]} : vector<32x32xf32> to vector<8x32xf32>
    %cst_39 = arith.constant dense<0.000000e+00> : vector<16x32xf32>
    %108 = tpu.matmul %106, %107, %cst_39 {dimension_numbers = #tpu.dot_dimension_numbers<[1], [0], [0], [1], [0, 0, 1, 1], [], []>} : vector<16x8xf32>, vector<8x32xf32>, vector<16x32xf32> -> vector<16x32xf32>
    %109 = arith.addf %77, %108 : vector<16x32xf32>
    %110 = vector.extract_strided_slice %7 {offsets = [0, 24], sizes = [32, 8], strides = [1, 1]} : vector<32x32xf32> to vector<32x8xf32>
    %cst_40 = arith.constant dense<0.000000e+00> : vector<16x8xf32>
    %111 = tpu.matmul %3, %110, %cst_40 {dimension_numbers = #tpu.dot_dimension_numbers<[1], [0], [0], [1], [0, 0, 1, 1], [], []>} : vector<16x32xf32>, vector<32x8xf32>, vector<16x8xf32> -> vector<16x8xf32>
    %112 = vector.extract_strided_slice %8 {offsets = [0, 24], sizes = [1, 8], strides = [1, 1]} : vector<1x32xf32> to vector<1x8xf32>
    %113 = vector.broadcast %112 : vector<1x8xf32> to vector<16x8xf32>
    %114 = arith.addf %111, %113 : vector<16x8xf32>
    %115 = vector.extract_strided_slice %9 {offsets = [0, 24], sizes = [32, 8], strides = [1, 1]} : vector<32x32xf32> to vector<32x8xf32>
    %cst_41 = arith.constant dense<0.000000e+00> : vector<16x8xf32>
    %116 = tpu.matmul %3, %115, %cst_41 {dimension_numbers = #tpu.dot_dimension_numbers<[1], [0], [0], [1], [0, 0, 1, 1], [], []>} : vector<16x32xf32>, vector<32x8xf32>, vector<16x8xf32> -> vector<16x8xf32>
    %117 = vector.extract_strided_slice %10 {offsets = [0, 24], sizes = [1, 8], strides = [1, 1]} : vector<1x32xf32> to vector<1x8xf32>
    %118 = vector.broadcast %117 : vector<1x8xf32> to vector<16x8xf32>
    %119 = arith.addf %116, %118 : vector<16x8xf32>
    %120 = vector.extract_strided_slice %11 {offsets = [0, 24], sizes = [32, 8], strides = [1, 1]} : vector<32x32xf32> to vector<32x8xf32>
    %cst_42 = arith.constant dense<0.000000e+00> : vector<16x8xf32>
    %121 = tpu.matmul %3, %120, %cst_42 {dimension_numbers = #tpu.dot_dimension_numbers<[1], [0], [0], [1], [0, 0, 1, 1], [], []>} : vector<16x32xf32>, vector<32x8xf32>, vector<16x8xf32> -> vector<16x8xf32>
    %122 = vector.extract_strided_slice %12 {offsets = [0, 24], sizes = [1, 8], strides = [1, 1]} : vector<1x32xf32> to vector<1x8xf32>
    %123 = vector.broadcast %122 : vector<1x8xf32> to vector<16x8xf32>
    %124 = arith.addf %121, %123 : vector<16x8xf32>
    %cst_43 = arith.constant dense<0.000000e+00> : vector<16x16xf32>
    %125 = tpu.matmul %114, %119, %cst_43 {dimension_numbers = #tpu.dot_dimension_numbers<[1], [1], [0], [0], [0, 0, 1, 0], [], []>} : vector<16x8xf32>, vector<16x8xf32>, vector<16x16xf32> -> vector<16x16xf32>
    %cst_44 = arith.constant 0.353553385 : f32
    %126 = vector.broadcast %cst_44 : f32 to vector<16x16xf32>
    %127 = arith.mulf %125, %126 : vector<16x16xf32>
    %128 = arith.addf %127, %0 : vector<16x16xf32>
    %cst_45 = arith.constant dense<0xFF800000> : vector<16xf32>
    %129 = vector.multi_reduction <maximumf>, %128, %cst_45 [1] : vector<16x16xf32> to vector<16xf32>
    %130 = vector.shape_cast %129 : vector<16xf32> to vector<16x1xf32>
    %131 = vector.broadcast %130 : vector<16x1xf32> to vector<16x16xf32>
    %132 = arith.subf %128, %131 : vector<16x16xf32>
    %133 = math.exp %132 : vector<16x16xf32>
    %cst_46 = arith.constant dense<0.000000e+00> : vector<16xf32>
    %134 = vector.multi_reduction <add>, %133, %cst_46 [1] : vector<16x16xf32> to vector<16xf32>
    %135 = vector.shape_cast %134 : vector<16xf32> to vector<16x1xf32>
    %136 = vector.broadcast %135 : vector<16x1xf32> to vector<16x16xf32>
    %137 = arith.divf %133, %136 : vector<16x16xf32>
    %cst_47 = arith.constant dense<0.000000e+00> : vector<16x8xf32>
    %138 = tpu.matmul %137, %124, %cst_47 {dimension_numbers = #tpu.dot_dimension_numbers<[1], [0], [0], [1], [0, 0, 1, 1], [], []>} : vector<16x16xf32>, vector<16x8xf32>, vector<16x8xf32> -> vector<16x8xf32>
    %139 = vector.extract_strided_slice %13 {offsets = [24, 0], sizes = [8, 32], strides = [1, 1]} : vector<32x32xf32> to vector<8x32xf32>
    %cst_48 = arith.constant dense<0.000000e+00> : vector<16x32xf32>
    %140 = tpu.matmul %138, %139, %cst_48 {dimension_numbers = #tpu.dot_dimension_numbers<[1], [0], [0], [1], [0, 0, 1, 1], [], []>} : vector<16x8xf32>, vector<8x32xf32>, vector<16x32xf32> -> vector<16x32xf32>
    %141 = arith.addf %109, %140 : vector<16x32xf32>
    %142 = vector.broadcast %14 : vector<1x32xf32> to vector<16x32xf32>
    %143 = arith.addf %141, %142 : vector<16x32xf32>
    %144 = arith.addf %3, %143 : vector<16x32xf32>
    %c2 = arith.constant 2 : index
    %c0_49 = arith.constant 0 : index
    %145 = vector.load %arg5[%c2, %c0_49] : memref<48x128xf32, #tpu.memory_space<vmem>>, vector<1x32xf32>
    %c3 = arith.constant 3 : index
    %c0_50 = arith.constant 0 : index
    %146 = vector.load %arg5[%c3, %c0_50] : memref<48x128xf32, #tpu.memory_space<vmem>>, vector<1x32xf32>
    %cst_51 = arith.constant dense<0.000000e+00> : vector<16xf32>
    %147 = vector.multi_reduction <add>, %144, %cst_51 [1] : vector<16x32xf32> to vector<16xf32>
    %148 = vector.shape_cast %147 : vector<16xf32> to vector<16x1xf32>
    %cst_52 = arith.constant 3.200000e+01 : f32
    %149 = vector.broadcast %cst_52 : f32 to vector<16x1xf32>
    %150 = arith.divf %148, %149 : vector<16x1xf32>
    %151 = vector.broadcast %150 : vector<16x1xf32> to vector<16x32xf32>
    %152 = arith.subf %144, %151 : vector<16x32xf32>
    %153 = arith.mulf %152, %152 : vector<16x32xf32>
    %cst_53 = arith.constant dense<0.000000e+00> : vector<16xf32>
    %154 = vector.multi_reduction <add>, %153, %cst_53 [1] : vector<16x32xf32> to vector<16xf32>
    %155 = vector.shape_cast %154 : vector<16xf32> to vector<16x1xf32>
    %cst_54 = arith.constant 3.200000e+01 : f32
    %156 = vector.broadcast %cst_54 : f32 to vector<16x1xf32>
    %157 = arith.divf %155, %156 : vector<16x1xf32>
    %158 = vector.broadcast %150 : vector<16x1xf32> to vector<16x32xf32>
    %159 = arith.subf %144, %158 : vector<16x32xf32>
    %cst_55 = arith.constant 9.99999974E-6 : f32
    %160 = vector.broadcast %cst_55 : f32 to vector<16x1xf32>
    %161 = arith.addf %157, %160 : vector<16x1xf32>
    %162 = math.rsqrt %161 : vector<16x1xf32>
    %163 = vector.broadcast %162 : vector<16x1xf32> to vector<16x32xf32>
    %164 = arith.mulf %159, %163 : vector<16x32xf32>
    %165 = vector.broadcast %145 : vector<1x32xf32> to vector<16x32xf32>
    %166 = arith.mulf %164, %165 : vector<16x32xf32>
    %167 = vector.broadcast %146 : vector<1x32xf32> to vector<16x32xf32>
    %168 = arith.addf %166, %167 : vector<16x32xf32>
    %c64 = arith.constant 64 : index
    %c0_56 = arith.constant 0 : index
    %169 = vector.load %arg4[%c64, %c0_56] : memref<864x128xf32, #tpu.memory_space<vmem>>, vector<32x64xf32>
    %c4 = arith.constant 4 : index
    %c0_57 = arith.constant 0 : index
    %170 = vector.load %arg5[%c4, %c0_57] : memref<48x128xf32, #tpu.memory_space<vmem>>, vector<1x64xf32>
    %c96 = arith.constant 96 : index
    %c0_58 = arith.constant 0 : index
    %171 = vector.load %arg4[%c96, %c0_58] : memref<864x128xf32, #tpu.memory_space<vmem>>, vector<64x32xf32>
    %c5 = arith.constant 5 : index
    %c0_59 = arith.constant 0 : index
    %172 = vector.load %arg5[%c5, %c0_59] : memref<48x128xf32, #tpu.memory_space<vmem>>, vector<1x32xf32>
    %cst_60 = arith.constant dense<0.000000e+00> : vector<16x64xf32>
    %173 = tpu.matmul %168, %169, %cst_60 {dimension_numbers = #tpu.dot_dimension_numbers<[1], [0], [0], [1], [0, 0, 1, 1], [], []>} : vector<16x32xf32>, vector<32x64xf32>, vector<16x64xf32> -> vector<16x64xf32>
    %174 = vector.broadcast %170 : vector<1x64xf32> to vector<16x64xf32>
    %175 = arith.addf %173, %174 : vector<16x64xf32>
    %cst_61 = arith.constant 0.000000e+00 : f32
    %176 = vector.broadcast %cst_61 : f32 to vector<16x64xf32>
    %177 = arith.maximumf %175, %176 : vector<16x64xf32>
    %cst_62 = arith.constant dense<0.000000e+00> : vector<16x32xf32>
    %178 = tpu.matmul %177, %171, %cst_62 {dimension_numbers = #tpu.dot_dimension_numbers<[1], [0], [0], [1], [0, 0, 1, 1], [], []>} : vector<16x64xf32>, vector<64x32xf32>, vector<16x32xf32> -> vector<16x32xf32>
    %179 = vector.broadcast %172 : vector<1x32xf32> to vector<16x32xf32>
    %180 = arith.addf %178, %179 : vector<16x32xf32>
    %181 = arith.addf %168, %180 : vector<16x32xf32>
    %c6 = arith.constant 6 : index
    %c0_63 = arith.constant 0 : index
    %182 = vector.load %arg5[%c6, %c0_63] : memref<48x128xf32, #tpu.memory_space<vmem>>, vector<1x32xf32>
    %c7 = arith.constant 7 : index
    %c0_64 = arith.constant 0 : index
    %183 = vector.load %arg5[%c7, %c0_64] : memref<48x128xf32, #tpu.memory_space<vmem>>, vector<1x32xf32>
    %cst_65 = arith.constant dense<0.000000e+00> : vector<16xf32>
    %184 = vector.multi_reduction <add>, %181, %cst_65 [1] : vector<16x32xf32> to vector<16xf32>
    %185 = vector.shape_cast %184 : vector<16xf32> to vector<16x1xf32>
    %cst_66 = arith.constant 3.200000e+01 : f32
    %186 = vector.broadcast %cst_66 : f32 to vector<16x1xf32>
    %187 = arith.divf %185, %186 : vector<16x1xf32>
    %188 = vector.broadcast %187 : vector<16x1xf32> to vector<16x32xf32>
    %189 = arith.subf %181, %188 : vector<16x32xf32>
    %190 = arith.mulf %189, %189 : vector<16x32xf32>
    %cst_67 = arith.constant dense<0.000000e+00> : vector<16xf32>
    %191 = vector.multi_reduction <add>, %190, %cst_67 [1] : vector<16x32xf32> to vector<16xf32>
    %192 = vector.shape_cast %191 : vector<16xf32> to vector<16x1xf32>
    %cst_68 = arith.constant 3.200000e+01 : f32
    %193 = vector.broadcast %cst_68 : f32 to vector<16x1xf32>
    %194 = arith.divf %192, %193 : vector<16x1xf32>
    %195 = vector.broadcast %187 : vector<16x1xf32> to vector<16x32xf32>
    %196 = arith.subf %181, %195 : vector<16x32xf32>
    %cst_69 = arith.constant 9.99999974E-6 : f32
    %197 = vector.broadcast %cst_69 : f32 to vector<16x1xf32>
    %198 = arith.addf %194, %197 : vector<16x1xf32>
    %199 = math.rsqrt %198 : vector<16x1xf32>
    %200 = vector.broadcast %199 : vector<16x1xf32> to vector<16x32xf32>
    %201 = arith.mulf %196, %200 : vector<16x32xf32>
    %202 = vector.broadcast %182 : vector<1x32xf32> to vector<16x32xf32>
    %203 = arith.mulf %201, %202 : vector<16x32xf32>
    %204 = vector.broadcast %183 : vector<1x32xf32> to vector<16x32xf32>
    %205 = arith.addf %203, %204 : vector<16x32xf32>
    %c160 = arith.constant 160 : index
    %c0_70 = arith.constant 0 : index
    %206 = vector.load %arg4[%c160, %c0_70] : memref<864x128xf32, #tpu.memory_space<vmem>>, vector<32x96xf32>
    %c8 = arith.constant 8 : index
    %c0_71 = arith.constant 0 : index
    %207 = vector.load %arg5[%c8, %c0_71] : memref<48x128xf32, #tpu.memory_space<vmem>>, vector<1x96xf32>
    %208 = vector.extract_strided_slice %206 {offsets = [0, 0], sizes = [32, 32], strides = [1, 1]} : vector<32x96xf32> to vector<32x32xf32>
    %209 = vector.extract_strided_slice %207 {offsets = [0, 0], sizes = [1, 32], strides = [1, 1]} : vector<1x96xf32> to vector<1x32xf32>
    %210 = vector.extract_strided_slice %206 {offsets = [0, 32], sizes = [32, 32], strides = [1, 1]} : vector<32x96xf32> to vector<32x32xf32>
    %211 = vector.extract_strided_slice %207 {offsets = [0, 32], sizes = [1, 32], strides = [1, 1]} : vector<1x96xf32> to vector<1x32xf32>
    %212 = vector.extract_strided_slice %206 {offsets = [0, 64], sizes = [32, 32], strides = [1, 1]} : vector<32x96xf32> to vector<32x32xf32>
    %213 = vector.extract_strided_slice %207 {offsets = [0, 64], sizes = [1, 32], strides = [1, 1]} : vector<1x96xf32> to vector<1x32xf32>
    %c192 = arith.constant 192 : index
    %c0_72 = arith.constant 0 : index
    %214 = vector.load %arg4[%c192, %c0_72] : memref<864x128xf32, #tpu.memory_space<vmem>>, vector<32x32xf32>
    %c9 = arith.constant 9 : index
    %c0_73 = arith.constant 0 : index
    %215 = vector.load %arg5[%c9, %c0_73] : memref<48x128xf32, #tpu.memory_space<vmem>>, vector<1x32xf32>
    %216 = vector.extract_strided_slice %208 {offsets = [0, 0], sizes = [32, 8], strides = [1, 1]} : vector<32x32xf32> to vector<32x8xf32>
    %cst_74 = arith.constant dense<0.000000e+00> : vector<16x8xf32>
    %217 = tpu.matmul %205, %216, %cst_74 {dimension_numbers = #tpu.dot_dimension_numbers<[1], [0], [0], [1], [0, 0, 1, 1], [], []>} : vector<16x32xf32>, vector<32x8xf32>, vector<16x8xf32> -> vector<16x8xf32>
    %218 = vector.extract_strided_slice %209 {offsets = [0, 0], sizes = [1, 8], strides = [1, 1]} : vector<1x32xf32> to vector<1x8xf32>
    %219 = vector.broadcast %218 : vector<1x8xf32> to vector<16x8xf32>
    %220 = arith.addf %217, %219 : vector<16x8xf32>
    %221 = vector.extract_strided_slice %210 {offsets = [0, 0], sizes = [32, 8], strides = [1, 1]} : vector<32x32xf32> to vector<32x8xf32>
    %cst_75 = arith.constant dense<0.000000e+00> : vector<16x8xf32>
    %222 = tpu.matmul %205, %221, %cst_75 {dimension_numbers = #tpu.dot_dimension_numbers<[1], [0], [0], [1], [0, 0, 1, 1], [], []>} : vector<16x32xf32>, vector<32x8xf32>, vector<16x8xf32> -> vector<16x8xf32>
    %223 = vector.extract_strided_slice %211 {offsets = [0, 0], sizes = [1, 8], strides = [1, 1]} : vector<1x32xf32> to vector<1x8xf32>
    %224 = vector.broadcast %223 : vector<1x8xf32> to vector<16x8xf32>
    %225 = arith.addf %222, %224 : vector<16x8xf32>
    %226 = vector.extract_strided_slice %212 {offsets = [0, 0], sizes = [32, 8], strides = [1, 1]} : vector<32x32xf32> to vector<32x8xf32>
    %cst_76 = arith.constant dense<0.000000e+00> : vector<16x8xf32>
    %227 = tpu.matmul %205, %226, %cst_76 {dimension_numbers = #tpu.dot_dimension_numbers<[1], [0], [0], [1], [0, 0, 1, 1], [], []>} : vector<16x32xf32>, vector<32x8xf32>, vector<16x8xf32> -> vector<16x8xf32>
    %228 = vector.extract_strided_slice %213 {offsets = [0, 0], sizes = [1, 8], strides = [1, 1]} : vector<1x32xf32> to vector<1x8xf32>
    %229 = vector.broadcast %228 : vector<1x8xf32> to vector<16x8xf32>
    %230 = arith.addf %227, %229 : vector<16x8xf32>
    %cst_77 = arith.constant dense<0.000000e+00> : vector<16x16xf32>
    %231 = tpu.matmul %220, %225, %cst_77 {dimension_numbers = #tpu.dot_dimension_numbers<[1], [1], [0], [0], [0, 0, 1, 0], [], []>} : vector<16x8xf32>, vector<16x8xf32>, vector<16x16xf32> -> vector<16x16xf32>
    %cst_78 = arith.constant 0.353553385 : f32
    %232 = vector.broadcast %cst_78 : f32 to vector<16x16xf32>
    %233 = arith.mulf %231, %232 : vector<16x16xf32>
    %234 = arith.addf %233, %0 : vector<16x16xf32>
    %cst_79 = arith.constant dense<0xFF800000> : vector<16xf32>
    %235 = vector.multi_reduction <maximumf>, %234, %cst_79 [1] : vector<16x16xf32> to vector<16xf32>
    %236 = vector.shape_cast %235 : vector<16xf32> to vector<16x1xf32>
    %237 = vector.broadcast %236 : vector<16x1xf32> to vector<16x16xf32>
    %238 = arith.subf %234, %237 : vector<16x16xf32>
    %239 = math.exp %238 : vector<16x16xf32>
    %cst_80 = arith.constant dense<0.000000e+00> : vector<16xf32>
    %240 = vector.multi_reduction <add>, %239, %cst_80 [1] : vector<16x16xf32> to vector<16xf32>
    %241 = vector.shape_cast %240 : vector<16xf32> to vector<16x1xf32>
    %242 = vector.broadcast %241 : vector<16x1xf32> to vector<16x16xf32>
    %243 = arith.divf %239, %242 : vector<16x16xf32>
    %cst_81 = arith.constant dense<0.000000e+00> : vector<16x8xf32>
    %244 = tpu.matmul %243, %230, %cst_81 {dimension_numbers = #tpu.dot_dimension_numbers<[1], [0], [0], [1], [0, 0, 1, 1], [], []>} : vector<16x16xf32>, vector<16x8xf32>, vector<16x8xf32> -> vector<16x8xf32>
    %245 = vector.extract_strided_slice %214 {offsets = [0, 0], sizes = [8, 32], strides = [1, 1]} : vector<32x32xf32> to vector<8x32xf32>
    %cst_82 = arith.constant dense<0.000000e+00> : vector<16x32xf32>
    %246 = tpu.matmul %244, %245, %cst_82 {dimension_numbers = #tpu.dot_dimension_numbers<[1], [0], [0], [1], [0, 0, 1, 1], [], []>} : vector<16x8xf32>, vector<8x32xf32>, vector<16x32xf32> -> vector<16x32xf32>
    %247 = vector.extract_strided_slice %208 {offsets = [0, 8], sizes = [32, 8], strides = [1, 1]} : vector<32x32xf32> to vector<32x8xf32>
    %cst_83 = arith.constant dense<0.000000e+00> : vector<16x8xf32>
    %248 = tpu.matmul %205, %247, %cst_83 {dimension_numbers = #tpu.dot_dimension_numbers<[1], [0], [0], [1], [0, 0, 1, 1], [], []>} : vector<16x32xf32>, vector<32x8xf32>, vector<16x8xf32> -> vector<16x8xf32>
    %249 = vector.extract_strided_slice %209 {offsets = [0, 8], sizes = [1, 8], strides = [1, 1]} : vector<1x32xf32> to vector<1x8xf32>
    %250 = vector.broadcast %249 : vector<1x8xf32> to vector<16x8xf32>
    %251 = arith.addf %248, %250 : vector<16x8xf32>
    %252 = vector.extract_strided_slice %210 {offsets = [0, 8], sizes = [32, 8], strides = [1, 1]} : vector<32x32xf32> to vector<32x8xf32>
    %cst_84 = arith.constant dense<0.000000e+00> : vector<16x8xf32>
    %253 = tpu.matmul %205, %252, %cst_84 {dimension_numbers = #tpu.dot_dimension_numbers<[1], [0], [0], [1], [0, 0, 1, 1], [], []>} : vector<16x32xf32>, vector<32x8xf32>, vector<16x8xf32> -> vector<16x8xf32>
    %254 = vector.extract_strided_slice %211 {offsets = [0, 8], sizes = [1, 8], strides = [1, 1]} : vector<1x32xf32> to vector<1x8xf32>
    %255 = vector.broadcast %254 : vector<1x8xf32> to vector<16x8xf32>
    %256 = arith.addf %253, %255 : vector<16x8xf32>
    %257 = vector.extract_strided_slice %212 {offsets = [0, 8], sizes = [32, 8], strides = [1, 1]} : vector<32x32xf32> to vector<32x8xf32>
    %cst_85 = arith.constant dense<0.000000e+00> : vector<16x8xf32>
    %258 = tpu.matmul %205, %257, %cst_85 {dimension_numbers = #tpu.dot_dimension_numbers<[1], [0], [0], [1], [0, 0, 1, 1], [], []>} : vector<16x32xf32>, vector<32x8xf32>, vector<16x8xf32> -> vector<16x8xf32>
    %259 = vector.extract_strided_slice %213 {offsets = [0, 8], sizes = [1, 8], strides = [1, 1]} : vector<1x32xf32> to vector<1x8xf32>
    %260 = vector.broadcast %259 : vector<1x8xf32> to vector<16x8xf32>
    %261 = arith.addf %258, %260 : vector<16x8xf32>
    %cst_86 = arith.constant dense<0.000000e+00> : vector<16x16xf32>
    %262 = tpu.matmul %251, %256, %cst_86 {dimension_numbers = #tpu.dot_dimension_numbers<[1], [1], [0], [0], [0, 0, 1, 0], [], []>} : vector<16x8xf32>, vector<16x8xf32>, vector<16x16xf32> -> vector<16x16xf32>
    %cst_87 = arith.constant 0.353553385 : f32
    %263 = vector.broadcast %cst_87 : f32 to vector<16x16xf32>
    %264 = arith.mulf %262, %263 : vector<16x16xf32>
    %265 = arith.addf %264, %0 : vector<16x16xf32>
    %cst_88 = arith.constant dense<0xFF800000> : vector<16xf32>
    %266 = vector.multi_reduction <maximumf>, %265, %cst_88 [1] : vector<16x16xf32> to vector<16xf32>
    %267 = vector.shape_cast %266 : vector<16xf32> to vector<16x1xf32>
    %268 = vector.broadcast %267 : vector<16x1xf32> to vector<16x16xf32>
    %269 = arith.subf %265, %268 : vector<16x16xf32>
    %270 = math.exp %269 : vector<16x16xf32>
    %cst_89 = arith.constant dense<0.000000e+00> : vector<16xf32>
    %271 = vector.multi_reduction <add>, %270, %cst_89 [1] : vector<16x16xf32> to vector<16xf32>
    %272 = vector.shape_cast %271 : vector<16xf32> to vector<16x1xf32>
    %273 = vector.broadcast %272 : vector<16x1xf32> to vector<16x16xf32>
    %274 = arith.divf %270, %273 : vector<16x16xf32>
    %cst_90 = arith.constant dense<0.000000e+00> : vector<16x8xf32>
    %275 = tpu.matmul %274, %261, %cst_90 {dimension_numbers = #tpu.dot_dimension_numbers<[1], [0], [0], [1], [0, 0, 1, 1], [], []>} : vector<16x16xf32>, vector<16x8xf32>, vector<16x8xf32> -> vector<16x8xf32>
    %276 = vector.extract_strided_slice %214 {offsets = [8, 0], sizes = [8, 32], strides = [1, 1]} : vector<32x32xf32> to vector<8x32xf32>
    %cst_91 = arith.constant dense<0.000000e+00> : vector<16x32xf32>
    %277 = tpu.matmul %275, %276, %cst_91 {dimension_numbers = #tpu.dot_dimension_numbers<[1], [0], [0], [1], [0, 0, 1, 1], [], []>} : vector<16x8xf32>, vector<8x32xf32>, vector<16x32xf32> -> vector<16x32xf32>
    %278 = arith.addf %246, %277 : vector<16x32xf32>
    %279 = vector.extract_strided_slice %208 {offsets = [0, 16], sizes = [32, 8], strides = [1, 1]} : vector<32x32xf32> to vector<32x8xf32>
    %cst_92 = arith.constant dense<0.000000e+00> : vector<16x8xf32>
    %280 = tpu.matmul %205, %279, %cst_92 {dimension_numbers = #tpu.dot_dimension_numbers<[1], [0], [0], [1], [0, 0, 1, 1], [], []>} : vector<16x32xf32>, vector<32x8xf32>, vector<16x8xf32> -> vector<16x8xf32>
    %281 = vector.extract_strided_slice %209 {offsets = [0, 16], sizes = [1, 8], strides = [1, 1]} : vector<1x32xf32> to vector<1x8xf32>
    %282 = vector.broadcast %281 : vector<1x8xf32> to vector<16x8xf32>
    %283 = arith.addf %280, %282 : vector<16x8xf32>
    %284 = vector.extract_strided_slice %210 {offsets = [0, 16], sizes = [32, 8], strides = [1, 1]} : vector<32x32xf32> to vector<32x8xf32>
    %cst_93 = arith.constant dense<0.000000e+00> : vector<16x8xf32>
    %285 = tpu.matmul %205, %284, %cst_93 {dimension_numbers = #tpu.dot_dimension_numbers<[1], [0], [0], [1], [0, 0, 1, 1], [], []>} : vector<16x32xf32>, vector<32x8xf32>, vector<16x8xf32> -> vector<16x8xf32>
    %286 = vector.extract_strided_slice %211 {offsets = [0, 16], sizes = [1, 8], strides = [1, 1]} : vector<1x32xf32> to vector<1x8xf32>
    %287 = vector.broadcast %286 : vector<1x8xf32> to vector<16x8xf32>
    %288 = arith.addf %285, %287 : vector<16x8xf32>
    %289 = vector.extract_strided_slice %212 {offsets = [0, 16], sizes = [32, 8], strides = [1, 1]} : vector<32x32xf32> to vector<32x8xf32>
    %cst_94 = arith.constant dense<0.000000e+00> : vector<16x8xf32>
    %290 = tpu.matmul %205, %289, %cst_94 {dimension_numbers = #tpu.dot_dimension_numbers<[1], [0], [0], [1], [0, 0, 1, 1], [], []>} : vector<16x32xf32>, vector<32x8xf32>, vector<16x8xf32> -> vector<16x8xf32>
    %291 = vector.extract_strided_slice %213 {offsets = [0, 16], sizes = [1, 8], strides = [1, 1]} : vector<1x32xf32> to vector<1x8xf32>
    %292 = vector.broadcast %291 : vector<1x8xf32> to vector<16x8xf32>
    %293 = arith.addf %290, %292 : vector<16x8xf32>
    %cst_95 = arith.constant dense<0.000000e+00> : vector<16x16xf32>
    %294 = tpu.matmul %283, %288, %cst_95 {dimension_numbers = #tpu.dot_dimension_numbers<[1], [1], [0], [0], [0, 0, 1, 0], [], []>} : vector<16x8xf32>, vector<16x8xf32>, vector<16x16xf32> -> vector<16x16xf32>
    %cst_96 = arith.constant 0.353553385 : f32
    %295 = vector.broadcast %cst_96 : f32 to vector<16x16xf32>
    %296 = arith.mulf %294, %295 : vector<16x16xf32>
    %297 = arith.addf %296, %0 : vector<16x16xf32>
    %cst_97 = arith.constant dense<0xFF800000> : vector<16xf32>
    %298 = vector.multi_reduction <maximumf>, %297, %cst_97 [1] : vector<16x16xf32> to vector<16xf32>
    %299 = vector.shape_cast %298 : vector<16xf32> to vector<16x1xf32>
    %300 = vector.broadcast %299 : vector<16x1xf32> to vector<16x16xf32>
    %301 = arith.subf %297, %300 : vector<16x16xf32>
    %302 = math.exp %301 : vector<16x16xf32>
    %cst_98 = arith.constant dense<0.000000e+00> : vector<16xf32>
    %303 = vector.multi_reduction <add>, %302, %cst_98 [1] : vector<16x16xf32> to vector<16xf32>
    %304 = vector.shape_cast %303 : vector<16xf32> to vector<16x1xf32>
    %305 = vector.broadcast %304 : vector<16x1xf32> to vector<16x16xf32>
    %306 = arith.divf %302, %305 : vector<16x16xf32>
    %cst_99 = arith.constant dense<0.000000e+00> : vector<16x8xf32>
    %307 = tpu.matmul %306, %293, %cst_99 {dimension_numbers = #tpu.dot_dimension_numbers<[1], [0], [0], [1], [0, 0, 1, 1], [], []>} : vector<16x16xf32>, vector<16x8xf32>, vector<16x8xf32> -> vector<16x8xf32>
    %308 = vector.extract_strided_slice %214 {offsets = [16, 0], sizes = [8, 32], strides = [1, 1]} : vector<32x32xf32> to vector<8x32xf32>
    %cst_100 = arith.constant dense<0.000000e+00> : vector<16x32xf32>
    %309 = tpu.matmul %307, %308, %cst_100 {dimension_numbers = #tpu.dot_dimension_numbers<[1], [0], [0], [1], [0, 0, 1, 1], [], []>} : vector<16x8xf32>, vector<8x32xf32>, vector<16x32xf32> -> vector<16x32xf32>
    %310 = arith.addf %278, %309 : vector<16x32xf32>
    %311 = vector.extract_strided_slice %208 {offsets = [0, 24], sizes = [32, 8], strides = [1, 1]} : vector<32x32xf32> to vector<32x8xf32>
    %cst_101 = arith.constant dense<0.000000e+00> : vector<16x8xf32>
    %312 = tpu.matmul %205, %311, %cst_101 {dimension_numbers = #tpu.dot_dimension_numbers<[1], [0], [0], [1], [0, 0, 1, 1], [], []>} : vector<16x32xf32>, vector<32x8xf32>, vector<16x8xf32> -> vector<16x8xf32>
    %313 = vector.extract_strided_slice %209 {offsets = [0, 24], sizes = [1, 8], strides = [1, 1]} : vector<1x32xf32> to vector<1x8xf32>
    %314 = vector.broadcast %313 : vector<1x8xf32> to vector<16x8xf32>
    %315 = arith.addf %312, %314 : vector<16x8xf32>
    %316 = vector.extract_strided_slice %210 {offsets = [0, 24], sizes = [32, 8], strides = [1, 1]} : vector<32x32xf32> to vector<32x8xf32>
    %cst_102 = arith.constant dense<0.000000e+00> : vector<16x8xf32>
    %317 = tpu.matmul %205, %316, %cst_102 {dimension_numbers = #tpu.dot_dimension_numbers<[1], [0], [0], [1], [0, 0, 1, 1], [], []>} : vector<16x32xf32>, vector<32x8xf32>, vector<16x8xf32> -> vector<16x8xf32>
    %318 = vector.extract_strided_slice %211 {offsets = [0, 24], sizes = [1, 8], strides = [1, 1]} : vector<1x32xf32> to vector<1x8xf32>
    %319 = vector.broadcast %318 : vector<1x8xf32> to vector<16x8xf32>
    %320 = arith.addf %317, %319 : vector<16x8xf32>
    %321 = vector.extract_strided_slice %212 {offsets = [0, 24], sizes = [32, 8], strides = [1, 1]} : vector<32x32xf32> to vector<32x8xf32>
    %cst_103 = arith.constant dense<0.000000e+00> : vector<16x8xf32>
    %322 = tpu.matmul %205, %321, %cst_103 {dimension_numbers = #tpu.dot_dimension_numbers<[1], [0], [0], [1], [0, 0, 1, 1], [], []>} : vector<16x32xf32>, vector<32x8xf32>, vector<16x8xf32> -> vector<16x8xf32>
    %323 = vector.extract_strided_slice %213 {offsets = [0, 24], sizes = [1, 8], strides = [1, 1]} : vector<1x32xf32> to vector<1x8xf32>
    %324 = vector.broadcast %323 : vector<1x8xf32> to vector<16x8xf32>
    %325 = arith.addf %322, %324 : vector<16x8xf32>
    %cst_104 = arith.constant dense<0.000000e+00> : vector<16x16xf32>
    %326 = tpu.matmul %315, %320, %cst_104 {dimension_numbers = #tpu.dot_dimension_numbers<[1], [1], [0], [0], [0, 0, 1, 0], [], []>} : vector<16x8xf32>, vector<16x8xf32>, vector<16x16xf32> -> vector<16x16xf32>
    %cst_105 = arith.constant 0.353553385 : f32
    %327 = vector.broadcast %cst_105 : f32 to vector<16x16xf32>
    %328 = arith.mulf %326, %327 : vector<16x16xf32>
    %329 = arith.addf %328, %0 : vector<16x16xf32>
    %cst_106 = arith.constant dense<0xFF800000> : vector<16xf32>
    %330 = vector.multi_reduction <maximumf>, %329, %cst_106 [1] : vector<16x16xf32> to vector<16xf32>
    %331 = vector.shape_cast %330 : vector<16xf32> to vector<16x1xf32>
    %332 = vector.broadcast %331 : vector<16x1xf32> to vector<16x16xf32>
    %333 = arith.subf %329, %332 : vector<16x16xf32>
    %334 = math.exp %333 : vector<16x16xf32>
    %cst_107 = arith.constant dense<0.000000e+00> : vector<16xf32>
    %335 = vector.multi_reduction <add>, %334, %cst_107 [1] : vector<16x16xf32> to vector<16xf32>
    %336 = vector.shape_cast %335 : vector<16xf32> to vector<16x1xf32>
    %337 = vector.broadcast %336 : vector<16x1xf32> to vector<16x16xf32>
    %338 = arith.divf %334, %337 : vector<16x16xf32>
    %cst_108 = arith.constant dense<0.000000e+00> : vector<16x8xf32>
    %339 = tpu.matmul %338, %325, %cst_108 {dimension_numbers = #tpu.dot_dimension_numbers<[1], [0], [0], [1], [0, 0, 1, 1], [], []>} : vector<16x16xf32>, vector<16x8xf32>, vector<16x8xf32> -> vector<16x8xf32>
    %340 = vector.extract_strided_slice %214 {offsets = [24, 0], sizes = [8, 32], strides = [1, 1]} : vector<32x32xf32> to vector<8x32xf32>
    %cst_109 = arith.constant dense<0.000000e+00> : vector<16x32xf32>
    %341 = tpu.matmul %339, %340, %cst_109 {dimension_numbers = #tpu.dot_dimension_numbers<[1], [0], [0], [1], [0, 0, 1, 1], [], []>} : vector<16x8xf32>, vector<8x32xf32>, vector<16x32xf32> -> vector<16x32xf32>
    %342 = arith.addf %310, %341 : vector<16x32xf32>
    %343 = vector.broadcast %215 : vector<1x32xf32> to vector<16x32xf32>
    %344 = arith.addf %342, %343 : vector<16x32xf32>
    %345 = arith.addf %205, %344 : vector<16x32xf32>
    %c10 = arith.constant 10 : index
    %c0_110 = arith.constant 0 : index
    %346 = vector.load %arg5[%c10, %c0_110] : memref<48x128xf32, #tpu.memory_space<vmem>>, vector<1x32xf32>
    %c11 = arith.constant 11 : index
    %c0_111 = arith.constant 0 : index
    %347 = vector.load %arg5[%c11, %c0_111] : memref<48x128xf32, #tpu.memory_space<vmem>>, vector<1x32xf32>
    %cst_112 = arith.constant dense<0.000000e+00> : vector<16xf32>
    %348 = vector.multi_reduction <add>, %345, %cst_112 [1] : vector<16x32xf32> to vector<16xf32>
    %349 = vector.shape_cast %348 : vector<16xf32> to vector<16x1xf32>
    %cst_113 = arith.constant 3.200000e+01 : f32
    %350 = vector.broadcast %cst_113 : f32 to vector<16x1xf32>
    %351 = arith.divf %349, %350 : vector<16x1xf32>
    %352 = vector.broadcast %351 : vector<16x1xf32> to vector<16x32xf32>
    %353 = arith.subf %345, %352 : vector<16x32xf32>
    %354 = arith.mulf %353, %353 : vector<16x32xf32>
    %cst_114 = arith.constant dense<0.000000e+00> : vector<16xf32>
    %355 = vector.multi_reduction <add>, %354, %cst_114 [1] : vector<16x32xf32> to vector<16xf32>
    %356 = vector.shape_cast %355 : vector<16xf32> to vector<16x1xf32>
    %cst_115 = arith.constant 3.200000e+01 : f32
    %357 = vector.broadcast %cst_115 : f32 to vector<16x1xf32>
    %358 = arith.divf %356, %357 : vector<16x1xf32>
    %359 = vector.broadcast %351 : vector<16x1xf32> to vector<16x32xf32>
    %360 = arith.subf %345, %359 : vector<16x32xf32>
    %cst_116 = arith.constant 9.99999974E-6 : f32
    %361 = vector.broadcast %cst_116 : f32 to vector<16x1xf32>
    %362 = arith.addf %358, %361 : vector<16x1xf32>
    %363 = math.rsqrt %362 : vector<16x1xf32>
    %364 = vector.broadcast %363 : vector<16x1xf32> to vector<16x32xf32>
    %365 = arith.mulf %360, %364 : vector<16x32xf32>
    %366 = vector.broadcast %346 : vector<1x32xf32> to vector<16x32xf32>
    %367 = arith.mulf %365, %366 : vector<16x32xf32>
    %368 = vector.broadcast %347 : vector<1x32xf32> to vector<16x32xf32>
    %369 = arith.addf %367, %368 : vector<16x32xf32>
    %c224 = arith.constant 224 : index
    %c0_117 = arith.constant 0 : index
    %370 = vector.load %arg4[%c224, %c0_117] : memref<864x128xf32, #tpu.memory_space<vmem>>, vector<32x64xf32>
    %c12 = arith.constant 12 : index
    %c0_118 = arith.constant 0 : index
    %371 = vector.load %arg5[%c12, %c0_118] : memref<48x128xf32, #tpu.memory_space<vmem>>, vector<1x64xf32>
    %c256 = arith.constant 256 : index
    %c0_119 = arith.constant 0 : index
    %372 = vector.load %arg4[%c256, %c0_119] : memref<864x128xf32, #tpu.memory_space<vmem>>, vector<64x32xf32>
    %c13 = arith.constant 13 : index
    %c0_120 = arith.constant 0 : index
    %373 = vector.load %arg5[%c13, %c0_120] : memref<48x128xf32, #tpu.memory_space<vmem>>, vector<1x32xf32>
    %cst_121 = arith.constant dense<0.000000e+00> : vector<16x64xf32>
    %374 = tpu.matmul %369, %370, %cst_121 {dimension_numbers = #tpu.dot_dimension_numbers<[1], [0], [0], [1], [0, 0, 1, 1], [], []>} : vector<16x32xf32>, vector<32x64xf32>, vector<16x64xf32> -> vector<16x64xf32>
    %375 = vector.broadcast %371 : vector<1x64xf32> to vector<16x64xf32>
    %376 = arith.addf %374, %375 : vector<16x64xf32>
    %cst_122 = arith.constant 0.000000e+00 : f32
    %377 = vector.broadcast %cst_122 : f32 to vector<16x64xf32>
    %378 = arith.maximumf %376, %377 : vector<16x64xf32>
    %cst_123 = arith.constant dense<0.000000e+00> : vector<16x32xf32>
    %379 = tpu.matmul %378, %372, %cst_123 {dimension_numbers = #tpu.dot_dimension_numbers<[1], [0], [0], [1], [0, 0, 1, 1], [], []>} : vector<16x64xf32>, vector<64x32xf32>, vector<16x32xf32> -> vector<16x32xf32>
    %380 = vector.broadcast %373 : vector<1x32xf32> to vector<16x32xf32>
    %381 = arith.addf %379, %380 : vector<16x32xf32>
    %382 = arith.addf %369, %381 : vector<16x32xf32>
    %c14 = arith.constant 14 : index
    %c0_124 = arith.constant 0 : index
    %383 = vector.load %arg5[%c14, %c0_124] : memref<48x128xf32, #tpu.memory_space<vmem>>, vector<1x32xf32>
    %c15 = arith.constant 15 : index
    %c0_125 = arith.constant 0 : index
    %384 = vector.load %arg5[%c15, %c0_125] : memref<48x128xf32, #tpu.memory_space<vmem>>, vector<1x32xf32>
    %cst_126 = arith.constant dense<0.000000e+00> : vector<16xf32>
    %385 = vector.multi_reduction <add>, %382, %cst_126 [1] : vector<16x32xf32> to vector<16xf32>
    %386 = vector.shape_cast %385 : vector<16xf32> to vector<16x1xf32>
    %cst_127 = arith.constant 3.200000e+01 : f32
    %387 = vector.broadcast %cst_127 : f32 to vector<16x1xf32>
    %388 = arith.divf %386, %387 : vector<16x1xf32>
    %389 = vector.broadcast %388 : vector<16x1xf32> to vector<16x32xf32>
    %390 = arith.subf %382, %389 : vector<16x32xf32>
    %391 = arith.mulf %390, %390 : vector<16x32xf32>
    %cst_128 = arith.constant dense<0.000000e+00> : vector<16xf32>
    %392 = vector.multi_reduction <add>, %391, %cst_128 [1] : vector<16x32xf32> to vector<16xf32>
    %393 = vector.shape_cast %392 : vector<16xf32> to vector<16x1xf32>
    %cst_129 = arith.constant 3.200000e+01 : f32
    %394 = vector.broadcast %cst_129 : f32 to vector<16x1xf32>
    %395 = arith.divf %393, %394 : vector<16x1xf32>
    %396 = vector.broadcast %388 : vector<16x1xf32> to vector<16x32xf32>
    %397 = arith.subf %382, %396 : vector<16x32xf32>
    %cst_130 = arith.constant 9.99999974E-6 : f32
    %398 = vector.broadcast %cst_130 : f32 to vector<16x1xf32>
    %399 = arith.addf %395, %398 : vector<16x1xf32>
    %400 = math.rsqrt %399 : vector<16x1xf32>
    %401 = vector.broadcast %400 : vector<16x1xf32> to vector<16x32xf32>
    %402 = arith.mulf %397, %401 : vector<16x32xf32>
    %403 = vector.broadcast %383 : vector<1x32xf32> to vector<16x32xf32>
    %404 = arith.mulf %402, %403 : vector<16x32xf32>
    %405 = vector.broadcast %384 : vector<1x32xf32> to vector<16x32xf32>
    %406 = arith.addf %404, %405 : vector<16x32xf32>
    %c42 = arith.constant 42 : index
    %c0_131 = arith.constant 0 : index
    %407 = vector.load %arg5[%c42, %c0_131] : memref<48x128xf32, #tpu.memory_space<vmem>>, vector<1x32xf32>
    %c43 = arith.constant 43 : index
    %c0_132 = arith.constant 0 : index
    %408 = vector.load %arg5[%c43, %c0_132] : memref<48x128xf32, #tpu.memory_space<vmem>>, vector<1x32xf32>
    %cst_133 = arith.constant dense<0.000000e+00> : vector<16xf32>
    %409 = vector.multi_reduction <add>, %406, %cst_133 [1] : vector<16x32xf32> to vector<16xf32>
    %410 = vector.shape_cast %409 : vector<16xf32> to vector<16x1xf32>
    %cst_134 = arith.constant 3.200000e+01 : f32
    %411 = vector.broadcast %cst_134 : f32 to vector<16x1xf32>
    %412 = arith.divf %410, %411 : vector<16x1xf32>
    %413 = vector.broadcast %412 : vector<16x1xf32> to vector<16x32xf32>
    %414 = arith.subf %406, %413 : vector<16x32xf32>
    %415 = arith.mulf %414, %414 : vector<16x32xf32>
    %cst_135 = arith.constant dense<0.000000e+00> : vector<16xf32>
    %416 = vector.multi_reduction <add>, %415, %cst_135 [1] : vector<16x32xf32> to vector<16xf32>
    %417 = vector.shape_cast %416 : vector<16xf32> to vector<16x1xf32>
    %cst_136 = arith.constant 3.200000e+01 : f32
    %418 = vector.broadcast %cst_136 : f32 to vector<16x1xf32>
    %419 = arith.divf %417, %418 : vector<16x1xf32>
    %420 = vector.broadcast %412 : vector<16x1xf32> to vector<16x32xf32>
    %421 = arith.subf %406, %420 : vector<16x32xf32>
    %cst_137 = arith.constant 9.99999974E-6 : f32
    %422 = vector.broadcast %cst_137 : f32 to vector<16x1xf32>
    %423 = arith.addf %419, %422 : vector<16x1xf32>
    %424 = math.rsqrt %423 : vector<16x1xf32>
    %425 = vector.broadcast %424 : vector<16x1xf32> to vector<16x32xf32>
    %426 = arith.mulf %421, %425 : vector<16x32xf32>
    %427 = vector.broadcast %407 : vector<1x32xf32> to vector<16x32xf32>
    %428 = arith.mulf %426, %427 : vector<16x32xf32>
    %429 = vector.broadcast %408 : vector<1x32xf32> to vector<16x32xf32>
    %430 = arith.addf %428, %429 : vector<16x32xf32>
    %c320 = arith.constant 320 : index
    %c0_138 = arith.constant 0 : index
    %431 = vector.load %arg4[%c320, %c0_138] : memref<864x128xf32, #tpu.memory_space<vmem>>, vector<32x96xf32>
    %c16_139 = arith.constant 16 : index
    %c0_140 = arith.constant 0 : index
    %432 = vector.load %arg5[%c16_139, %c0_140] : memref<48x128xf32, #tpu.memory_space<vmem>>, vector<1x96xf32>
    %433 = vector.extract_strided_slice %431 {offsets = [0, 0], sizes = [32, 32], strides = [1, 1]} : vector<32x96xf32> to vector<32x32xf32>
    %434 = vector.extract_strided_slice %432 {offsets = [0, 0], sizes = [1, 32], strides = [1, 1]} : vector<1x96xf32> to vector<1x32xf32>
    %435 = vector.extract_strided_slice %431 {offsets = [0, 32], sizes = [32, 32], strides = [1, 1]} : vector<32x96xf32> to vector<32x32xf32>
    %436 = vector.extract_strided_slice %432 {offsets = [0, 32], sizes = [1, 32], strides = [1, 1]} : vector<1x96xf32> to vector<1x32xf32>
    %437 = vector.extract_strided_slice %431 {offsets = [0, 64], sizes = [32, 32], strides = [1, 1]} : vector<32x96xf32> to vector<32x32xf32>
    %438 = vector.extract_strided_slice %432 {offsets = [0, 64], sizes = [1, 32], strides = [1, 1]} : vector<1x96xf32> to vector<1x32xf32>
    %c352 = arith.constant 352 : index
    %c0_141 = arith.constant 0 : index
    %439 = vector.load %arg4[%c352, %c0_141] : memref<864x128xf32, #tpu.memory_space<vmem>>, vector<32x32xf32>
    %c17 = arith.constant 17 : index
    %c0_142 = arith.constant 0 : index
    %440 = vector.load %arg5[%c17, %c0_142] : memref<48x128xf32, #tpu.memory_space<vmem>>, vector<1x32xf32>
    %441 = vector.extract_strided_slice %433 {offsets = [0, 0], sizes = [32, 8], strides = [1, 1]} : vector<32x32xf32> to vector<32x8xf32>
    %cst_143 = arith.constant dense<0.000000e+00> : vector<16x8xf32>
    %442 = tpu.matmul %4, %441, %cst_143 {dimension_numbers = #tpu.dot_dimension_numbers<[1], [0], [0], [1], [0, 0, 1, 1], [], []>} : vector<16x32xf32>, vector<32x8xf32>, vector<16x8xf32> -> vector<16x8xf32>
    %443 = vector.extract_strided_slice %434 {offsets = [0, 0], sizes = [1, 8], strides = [1, 1]} : vector<1x32xf32> to vector<1x8xf32>
    %444 = vector.broadcast %443 : vector<1x8xf32> to vector<16x8xf32>
    %445 = arith.addf %442, %444 : vector<16x8xf32>
    %446 = vector.extract_strided_slice %435 {offsets = [0, 0], sizes = [32, 8], strides = [1, 1]} : vector<32x32xf32> to vector<32x8xf32>
    %cst_144 = arith.constant dense<0.000000e+00> : vector<16x8xf32>
    %447 = tpu.matmul %4, %446, %cst_144 {dimension_numbers = #tpu.dot_dimension_numbers<[1], [0], [0], [1], [0, 0, 1, 1], [], []>} : vector<16x32xf32>, vector<32x8xf32>, vector<16x8xf32> -> vector<16x8xf32>
    %448 = vector.extract_strided_slice %436 {offsets = [0, 0], sizes = [1, 8], strides = [1, 1]} : vector<1x32xf32> to vector<1x8xf32>
    %449 = vector.broadcast %448 : vector<1x8xf32> to vector<16x8xf32>
    %450 = arith.addf %447, %449 : vector<16x8xf32>
    %451 = vector.extract_strided_slice %437 {offsets = [0, 0], sizes = [32, 8], strides = [1, 1]} : vector<32x32xf32> to vector<32x8xf32>
    %cst_145 = arith.constant dense<0.000000e+00> : vector<16x8xf32>
    %452 = tpu.matmul %4, %451, %cst_145 {dimension_numbers = #tpu.dot_dimension_numbers<[1], [0], [0], [1], [0, 0, 1, 1], [], []>} : vector<16x32xf32>, vector<32x8xf32>, vector<16x8xf32> -> vector<16x8xf32>
    %453 = vector.extract_strided_slice %438 {offsets = [0, 0], sizes = [1, 8], strides = [1, 1]} : vector<1x32xf32> to vector<1x8xf32>
    %454 = vector.broadcast %453 : vector<1x8xf32> to vector<16x8xf32>
    %455 = arith.addf %452, %454 : vector<16x8xf32>
    %cst_146 = arith.constant dense<0.000000e+00> : vector<16x16xf32>
    %456 = tpu.matmul %445, %450, %cst_146 {dimension_numbers = #tpu.dot_dimension_numbers<[1], [1], [0], [0], [0, 0, 1, 0], [], []>} : vector<16x8xf32>, vector<16x8xf32>, vector<16x16xf32> -> vector<16x16xf32>
    %cst_147 = arith.constant 0.353553385 : f32
    %457 = vector.broadcast %cst_147 : f32 to vector<16x16xf32>
    %458 = arith.mulf %456, %457 : vector<16x16xf32>
    %459 = arith.addf %458, %1 : vector<16x16xf32>
    %cst_148 = arith.constant dense<0xFF800000> : vector<16xf32>
    %460 = vector.multi_reduction <maximumf>, %459, %cst_148 [1] : vector<16x16xf32> to vector<16xf32>
    %461 = vector.shape_cast %460 : vector<16xf32> to vector<16x1xf32>
    %462 = vector.broadcast %461 : vector<16x1xf32> to vector<16x16xf32>
    %463 = arith.subf %459, %462 : vector<16x16xf32>
    %464 = math.exp %463 : vector<16x16xf32>
    %cst_149 = arith.constant dense<0.000000e+00> : vector<16xf32>
    %465 = vector.multi_reduction <add>, %464, %cst_149 [1] : vector<16x16xf32> to vector<16xf32>
    %466 = vector.shape_cast %465 : vector<16xf32> to vector<16x1xf32>
    %467 = vector.broadcast %466 : vector<16x1xf32> to vector<16x16xf32>
    %468 = arith.divf %464, %467 : vector<16x16xf32>
    %cst_150 = arith.constant dense<0.000000e+00> : vector<16x8xf32>
    %469 = tpu.matmul %468, %455, %cst_150 {dimension_numbers = #tpu.dot_dimension_numbers<[1], [0], [0], [1], [0, 0, 1, 1], [], []>} : vector<16x16xf32>, vector<16x8xf32>, vector<16x8xf32> -> vector<16x8xf32>
    %470 = vector.extract_strided_slice %439 {offsets = [0, 0], sizes = [8, 32], strides = [1, 1]} : vector<32x32xf32> to vector<8x32xf32>
    %cst_151 = arith.constant dense<0.000000e+00> : vector<16x32xf32>
    %471 = tpu.matmul %469, %470, %cst_151 {dimension_numbers = #tpu.dot_dimension_numbers<[1], [0], [0], [1], [0, 0, 1, 1], [], []>} : vector<16x8xf32>, vector<8x32xf32>, vector<16x32xf32> -> vector<16x32xf32>
    %472 = vector.extract_strided_slice %433 {offsets = [0, 8], sizes = [32, 8], strides = [1, 1]} : vector<32x32xf32> to vector<32x8xf32>
    %cst_152 = arith.constant dense<0.000000e+00> : vector<16x8xf32>
    %473 = tpu.matmul %4, %472, %cst_152 {dimension_numbers = #tpu.dot_dimension_numbers<[1], [0], [0], [1], [0, 0, 1, 1], [], []>} : vector<16x32xf32>, vector<32x8xf32>, vector<16x8xf32> -> vector<16x8xf32>
    %474 = vector.extract_strided_slice %434 {offsets = [0, 8], sizes = [1, 8], strides = [1, 1]} : vector<1x32xf32> to vector<1x8xf32>
    %475 = vector.broadcast %474 : vector<1x8xf32> to vector<16x8xf32>
    %476 = arith.addf %473, %475 : vector<16x8xf32>
    %477 = vector.extract_strided_slice %435 {offsets = [0, 8], sizes = [32, 8], strides = [1, 1]} : vector<32x32xf32> to vector<32x8xf32>
    %cst_153 = arith.constant dense<0.000000e+00> : vector<16x8xf32>
    %478 = tpu.matmul %4, %477, %cst_153 {dimension_numbers = #tpu.dot_dimension_numbers<[1], [0], [0], [1], [0, 0, 1, 1], [], []>} : vector<16x32xf32>, vector<32x8xf32>, vector<16x8xf32> -> vector<16x8xf32>
    %479 = vector.extract_strided_slice %436 {offsets = [0, 8], sizes = [1, 8], strides = [1, 1]} : vector<1x32xf32> to vector<1x8xf32>
    %480 = vector.broadcast %479 : vector<1x8xf32> to vector<16x8xf32>
    %481 = arith.addf %478, %480 : vector<16x8xf32>
    %482 = vector.extract_strided_slice %437 {offsets = [0, 8], sizes = [32, 8], strides = [1, 1]} : vector<32x32xf32> to vector<32x8xf32>
    %cst_154 = arith.constant dense<0.000000e+00> : vector<16x8xf32>
    %483 = tpu.matmul %4, %482, %cst_154 {dimension_numbers = #tpu.dot_dimension_numbers<[1], [0], [0], [1], [0, 0, 1, 1], [], []>} : vector<16x32xf32>, vector<32x8xf32>, vector<16x8xf32> -> vector<16x8xf32>
    %484 = vector.extract_strided_slice %438 {offsets = [0, 8], sizes = [1, 8], strides = [1, 1]} : vector<1x32xf32> to vector<1x8xf32>
    %485 = vector.broadcast %484 : vector<1x8xf32> to vector<16x8xf32>
    %486 = arith.addf %483, %485 : vector<16x8xf32>
    %cst_155 = arith.constant dense<0.000000e+00> : vector<16x16xf32>
    %487 = tpu.matmul %476, %481, %cst_155 {dimension_numbers = #tpu.dot_dimension_numbers<[1], [1], [0], [0], [0, 0, 1, 0], [], []>} : vector<16x8xf32>, vector<16x8xf32>, vector<16x16xf32> -> vector<16x16xf32>
    %cst_156 = arith.constant 0.353553385 : f32
    %488 = vector.broadcast %cst_156 : f32 to vector<16x16xf32>
    %489 = arith.mulf %487, %488 : vector<16x16xf32>
    %490 = arith.addf %489, %1 : vector<16x16xf32>
    %cst_157 = arith.constant dense<0xFF800000> : vector<16xf32>
    %491 = vector.multi_reduction <maximumf>, %490, %cst_157 [1] : vector<16x16xf32> to vector<16xf32>
    %492 = vector.shape_cast %491 : vector<16xf32> to vector<16x1xf32>
    %493 = vector.broadcast %492 : vector<16x1xf32> to vector<16x16xf32>
    %494 = arith.subf %490, %493 : vector<16x16xf32>
    %495 = math.exp %494 : vector<16x16xf32>
    %cst_158 = arith.constant dense<0.000000e+00> : vector<16xf32>
    %496 = vector.multi_reduction <add>, %495, %cst_158 [1] : vector<16x16xf32> to vector<16xf32>
    %497 = vector.shape_cast %496 : vector<16xf32> to vector<16x1xf32>
    %498 = vector.broadcast %497 : vector<16x1xf32> to vector<16x16xf32>
    %499 = arith.divf %495, %498 : vector<16x16xf32>
    %cst_159 = arith.constant dense<0.000000e+00> : vector<16x8xf32>
    %500 = tpu.matmul %499, %486, %cst_159 {dimension_numbers = #tpu.dot_dimension_numbers<[1], [0], [0], [1], [0, 0, 1, 1], [], []>} : vector<16x16xf32>, vector<16x8xf32>, vector<16x8xf32> -> vector<16x8xf32>
    %501 = vector.extract_strided_slice %439 {offsets = [8, 0], sizes = [8, 32], strides = [1, 1]} : vector<32x32xf32> to vector<8x32xf32>
    %cst_160 = arith.constant dense<0.000000e+00> : vector<16x32xf32>
    %502 = tpu.matmul %500, %501, %cst_160 {dimension_numbers = #tpu.dot_dimension_numbers<[1], [0], [0], [1], [0, 0, 1, 1], [], []>} : vector<16x8xf32>, vector<8x32xf32>, vector<16x32xf32> -> vector<16x32xf32>
    %503 = arith.addf %471, %502 : vector<16x32xf32>
    %504 = vector.extract_strided_slice %433 {offsets = [0, 16], sizes = [32, 8], strides = [1, 1]} : vector<32x32xf32> to vector<32x8xf32>
    %cst_161 = arith.constant dense<0.000000e+00> : vector<16x8xf32>
    %505 = tpu.matmul %4, %504, %cst_161 {dimension_numbers = #tpu.dot_dimension_numbers<[1], [0], [0], [1], [0, 0, 1, 1], [], []>} : vector<16x32xf32>, vector<32x8xf32>, vector<16x8xf32> -> vector<16x8xf32>
    %506 = vector.extract_strided_slice %434 {offsets = [0, 16], sizes = [1, 8], strides = [1, 1]} : vector<1x32xf32> to vector<1x8xf32>
    %507 = vector.broadcast %506 : vector<1x8xf32> to vector<16x8xf32>
    %508 = arith.addf %505, %507 : vector<16x8xf32>
    %509 = vector.extract_strided_slice %435 {offsets = [0, 16], sizes = [32, 8], strides = [1, 1]} : vector<32x32xf32> to vector<32x8xf32>
    %cst_162 = arith.constant dense<0.000000e+00> : vector<16x8xf32>
    %510 = tpu.matmul %4, %509, %cst_162 {dimension_numbers = #tpu.dot_dimension_numbers<[1], [0], [0], [1], [0, 0, 1, 1], [], []>} : vector<16x32xf32>, vector<32x8xf32>, vector<16x8xf32> -> vector<16x8xf32>
    %511 = vector.extract_strided_slice %436 {offsets = [0, 16], sizes = [1, 8], strides = [1, 1]} : vector<1x32xf32> to vector<1x8xf32>
    %512 = vector.broadcast %511 : vector<1x8xf32> to vector<16x8xf32>
    %513 = arith.addf %510, %512 : vector<16x8xf32>
    %514 = vector.extract_strided_slice %437 {offsets = [0, 16], sizes = [32, 8], strides = [1, 1]} : vector<32x32xf32> to vector<32x8xf32>
    %cst_163 = arith.constant dense<0.000000e+00> : vector<16x8xf32>
    %515 = tpu.matmul %4, %514, %cst_163 {dimension_numbers = #tpu.dot_dimension_numbers<[1], [0], [0], [1], [0, 0, 1, 1], [], []>} : vector<16x32xf32>, vector<32x8xf32>, vector<16x8xf32> -> vector<16x8xf32>
    %516 = vector.extract_strided_slice %438 {offsets = [0, 16], sizes = [1, 8], strides = [1, 1]} : vector<1x32xf32> to vector<1x8xf32>
    %517 = vector.broadcast %516 : vector<1x8xf32> to vector<16x8xf32>
    %518 = arith.addf %515, %517 : vector<16x8xf32>
    %cst_164 = arith.constant dense<0.000000e+00> : vector<16x16xf32>
    %519 = tpu.matmul %508, %513, %cst_164 {dimension_numbers = #tpu.dot_dimension_numbers<[1], [1], [0], [0], [0, 0, 1, 0], [], []>} : vector<16x8xf32>, vector<16x8xf32>, vector<16x16xf32> -> vector<16x16xf32>
    %cst_165 = arith.constant 0.353553385 : f32
    %520 = vector.broadcast %cst_165 : f32 to vector<16x16xf32>
    %521 = arith.mulf %519, %520 : vector<16x16xf32>
    %522 = arith.addf %521, %1 : vector<16x16xf32>
    %cst_166 = arith.constant dense<0xFF800000> : vector<16xf32>
    %523 = vector.multi_reduction <maximumf>, %522, %cst_166 [1] : vector<16x16xf32> to vector<16xf32>
    %524 = vector.shape_cast %523 : vector<16xf32> to vector<16x1xf32>
    %525 = vector.broadcast %524 : vector<16x1xf32> to vector<16x16xf32>
    %526 = arith.subf %522, %525 : vector<16x16xf32>
    %527 = math.exp %526 : vector<16x16xf32>
    %cst_167 = arith.constant dense<0.000000e+00> : vector<16xf32>
    %528 = vector.multi_reduction <add>, %527, %cst_167 [1] : vector<16x16xf32> to vector<16xf32>
    %529 = vector.shape_cast %528 : vector<16xf32> to vector<16x1xf32>
    %530 = vector.broadcast %529 : vector<16x1xf32> to vector<16x16xf32>
    %531 = arith.divf %527, %530 : vector<16x16xf32>
    %cst_168 = arith.constant dense<0.000000e+00> : vector<16x8xf32>
    %532 = tpu.matmul %531, %518, %cst_168 {dimension_numbers = #tpu.dot_dimension_numbers<[1], [0], [0], [1], [0, 0, 1, 1], [], []>} : vector<16x16xf32>, vector<16x8xf32>, vector<16x8xf32> -> vector<16x8xf32>
    %533 = vector.extract_strided_slice %439 {offsets = [16, 0], sizes = [8, 32], strides = [1, 1]} : vector<32x32xf32> to vector<8x32xf32>
    %cst_169 = arith.constant dense<0.000000e+00> : vector<16x32xf32>
    %534 = tpu.matmul %532, %533, %cst_169 {dimension_numbers = #tpu.dot_dimension_numbers<[1], [0], [0], [1], [0, 0, 1, 1], [], []>} : vector<16x8xf32>, vector<8x32xf32>, vector<16x32xf32> -> vector<16x32xf32>
    %535 = arith.addf %503, %534 : vector<16x32xf32>
    %536 = vector.extract_strided_slice %433 {offsets = [0, 24], sizes = [32, 8], strides = [1, 1]} : vector<32x32xf32> to vector<32x8xf32>
    %cst_170 = arith.constant dense<0.000000e+00> : vector<16x8xf32>
    %537 = tpu.matmul %4, %536, %cst_170 {dimension_numbers = #tpu.dot_dimension_numbers<[1], [0], [0], [1], [0, 0, 1, 1], [], []>} : vector<16x32xf32>, vector<32x8xf32>, vector<16x8xf32> -> vector<16x8xf32>
    %538 = vector.extract_strided_slice %434 {offsets = [0, 24], sizes = [1, 8], strides = [1, 1]} : vector<1x32xf32> to vector<1x8xf32>
    %539 = vector.broadcast %538 : vector<1x8xf32> to vector<16x8xf32>
    %540 = arith.addf %537, %539 : vector<16x8xf32>
    %541 = vector.extract_strided_slice %435 {offsets = [0, 24], sizes = [32, 8], strides = [1, 1]} : vector<32x32xf32> to vector<32x8xf32>
    %cst_171 = arith.constant dense<0.000000e+00> : vector<16x8xf32>
    %542 = tpu.matmul %4, %541, %cst_171 {dimension_numbers = #tpu.dot_dimension_numbers<[1], [0], [0], [1], [0, 0, 1, 1], [], []>} : vector<16x32xf32>, vector<32x8xf32>, vector<16x8xf32> -> vector<16x8xf32>
    %543 = vector.extract_strided_slice %436 {offsets = [0, 24], sizes = [1, 8], strides = [1, 1]} : vector<1x32xf32> to vector<1x8xf32>
    %544 = vector.broadcast %543 : vector<1x8xf32> to vector<16x8xf32>
    %545 = arith.addf %542, %544 : vector<16x8xf32>
    %546 = vector.extract_strided_slice %437 {offsets = [0, 24], sizes = [32, 8], strides = [1, 1]} : vector<32x32xf32> to vector<32x8xf32>
    %cst_172 = arith.constant dense<0.000000e+00> : vector<16x8xf32>
    %547 = tpu.matmul %4, %546, %cst_172 {dimension_numbers = #tpu.dot_dimension_numbers<[1], [0], [0], [1], [0, 0, 1, 1], [], []>} : vector<16x32xf32>, vector<32x8xf32>, vector<16x8xf32> -> vector<16x8xf32>
    %548 = vector.extract_strided_slice %438 {offsets = [0, 24], sizes = [1, 8], strides = [1, 1]} : vector<1x32xf32> to vector<1x8xf32>
    %549 = vector.broadcast %548 : vector<1x8xf32> to vector<16x8xf32>
    %550 = arith.addf %547, %549 : vector<16x8xf32>
    %cst_173 = arith.constant dense<0.000000e+00> : vector<16x16xf32>
    %551 = tpu.matmul %540, %545, %cst_173 {dimension_numbers = #tpu.dot_dimension_numbers<[1], [1], [0], [0], [0, 0, 1, 0], [], []>} : vector<16x8xf32>, vector<16x8xf32>, vector<16x16xf32> -> vector<16x16xf32>
    %cst_174 = arith.constant 0.353553385 : f32
    %552 = vector.broadcast %cst_174 : f32 to vector<16x16xf32>
    %553 = arith.mulf %551, %552 : vector<16x16xf32>
    %554 = arith.addf %553, %1 : vector<16x16xf32>
    %cst_175 = arith.constant dense<0xFF800000> : vector<16xf32>
    %555 = vector.multi_reduction <maximumf>, %554, %cst_175 [1] : vector<16x16xf32> to vector<16xf32>
    %556 = vector.shape_cast %555 : vector<16xf32> to vector<16x1xf32>
    %557 = vector.broadcast %556 : vector<16x1xf32> to vector<16x16xf32>
    %558 = arith.subf %554, %557 : vector<16x16xf32>
    %559 = math.exp %558 : vector<16x16xf32>
    %cst_176 = arith.constant dense<0.000000e+00> : vector<16xf32>
    %560 = vector.multi_reduction <add>, %559, %cst_176 [1] : vector<16x16xf32> to vector<16xf32>
    %561 = vector.shape_cast %560 : vector<16xf32> to vector<16x1xf32>
    %562 = vector.broadcast %561 : vector<16x1xf32> to vector<16x16xf32>
    %563 = arith.divf %559, %562 : vector<16x16xf32>
    %cst_177 = arith.constant dense<0.000000e+00> : vector<16x8xf32>
    %564 = tpu.matmul %563, %550, %cst_177 {dimension_numbers = #tpu.dot_dimension_numbers<[1], [0], [0], [1], [0, 0, 1, 1], [], []>} : vector<16x16xf32>, vector<16x8xf32>, vector<16x8xf32> -> vector<16x8xf32>
    %565 = vector.extract_strided_slice %439 {offsets = [24, 0], sizes = [8, 32], strides = [1, 1]} : vector<32x32xf32> to vector<8x32xf32>
    %cst_178 = arith.constant dense<0.000000e+00> : vector<16x32xf32>
    %566 = tpu.matmul %564, %565, %cst_178 {dimension_numbers = #tpu.dot_dimension_numbers<[1], [0], [0], [1], [0, 0, 1, 1], [], []>} : vector<16x8xf32>, vector<8x32xf32>, vector<16x32xf32> -> vector<16x32xf32>
    %567 = arith.addf %535, %566 : vector<16x32xf32>
    %568 = vector.broadcast %440 : vector<1x32xf32> to vector<16x32xf32>
    %569 = arith.addf %567, %568 : vector<16x32xf32>
    %570 = arith.addf %4, %569 : vector<16x32xf32>
    %c18 = arith.constant 18 : index
    %c0_179 = arith.constant 0 : index
    %571 = vector.load %arg5[%c18, %c0_179] : memref<48x128xf32, #tpu.memory_space<vmem>>, vector<1x32xf32>
    %c19 = arith.constant 19 : index
    %c0_180 = arith.constant 0 : index
    %572 = vector.load %arg5[%c19, %c0_180] : memref<48x128xf32, #tpu.memory_space<vmem>>, vector<1x32xf32>
    %cst_181 = arith.constant dense<0.000000e+00> : vector<16xf32>
    %573 = vector.multi_reduction <add>, %570, %cst_181 [1] : vector<16x32xf32> to vector<16xf32>
    %574 = vector.shape_cast %573 : vector<16xf32> to vector<16x1xf32>
    %cst_182 = arith.constant 3.200000e+01 : f32
    %575 = vector.broadcast %cst_182 : f32 to vector<16x1xf32>
    %576 = arith.divf %574, %575 : vector<16x1xf32>
    %577 = vector.broadcast %576 : vector<16x1xf32> to vector<16x32xf32>
    %578 = arith.subf %570, %577 : vector<16x32xf32>
    %579 = arith.mulf %578, %578 : vector<16x32xf32>
    %cst_183 = arith.constant dense<0.000000e+00> : vector<16xf32>
    %580 = vector.multi_reduction <add>, %579, %cst_183 [1] : vector<16x32xf32> to vector<16xf32>
    %581 = vector.shape_cast %580 : vector<16xf32> to vector<16x1xf32>
    %cst_184 = arith.constant 3.200000e+01 : f32
    %582 = vector.broadcast %cst_184 : f32 to vector<16x1xf32>
    %583 = arith.divf %581, %582 : vector<16x1xf32>
    %584 = vector.broadcast %576 : vector<16x1xf32> to vector<16x32xf32>
    %585 = arith.subf %570, %584 : vector<16x32xf32>
    %cst_185 = arith.constant 9.99999974E-6 : f32
    %586 = vector.broadcast %cst_185 : f32 to vector<16x1xf32>
    %587 = arith.addf %583, %586 : vector<16x1xf32>
    %588 = math.rsqrt %587 : vector<16x1xf32>
    %589 = vector.broadcast %588 : vector<16x1xf32> to vector<16x32xf32>
    %590 = arith.mulf %585, %589 : vector<16x32xf32>
    %591 = vector.broadcast %571 : vector<1x32xf32> to vector<16x32xf32>
    %592 = arith.mulf %590, %591 : vector<16x32xf32>
    %593 = vector.broadcast %572 : vector<1x32xf32> to vector<16x32xf32>
    %594 = arith.addf %592, %593 : vector<16x32xf32>
    %c416 = arith.constant 416 : index
    %c0_186 = arith.constant 0 : index
    %595 = vector.load %arg4[%c416, %c0_186] : memref<864x128xf32, #tpu.memory_space<vmem>>, vector<32x64xf32>
    %c21 = arith.constant 21 : index
    %c0_187 = arith.constant 0 : index
    %596 = vector.load %arg5[%c21, %c0_187] : memref<48x128xf32, #tpu.memory_space<vmem>>, vector<1x64xf32>
    %c384 = arith.constant 384 : index
    %c0_188 = arith.constant 0 : index
    %597 = vector.load %arg4[%c384, %c0_188] : memref<864x128xf32, #tpu.memory_space<vmem>>, vector<32x32xf32>
    %c20 = arith.constant 20 : index
    %c0_189 = arith.constant 0 : index
    %598 = vector.load %arg5[%c20, %c0_189] : memref<48x128xf32, #tpu.memory_space<vmem>>, vector<1x32xf32>
    %599 = vector.extract_strided_slice %595 {offsets = [0, 0], sizes = [32, 32], strides = [1, 1]} : vector<32x64xf32> to vector<32x32xf32>
    %600 = vector.extract_strided_slice %596 {offsets = [0, 0], sizes = [1, 32], strides = [1, 1]} : vector<1x64xf32> to vector<1x32xf32>
    %601 = vector.extract_strided_slice %595 {offsets = [0, 32], sizes = [32, 32], strides = [1, 1]} : vector<32x64xf32> to vector<32x32xf32>
    %602 = vector.extract_strided_slice %596 {offsets = [0, 32], sizes = [1, 32], strides = [1, 1]} : vector<1x64xf32> to vector<1x32xf32>
    %c448 = arith.constant 448 : index
    %c0_190 = arith.constant 0 : index
    %603 = vector.load %arg4[%c448, %c0_190] : memref<864x128xf32, #tpu.memory_space<vmem>>, vector<32x32xf32>
    %c22 = arith.constant 22 : index
    %c0_191 = arith.constant 0 : index
    %604 = vector.load %arg5[%c22, %c0_191] : memref<48x128xf32, #tpu.memory_space<vmem>>, vector<1x32xf32>
    %605 = vector.extract_strided_slice %597 {offsets = [0, 0], sizes = [32, 8], strides = [1, 1]} : vector<32x32xf32> to vector<32x8xf32>
    %cst_192 = arith.constant dense<0.000000e+00> : vector<16x8xf32>
    %606 = tpu.matmul %594, %605, %cst_192 {dimension_numbers = #tpu.dot_dimension_numbers<[1], [0], [0], [1], [0, 0, 1, 1], [], []>} : vector<16x32xf32>, vector<32x8xf32>, vector<16x8xf32> -> vector<16x8xf32>
    %607 = vector.extract_strided_slice %598 {offsets = [0, 0], sizes = [1, 8], strides = [1, 1]} : vector<1x32xf32> to vector<1x8xf32>
    %608 = vector.broadcast %607 : vector<1x8xf32> to vector<16x8xf32>
    %609 = arith.addf %606, %608 : vector<16x8xf32>
    %610 = vector.extract_strided_slice %599 {offsets = [0, 0], sizes = [32, 8], strides = [1, 1]} : vector<32x32xf32> to vector<32x8xf32>
    %cst_193 = arith.constant dense<0.000000e+00> : vector<16x8xf32>
    %611 = tpu.matmul %430, %610, %cst_193 {dimension_numbers = #tpu.dot_dimension_numbers<[1], [0], [0], [1], [0, 0, 1, 1], [], []>} : vector<16x32xf32>, vector<32x8xf32>, vector<16x8xf32> -> vector<16x8xf32>
    %612 = vector.extract_strided_slice %600 {offsets = [0, 0], sizes = [1, 8], strides = [1, 1]} : vector<1x32xf32> to vector<1x8xf32>
    %613 = vector.broadcast %612 : vector<1x8xf32> to vector<16x8xf32>
    %614 = arith.addf %611, %613 : vector<16x8xf32>
    %615 = vector.extract_strided_slice %601 {offsets = [0, 0], sizes = [32, 8], strides = [1, 1]} : vector<32x32xf32> to vector<32x8xf32>
    %cst_194 = arith.constant dense<0.000000e+00> : vector<16x8xf32>
    %616 = tpu.matmul %430, %615, %cst_194 {dimension_numbers = #tpu.dot_dimension_numbers<[1], [0], [0], [1], [0, 0, 1, 1], [], []>} : vector<16x32xf32>, vector<32x8xf32>, vector<16x8xf32> -> vector<16x8xf32>
    %617 = vector.extract_strided_slice %602 {offsets = [0, 0], sizes = [1, 8], strides = [1, 1]} : vector<1x32xf32> to vector<1x8xf32>
    %618 = vector.broadcast %617 : vector<1x8xf32> to vector<16x8xf32>
    %619 = arith.addf %616, %618 : vector<16x8xf32>
    %cst_195 = arith.constant dense<0.000000e+00> : vector<16x16xf32>
    %620 = tpu.matmul %609, %614, %cst_195 {dimension_numbers = #tpu.dot_dimension_numbers<[1], [1], [0], [0], [0, 0, 1, 0], [], []>} : vector<16x8xf32>, vector<16x8xf32>, vector<16x16xf32> -> vector<16x16xf32>
    %cst_196 = arith.constant 0.353553385 : f32
    %621 = vector.broadcast %cst_196 : f32 to vector<16x16xf32>
    %622 = arith.mulf %620, %621 : vector<16x16xf32>
    %623 = arith.addf %622, %2 : vector<16x16xf32>
    %cst_197 = arith.constant dense<0xFF800000> : vector<16xf32>
    %624 = vector.multi_reduction <maximumf>, %623, %cst_197 [1] : vector<16x16xf32> to vector<16xf32>
    %625 = vector.shape_cast %624 : vector<16xf32> to vector<16x1xf32>
    %626 = vector.broadcast %625 : vector<16x1xf32> to vector<16x16xf32>
    %627 = arith.subf %623, %626 : vector<16x16xf32>
    %628 = math.exp %627 : vector<16x16xf32>
    %cst_198 = arith.constant dense<0.000000e+00> : vector<16xf32>
    %629 = vector.multi_reduction <add>, %628, %cst_198 [1] : vector<16x16xf32> to vector<16xf32>
    %630 = vector.shape_cast %629 : vector<16xf32> to vector<16x1xf32>
    %631 = vector.broadcast %630 : vector<16x1xf32> to vector<16x16xf32>
    %632 = arith.divf %628, %631 : vector<16x16xf32>
    %cst_199 = arith.constant dense<0.000000e+00> : vector<16x8xf32>
    %633 = tpu.matmul %632, %619, %cst_199 {dimension_numbers = #tpu.dot_dimension_numbers<[1], [0], [0], [1], [0, 0, 1, 1], [], []>} : vector<16x16xf32>, vector<16x8xf32>, vector<16x8xf32> -> vector<16x8xf32>
    %634 = vector.extract_strided_slice %603 {offsets = [0, 0], sizes = [8, 32], strides = [1, 1]} : vector<32x32xf32> to vector<8x32xf32>
    %cst_200 = arith.constant dense<0.000000e+00> : vector<16x32xf32>
    %635 = tpu.matmul %633, %634, %cst_200 {dimension_numbers = #tpu.dot_dimension_numbers<[1], [0], [0], [1], [0, 0, 1, 1], [], []>} : vector<16x8xf32>, vector<8x32xf32>, vector<16x32xf32> -> vector<16x32xf32>
    %636 = vector.extract_strided_slice %597 {offsets = [0, 8], sizes = [32, 8], strides = [1, 1]} : vector<32x32xf32> to vector<32x8xf32>
    %cst_201 = arith.constant dense<0.000000e+00> : vector<16x8xf32>
    %637 = tpu.matmul %594, %636, %cst_201 {dimension_numbers = #tpu.dot_dimension_numbers<[1], [0], [0], [1], [0, 0, 1, 1], [], []>} : vector<16x32xf32>, vector<32x8xf32>, vector<16x8xf32> -> vector<16x8xf32>
    %638 = vector.extract_strided_slice %598 {offsets = [0, 8], sizes = [1, 8], strides = [1, 1]} : vector<1x32xf32> to vector<1x8xf32>
    %639 = vector.broadcast %638 : vector<1x8xf32> to vector<16x8xf32>
    %640 = arith.addf %637, %639 : vector<16x8xf32>
    %641 = vector.extract_strided_slice %599 {offsets = [0, 8], sizes = [32, 8], strides = [1, 1]} : vector<32x32xf32> to vector<32x8xf32>
    %cst_202 = arith.constant dense<0.000000e+00> : vector<16x8xf32>
    %642 = tpu.matmul %430, %641, %cst_202 {dimension_numbers = #tpu.dot_dimension_numbers<[1], [0], [0], [1], [0, 0, 1, 1], [], []>} : vector<16x32xf32>, vector<32x8xf32>, vector<16x8xf32> -> vector<16x8xf32>
    %643 = vector.extract_strided_slice %600 {offsets = [0, 8], sizes = [1, 8], strides = [1, 1]} : vector<1x32xf32> to vector<1x8xf32>
    %644 = vector.broadcast %643 : vector<1x8xf32> to vector<16x8xf32>
    %645 = arith.addf %642, %644 : vector<16x8xf32>
    %646 = vector.extract_strided_slice %601 {offsets = [0, 8], sizes = [32, 8], strides = [1, 1]} : vector<32x32xf32> to vector<32x8xf32>
    %cst_203 = arith.constant dense<0.000000e+00> : vector<16x8xf32>
    %647 = tpu.matmul %430, %646, %cst_203 {dimension_numbers = #tpu.dot_dimension_numbers<[1], [0], [0], [1], [0, 0, 1, 1], [], []>} : vector<16x32xf32>, vector<32x8xf32>, vector<16x8xf32> -> vector<16x8xf32>
    %648 = vector.extract_strided_slice %602 {offsets = [0, 8], sizes = [1, 8], strides = [1, 1]} : vector<1x32xf32> to vector<1x8xf32>
    %649 = vector.broadcast %648 : vector<1x8xf32> to vector<16x8xf32>
    %650 = arith.addf %647, %649 : vector<16x8xf32>
    %cst_204 = arith.constant dense<0.000000e+00> : vector<16x16xf32>
    %651 = tpu.matmul %640, %645, %cst_204 {dimension_numbers = #tpu.dot_dimension_numbers<[1], [1], [0], [0], [0, 0, 1, 0], [], []>} : vector<16x8xf32>, vector<16x8xf32>, vector<16x16xf32> -> vector<16x16xf32>
    %cst_205 = arith.constant 0.353553385 : f32
    %652 = vector.broadcast %cst_205 : f32 to vector<16x16xf32>
    %653 = arith.mulf %651, %652 : vector<16x16xf32>
    %654 = arith.addf %653, %2 : vector<16x16xf32>
    %cst_206 = arith.constant dense<0xFF800000> : vector<16xf32>
    %655 = vector.multi_reduction <maximumf>, %654, %cst_206 [1] : vector<16x16xf32> to vector<16xf32>
    %656 = vector.shape_cast %655 : vector<16xf32> to vector<16x1xf32>
    %657 = vector.broadcast %656 : vector<16x1xf32> to vector<16x16xf32>
    %658 = arith.subf %654, %657 : vector<16x16xf32>
    %659 = math.exp %658 : vector<16x16xf32>
    %cst_207 = arith.constant dense<0.000000e+00> : vector<16xf32>
    %660 = vector.multi_reduction <add>, %659, %cst_207 [1] : vector<16x16xf32> to vector<16xf32>
    %661 = vector.shape_cast %660 : vector<16xf32> to vector<16x1xf32>
    %662 = vector.broadcast %661 : vector<16x1xf32> to vector<16x16xf32>
    %663 = arith.divf %659, %662 : vector<16x16xf32>
    %cst_208 = arith.constant dense<0.000000e+00> : vector<16x8xf32>
    %664 = tpu.matmul %663, %650, %cst_208 {dimension_numbers = #tpu.dot_dimension_numbers<[1], [0], [0], [1], [0, 0, 1, 1], [], []>} : vector<16x16xf32>, vector<16x8xf32>, vector<16x8xf32> -> vector<16x8xf32>
    %665 = vector.extract_strided_slice %603 {offsets = [8, 0], sizes = [8, 32], strides = [1, 1]} : vector<32x32xf32> to vector<8x32xf32>
    %cst_209 = arith.constant dense<0.000000e+00> : vector<16x32xf32>
    %666 = tpu.matmul %664, %665, %cst_209 {dimension_numbers = #tpu.dot_dimension_numbers<[1], [0], [0], [1], [0, 0, 1, 1], [], []>} : vector<16x8xf32>, vector<8x32xf32>, vector<16x32xf32> -> vector<16x32xf32>
    %667 = arith.addf %635, %666 : vector<16x32xf32>
    %668 = vector.extract_strided_slice %597 {offsets = [0, 16], sizes = [32, 8], strides = [1, 1]} : vector<32x32xf32> to vector<32x8xf32>
    %cst_210 = arith.constant dense<0.000000e+00> : vector<16x8xf32>
    %669 = tpu.matmul %594, %668, %cst_210 {dimension_numbers = #tpu.dot_dimension_numbers<[1], [0], [0], [1], [0, 0, 1, 1], [], []>} : vector<16x32xf32>, vector<32x8xf32>, vector<16x8xf32> -> vector<16x8xf32>
    %670 = vector.extract_strided_slice %598 {offsets = [0, 16], sizes = [1, 8], strides = [1, 1]} : vector<1x32xf32> to vector<1x8xf32>
    %671 = vector.broadcast %670 : vector<1x8xf32> to vector<16x8xf32>
    %672 = arith.addf %669, %671 : vector<16x8xf32>
    %673 = vector.extract_strided_slice %599 {offsets = [0, 16], sizes = [32, 8], strides = [1, 1]} : vector<32x32xf32> to vector<32x8xf32>
    %cst_211 = arith.constant dense<0.000000e+00> : vector<16x8xf32>
    %674 = tpu.matmul %430, %673, %cst_211 {dimension_numbers = #tpu.dot_dimension_numbers<[1], [0], [0], [1], [0, 0, 1, 1], [], []>} : vector<16x32xf32>, vector<32x8xf32>, vector<16x8xf32> -> vector<16x8xf32>
    %675 = vector.extract_strided_slice %600 {offsets = [0, 16], sizes = [1, 8], strides = [1, 1]} : vector<1x32xf32> to vector<1x8xf32>
    %676 = vector.broadcast %675 : vector<1x8xf32> to vector<16x8xf32>
    %677 = arith.addf %674, %676 : vector<16x8xf32>
    %678 = vector.extract_strided_slice %601 {offsets = [0, 16], sizes = [32, 8], strides = [1, 1]} : vector<32x32xf32> to vector<32x8xf32>
    %cst_212 = arith.constant dense<0.000000e+00> : vector<16x8xf32>
    %679 = tpu.matmul %430, %678, %cst_212 {dimension_numbers = #tpu.dot_dimension_numbers<[1], [0], [0], [1], [0, 0, 1, 1], [], []>} : vector<16x32xf32>, vector<32x8xf32>, vector<16x8xf32> -> vector<16x8xf32>
    %680 = vector.extract_strided_slice %602 {offsets = [0, 16], sizes = [1, 8], strides = [1, 1]} : vector<1x32xf32> to vector<1x8xf32>
    %681 = vector.broadcast %680 : vector<1x8xf32> to vector<16x8xf32>
    %682 = arith.addf %679, %681 : vector<16x8xf32>
    %cst_213 = arith.constant dense<0.000000e+00> : vector<16x16xf32>
    %683 = tpu.matmul %672, %677, %cst_213 {dimension_numbers = #tpu.dot_dimension_numbers<[1], [1], [0], [0], [0, 0, 1, 0], [], []>} : vector<16x8xf32>, vector<16x8xf32>, vector<16x16xf32> -> vector<16x16xf32>
    %cst_214 = arith.constant 0.353553385 : f32
    %684 = vector.broadcast %cst_214 : f32 to vector<16x16xf32>
    %685 = arith.mulf %683, %684 : vector<16x16xf32>
    %686 = arith.addf %685, %2 : vector<16x16xf32>
    %cst_215 = arith.constant dense<0xFF800000> : vector<16xf32>
    %687 = vector.multi_reduction <maximumf>, %686, %cst_215 [1] : vector<16x16xf32> to vector<16xf32>
    %688 = vector.shape_cast %687 : vector<16xf32> to vector<16x1xf32>
    %689 = vector.broadcast %688 : vector<16x1xf32> to vector<16x16xf32>
    %690 = arith.subf %686, %689 : vector<16x16xf32>
    %691 = math.exp %690 : vector<16x16xf32>
    %cst_216 = arith.constant dense<0.000000e+00> : vector<16xf32>
    %692 = vector.multi_reduction <add>, %691, %cst_216 [1] : vector<16x16xf32> to vector<16xf32>
    %693 = vector.shape_cast %692 : vector<16xf32> to vector<16x1xf32>
    %694 = vector.broadcast %693 : vector<16x1xf32> to vector<16x16xf32>
    %695 = arith.divf %691, %694 : vector<16x16xf32>
    %cst_217 = arith.constant dense<0.000000e+00> : vector<16x8xf32>
    %696 = tpu.matmul %695, %682, %cst_217 {dimension_numbers = #tpu.dot_dimension_numbers<[1], [0], [0], [1], [0, 0, 1, 1], [], []>} : vector<16x16xf32>, vector<16x8xf32>, vector<16x8xf32> -> vector<16x8xf32>
    %697 = vector.extract_strided_slice %603 {offsets = [16, 0], sizes = [8, 32], strides = [1, 1]} : vector<32x32xf32> to vector<8x32xf32>
    %cst_218 = arith.constant dense<0.000000e+00> : vector<16x32xf32>
    %698 = tpu.matmul %696, %697, %cst_218 {dimension_numbers = #tpu.dot_dimension_numbers<[1], [0], [0], [1], [0, 0, 1, 1], [], []>} : vector<16x8xf32>, vector<8x32xf32>, vector<16x32xf32> -> vector<16x32xf32>
    %699 = arith.addf %667, %698 : vector<16x32xf32>
    %700 = vector.extract_strided_slice %597 {offsets = [0, 24], sizes = [32, 8], strides = [1, 1]} : vector<32x32xf32> to vector<32x8xf32>
    %cst_219 = arith.constant dense<0.000000e+00> : vector<16x8xf32>
    %701 = tpu.matmul %594, %700, %cst_219 {dimension_numbers = #tpu.dot_dimension_numbers<[1], [0], [0], [1], [0, 0, 1, 1], [], []>} : vector<16x32xf32>, vector<32x8xf32>, vector<16x8xf32> -> vector<16x8xf32>
    %702 = vector.extract_strided_slice %598 {offsets = [0, 24], sizes = [1, 8], strides = [1, 1]} : vector<1x32xf32> to vector<1x8xf32>
    %703 = vector.broadcast %702 : vector<1x8xf32> to vector<16x8xf32>
    %704 = arith.addf %701, %703 : vector<16x8xf32>
    %705 = vector.extract_strided_slice %599 {offsets = [0, 24], sizes = [32, 8], strides = [1, 1]} : vector<32x32xf32> to vector<32x8xf32>
    %cst_220 = arith.constant dense<0.000000e+00> : vector<16x8xf32>
    %706 = tpu.matmul %430, %705, %cst_220 {dimension_numbers = #tpu.dot_dimension_numbers<[1], [0], [0], [1], [0, 0, 1, 1], [], []>} : vector<16x32xf32>, vector<32x8xf32>, vector<16x8xf32> -> vector<16x8xf32>
    %707 = vector.extract_strided_slice %600 {offsets = [0, 24], sizes = [1, 8], strides = [1, 1]} : vector<1x32xf32> to vector<1x8xf32>
    %708 = vector.broadcast %707 : vector<1x8xf32> to vector<16x8xf32>
    %709 = arith.addf %706, %708 : vector<16x8xf32>
    %710 = vector.extract_strided_slice %601 {offsets = [0, 24], sizes = [32, 8], strides = [1, 1]} : vector<32x32xf32> to vector<32x8xf32>
    %cst_221 = arith.constant dense<0.000000e+00> : vector<16x8xf32>
    %711 = tpu.matmul %430, %710, %cst_221 {dimension_numbers = #tpu.dot_dimension_numbers<[1], [0], [0], [1], [0, 0, 1, 1], [], []>} : vector<16x32xf32>, vector<32x8xf32>, vector<16x8xf32> -> vector<16x8xf32>
    %712 = vector.extract_strided_slice %602 {offsets = [0, 24], sizes = [1, 8], strides = [1, 1]} : vector<1x32xf32> to vector<1x8xf32>
    %713 = vector.broadcast %712 : vector<1x8xf32> to vector<16x8xf32>
    %714 = arith.addf %711, %713 : vector<16x8xf32>
    %cst_222 = arith.constant dense<0.000000e+00> : vector<16x16xf32>
    %715 = tpu.matmul %704, %709, %cst_222 {dimension_numbers = #tpu.dot_dimension_numbers<[1], [1], [0], [0], [0, 0, 1, 0], [], []>} : vector<16x8xf32>, vector<16x8xf32>, vector<16x16xf32> -> vector<16x16xf32>
    %cst_223 = arith.constant 0.353553385 : f32
    %716 = vector.broadcast %cst_223 : f32 to vector<16x16xf32>
    %717 = arith.mulf %715, %716 : vector<16x16xf32>
    %718 = arith.addf %717, %2 : vector<16x16xf32>
    %cst_224 = arith.constant dense<0xFF800000> : vector<16xf32>
    %719 = vector.multi_reduction <maximumf>, %718, %cst_224 [1] : vector<16x16xf32> to vector<16xf32>
    %720 = vector.shape_cast %719 : vector<16xf32> to vector<16x1xf32>
    %721 = vector.broadcast %720 : vector<16x1xf32> to vector<16x16xf32>
    %722 = arith.subf %718, %721 : vector<16x16xf32>
    %723 = math.exp %722 : vector<16x16xf32>
    %cst_225 = arith.constant dense<0.000000e+00> : vector<16xf32>
    %724 = vector.multi_reduction <add>, %723, %cst_225 [1] : vector<16x16xf32> to vector<16xf32>
    %725 = vector.shape_cast %724 : vector<16xf32> to vector<16x1xf32>
    %726 = vector.broadcast %725 : vector<16x1xf32> to vector<16x16xf32>
    %727 = arith.divf %723, %726 : vector<16x16xf32>
    %cst_226 = arith.constant dense<0.000000e+00> : vector<16x8xf32>
    %728 = tpu.matmul %727, %714, %cst_226 {dimension_numbers = #tpu.dot_dimension_numbers<[1], [0], [0], [1], [0, 0, 1, 1], [], []>} : vector<16x16xf32>, vector<16x8xf32>, vector<16x8xf32> -> vector<16x8xf32>
    %729 = vector.extract_strided_slice %603 {offsets = [24, 0], sizes = [8, 32], strides = [1, 1]} : vector<32x32xf32> to vector<8x32xf32>
    %cst_227 = arith.constant dense<0.000000e+00> : vector<16x32xf32>
    %730 = tpu.matmul %728, %729, %cst_227 {dimension_numbers = #tpu.dot_dimension_numbers<[1], [0], [0], [1], [0, 0, 1, 1], [], []>} : vector<16x8xf32>, vector<8x32xf32>, vector<16x32xf32> -> vector<16x32xf32>
    %731 = arith.addf %699, %730 : vector<16x32xf32>
    %732 = vector.broadcast %604 : vector<1x32xf32> to vector<16x32xf32>
    %733 = arith.addf %731, %732 : vector<16x32xf32>
    %734 = arith.addf %594, %733 : vector<16x32xf32>
    %c23 = arith.constant 23 : index
    %c0_228 = arith.constant 0 : index
    %735 = vector.load %arg5[%c23, %c0_228] : memref<48x128xf32, #tpu.memory_space<vmem>>, vector<1x32xf32>
    %c24 = arith.constant 24 : index
    %c0_229 = arith.constant 0 : index
    %736 = vector.load %arg5[%c24, %c0_229] : memref<48x128xf32, #tpu.memory_space<vmem>>, vector<1x32xf32>
    %cst_230 = arith.constant dense<0.000000e+00> : vector<16xf32>
    %737 = vector.multi_reduction <add>, %734, %cst_230 [1] : vector<16x32xf32> to vector<16xf32>
    %738 = vector.shape_cast %737 : vector<16xf32> to vector<16x1xf32>
    %cst_231 = arith.constant 3.200000e+01 : f32
    %739 = vector.broadcast %cst_231 : f32 to vector<16x1xf32>
    %740 = arith.divf %738, %739 : vector<16x1xf32>
    %741 = vector.broadcast %740 : vector<16x1xf32> to vector<16x32xf32>
    %742 = arith.subf %734, %741 : vector<16x32xf32>
    %743 = arith.mulf %742, %742 : vector<16x32xf32>
    %cst_232 = arith.constant dense<0.000000e+00> : vector<16xf32>
    %744 = vector.multi_reduction <add>, %743, %cst_232 [1] : vector<16x32xf32> to vector<16xf32>
    %745 = vector.shape_cast %744 : vector<16xf32> to vector<16x1xf32>
    %cst_233 = arith.constant 3.200000e+01 : f32
    %746 = vector.broadcast %cst_233 : f32 to vector<16x1xf32>
    %747 = arith.divf %745, %746 : vector<16x1xf32>
    %748 = vector.broadcast %740 : vector<16x1xf32> to vector<16x32xf32>
    %749 = arith.subf %734, %748 : vector<16x32xf32>
    %cst_234 = arith.constant 9.99999974E-6 : f32
    %750 = vector.broadcast %cst_234 : f32 to vector<16x1xf32>
    %751 = arith.addf %747, %750 : vector<16x1xf32>
    %752 = math.rsqrt %751 : vector<16x1xf32>
    %753 = vector.broadcast %752 : vector<16x1xf32> to vector<16x32xf32>
    %754 = arith.mulf %749, %753 : vector<16x32xf32>
    %755 = vector.broadcast %735 : vector<1x32xf32> to vector<16x32xf32>
    %756 = arith.mulf %754, %755 : vector<16x32xf32>
    %757 = vector.broadcast %736 : vector<1x32xf32> to vector<16x32xf32>
    %758 = arith.addf %756, %757 : vector<16x32xf32>
    %c480 = arith.constant 480 : index
    %c0_235 = arith.constant 0 : index
    %759 = vector.load %arg4[%c480, %c0_235] : memref<864x128xf32, #tpu.memory_space<vmem>>, vector<32x64xf32>
    %c25 = arith.constant 25 : index
    %c0_236 = arith.constant 0 : index
    %760 = vector.load %arg5[%c25, %c0_236] : memref<48x128xf32, #tpu.memory_space<vmem>>, vector<1x64xf32>
    %c512 = arith.constant 512 : index
    %c0_237 = arith.constant 0 : index
    %761 = vector.load %arg4[%c512, %c0_237] : memref<864x128xf32, #tpu.memory_space<vmem>>, vector<64x32xf32>
    %c26 = arith.constant 26 : index
    %c0_238 = arith.constant 0 : index
    %762 = vector.load %arg5[%c26, %c0_238] : memref<48x128xf32, #tpu.memory_space<vmem>>, vector<1x32xf32>
    %cst_239 = arith.constant dense<0.000000e+00> : vector<16x64xf32>
    %763 = tpu.matmul %758, %759, %cst_239 {dimension_numbers = #tpu.dot_dimension_numbers<[1], [0], [0], [1], [0, 0, 1, 1], [], []>} : vector<16x32xf32>, vector<32x64xf32>, vector<16x64xf32> -> vector<16x64xf32>
    %764 = vector.broadcast %760 : vector<1x64xf32> to vector<16x64xf32>
    %765 = arith.addf %763, %764 : vector<16x64xf32>
    %cst_240 = arith.constant 0.000000e+00 : f32
    %766 = vector.broadcast %cst_240 : f32 to vector<16x64xf32>
    %767 = arith.maximumf %765, %766 : vector<16x64xf32>
    %cst_241 = arith.constant dense<0.000000e+00> : vector<16x32xf32>
    %768 = tpu.matmul %767, %761, %cst_241 {dimension_numbers = #tpu.dot_dimension_numbers<[1], [0], [0], [1], [0, 0, 1, 1], [], []>} : vector<16x64xf32>, vector<64x32xf32>, vector<16x32xf32> -> vector<16x32xf32>
    %769 = vector.broadcast %762 : vector<1x32xf32> to vector<16x32xf32>
    %770 = arith.addf %768, %769 : vector<16x32xf32>
    %771 = arith.addf %758, %770 : vector<16x32xf32>
    %c27 = arith.constant 27 : index
    %c0_242 = arith.constant 0 : index
    %772 = vector.load %arg5[%c27, %c0_242] : memref<48x128xf32, #tpu.memory_space<vmem>>, vector<1x32xf32>
    %c28 = arith.constant 28 : index
    %c0_243 = arith.constant 0 : index
    %773 = vector.load %arg5[%c28, %c0_243] : memref<48x128xf32, #tpu.memory_space<vmem>>, vector<1x32xf32>
    %cst_244 = arith.constant dense<0.000000e+00> : vector<16xf32>
    %774 = vector.multi_reduction <add>, %771, %cst_244 [1] : vector<16x32xf32> to vector<16xf32>
    %775 = vector.shape_cast %774 : vector<16xf32> to vector<16x1xf32>
    %cst_245 = arith.constant 3.200000e+01 : f32
    %776 = vector.broadcast %cst_245 : f32 to vector<16x1xf32>
    %777 = arith.divf %775, %776 : vector<16x1xf32>
    %778 = vector.broadcast %777 : vector<16x1xf32> to vector<16x32xf32>
    %779 = arith.subf %771, %778 : vector<16x32xf32>
    %780 = arith.mulf %779, %779 : vector<16x32xf32>
    %cst_246 = arith.constant dense<0.000000e+00> : vector<16xf32>
    %781 = vector.multi_reduction <add>, %780, %cst_246 [1] : vector<16x32xf32> to vector<16xf32>
    %782 = vector.shape_cast %781 : vector<16xf32> to vector<16x1xf32>
    %cst_247 = arith.constant 3.200000e+01 : f32
    %783 = vector.broadcast %cst_247 : f32 to vector<16x1xf32>
    %784 = arith.divf %782, %783 : vector<16x1xf32>
    %785 = vector.broadcast %777 : vector<16x1xf32> to vector<16x32xf32>
    %786 = arith.subf %771, %785 : vector<16x32xf32>
    %cst_248 = arith.constant 9.99999974E-6 : f32
    %787 = vector.broadcast %cst_248 : f32 to vector<16x1xf32>
    %788 = arith.addf %784, %787 : vector<16x1xf32>
    %789 = math.rsqrt %788 : vector<16x1xf32>
    %790 = vector.broadcast %789 : vector<16x1xf32> to vector<16x32xf32>
    %791 = arith.mulf %786, %790 : vector<16x32xf32>
    %792 = vector.broadcast %772 : vector<1x32xf32> to vector<16x32xf32>
    %793 = arith.mulf %791, %792 : vector<16x32xf32>
    %794 = vector.broadcast %773 : vector<1x32xf32> to vector<16x32xf32>
    %795 = arith.addf %793, %794 : vector<16x32xf32>
    %c576 = arith.constant 576 : index
    %c0_249 = arith.constant 0 : index
    %796 = vector.load %arg4[%c576, %c0_249] : memref<864x128xf32, #tpu.memory_space<vmem>>, vector<32x96xf32>
    %c29 = arith.constant 29 : index
    %c0_250 = arith.constant 0 : index
    %797 = vector.load %arg5[%c29, %c0_250] : memref<48x128xf32, #tpu.memory_space<vmem>>, vector<1x96xf32>
    %798 = vector.extract_strided_slice %796 {offsets = [0, 0], sizes = [32, 32], strides = [1, 1]} : vector<32x96xf32> to vector<32x32xf32>
    %799 = vector.extract_strided_slice %797 {offsets = [0, 0], sizes = [1, 32], strides = [1, 1]} : vector<1x96xf32> to vector<1x32xf32>
    %800 = vector.extract_strided_slice %796 {offsets = [0, 32], sizes = [32, 32], strides = [1, 1]} : vector<32x96xf32> to vector<32x32xf32>
    %801 = vector.extract_strided_slice %797 {offsets = [0, 32], sizes = [1, 32], strides = [1, 1]} : vector<1x96xf32> to vector<1x32xf32>
    %802 = vector.extract_strided_slice %796 {offsets = [0, 64], sizes = [32, 32], strides = [1, 1]} : vector<32x96xf32> to vector<32x32xf32>
    %803 = vector.extract_strided_slice %797 {offsets = [0, 64], sizes = [1, 32], strides = [1, 1]} : vector<1x96xf32> to vector<1x32xf32>
    %c608 = arith.constant 608 : index
    %c0_251 = arith.constant 0 : index
    %804 = vector.load %arg4[%c608, %c0_251] : memref<864x128xf32, #tpu.memory_space<vmem>>, vector<32x32xf32>
    %c30 = arith.constant 30 : index
    %c0_252 = arith.constant 0 : index
    %805 = vector.load %arg5[%c30, %c0_252] : memref<48x128xf32, #tpu.memory_space<vmem>>, vector<1x32xf32>
    %806 = vector.extract_strided_slice %798 {offsets = [0, 0], sizes = [32, 8], strides = [1, 1]} : vector<32x32xf32> to vector<32x8xf32>
    %cst_253 = arith.constant dense<0.000000e+00> : vector<16x8xf32>
    %807 = tpu.matmul %795, %806, %cst_253 {dimension_numbers = #tpu.dot_dimension_numbers<[1], [0], [0], [1], [0, 0, 1, 1], [], []>} : vector<16x32xf32>, vector<32x8xf32>, vector<16x8xf32> -> vector<16x8xf32>
    %808 = vector.extract_strided_slice %799 {offsets = [0, 0], sizes = [1, 8], strides = [1, 1]} : vector<1x32xf32> to vector<1x8xf32>
    %809 = vector.broadcast %808 : vector<1x8xf32> to vector<16x8xf32>
    %810 = arith.addf %807, %809 : vector<16x8xf32>
    %811 = vector.extract_strided_slice %800 {offsets = [0, 0], sizes = [32, 8], strides = [1, 1]} : vector<32x32xf32> to vector<32x8xf32>
    %cst_254 = arith.constant dense<0.000000e+00> : vector<16x8xf32>
    %812 = tpu.matmul %795, %811, %cst_254 {dimension_numbers = #tpu.dot_dimension_numbers<[1], [0], [0], [1], [0, 0, 1, 1], [], []>} : vector<16x32xf32>, vector<32x8xf32>, vector<16x8xf32> -> vector<16x8xf32>
    %813 = vector.extract_strided_slice %801 {offsets = [0, 0], sizes = [1, 8], strides = [1, 1]} : vector<1x32xf32> to vector<1x8xf32>
    %814 = vector.broadcast %813 : vector<1x8xf32> to vector<16x8xf32>
    %815 = arith.addf %812, %814 : vector<16x8xf32>
    %816 = vector.extract_strided_slice %802 {offsets = [0, 0], sizes = [32, 8], strides = [1, 1]} : vector<32x32xf32> to vector<32x8xf32>
    %cst_255 = arith.constant dense<0.000000e+00> : vector<16x8xf32>
    %817 = tpu.matmul %795, %816, %cst_255 {dimension_numbers = #tpu.dot_dimension_numbers<[1], [0], [0], [1], [0, 0, 1, 1], [], []>} : vector<16x32xf32>, vector<32x8xf32>, vector<16x8xf32> -> vector<16x8xf32>
    %818 = vector.extract_strided_slice %803 {offsets = [0, 0], sizes = [1, 8], strides = [1, 1]} : vector<1x32xf32> to vector<1x8xf32>
    %819 = vector.broadcast %818 : vector<1x8xf32> to vector<16x8xf32>
    %820 = arith.addf %817, %819 : vector<16x8xf32>
    %cst_256 = arith.constant dense<0.000000e+00> : vector<16x16xf32>
    %821 = tpu.matmul %810, %815, %cst_256 {dimension_numbers = #tpu.dot_dimension_numbers<[1], [1], [0], [0], [0, 0, 1, 0], [], []>} : vector<16x8xf32>, vector<16x8xf32>, vector<16x16xf32> -> vector<16x16xf32>
    %cst_257 = arith.constant 0.353553385 : f32
    %822 = vector.broadcast %cst_257 : f32 to vector<16x16xf32>
    %823 = arith.mulf %821, %822 : vector<16x16xf32>
    %824 = arith.addf %823, %1 : vector<16x16xf32>
    %cst_258 = arith.constant dense<0xFF800000> : vector<16xf32>
    %825 = vector.multi_reduction <maximumf>, %824, %cst_258 [1] : vector<16x16xf32> to vector<16xf32>
    %826 = vector.shape_cast %825 : vector<16xf32> to vector<16x1xf32>
    %827 = vector.broadcast %826 : vector<16x1xf32> to vector<16x16xf32>
    %828 = arith.subf %824, %827 : vector<16x16xf32>
    %829 = math.exp %828 : vector<16x16xf32>
    %cst_259 = arith.constant dense<0.000000e+00> : vector<16xf32>
    %830 = vector.multi_reduction <add>, %829, %cst_259 [1] : vector<16x16xf32> to vector<16xf32>
    %831 = vector.shape_cast %830 : vector<16xf32> to vector<16x1xf32>
    %832 = vector.broadcast %831 : vector<16x1xf32> to vector<16x16xf32>
    %833 = arith.divf %829, %832 : vector<16x16xf32>
    %cst_260 = arith.constant dense<0.000000e+00> : vector<16x8xf32>
    %834 = tpu.matmul %833, %820, %cst_260 {dimension_numbers = #tpu.dot_dimension_numbers<[1], [0], [0], [1], [0, 0, 1, 1], [], []>} : vector<16x16xf32>, vector<16x8xf32>, vector<16x8xf32> -> vector<16x8xf32>
    %835 = vector.extract_strided_slice %804 {offsets = [0, 0], sizes = [8, 32], strides = [1, 1]} : vector<32x32xf32> to vector<8x32xf32>
    %cst_261 = arith.constant dense<0.000000e+00> : vector<16x32xf32>
    %836 = tpu.matmul %834, %835, %cst_261 {dimension_numbers = #tpu.dot_dimension_numbers<[1], [0], [0], [1], [0, 0, 1, 1], [], []>} : vector<16x8xf32>, vector<8x32xf32>, vector<16x32xf32> -> vector<16x32xf32>
    %837 = vector.extract_strided_slice %798 {offsets = [0, 8], sizes = [32, 8], strides = [1, 1]} : vector<32x32xf32> to vector<32x8xf32>
    %cst_262 = arith.constant dense<0.000000e+00> : vector<16x8xf32>
    %838 = tpu.matmul %795, %837, %cst_262 {dimension_numbers = #tpu.dot_dimension_numbers<[1], [0], [0], [1], [0, 0, 1, 1], [], []>} : vector<16x32xf32>, vector<32x8xf32>, vector<16x8xf32> -> vector<16x8xf32>
    %839 = vector.extract_strided_slice %799 {offsets = [0, 8], sizes = [1, 8], strides = [1, 1]} : vector<1x32xf32> to vector<1x8xf32>
    %840 = vector.broadcast %839 : vector<1x8xf32> to vector<16x8xf32>
    %841 = arith.addf %838, %840 : vector<16x8xf32>
    %842 = vector.extract_strided_slice %800 {offsets = [0, 8], sizes = [32, 8], strides = [1, 1]} : vector<32x32xf32> to vector<32x8xf32>
    %cst_263 = arith.constant dense<0.000000e+00> : vector<16x8xf32>
    %843 = tpu.matmul %795, %842, %cst_263 {dimension_numbers = #tpu.dot_dimension_numbers<[1], [0], [0], [1], [0, 0, 1, 1], [], []>} : vector<16x32xf32>, vector<32x8xf32>, vector<16x8xf32> -> vector<16x8xf32>
    %844 = vector.extract_strided_slice %801 {offsets = [0, 8], sizes = [1, 8], strides = [1, 1]} : vector<1x32xf32> to vector<1x8xf32>
    %845 = vector.broadcast %844 : vector<1x8xf32> to vector<16x8xf32>
    %846 = arith.addf %843, %845 : vector<16x8xf32>
    %847 = vector.extract_strided_slice %802 {offsets = [0, 8], sizes = [32, 8], strides = [1, 1]} : vector<32x32xf32> to vector<32x8xf32>
    %cst_264 = arith.constant dense<0.000000e+00> : vector<16x8xf32>
    %848 = tpu.matmul %795, %847, %cst_264 {dimension_numbers = #tpu.dot_dimension_numbers<[1], [0], [0], [1], [0, 0, 1, 1], [], []>} : vector<16x32xf32>, vector<32x8xf32>, vector<16x8xf32> -> vector<16x8xf32>
    %849 = vector.extract_strided_slice %803 {offsets = [0, 8], sizes = [1, 8], strides = [1, 1]} : vector<1x32xf32> to vector<1x8xf32>
    %850 = vector.broadcast %849 : vector<1x8xf32> to vector<16x8xf32>
    %851 = arith.addf %848, %850 : vector<16x8xf32>
    %cst_265 = arith.constant dense<0.000000e+00> : vector<16x16xf32>
    %852 = tpu.matmul %841, %846, %cst_265 {dimension_numbers = #tpu.dot_dimension_numbers<[1], [1], [0], [0], [0, 0, 1, 0], [], []>} : vector<16x8xf32>, vector<16x8xf32>, vector<16x16xf32> -> vector<16x16xf32>
    %cst_266 = arith.constant 0.353553385 : f32
    %853 = vector.broadcast %cst_266 : f32 to vector<16x16xf32>
    %854 = arith.mulf %852, %853 : vector<16x16xf32>
    %855 = arith.addf %854, %1 : vector<16x16xf32>
    %cst_267 = arith.constant dense<0xFF800000> : vector<16xf32>
    %856 = vector.multi_reduction <maximumf>, %855, %cst_267 [1] : vector<16x16xf32> to vector<16xf32>
    %857 = vector.shape_cast %856 : vector<16xf32> to vector<16x1xf32>
    %858 = vector.broadcast %857 : vector<16x1xf32> to vector<16x16xf32>
    %859 = arith.subf %855, %858 : vector<16x16xf32>
    %860 = math.exp %859 : vector<16x16xf32>
    %cst_268 = arith.constant dense<0.000000e+00> : vector<16xf32>
    %861 = vector.multi_reduction <add>, %860, %cst_268 [1] : vector<16x16xf32> to vector<16xf32>
    %862 = vector.shape_cast %861 : vector<16xf32> to vector<16x1xf32>
    %863 = vector.broadcast %862 : vector<16x1xf32> to vector<16x16xf32>
    %864 = arith.divf %860, %863 : vector<16x16xf32>
    %cst_269 = arith.constant dense<0.000000e+00> : vector<16x8xf32>
    %865 = tpu.matmul %864, %851, %cst_269 {dimension_numbers = #tpu.dot_dimension_numbers<[1], [0], [0], [1], [0, 0, 1, 1], [], []>} : vector<16x16xf32>, vector<16x8xf32>, vector<16x8xf32> -> vector<16x8xf32>
    %866 = vector.extract_strided_slice %804 {offsets = [8, 0], sizes = [8, 32], strides = [1, 1]} : vector<32x32xf32> to vector<8x32xf32>
    %cst_270 = arith.constant dense<0.000000e+00> : vector<16x32xf32>
    %867 = tpu.matmul %865, %866, %cst_270 {dimension_numbers = #tpu.dot_dimension_numbers<[1], [0], [0], [1], [0, 0, 1, 1], [], []>} : vector<16x8xf32>, vector<8x32xf32>, vector<16x32xf32> -> vector<16x32xf32>
    %868 = arith.addf %836, %867 : vector<16x32xf32>
    %869 = vector.extract_strided_slice %798 {offsets = [0, 16], sizes = [32, 8], strides = [1, 1]} : vector<32x32xf32> to vector<32x8xf32>
    %cst_271 = arith.constant dense<0.000000e+00> : vector<16x8xf32>
    %870 = tpu.matmul %795, %869, %cst_271 {dimension_numbers = #tpu.dot_dimension_numbers<[1], [0], [0], [1], [0, 0, 1, 1], [], []>} : vector<16x32xf32>, vector<32x8xf32>, vector<16x8xf32> -> vector<16x8xf32>
    %871 = vector.extract_strided_slice %799 {offsets = [0, 16], sizes = [1, 8], strides = [1, 1]} : vector<1x32xf32> to vector<1x8xf32>
    %872 = vector.broadcast %871 : vector<1x8xf32> to vector<16x8xf32>
    %873 = arith.addf %870, %872 : vector<16x8xf32>
    %874 = vector.extract_strided_slice %800 {offsets = [0, 16], sizes = [32, 8], strides = [1, 1]} : vector<32x32xf32> to vector<32x8xf32>
    %cst_272 = arith.constant dense<0.000000e+00> : vector<16x8xf32>
    %875 = tpu.matmul %795, %874, %cst_272 {dimension_numbers = #tpu.dot_dimension_numbers<[1], [0], [0], [1], [0, 0, 1, 1], [], []>} : vector<16x32xf32>, vector<32x8xf32>, vector<16x8xf32> -> vector<16x8xf32>
    %876 = vector.extract_strided_slice %801 {offsets = [0, 16], sizes = [1, 8], strides = [1, 1]} : vector<1x32xf32> to vector<1x8xf32>
    %877 = vector.broadcast %876 : vector<1x8xf32> to vector<16x8xf32>
    %878 = arith.addf %875, %877 : vector<16x8xf32>
    %879 = vector.extract_strided_slice %802 {offsets = [0, 16], sizes = [32, 8], strides = [1, 1]} : vector<32x32xf32> to vector<32x8xf32>
    %cst_273 = arith.constant dense<0.000000e+00> : vector<16x8xf32>
    %880 = tpu.matmul %795, %879, %cst_273 {dimension_numbers = #tpu.dot_dimension_numbers<[1], [0], [0], [1], [0, 0, 1, 1], [], []>} : vector<16x32xf32>, vector<32x8xf32>, vector<16x8xf32> -> vector<16x8xf32>
    %881 = vector.extract_strided_slice %803 {offsets = [0, 16], sizes = [1, 8], strides = [1, 1]} : vector<1x32xf32> to vector<1x8xf32>
    %882 = vector.broadcast %881 : vector<1x8xf32> to vector<16x8xf32>
    %883 = arith.addf %880, %882 : vector<16x8xf32>
    %cst_274 = arith.constant dense<0.000000e+00> : vector<16x16xf32>
    %884 = tpu.matmul %873, %878, %cst_274 {dimension_numbers = #tpu.dot_dimension_numbers<[1], [1], [0], [0], [0, 0, 1, 0], [], []>} : vector<16x8xf32>, vector<16x8xf32>, vector<16x16xf32> -> vector<16x16xf32>
    %cst_275 = arith.constant 0.353553385 : f32
    %885 = vector.broadcast %cst_275 : f32 to vector<16x16xf32>
    %886 = arith.mulf %884, %885 : vector<16x16xf32>
    %887 = arith.addf %886, %1 : vector<16x16xf32>
    %cst_276 = arith.constant dense<0xFF800000> : vector<16xf32>
    %888 = vector.multi_reduction <maximumf>, %887, %cst_276 [1] : vector<16x16xf32> to vector<16xf32>
    %889 = vector.shape_cast %888 : vector<16xf32> to vector<16x1xf32>
    %890 = vector.broadcast %889 : vector<16x1xf32> to vector<16x16xf32>
    %891 = arith.subf %887, %890 : vector<16x16xf32>
    %892 = math.exp %891 : vector<16x16xf32>
    %cst_277 = arith.constant dense<0.000000e+00> : vector<16xf32>
    %893 = vector.multi_reduction <add>, %892, %cst_277 [1] : vector<16x16xf32> to vector<16xf32>
    %894 = vector.shape_cast %893 : vector<16xf32> to vector<16x1xf32>
    %895 = vector.broadcast %894 : vector<16x1xf32> to vector<16x16xf32>
    %896 = arith.divf %892, %895 : vector<16x16xf32>
    %cst_278 = arith.constant dense<0.000000e+00> : vector<16x8xf32>
    %897 = tpu.matmul %896, %883, %cst_278 {dimension_numbers = #tpu.dot_dimension_numbers<[1], [0], [0], [1], [0, 0, 1, 1], [], []>} : vector<16x16xf32>, vector<16x8xf32>, vector<16x8xf32> -> vector<16x8xf32>
    %898 = vector.extract_strided_slice %804 {offsets = [16, 0], sizes = [8, 32], strides = [1, 1]} : vector<32x32xf32> to vector<8x32xf32>
    %cst_279 = arith.constant dense<0.000000e+00> : vector<16x32xf32>
    %899 = tpu.matmul %897, %898, %cst_279 {dimension_numbers = #tpu.dot_dimension_numbers<[1], [0], [0], [1], [0, 0, 1, 1], [], []>} : vector<16x8xf32>, vector<8x32xf32>, vector<16x32xf32> -> vector<16x32xf32>
    %900 = arith.addf %868, %899 : vector<16x32xf32>
    %901 = vector.extract_strided_slice %798 {offsets = [0, 24], sizes = [32, 8], strides = [1, 1]} : vector<32x32xf32> to vector<32x8xf32>
    %cst_280 = arith.constant dense<0.000000e+00> : vector<16x8xf32>
    %902 = tpu.matmul %795, %901, %cst_280 {dimension_numbers = #tpu.dot_dimension_numbers<[1], [0], [0], [1], [0, 0, 1, 1], [], []>} : vector<16x32xf32>, vector<32x8xf32>, vector<16x8xf32> -> vector<16x8xf32>
    %903 = vector.extract_strided_slice %799 {offsets = [0, 24], sizes = [1, 8], strides = [1, 1]} : vector<1x32xf32> to vector<1x8xf32>
    %904 = vector.broadcast %903 : vector<1x8xf32> to vector<16x8xf32>
    %905 = arith.addf %902, %904 : vector<16x8xf32>
    %906 = vector.extract_strided_slice %800 {offsets = [0, 24], sizes = [32, 8], strides = [1, 1]} : vector<32x32xf32> to vector<32x8xf32>
    %cst_281 = arith.constant dense<0.000000e+00> : vector<16x8xf32>
    %907 = tpu.matmul %795, %906, %cst_281 {dimension_numbers = #tpu.dot_dimension_numbers<[1], [0], [0], [1], [0, 0, 1, 1], [], []>} : vector<16x32xf32>, vector<32x8xf32>, vector<16x8xf32> -> vector<16x8xf32>
    %908 = vector.extract_strided_slice %801 {offsets = [0, 24], sizes = [1, 8], strides = [1, 1]} : vector<1x32xf32> to vector<1x8xf32>
    %909 = vector.broadcast %908 : vector<1x8xf32> to vector<16x8xf32>
    %910 = arith.addf %907, %909 : vector<16x8xf32>
    %911 = vector.extract_strided_slice %802 {offsets = [0, 24], sizes = [32, 8], strides = [1, 1]} : vector<32x32xf32> to vector<32x8xf32>
    %cst_282 = arith.constant dense<0.000000e+00> : vector<16x8xf32>
    %912 = tpu.matmul %795, %911, %cst_282 {dimension_numbers = #tpu.dot_dimension_numbers<[1], [0], [0], [1], [0, 0, 1, 1], [], []>} : vector<16x32xf32>, vector<32x8xf32>, vector<16x8xf32> -> vector<16x8xf32>
    %913 = vector.extract_strided_slice %803 {offsets = [0, 24], sizes = [1, 8], strides = [1, 1]} : vector<1x32xf32> to vector<1x8xf32>
    %914 = vector.broadcast %913 : vector<1x8xf32> to vector<16x8xf32>
    %915 = arith.addf %912, %914 : vector<16x8xf32>
    %cst_283 = arith.constant dense<0.000000e+00> : vector<16x16xf32>
    %916 = tpu.matmul %905, %910, %cst_283 {dimension_numbers = #tpu.dot_dimension_numbers<[1], [1], [0], [0], [0, 0, 1, 0], [], []>} : vector<16x8xf32>, vector<16x8xf32>, vector<16x16xf32> -> vector<16x16xf32>
    %cst_284 = arith.constant 0.353553385 : f32
    %917 = vector.broadcast %cst_284 : f32 to vector<16x16xf32>
    %918 = arith.mulf %916, %917 : vector<16x16xf32>
    %919 = arith.addf %918, %1 : vector<16x16xf32>
    %cst_285 = arith.constant dense<0xFF800000> : vector<16xf32>
    %920 = vector.multi_reduction <maximumf>, %919, %cst_285 [1] : vector<16x16xf32> to vector<16xf32>
    %921 = vector.shape_cast %920 : vector<16xf32> to vector<16x1xf32>
    %922 = vector.broadcast %921 : vector<16x1xf32> to vector<16x16xf32>
    %923 = arith.subf %919, %922 : vector<16x16xf32>
    %924 = math.exp %923 : vector<16x16xf32>
    %cst_286 = arith.constant dense<0.000000e+00> : vector<16xf32>
    %925 = vector.multi_reduction <add>, %924, %cst_286 [1] : vector<16x16xf32> to vector<16xf32>
    %926 = vector.shape_cast %925 : vector<16xf32> to vector<16x1xf32>
    %927 = vector.broadcast %926 : vector<16x1xf32> to vector<16x16xf32>
    %928 = arith.divf %924, %927 : vector<16x16xf32>
    %cst_287 = arith.constant dense<0.000000e+00> : vector<16x8xf32>
    %929 = tpu.matmul %928, %915, %cst_287 {dimension_numbers = #tpu.dot_dimension_numbers<[1], [0], [0], [1], [0, 0, 1, 1], [], []>} : vector<16x16xf32>, vector<16x8xf32>, vector<16x8xf32> -> vector<16x8xf32>
    %930 = vector.extract_strided_slice %804 {offsets = [24, 0], sizes = [8, 32], strides = [1, 1]} : vector<32x32xf32> to vector<8x32xf32>
    %cst_288 = arith.constant dense<0.000000e+00> : vector<16x32xf32>
    %931 = tpu.matmul %929, %930, %cst_288 {dimension_numbers = #tpu.dot_dimension_numbers<[1], [0], [0], [1], [0, 0, 1, 1], [], []>} : vector<16x8xf32>, vector<8x32xf32>, vector<16x32xf32> -> vector<16x32xf32>
    %932 = arith.addf %900, %931 : vector<16x32xf32>
    %933 = vector.broadcast %805 : vector<1x32xf32> to vector<16x32xf32>
    %934 = arith.addf %932, %933 : vector<16x32xf32>
    %935 = arith.addf %795, %934 : vector<16x32xf32>
    %c31 = arith.constant 31 : index
    %c0_289 = arith.constant 0 : index
    %936 = vector.load %arg5[%c31, %c0_289] : memref<48x128xf32, #tpu.memory_space<vmem>>, vector<1x32xf32>
    %c32_290 = arith.constant 32 : index
    %c0_291 = arith.constant 0 : index
    %937 = vector.load %arg5[%c32_290, %c0_291] : memref<48x128xf32, #tpu.memory_space<vmem>>, vector<1x32xf32>
    %cst_292 = arith.constant dense<0.000000e+00> : vector<16xf32>
    %938 = vector.multi_reduction <add>, %935, %cst_292 [1] : vector<16x32xf32> to vector<16xf32>
    %939 = vector.shape_cast %938 : vector<16xf32> to vector<16x1xf32>
    %cst_293 = arith.constant 3.200000e+01 : f32
    %940 = vector.broadcast %cst_293 : f32 to vector<16x1xf32>
    %941 = arith.divf %939, %940 : vector<16x1xf32>
    %942 = vector.broadcast %941 : vector<16x1xf32> to vector<16x32xf32>
    %943 = arith.subf %935, %942 : vector<16x32xf32>
    %944 = arith.mulf %943, %943 : vector<16x32xf32>
    %cst_294 = arith.constant dense<0.000000e+00> : vector<16xf32>
    %945 = vector.multi_reduction <add>, %944, %cst_294 [1] : vector<16x32xf32> to vector<16xf32>
    %946 = vector.shape_cast %945 : vector<16xf32> to vector<16x1xf32>
    %cst_295 = arith.constant 3.200000e+01 : f32
    %947 = vector.broadcast %cst_295 : f32 to vector<16x1xf32>
    %948 = arith.divf %946, %947 : vector<16x1xf32>
    %949 = vector.broadcast %941 : vector<16x1xf32> to vector<16x32xf32>
    %950 = arith.subf %935, %949 : vector<16x32xf32>
    %cst_296 = arith.constant 9.99999974E-6 : f32
    %951 = vector.broadcast %cst_296 : f32 to vector<16x1xf32>
    %952 = arith.addf %948, %951 : vector<16x1xf32>
    %953 = math.rsqrt %952 : vector<16x1xf32>
    %954 = vector.broadcast %953 : vector<16x1xf32> to vector<16x32xf32>
    %955 = arith.mulf %950, %954 : vector<16x32xf32>
    %956 = vector.broadcast %936 : vector<1x32xf32> to vector<16x32xf32>
    %957 = arith.mulf %955, %956 : vector<16x32xf32>
    %958 = vector.broadcast %937 : vector<1x32xf32> to vector<16x32xf32>
    %959 = arith.addf %957, %958 : vector<16x32xf32>
    %c672 = arith.constant 672 : index
    %c0_297 = arith.constant 0 : index
    %960 = vector.load %arg4[%c672, %c0_297] : memref<864x128xf32, #tpu.memory_space<vmem>>, vector<32x64xf32>
    %c34 = arith.constant 34 : index
    %c0_298 = arith.constant 0 : index
    %961 = vector.load %arg5[%c34, %c0_298] : memref<48x128xf32, #tpu.memory_space<vmem>>, vector<1x64xf32>
    %c640 = arith.constant 640 : index
    %c0_299 = arith.constant 0 : index
    %962 = vector.load %arg4[%c640, %c0_299] : memref<864x128xf32, #tpu.memory_space<vmem>>, vector<32x32xf32>
    %c33 = arith.constant 33 : index
    %c0_300 = arith.constant 0 : index
    %963 = vector.load %arg5[%c33, %c0_300] : memref<48x128xf32, #tpu.memory_space<vmem>>, vector<1x32xf32>
    %964 = vector.extract_strided_slice %960 {offsets = [0, 0], sizes = [32, 32], strides = [1, 1]} : vector<32x64xf32> to vector<32x32xf32>
    %965 = vector.extract_strided_slice %961 {offsets = [0, 0], sizes = [1, 32], strides = [1, 1]} : vector<1x64xf32> to vector<1x32xf32>
    %966 = vector.extract_strided_slice %960 {offsets = [0, 32], sizes = [32, 32], strides = [1, 1]} : vector<32x64xf32> to vector<32x32xf32>
    %967 = vector.extract_strided_slice %961 {offsets = [0, 32], sizes = [1, 32], strides = [1, 1]} : vector<1x64xf32> to vector<1x32xf32>
    %c704 = arith.constant 704 : index
    %c0_301 = arith.constant 0 : index
    %968 = vector.load %arg4[%c704, %c0_301] : memref<864x128xf32, #tpu.memory_space<vmem>>, vector<32x32xf32>
    %c35 = arith.constant 35 : index
    %c0_302 = arith.constant 0 : index
    %969 = vector.load %arg5[%c35, %c0_302] : memref<48x128xf32, #tpu.memory_space<vmem>>, vector<1x32xf32>
    %970 = vector.extract_strided_slice %962 {offsets = [0, 0], sizes = [32, 8], strides = [1, 1]} : vector<32x32xf32> to vector<32x8xf32>
    %cst_303 = arith.constant dense<0.000000e+00> : vector<16x8xf32>
    %971 = tpu.matmul %959, %970, %cst_303 {dimension_numbers = #tpu.dot_dimension_numbers<[1], [0], [0], [1], [0, 0, 1, 1], [], []>} : vector<16x32xf32>, vector<32x8xf32>, vector<16x8xf32> -> vector<16x8xf32>
    %972 = vector.extract_strided_slice %963 {offsets = [0, 0], sizes = [1, 8], strides = [1, 1]} : vector<1x32xf32> to vector<1x8xf32>
    %973 = vector.broadcast %972 : vector<1x8xf32> to vector<16x8xf32>
    %974 = arith.addf %971, %973 : vector<16x8xf32>
    %975 = vector.extract_strided_slice %964 {offsets = [0, 0], sizes = [32, 8], strides = [1, 1]} : vector<32x32xf32> to vector<32x8xf32>
    %cst_304 = arith.constant dense<0.000000e+00> : vector<16x8xf32>
    %976 = tpu.matmul %430, %975, %cst_304 {dimension_numbers = #tpu.dot_dimension_numbers<[1], [0], [0], [1], [0, 0, 1, 1], [], []>} : vector<16x32xf32>, vector<32x8xf32>, vector<16x8xf32> -> vector<16x8xf32>
    %977 = vector.extract_strided_slice %965 {offsets = [0, 0], sizes = [1, 8], strides = [1, 1]} : vector<1x32xf32> to vector<1x8xf32>
    %978 = vector.broadcast %977 : vector<1x8xf32> to vector<16x8xf32>
    %979 = arith.addf %976, %978 : vector<16x8xf32>
    %980 = vector.extract_strided_slice %966 {offsets = [0, 0], sizes = [32, 8], strides = [1, 1]} : vector<32x32xf32> to vector<32x8xf32>
    %cst_305 = arith.constant dense<0.000000e+00> : vector<16x8xf32>
    %981 = tpu.matmul %430, %980, %cst_305 {dimension_numbers = #tpu.dot_dimension_numbers<[1], [0], [0], [1], [0, 0, 1, 1], [], []>} : vector<16x32xf32>, vector<32x8xf32>, vector<16x8xf32> -> vector<16x8xf32>
    %982 = vector.extract_strided_slice %967 {offsets = [0, 0], sizes = [1, 8], strides = [1, 1]} : vector<1x32xf32> to vector<1x8xf32>
    %983 = vector.broadcast %982 : vector<1x8xf32> to vector<16x8xf32>
    %984 = arith.addf %981, %983 : vector<16x8xf32>
    %cst_306 = arith.constant dense<0.000000e+00> : vector<16x16xf32>
    %985 = tpu.matmul %974, %979, %cst_306 {dimension_numbers = #tpu.dot_dimension_numbers<[1], [1], [0], [0], [0, 0, 1, 0], [], []>} : vector<16x8xf32>, vector<16x8xf32>, vector<16x16xf32> -> vector<16x16xf32>
    %cst_307 = arith.constant 0.353553385 : f32
    %986 = vector.broadcast %cst_307 : f32 to vector<16x16xf32>
    %987 = arith.mulf %985, %986 : vector<16x16xf32>
    %988 = arith.addf %987, %2 : vector<16x16xf32>
    %cst_308 = arith.constant dense<0xFF800000> : vector<16xf32>
    %989 = vector.multi_reduction <maximumf>, %988, %cst_308 [1] : vector<16x16xf32> to vector<16xf32>
    %990 = vector.shape_cast %989 : vector<16xf32> to vector<16x1xf32>
    %991 = vector.broadcast %990 : vector<16x1xf32> to vector<16x16xf32>
    %992 = arith.subf %988, %991 : vector<16x16xf32>
    %993 = math.exp %992 : vector<16x16xf32>
    %cst_309 = arith.constant dense<0.000000e+00> : vector<16xf32>
    %994 = vector.multi_reduction <add>, %993, %cst_309 [1] : vector<16x16xf32> to vector<16xf32>
    %995 = vector.shape_cast %994 : vector<16xf32> to vector<16x1xf32>
    %996 = vector.broadcast %995 : vector<16x1xf32> to vector<16x16xf32>
    %997 = arith.divf %993, %996 : vector<16x16xf32>
    %cst_310 = arith.constant dense<0.000000e+00> : vector<16x8xf32>
    %998 = tpu.matmul %997, %984, %cst_310 {dimension_numbers = #tpu.dot_dimension_numbers<[1], [0], [0], [1], [0, 0, 1, 1], [], []>} : vector<16x16xf32>, vector<16x8xf32>, vector<16x8xf32> -> vector<16x8xf32>
    %999 = vector.extract_strided_slice %968 {offsets = [0, 0], sizes = [8, 32], strides = [1, 1]} : vector<32x32xf32> to vector<8x32xf32>
    %cst_311 = arith.constant dense<0.000000e+00> : vector<16x32xf32>
    %1000 = tpu.matmul %998, %999, %cst_311 {dimension_numbers = #tpu.dot_dimension_numbers<[1], [0], [0], [1], [0, 0, 1, 1], [], []>} : vector<16x8xf32>, vector<8x32xf32>, vector<16x32xf32> -> vector<16x32xf32>
    %1001 = vector.extract_strided_slice %962 {offsets = [0, 8], sizes = [32, 8], strides = [1, 1]} : vector<32x32xf32> to vector<32x8xf32>
    %cst_312 = arith.constant dense<0.000000e+00> : vector<16x8xf32>
    %1002 = tpu.matmul %959, %1001, %cst_312 {dimension_numbers = #tpu.dot_dimension_numbers<[1], [0], [0], [1], [0, 0, 1, 1], [], []>} : vector<16x32xf32>, vector<32x8xf32>, vector<16x8xf32> -> vector<16x8xf32>
    %1003 = vector.extract_strided_slice %963 {offsets = [0, 8], sizes = [1, 8], strides = [1, 1]} : vector<1x32xf32> to vector<1x8xf32>
    %1004 = vector.broadcast %1003 : vector<1x8xf32> to vector<16x8xf32>
    %1005 = arith.addf %1002, %1004 : vector<16x8xf32>
    %1006 = vector.extract_strided_slice %964 {offsets = [0, 8], sizes = [32, 8], strides = [1, 1]} : vector<32x32xf32> to vector<32x8xf32>
    %cst_313 = arith.constant dense<0.000000e+00> : vector<16x8xf32>
    %1007 = tpu.matmul %430, %1006, %cst_313 {dimension_numbers = #tpu.dot_dimension_numbers<[1], [0], [0], [1], [0, 0, 1, 1], [], []>} : vector<16x32xf32>, vector<32x8xf32>, vector<16x8xf32> -> vector<16x8xf32>
    %1008 = vector.extract_strided_slice %965 {offsets = [0, 8], sizes = [1, 8], strides = [1, 1]} : vector<1x32xf32> to vector<1x8xf32>
    %1009 = vector.broadcast %1008 : vector<1x8xf32> to vector<16x8xf32>
    %1010 = arith.addf %1007, %1009 : vector<16x8xf32>
    %1011 = vector.extract_strided_slice %966 {offsets = [0, 8], sizes = [32, 8], strides = [1, 1]} : vector<32x32xf32> to vector<32x8xf32>
    %cst_314 = arith.constant dense<0.000000e+00> : vector<16x8xf32>
    %1012 = tpu.matmul %430, %1011, %cst_314 {dimension_numbers = #tpu.dot_dimension_numbers<[1], [0], [0], [1], [0, 0, 1, 1], [], []>} : vector<16x32xf32>, vector<32x8xf32>, vector<16x8xf32> -> vector<16x8xf32>
    %1013 = vector.extract_strided_slice %967 {offsets = [0, 8], sizes = [1, 8], strides = [1, 1]} : vector<1x32xf32> to vector<1x8xf32>
    %1014 = vector.broadcast %1013 : vector<1x8xf32> to vector<16x8xf32>
    %1015 = arith.addf %1012, %1014 : vector<16x8xf32>
    %cst_315 = arith.constant dense<0.000000e+00> : vector<16x16xf32>
    %1016 = tpu.matmul %1005, %1010, %cst_315 {dimension_numbers = #tpu.dot_dimension_numbers<[1], [1], [0], [0], [0, 0, 1, 0], [], []>} : vector<16x8xf32>, vector<16x8xf32>, vector<16x16xf32> -> vector<16x16xf32>
    %cst_316 = arith.constant 0.353553385 : f32
    %1017 = vector.broadcast %cst_316 : f32 to vector<16x16xf32>
    %1018 = arith.mulf %1016, %1017 : vector<16x16xf32>
    %1019 = arith.addf %1018, %2 : vector<16x16xf32>
    %cst_317 = arith.constant dense<0xFF800000> : vector<16xf32>
    %1020 = vector.multi_reduction <maximumf>, %1019, %cst_317 [1] : vector<16x16xf32> to vector<16xf32>
    %1021 = vector.shape_cast %1020 : vector<16xf32> to vector<16x1xf32>
    %1022 = vector.broadcast %1021 : vector<16x1xf32> to vector<16x16xf32>
    %1023 = arith.subf %1019, %1022 : vector<16x16xf32>
    %1024 = math.exp %1023 : vector<16x16xf32>
    %cst_318 = arith.constant dense<0.000000e+00> : vector<16xf32>
    %1025 = vector.multi_reduction <add>, %1024, %cst_318 [1] : vector<16x16xf32> to vector<16xf32>
    %1026 = vector.shape_cast %1025 : vector<16xf32> to vector<16x1xf32>
    %1027 = vector.broadcast %1026 : vector<16x1xf32> to vector<16x16xf32>
    %1028 = arith.divf %1024, %1027 : vector<16x16xf32>
    %cst_319 = arith.constant dense<0.000000e+00> : vector<16x8xf32>
    %1029 = tpu.matmul %1028, %1015, %cst_319 {dimension_numbers = #tpu.dot_dimension_numbers<[1], [0], [0], [1], [0, 0, 1, 1], [], []>} : vector<16x16xf32>, vector<16x8xf32>, vector<16x8xf32> -> vector<16x8xf32>
    %1030 = vector.extract_strided_slice %968 {offsets = [8, 0], sizes = [8, 32], strides = [1, 1]} : vector<32x32xf32> to vector<8x32xf32>
    %cst_320 = arith.constant dense<0.000000e+00> : vector<16x32xf32>
    %1031 = tpu.matmul %1029, %1030, %cst_320 {dimension_numbers = #tpu.dot_dimension_numbers<[1], [0], [0], [1], [0, 0, 1, 1], [], []>} : vector<16x8xf32>, vector<8x32xf32>, vector<16x32xf32> -> vector<16x32xf32>
    %1032 = arith.addf %1000, %1031 : vector<16x32xf32>
    %1033 = vector.extract_strided_slice %962 {offsets = [0, 16], sizes = [32, 8], strides = [1, 1]} : vector<32x32xf32> to vector<32x8xf32>
    %cst_321 = arith.constant dense<0.000000e+00> : vector<16x8xf32>
    %1034 = tpu.matmul %959, %1033, %cst_321 {dimension_numbers = #tpu.dot_dimension_numbers<[1], [0], [0], [1], [0, 0, 1, 1], [], []>} : vector<16x32xf32>, vector<32x8xf32>, vector<16x8xf32> -> vector<16x8xf32>
    %1035 = vector.extract_strided_slice %963 {offsets = [0, 16], sizes = [1, 8], strides = [1, 1]} : vector<1x32xf32> to vector<1x8xf32>
    %1036 = vector.broadcast %1035 : vector<1x8xf32> to vector<16x8xf32>
    %1037 = arith.addf %1034, %1036 : vector<16x8xf32>
    %1038 = vector.extract_strided_slice %964 {offsets = [0, 16], sizes = [32, 8], strides = [1, 1]} : vector<32x32xf32> to vector<32x8xf32>
    %cst_322 = arith.constant dense<0.000000e+00> : vector<16x8xf32>
    %1039 = tpu.matmul %430, %1038, %cst_322 {dimension_numbers = #tpu.dot_dimension_numbers<[1], [0], [0], [1], [0, 0, 1, 1], [], []>} : vector<16x32xf32>, vector<32x8xf32>, vector<16x8xf32> -> vector<16x8xf32>
    %1040 = vector.extract_strided_slice %965 {offsets = [0, 16], sizes = [1, 8], strides = [1, 1]} : vector<1x32xf32> to vector<1x8xf32>
    %1041 = vector.broadcast %1040 : vector<1x8xf32> to vector<16x8xf32>
    %1042 = arith.addf %1039, %1041 : vector<16x8xf32>
    %1043 = vector.extract_strided_slice %966 {offsets = [0, 16], sizes = [32, 8], strides = [1, 1]} : vector<32x32xf32> to vector<32x8xf32>
    %cst_323 = arith.constant dense<0.000000e+00> : vector<16x8xf32>
    %1044 = tpu.matmul %430, %1043, %cst_323 {dimension_numbers = #tpu.dot_dimension_numbers<[1], [0], [0], [1], [0, 0, 1, 1], [], []>} : vector<16x32xf32>, vector<32x8xf32>, vector<16x8xf32> -> vector<16x8xf32>
    %1045 = vector.extract_strided_slice %967 {offsets = [0, 16], sizes = [1, 8], strides = [1, 1]} : vector<1x32xf32> to vector<1x8xf32>
    %1046 = vector.broadcast %1045 : vector<1x8xf32> to vector<16x8xf32>
    %1047 = arith.addf %1044, %1046 : vector<16x8xf32>
    %cst_324 = arith.constant dense<0.000000e+00> : vector<16x16xf32>
    %1048 = tpu.matmul %1037, %1042, %cst_324 {dimension_numbers = #tpu.dot_dimension_numbers<[1], [1], [0], [0], [0, 0, 1, 0], [], []>} : vector<16x8xf32>, vector<16x8xf32>, vector<16x16xf32> -> vector<16x16xf32>
    %cst_325 = arith.constant 0.353553385 : f32
    %1049 = vector.broadcast %cst_325 : f32 to vector<16x16xf32>
    %1050 = arith.mulf %1048, %1049 : vector<16x16xf32>
    %1051 = arith.addf %1050, %2 : vector<16x16xf32>
    %cst_326 = arith.constant dense<0xFF800000> : vector<16xf32>
    %1052 = vector.multi_reduction <maximumf>, %1051, %cst_326 [1] : vector<16x16xf32> to vector<16xf32>
    %1053 = vector.shape_cast %1052 : vector<16xf32> to vector<16x1xf32>
    %1054 = vector.broadcast %1053 : vector<16x1xf32> to vector<16x16xf32>
    %1055 = arith.subf %1051, %1054 : vector<16x16xf32>
    %1056 = math.exp %1055 : vector<16x16xf32>
    %cst_327 = arith.constant dense<0.000000e+00> : vector<16xf32>
    %1057 = vector.multi_reduction <add>, %1056, %cst_327 [1] : vector<16x16xf32> to vector<16xf32>
    %1058 = vector.shape_cast %1057 : vector<16xf32> to vector<16x1xf32>
    %1059 = vector.broadcast %1058 : vector<16x1xf32> to vector<16x16xf32>
    %1060 = arith.divf %1056, %1059 : vector<16x16xf32>
    %cst_328 = arith.constant dense<0.000000e+00> : vector<16x8xf32>
    %1061 = tpu.matmul %1060, %1047, %cst_328 {dimension_numbers = #tpu.dot_dimension_numbers<[1], [0], [0], [1], [0, 0, 1, 1], [], []>} : vector<16x16xf32>, vector<16x8xf32>, vector<16x8xf32> -> vector<16x8xf32>
    %1062 = vector.extract_strided_slice %968 {offsets = [16, 0], sizes = [8, 32], strides = [1, 1]} : vector<32x32xf32> to vector<8x32xf32>
    %cst_329 = arith.constant dense<0.000000e+00> : vector<16x32xf32>
    %1063 = tpu.matmul %1061, %1062, %cst_329 {dimension_numbers = #tpu.dot_dimension_numbers<[1], [0], [0], [1], [0, 0, 1, 1], [], []>} : vector<16x8xf32>, vector<8x32xf32>, vector<16x32xf32> -> vector<16x32xf32>
    %1064 = arith.addf %1032, %1063 : vector<16x32xf32>
    %1065 = vector.extract_strided_slice %962 {offsets = [0, 24], sizes = [32, 8], strides = [1, 1]} : vector<32x32xf32> to vector<32x8xf32>
    %cst_330 = arith.constant dense<0.000000e+00> : vector<16x8xf32>
    %1066 = tpu.matmul %959, %1065, %cst_330 {dimension_numbers = #tpu.dot_dimension_numbers<[1], [0], [0], [1], [0, 0, 1, 1], [], []>} : vector<16x32xf32>, vector<32x8xf32>, vector<16x8xf32> -> vector<16x8xf32>
    %1067 = vector.extract_strided_slice %963 {offsets = [0, 24], sizes = [1, 8], strides = [1, 1]} : vector<1x32xf32> to vector<1x8xf32>
    %1068 = vector.broadcast %1067 : vector<1x8xf32> to vector<16x8xf32>
    %1069 = arith.addf %1066, %1068 : vector<16x8xf32>
    %1070 = vector.extract_strided_slice %964 {offsets = [0, 24], sizes = [32, 8], strides = [1, 1]} : vector<32x32xf32> to vector<32x8xf32>
    %cst_331 = arith.constant dense<0.000000e+00> : vector<16x8xf32>
    %1071 = tpu.matmul %430, %1070, %cst_331 {dimension_numbers = #tpu.dot_dimension_numbers<[1], [0], [0], [1], [0, 0, 1, 1], [], []>} : vector<16x32xf32>, vector<32x8xf32>, vector<16x8xf32> -> vector<16x8xf32>
    %1072 = vector.extract_strided_slice %965 {offsets = [0, 24], sizes = [1, 8], strides = [1, 1]} : vector<1x32xf32> to vector<1x8xf32>
    %1073 = vector.broadcast %1072 : vector<1x8xf32> to vector<16x8xf32>
    %1074 = arith.addf %1071, %1073 : vector<16x8xf32>
    %1075 = vector.extract_strided_slice %966 {offsets = [0, 24], sizes = [32, 8], strides = [1, 1]} : vector<32x32xf32> to vector<32x8xf32>
    %cst_332 = arith.constant dense<0.000000e+00> : vector<16x8xf32>
    %1076 = tpu.matmul %430, %1075, %cst_332 {dimension_numbers = #tpu.dot_dimension_numbers<[1], [0], [0], [1], [0, 0, 1, 1], [], []>} : vector<16x32xf32>, vector<32x8xf32>, vector<16x8xf32> -> vector<16x8xf32>
    %1077 = vector.extract_strided_slice %967 {offsets = [0, 24], sizes = [1, 8], strides = [1, 1]} : vector<1x32xf32> to vector<1x8xf32>
    %1078 = vector.broadcast %1077 : vector<1x8xf32> to vector<16x8xf32>
    %1079 = arith.addf %1076, %1078 : vector<16x8xf32>
    %cst_333 = arith.constant dense<0.000000e+00> : vector<16x16xf32>
    %1080 = tpu.matmul %1069, %1074, %cst_333 {dimension_numbers = #tpu.dot_dimension_numbers<[1], [1], [0], [0], [0, 0, 1, 0], [], []>} : vector<16x8xf32>, vector<16x8xf32>, vector<16x16xf32> -> vector<16x16xf32>
    %cst_334 = arith.constant 0.353553385 : f32
    %1081 = vector.broadcast %cst_334 : f32 to vector<16x16xf32>
    %1082 = arith.mulf %1080, %1081 : vector<16x16xf32>
    %1083 = arith.addf %1082, %2 : vector<16x16xf32>
    %cst_335 = arith.constant dense<0xFF800000> : vector<16xf32>
    %1084 = vector.multi_reduction <maximumf>, %1083, %cst_335 [1] : vector<16x16xf32> to vector<16xf32>
    %1085 = vector.shape_cast %1084 : vector<16xf32> to vector<16x1xf32>
    %1086 = vector.broadcast %1085 : vector<16x1xf32> to vector<16x16xf32>
    %1087 = arith.subf %1083, %1086 : vector<16x16xf32>
    %1088 = math.exp %1087 : vector<16x16xf32>
    %cst_336 = arith.constant dense<0.000000e+00> : vector<16xf32>
    %1089 = vector.multi_reduction <add>, %1088, %cst_336 [1] : vector<16x16xf32> to vector<16xf32>
    %1090 = vector.shape_cast %1089 : vector<16xf32> to vector<16x1xf32>
    %1091 = vector.broadcast %1090 : vector<16x1xf32> to vector<16x16xf32>
    %1092 = arith.divf %1088, %1091 : vector<16x16xf32>
    %cst_337 = arith.constant dense<0.000000e+00> : vector<16x8xf32>
    %1093 = tpu.matmul %1092, %1079, %cst_337 {dimension_numbers = #tpu.dot_dimension_numbers<[1], [0], [0], [1], [0, 0, 1, 1], [], []>} : vector<16x16xf32>, vector<16x8xf32>, vector<16x8xf32> -> vector<16x8xf32>
    %1094 = vector.extract_strided_slice %968 {offsets = [24, 0], sizes = [8, 32], strides = [1, 1]} : vector<32x32xf32> to vector<8x32xf32>
    %cst_338 = arith.constant dense<0.000000e+00> : vector<16x32xf32>
    %1095 = tpu.matmul %1093, %1094, %cst_338 {dimension_numbers = #tpu.dot_dimension_numbers<[1], [0], [0], [1], [0, 0, 1, 1], [], []>} : vector<16x8xf32>, vector<8x32xf32>, vector<16x32xf32> -> vector<16x32xf32>
    %1096 = arith.addf %1064, %1095 : vector<16x32xf32>
    %1097 = vector.broadcast %969 : vector<1x32xf32> to vector<16x32xf32>
    %1098 = arith.addf %1096, %1097 : vector<16x32xf32>
    %1099 = arith.addf %959, %1098 : vector<16x32xf32>
    %c36 = arith.constant 36 : index
    %c0_339 = arith.constant 0 : index
    %1100 = vector.load %arg5[%c36, %c0_339] : memref<48x128xf32, #tpu.memory_space<vmem>>, vector<1x32xf32>
    %c37 = arith.constant 37 : index
    %c0_340 = arith.constant 0 : index
    %1101 = vector.load %arg5[%c37, %c0_340] : memref<48x128xf32, #tpu.memory_space<vmem>>, vector<1x32xf32>
    %cst_341 = arith.constant dense<0.000000e+00> : vector<16xf32>
    %1102 = vector.multi_reduction <add>, %1099, %cst_341 [1] : vector<16x32xf32> to vector<16xf32>
    %1103 = vector.shape_cast %1102 : vector<16xf32> to vector<16x1xf32>
    %cst_342 = arith.constant 3.200000e+01 : f32
    %1104 = vector.broadcast %cst_342 : f32 to vector<16x1xf32>
    %1105 = arith.divf %1103, %1104 : vector<16x1xf32>
    %1106 = vector.broadcast %1105 : vector<16x1xf32> to vector<16x32xf32>
    %1107 = arith.subf %1099, %1106 : vector<16x32xf32>
    %1108 = arith.mulf %1107, %1107 : vector<16x32xf32>
    %cst_343 = arith.constant dense<0.000000e+00> : vector<16xf32>
    %1109 = vector.multi_reduction <add>, %1108, %cst_343 [1] : vector<16x32xf32> to vector<16xf32>
    %1110 = vector.shape_cast %1109 : vector<16xf32> to vector<16x1xf32>
    %cst_344 = arith.constant 3.200000e+01 : f32
    %1111 = vector.broadcast %cst_344 : f32 to vector<16x1xf32>
    %1112 = arith.divf %1110, %1111 : vector<16x1xf32>
    %1113 = vector.broadcast %1105 : vector<16x1xf32> to vector<16x32xf32>
    %1114 = arith.subf %1099, %1113 : vector<16x32xf32>
    %cst_345 = arith.constant 9.99999974E-6 : f32
    %1115 = vector.broadcast %cst_345 : f32 to vector<16x1xf32>
    %1116 = arith.addf %1112, %1115 : vector<16x1xf32>
    %1117 = math.rsqrt %1116 : vector<16x1xf32>
    %1118 = vector.broadcast %1117 : vector<16x1xf32> to vector<16x32xf32>
    %1119 = arith.mulf %1114, %1118 : vector<16x32xf32>
    %1120 = vector.broadcast %1100 : vector<1x32xf32> to vector<16x32xf32>
    %1121 = arith.mulf %1119, %1120 : vector<16x32xf32>
    %1122 = vector.broadcast %1101 : vector<1x32xf32> to vector<16x32xf32>
    %1123 = arith.addf %1121, %1122 : vector<16x32xf32>
    %c736 = arith.constant 736 : index
    %c0_346 = arith.constant 0 : index
    %1124 = vector.load %arg4[%c736, %c0_346] : memref<864x128xf32, #tpu.memory_space<vmem>>, vector<32x64xf32>
    %c38 = arith.constant 38 : index
    %c0_347 = arith.constant 0 : index
    %1125 = vector.load %arg5[%c38, %c0_347] : memref<48x128xf32, #tpu.memory_space<vmem>>, vector<1x64xf32>
    %c768 = arith.constant 768 : index
    %c0_348 = arith.constant 0 : index
    %1126 = vector.load %arg4[%c768, %c0_348] : memref<864x128xf32, #tpu.memory_space<vmem>>, vector<64x32xf32>
    %c39 = arith.constant 39 : index
    %c0_349 = arith.constant 0 : index
    %1127 = vector.load %arg5[%c39, %c0_349] : memref<48x128xf32, #tpu.memory_space<vmem>>, vector<1x32xf32>
    %cst_350 = arith.constant dense<0.000000e+00> : vector<16x64xf32>
    %1128 = tpu.matmul %1123, %1124, %cst_350 {dimension_numbers = #tpu.dot_dimension_numbers<[1], [0], [0], [1], [0, 0, 1, 1], [], []>} : vector<16x32xf32>, vector<32x64xf32>, vector<16x64xf32> -> vector<16x64xf32>
    %1129 = vector.broadcast %1125 : vector<1x64xf32> to vector<16x64xf32>
    %1130 = arith.addf %1128, %1129 : vector<16x64xf32>
    %cst_351 = arith.constant 0.000000e+00 : f32
    %1131 = vector.broadcast %cst_351 : f32 to vector<16x64xf32>
    %1132 = arith.maximumf %1130, %1131 : vector<16x64xf32>
    %cst_352 = arith.constant dense<0.000000e+00> : vector<16x32xf32>
    %1133 = tpu.matmul %1132, %1126, %cst_352 {dimension_numbers = #tpu.dot_dimension_numbers<[1], [0], [0], [1], [0, 0, 1, 1], [], []>} : vector<16x64xf32>, vector<64x32xf32>, vector<16x32xf32> -> vector<16x32xf32>
    %1134 = vector.broadcast %1127 : vector<1x32xf32> to vector<16x32xf32>
    %1135 = arith.addf %1133, %1134 : vector<16x32xf32>
    %1136 = arith.addf %1123, %1135 : vector<16x32xf32>
    %c40 = arith.constant 40 : index
    %c0_353 = arith.constant 0 : index
    %1137 = vector.load %arg5[%c40, %c0_353] : memref<48x128xf32, #tpu.memory_space<vmem>>, vector<1x32xf32>
    %c41 = arith.constant 41 : index
    %c0_354 = arith.constant 0 : index
    %1138 = vector.load %arg5[%c41, %c0_354] : memref<48x128xf32, #tpu.memory_space<vmem>>, vector<1x32xf32>
    %cst_355 = arith.constant dense<0.000000e+00> : vector<16xf32>
    %1139 = vector.multi_reduction <add>, %1136, %cst_355 [1] : vector<16x32xf32> to vector<16xf32>
    %1140 = vector.shape_cast %1139 : vector<16xf32> to vector<16x1xf32>
    %cst_356 = arith.constant 3.200000e+01 : f32
    %1141 = vector.broadcast %cst_356 : f32 to vector<16x1xf32>
    %1142 = arith.divf %1140, %1141 : vector<16x1xf32>
    %1143 = vector.broadcast %1142 : vector<16x1xf32> to vector<16x32xf32>
    %1144 = arith.subf %1136, %1143 : vector<16x32xf32>
    %1145 = arith.mulf %1144, %1144 : vector<16x32xf32>
    %cst_357 = arith.constant dense<0.000000e+00> : vector<16xf32>
    %1146 = vector.multi_reduction <add>, %1145, %cst_357 [1] : vector<16x32xf32> to vector<16xf32>
    %1147 = vector.shape_cast %1146 : vector<16xf32> to vector<16x1xf32>
    %cst_358 = arith.constant 3.200000e+01 : f32
    %1148 = vector.broadcast %cst_358 : f32 to vector<16x1xf32>
    %1149 = arith.divf %1147, %1148 : vector<16x1xf32>
    %1150 = vector.broadcast %1142 : vector<16x1xf32> to vector<16x32xf32>
    %1151 = arith.subf %1136, %1150 : vector<16x32xf32>
    %cst_359 = arith.constant 9.99999974E-6 : f32
    %1152 = vector.broadcast %cst_359 : f32 to vector<16x1xf32>
    %1153 = arith.addf %1149, %1152 : vector<16x1xf32>
    %1154 = math.rsqrt %1153 : vector<16x1xf32>
    %1155 = vector.broadcast %1154 : vector<16x1xf32> to vector<16x32xf32>
    %1156 = arith.mulf %1151, %1155 : vector<16x32xf32>
    %1157 = vector.broadcast %1137 : vector<1x32xf32> to vector<16x32xf32>
    %1158 = arith.mulf %1156, %1157 : vector<16x32xf32>
    %1159 = vector.broadcast %1138 : vector<1x32xf32> to vector<16x32xf32>
    %1160 = arith.addf %1158, %1159 : vector<16x32xf32>
    %c44 = arith.constant 44 : index
    %c0_360 = arith.constant 0 : index
    %1161 = vector.load %arg5[%c44, %c0_360] : memref<48x128xf32, #tpu.memory_space<vmem>>, vector<1x32xf32>
    %c45 = arith.constant 45 : index
    %c0_361 = arith.constant 0 : index
    %1162 = vector.load %arg5[%c45, %c0_361] : memref<48x128xf32, #tpu.memory_space<vmem>>, vector<1x32xf32>
    %cst_362 = arith.constant dense<0.000000e+00> : vector<16xf32>
    %1163 = vector.multi_reduction <add>, %1160, %cst_362 [1] : vector<16x32xf32> to vector<16xf32>
    %1164 = vector.shape_cast %1163 : vector<16xf32> to vector<16x1xf32>
    %cst_363 = arith.constant 3.200000e+01 : f32
    %1165 = vector.broadcast %cst_363 : f32 to vector<16x1xf32>
    %1166 = arith.divf %1164, %1165 : vector<16x1xf32>
    %1167 = vector.broadcast %1166 : vector<16x1xf32> to vector<16x32xf32>
    %1168 = arith.subf %1160, %1167 : vector<16x32xf32>
    %1169 = arith.mulf %1168, %1168 : vector<16x32xf32>
    %cst_364 = arith.constant dense<0.000000e+00> : vector<16xf32>
    %1170 = vector.multi_reduction <add>, %1169, %cst_364 [1] : vector<16x32xf32> to vector<16xf32>
    %1171 = vector.shape_cast %1170 : vector<16xf32> to vector<16x1xf32>
    %cst_365 = arith.constant 3.200000e+01 : f32
    %1172 = vector.broadcast %cst_365 : f32 to vector<16x1xf32>
    %1173 = arith.divf %1171, %1172 : vector<16x1xf32>
    %1174 = vector.broadcast %1166 : vector<16x1xf32> to vector<16x32xf32>
    %1175 = arith.subf %1160, %1174 : vector<16x32xf32>
    %cst_366 = arith.constant 9.99999974E-6 : f32
    %1176 = vector.broadcast %cst_366 : f32 to vector<16x1xf32>
    %1177 = arith.addf %1173, %1176 : vector<16x1xf32>
    %1178 = math.rsqrt %1177 : vector<16x1xf32>
    %1179 = vector.broadcast %1178 : vector<16x1xf32> to vector<16x32xf32>
    %1180 = arith.mulf %1175, %1179 : vector<16x32xf32>
    %1181 = vector.broadcast %1161 : vector<1x32xf32> to vector<16x32xf32>
    %1182 = arith.mulf %1180, %1181 : vector<16x32xf32>
    %1183 = vector.broadcast %1162 : vector<1x32xf32> to vector<16x32xf32>
    %1184 = arith.addf %1182, %1183 : vector<16x32xf32>
    %c832 = arith.constant 832 : index
    %c0_367 = arith.constant 0 : index
    %1185 = vector.load %arg4[%c832, %c0_367] : memref<864x128xf32, #tpu.memory_space<vmem>>, vector<32x128xf32>
    %cst_368 = arith.constant dense<0.000000e+00> : vector<16x128xf32>
    %1186 = tpu.matmul %1184, %1185, %cst_368 {dimension_numbers = #tpu.dot_dimension_numbers<[1], [0], [0], [1], [0, 0, 1, 1], [], []>} : vector<16x32xf32>, vector<32x128xf32>, vector<16x128xf32> -> vector<16x128xf32>
    %c46 = arith.constant 46 : index
    %c0_369 = arith.constant 0 : index
    %1187 = vector.load %arg5[%c46, %c0_369] : memref<48x128xf32, #tpu.memory_space<vmem>>, vector<1x128xf32>
    %1188 = vector.broadcast %1187 : vector<1x128xf32> to vector<16x128xf32>
    %1189 = arith.addf %1186, %1188 : vector<16x128xf32>
    %c0_370 = arith.constant 0 : index
    %c0_371 = arith.constant 0 : index
    %1190 = vector.load %arg6[%c0_370, %c0_371] : memref<16x128xf32, #tpu.memory_space<vmem>>, vector<16x128xf32>
    tpu.vector_store %arg6[%c0_370, %c0_371], %1189 {strides = array<i32>} : memref<16x128xf32, #tpu.memory_space<vmem>>, vector<16x128xf32>,
    return
  }
}

</mosaic_0001>

<bundles_post_ra>
// kernel: forward.1
= control target key start
LH: loop header
LB: loop body
LE: loop exit
PB: predicated region body
PF: predicated region fallthrough
CT: control target
= control target key end

     0   :  { %11 = vsyncpa [#allocation3], 0  ;;  %s19025_s21 = smov [#allocation2]   ;;  %s20639_s0 = inlined_call_operand.vmem [shape: f32[32,32], index: 0, kind: input, shape index: {}]   ;;  %s20640_s1 = inlined_call_operand.vmem [shape: f32[16,16], index: 1, kind: input, shape index: {}]   ;;  %s20641_s2 = inlined_call_operand.vmem [shape: f32[16,16], index: 2, kind: input, shape index: {}]   ;;  %s20642_s3 = inlined_call_operand.vmem [shape: f32[16,16], index: 3, kind: input, shape index: {}]   ;;  %s20643_s4 = inlined_call_operand.hbm [shape: f32[864,128], index: 4, kind: input, shape index: {}]   ;;  %s20644_s5 = inlined_call_operand.vmem [shape: f32[48,128], index: 5, kind: input, shape index: {}]   ;;  %s20645_s6 = inlined_call_operand.vmem [shape: f32[16,128], index: 6, kind: output, shape index: {}]  }
   0x1   :  { %s25_s22 = sshll.u32 %s19025_s21, 4  ;;  %s19001_s25 = scalar_lea.hbm %s20643_s4, 13824  ;;  %s26_s22 = int_to_ptr.vmem [resolvable:$true] %s25_s22 }
   0x2   :  { %p19002_p0 = scmp.ne.s32.totalorder %s20643_s4, %s19001_s25  ;;  %p19005_p1 = scmp.lt.u32.totalorder %s19001_s25, %s20643_s4 }
   0x4   :  { %p19007_p2 = pnand %p19005_p1, %p19002_p0 }
   0x6   :  { %19010 = shalt.err (!%p19007_p2)
}
   0x7   :  { %s19011_s30 = scalar_lea.vmem %s26_s22, 13824  ;;  %p19016_p4 = scmp.lt.s32.totalorder %s26_s22, %s26_s22 }
   0x8   :  { %p19012_p3 = scmp.ne.s32.totalorder %s26_s22, %s19011_s30  ;;  %p19017_p5 = scmp.lt.s32.totalorder %s19011_s30, %s19011_s30 }
   0xa   :  { %p19018_p6 = por %p19017_p5, %p19016_p4 }
   0xc   :  { %p19019_p7 = pnand %p19018_p6, %p19012_p3 }
   0xe   :  { %19022 = shalt.err (!%p19019_p7)
}
   0xf   :  { %s19026_s7 = smov 128   ;;  %s19027_s8 = smov 8  }
  0x10   :  { %31 = dma.hbm_to_vmem [thread:$0]  %s20643_s4, 13824, %s26_s22, [#allocation3], %s19026_s7, %s19026_s7, %s19027_s8  }
  0x11   :  { %19023 = dma.done.wait [#allocation3], 13824  }
  0x12   :  { %19024 = vsyncadd [#allocation3], 4294953472  ;;  %vm61_vm0 = vcmask 261120   ;;  %v47_v0 = vld [vmem:[#allocation2] sm:$0xff]  ;;  %v48_v1 = vld [vmem:[#allocation2 + $0x8] sm:$0xff]  ;;  %s19028_s14 = smov 96  }
  0x13   :  { %v49_v2 = vld [vmem:[#allocation2 + $0x10] sm:$0xff]  ;;  %v19086_v3 = vpack.i.bf16 %v48_v1, %v47_v0  ;;  %v50_v4 = vld [vmem:[#allocation2 + $0x18] sm:$0xff]  ;;  %v19091_v5 = vld [vmem:[%s20639_s0] sm:$0xff]  ;;  %v17143_v6 = vpack.c.bf16 %v48_v1, %v47_v0  ;;  %vm328_vm1 = vcmask 64512   ;;  %s19029_s17 = smov 64   ;;  %vm420_vm3 = vcmask 130048  }
  0x14   :  { %15783 = vmatprep.mubr.msk.f32.mxu1 %vm61_vm0, %v19091_v5  ;;  %v17147_v7 = vpack.c.bf16 %v50_v4, %v49_v2  ;;  %15772 = vmatprep.mubr.msk.f32.mxu0 %vm61_vm0, %v19091_v5  ;;  %v19100_v8 = vld [vmem:[%s20644_s5] ss:$0 sm:$0xff]  ;;  %v19104_v9 = vpack.i.bf16 %v50_v4, %v49_v2  ;;  %v19113_v10 = vld [vmem:[%s20639_s0 + $0x8] sm:$0xff]  ;;  %vm19129_vm2 = vmpackc.low %vm328_vm1, %vm328_vm1  ;;  %s19030_s22 = smov 88   ;;  %s19031_s23 = smov 120   ;;  %vm2398_vm4 = vcmask 523264  }
  0x15   :  { %18114 = vrot.lane.b32.xlu0 %v19086_v3, %s19028_s14  ;;  %17144 = vmatprep.subr.bf16.mxu0 %v17143_v6  ;;  %v19146_v39 = vld [vmem:[%s20640_s1 + $0x8] sm:$0xff]  ;;  %v19151_v42 = vld [vmem:[%s20640_s1] sm:$0xff]  ;;  %s19032_s24 = smov 56   ;;  %s19033_s25 = smov 80  }
  0x16   :  { %17146 = vmatpush3.bf16.msra.mxu0 %v17143_v6  ;;  %160 = vrot.lane.b32.xlu1 %v19100_v8, %s19028_s14  ;;  %s19034_s26 = smov 112   ;;  %s19035_s27 = smov 48  }
  0x17   :  { %17148 = vmatprep.subr.bf16.mxu0 %v17147_v7  ;;  %s19036_s28 = smov 72   ;;  %s19037_s29 = smov 104  }
  0x18   :  { %s19038_s30 = smov 40  }
  0x19   :  { %18119 = vrot.lane.b32.xlu0 %v19104_v9, %s19028_s14 }
  0x1a   :  { %17150 = vmatpush3.bf16.msra.mxu0 %v17147_v7  ;;  %18124 = vrot.lane.b32.xlu1 %v19086_v3, %s19029_s17 }
  0x1d   :  { %15773 = vmatmul.mubr.msk.f32.vlgmr.msra.gmra.mrb[0].mxu0 %vm61_vm0, %v19113_v10  ;;  %18129 = vrot.lane.b32.xlu0 %v19104_v9, %s19029_s17 }
  0x1e   :  { %15794 = vmatprep.mubr.msk.f32.mxu0 %vm61_vm0, %v19091_v5 }
  0x87   :  { %v18115_v11 = vpop.permute.xlu0 %18114 }
  0x88   :  { %v18117_v12 = vunpack.i.h.bf16 %v18115_v11  ;;  %v18116_v13 = vunpack.i.l.bf16 %v18115_v11  ;;  %v161_v22 = vpop.permute.xlu1 %160 }
  0x8a   :  { %v17151_v14 = vpack.c.bf16 %v18117_v12, %v18116_v13 }
  0x8b   :  { %v18120_v15 = vpop.permute.xlu0 %18119 }
  0x8c   :  { %v18122_v16 = vunpack.i.h.bf16 %v18120_v15  ;;  %v18121_v17 = vunpack.i.l.bf16 %v18120_v15  ;;  %17152 = vmatprep.subr.bf16.mxu1 %v17151_v14  ;;  %v18125_v30 = vpop.permute.xlu1 %18124 }
  0x8d   :  { %17154 = vmatpush3.bf16.msra.mxu1 %v17151_v14  ;;  %v18127_v32 = vunpack.i.h.bf16 %v18125_v30  ;;  %v18126_v33 = vunpack.i.l.bf16 %v18125_v30 }
  0x8e   :  { %v17155_v18 = vpack.c.bf16 %v18122_v16, %v18121_v17 }
  0x8f   :  { %v18130_v31 = vpop.permute.xlu0 %18129  ;;  %v17159_v36 = vpack.c.bf16 %v18127_v32, %v18126_v33 }
  0x90   :  { %17156 = vmatprep.subr.bf16.mxu1 %v17155_v18  ;;  %v18132_v34 = vunpack.i.h.bf16 %v18130_v31  ;;  %v18131_v35 = vunpack.i.l.bf16 %v18130_v31 }
  0x91   :  { %17158 = vmatpush3.bf16.msra.mxu1 %v17155_v18  ;;  %17160 = vmatprep.subr.bf16.mxu0 %v17159_v36 }
  0x92   :  { %v17163_v37 = vpack.c.bf16 %v18132_v34, %v18131_v35  ;;  %17162 = vmatpush3.bf16.msra.mxu0 %v17159_v36 }
  0x94   :  { %15784 = vmatmul.mubr.msk.f32.vlgmr.msra.gmra.mrb[0].mxu1 %vm61_vm0, %v19113_v10  ;;  %17164 = vmatprep.subr.bf16.mxu0 %v17163_v37 }
  0x96   :  { %17166 = vmatpush3.bf16.msra.mxu0 %v17163_v37 }
  0x99   :  { %15795 = vmatmul.mubr.msk.f32.vlgmr.msra.gmra.mrb[2].mxu0 %vm61_vm0, %v19113_v10 }
  0x9a   :  { %15830 = vmatprep.mubr.msk.f32.mxu0 %vm61_vm0, %v19091_v5 }
  0xf0   :  { %v15774_v19 = vpop.f32.mrb[0].mxu0 }
  0xf1   :  { %v134_v20 = vpop.f32.mrb[1].mxu0  ;;  %v140_v29 = vadd.f32 %v15774_v19, %v19100_v8 }
  0xf2   :  { %v135_v21 = vadd.f32 %v19100_v8, %v134_v20 }
  0xf4   :  { %15801 = vmatprep.mubr.msk.f32.mxu1 %vm328_vm1, %v135_v21 }
 0x167   :  { %v15785_v23 = vpop.f32.mrb[0].mxu1 }
 0x168   :  { %v235_v24 = vadd.f32 %v15785_v23, %v161_v22  ;;  %v229_v25 = vpop.f32.mrb[1].mxu1 }
 0x169   :  { %v230_v26 = vadd.f32 %v229_v25, %v161_v22 }
 0x16b   :  { %v17167_v28 = vpack.c.bf16 %v235_v24, %v230_v26 }
 0x16c   :  { %v15796_v48 = vpop.f32.mrb[2].mxu0 }
 0x16d   :  { %17169 = vmatprep.subr.msk.bf16.mxu1 %vm19129_vm2, %v17167_v28  ;;  %v319_v49 = vpop.f32.mrb[3].mxu0 }
 0x16e   :  { %17172 = vmatpush3.bf16.xpose.msk.msra.mxu1 %vm19129_vm2, %v17167_v28 }
 0x175   :  { %15802 = vmatmul.mubr.msk.f32.vlgmr.msra.gmra.mrb[2].mxu1 %vm328_vm1, %v140_v29 }
 0x248   :  { %v15803_v38 = vpop.f32.mrb[2].mxu1 }
 0x249   :  { %v417_v40 = vmul.f32 0.35355338, %v15803_v38  ;;  %v407_v41 = vpop.f32.mrb[3].mxu1 }
 0x24a   :  { %v416_v43 = vmul.f32 0.35355338, %v407_v41 }
 0x24b   :  { %v419_v44 = vadd.f32 %v417_v40, %v19146_v39 }
 0x24c   :  { %v418_v45 = vadd.f32 %v416_v43, %v19151_v42 }
 0x24d   :  { %v424_v46 = vsel %vm420_vm3, %v419_v44, -inf }
 0x24e   :  { %425 = vmax.xlane.f32.xlu0 %v424_v46  ;;  %v421_v47 = vsel %vm420_vm3, %v418_v45, -inf }
 0x24f   :  { %422 = vmax.xlane.f32.xlu1 %v421_v47 }
 0x260   :  { %250 = vrot.lane.b32.xlu1 %v19100_v8, %s19029_s17 }
 0x264   :  { %18134 = vrot.lane.b32.xlu0 %v19086_v3, %s19030_s22  ;;  %18139 = vrot.lane.b32.xlu1 %v19104_v9, %s19030_s22 }
 0x2db   :  { %v426_v50 = vpop.xlane.xlu0 %425 }
 0x2dc   :  { %v428_v51 = vsub.f32 %v419_v44, %v426_v50  ;;  %v423_v52 = vpop.xlane.xlu1 %422 }
 0x2dd   :  { %v427_v53 = vsub.f32 %v418_v45, %v423_v52 }
 0x2de   :  { %v431_v54 = vmul.f32 1.442695, %v428_v51 }
 0x2df   :  { %v429_v55 = vmul.f32 1.442695, %v427_v53  ;;  %v18135_v56 = vpop.permute.xlu0 %18134 }
 0x2e0   :  { %18753 = vpow2.f32 %v431_v54  ;;  %v18137_v57 = vunpack.i.h.bf16 %v18135_v56  ;;  %v18136_v58 = vunpack.i.l.bf16 %v18135_v56  ;;  %v251_v59 = vpop.permute.xlu1 %250 }
 0x2e1   :  { %18755 = vpow2.f32 %v429_v55  ;;  %v320_v60 = vadd.f32 %v319_v49, %v251_v59  ;;  %v325_v61 = vadd.f32 %v15796_v48, %v251_v59 }
 0x2e2   :  { %v17185_v62 = vpack.c.bf16 %v18137_v57, %v18136_v58 }
 0x2e3   :  { %v17173_v63 = vpack.c.bf16 %v325_v61, %v320_v60 }
 0x2e4   :  { %v18140_v0 = vpop.permute.xlu1 %18139  ;;  %17186 = vmatprep.subr.bf16.mxu0 %v17185_v62 }
 0x2e5   :  { %v18142_v1 = vunpack.i.h.bf16 %v18140_v0  ;;  %v18141_v2 = vunpack.i.l.bf16 %v18140_v0  ;;  %17174 = vmatprep.subr.bf16.mxu1 %v17173_v63  ;;  %17188 = vmatpush3.bf16.msra.mxu0 %v17185_v62 }
 0x2e6   :  { %17176 = vmatpush3.bf16.msra.mxu1 %v17173_v63 }
 0x2e7   :  { %v17189_v4 = vpack.c.bf16 %v18142_v1, %v18141_v2 }
 0x2e9   :  { %17190 = vmatprep.subr.bf16.mxu0 %v17189_v4 }
 0x2ea   :  { %v18754_v6 = vpop.eup %18753  ;;  %17192 = vmatpush3.bf16.msra.mxu0 %v17189_v4 }
 0x2eb   :  { %v18756_v7 = vpop.eup %18755  ;;  %v436_v11 = vsel %vm420_vm3, %v18754_v6, 0.0 }
 0x2ec   :  { %437 = vadd.xlane.f32.xlu1 %v436_v11  ;;  %v433_v12 = vsel %vm420_vm3, %v18756_v7, 0.0 }
 0x2ed   :  { %434 = vadd.xlane.f32.xlu0 %v433_v12  ;;  %15831 = vmatmul.mubr.msk.f32.vlgmr.msra.gmra.mrb[4].mxu0 %vm61_vm0, %v19113_v10 }
 0x2fd   :  { %18149 = vrot.lane.b32.xlu1 %v19104_v9, %s19031_s23 }
 0x301   :  { %536 = vrot.lane.b32.xlu1 %v19100_v8, %s19031_s23 }
 0x303   :  { %18144 = vrot.lane.b32.xlu0 %v19086_v3, %s19031_s23 }
 0x305   :  { %18159 = vrot.lane.b32.xlu1 %v19104_v9, %s19032_s24 }
 0x307   :  { %626 = vrot.lane.b32.xlu0 %v19100_v8, %s19030_s22 }
 0x30b   :  { %18154 = vrot.lane.b32.xlu0 %v19086_v3, %s19032_s24 }
 0x379   :  { %v438_v13 = vpop.xlane.xlu1 %437 }
 0x37a   :  { %18757 = vrcp.f32 %v438_v13  ;;  %v435_v14 = vpop.xlane.xlu0 %434 }
 0x37b   :  { %18759 = vrcp.f32 %v435_v14 }
 0x37d   :  { %v18150_v18 = vpop.permute.xlu1 %18149 }
 0x37e   :  { %v18145_v15 = vpop.permute.xlu0 %18144  ;;  %v18152_v20 = vunpack.i.h.bf16 %v18150_v18  ;;  %v18151_v21 = vunpack.i.l.bf16 %v18150_v18 }
 0x37f   :  { %v18147_v16 = vunpack.i.h.bf16 %v18145_v15  ;;  %v18146_v17 = vunpack.i.l.bf16 %v18145_v15 }
 0x380   :  { %v17181_v26 = vpack.c.bf16 %v18152_v20, %v18151_v21 }
 0x381   :  { %v17177_v19 = vpack.c.bf16 %v18147_v16, %v18146_v17  ;;  %v537_v36 = vpop.permute.xlu1 %536  ;;  %v53_v16 = vld [vmem:[#allocation2 + $0x28] sm:$0xff] }
 0x382   :  { %v627_v28 = vpop.permute.xlu0 %626 }
 0x383   :  { %17178 = vmatprep.subr.bf16.mxu1 %v17177_v19 }
 0x384   :  { %v18758_v22 = vpop.eup %18757 }
 0x385   :  { %v18760_v23 = vpop.eup %18759  ;;  %v442_v25 = vmul.f32 %v18758_v22, %v18754_v6  ;;  %v18160_v44 = vpop.permute.xlu1 %18159 }
 0x386   :  { %v440_v24 = vmul.f32 %v18760_v23, %v18756_v7  ;;  %v18155_v43 = vpop.permute.xlu0 %18154  ;;  %v18162_v47 = vunpack.i.h.bf16 %v18160_v44  ;;  %v18161_v48 = vunpack.i.l.bf16 %v18160_v44  ;;  %v52_v23 = vld [vmem:[#allocation2 + $0x20] sm:$0xff] }
 0x387   :  { %v18157_v45 = vunpack.i.h.bf16 %v18155_v43  ;;  %v18156_v46 = vunpack.i.l.bf16 %v18155_v43 }
 0x388   :  { %15808 = vmatprep.mubr.msk.f32.mxu1 %vm420_vm3, %v440_v24  ;;  %v17197_v50 = vpack.c.bf16 %v18162_v47, %v18161_v48 }
 0x389   :  { %15809 = vmatmul.mubr.msk.f32.vlgmr.msra.gmra.mrb[4].mxu1 %vm420_vm3, %v442_v25  ;;  %v17193_v49 = vpack.c.bf16 %v18157_v45, %v18156_v46 }
 0x38a   :  { %17180 = vmatpush3.bf16.msra.mxu1 %v17177_v19  ;;  %15819 = vmatprep.mubr.msk.f32.mxu1 %vm61_vm0, %v19091_v5 }
 0x38b   :  { %17182 = vmatprep.subr.bf16.mxu1 %v17181_v26 }
 0x38e   :  { %17184 = vmatpush3.bf16.msra.mxu1 %v17181_v26 }
 0x38f   :  { %17194 = vmatprep.subr.bf16.mxu1 %v17193_v49 }
 0x391   :  { %15820 = vmatmul.mubr.msk.f32.vlgmr.msra.gmra.mrb[6].mxu1 %vm61_vm0, %v19113_v10 }
 0x392   :  { %15841 = vmatprep.mubr.msk.f32.mxu1 %vm61_vm0, %v19091_v5  ;;  %17196 = vmatpush3.bf16.msra.mxu1 %v17193_v49 }
 0x393   :  { %17198 = vmatprep.subr.bf16.mxu1 %v17197_v50 }
 0x396   :  { %17200 = vmatpush3.bf16.msra.mxu1 %v17197_v50 }
 0x399   :  { %15842 = vmatmul.mubr.msk.f32.vlgmr.msra.gmra.mrb[8].mxu1 %vm61_vm0, %v19113_v10 }
 0x3c0   :  { %v15832_v29 = vpop.f32.mrb[4].mxu0 }
 0x3c1   :  { %v701_v30 = vadd.f32 %v15832_v29, %v627_v28  ;;  %v695_v31 = vpop.f32.mrb[5].mxu0 }
 0x3c2   :  { %v696_v32 = vadd.f32 %v695_v31, %v627_v28 }
 0x3c4   :  { %v17201_v33 = vpack.c.bf16 %v701_v30, %v696_v32 }
 0x3c6   :  { %17203 = vmatprep.subr.msk.bf16.mxu0 %vm19129_vm2, %v17201_v33 }
 0x3c7   :  { %17206 = vmatpush3.bf16.xpose.msk.msra.mxu0 %vm19129_vm2, %v17201_v33 }
 0x3c8   :  { %15858 = vmatprep.subr.mxu0 %v53_v16 }
 0x45c   :  { %v19191_v34 = vpop.f32.mrb[4].mxu1 }
 0x45d   :  { %v19193_v35 = vpop.f32.mrb[5].mxu1 }
 0x464   :  { %v15821_v37 = vpop.f32.mrb[6].mxu1 }
 0x465   :  { %v605_v38 = vpop.f32.mrb[7].mxu1  ;;  %v611_v41 = vadd.f32 %v15821_v37, %v537_v36 }
 0x466   :  { %v606_v40 = vadd.f32 %v605_v38, %v537_v36 }
 0x468   :  { %15848 = vmatprep.mubr.msk.f32.mxu0 %vm328_vm1, %v606_v40 }
 0x469   :  { %15849 = vmatmul.mubr.msk.f32.vlgmr.msra.gmra.mrb[6].mxu0 %vm328_vm1, %v611_v41 }
 0x46a   :  { %15859 = vmatpush3.msra.mxu0 %v53_v16 }
 0x46b   :  { %15863 = vmatprep.subr.mxu0 %v52_v23 }
 0x46c   :  { %v15843_v7 = vpop.f32.mrb[8].mxu1 }
 0x46d   :  { %v785_v12 = vpop.f32.mrb[9].mxu1 }
 0x53c   :  { %v15850_v51 = vpop.f32.mrb[6].mxu0 }
 0x53d   :  { %v882_v52 = vmul.f32 0.35355338, %v15850_v51  ;;  %v872_v53 = vpop.f32.mrb[7].mxu0 }
 0x53e   :  { %v881_v54 = vmul.f32 0.35355338, %v872_v53 }
 0x53f   :  { %v884_v55 = vadd.f32 %v882_v52, %v19146_v39 }
 0x540   :  { %v883_v56 = vadd.f32 %v881_v54, %v19151_v42 }
 0x541   :  { %v888_v57 = vsel %vm420_vm3, %v884_v55, -inf }
 0x542   :  { %889 = vmax.xlane.f32.xlu1 %v888_v57  ;;  %v885_v58 = vsel %vm420_vm3, %v883_v56, -inf }
 0x543   :  { %886 = vmax.xlane.f32.xlu0 %v885_v58 }
 0x553   :  { %716 = vrot.lane.b32.xlu1 %v19100_v8, %s19032_s24 }
 0x557   :  { %18169 = vrot.lane.b32.xlu1 %v19104_v9, %s19033_s25 }
 0x55b   :  { %18174 = vrot.lane.b32.xlu1 %v19086_v3, %s19034_s26 }
 0x55f   :  { %1252 = vrot.lane.b32.xlu1 %v19100_v8, %s19033_s25 }
 0x563   :  { %18184 = vrot.lane.b32.xlu1 %v19086_v3, %s19035_s27 }
 0x5cf   :  { %v890_v59 = vpop.xlane.xlu1 %889 }
 0x5d0   :  { %v892_v60 = vsub.f32 %v884_v55, %v890_v59  ;;  %v887_v61 = vpop.xlane.xlu0 %886 }
 0x5d1   :  { %v891_v62 = vsub.f32 %v883_v56, %v887_v61 }
 0x5d2   :  { %v895_v63 = vmul.f32 1.442695, %v892_v60 }
 0x5d3   :  { %v893_v0 = vmul.f32 1.442695, %v891_v62  ;;  %v717_v11 = vpop.permute.xlu1 %716 }
 0x5d4   :  { %v791_v13 = vadd.f32 %v15843_v7, %v717_v11  ;;  %v786_v14 = vadd.f32 %v785_v12, %v717_v11 }
 0x5d5   :  { %18761 = vpow2.f32 %v893_v0 }
 0x5d6   :  { %18763 = vpow2.f32 %v895_v63  ;;  %v17207_v15 = vpack.c.bf16 %v791_v13, %v786_v14 }
 0x5d7   :  { %v18170_v24 = vpop.permute.xlu1 %18169 }
 0x5d8   :  { %17208 = vmatprep.subr.bf16.mxu1 %v17207_v15  ;;  %v18172_v44 = vunpack.i.h.bf16 %v18170_v24  ;;  %v18171_v45 = vunpack.i.l.bf16 %v18170_v24 }
 0x5d9   :  { %17210 = vmatpush3.bf16.msra.mxu1 %v17207_v15 }
 0x5da   :  { %v17223_v46 = vpack.c.bf16 %v18172_v44, %v18171_v45 }
 0x5db   :  { %v18175_v26 = vpop.permute.xlu1 %18174 }
 0x5dc   :  { %v18177_v28 = vunpack.i.h.bf16 %v18175_v26  ;;  %v18176_v29 = vunpack.i.l.bf16 %v18175_v26 }
 0x5de   :  { %v17211_v31 = vpack.c.bf16 %v18177_v28, %v18176_v29 }
 0x5df   :  { %v18762_v1 = vpop.eup %18761 }
 0x5e0   :  { %v897_v2 = vsel %vm420_vm3, %v18762_v1, 0.0  ;;  %v18764_v4 = vpop.eup %18763  ;;  %17212 = vmatprep.subr.bf16.mxu1 %v17211_v31 }
 0x5e1   :  { %898 = vadd.xlane.f32.xlu0 %v897_v2  ;;  %v900_v6 = vsel %vm420_vm3, %v18764_v4, 0.0 }
 0x5e5   :  { %901 = vadd.xlane.f32.xlu0 %v900_v6 }
 0x5fb   :  { %18164 = vrot.lane.b32.xlu0 %v19086_v3, %s19033_s25 }
 0x5ff   :  { %18179 = vrot.lane.b32.xlu0 %v19104_v9, %s19034_s26 }
 0x603   :  { %1162 = vrot.lane.b32.xlu0 %v19100_v8, %s19034_s26 }
 0x607   :  { %18189 = vrot.lane.b32.xlu0 %v19104_v9, %s19035_s27 }
 0x66e   :  { %v899_v17 = vpop.xlane.xlu0 %898 }
 0x66f   :  { %18765 = vrcp.f32 %v899_v17 }
 0x672   :  { %v902_v18 = vpop.xlane.xlu0 %901 }
 0x673   :  { %18767 = vrcp.f32 %v902_v18 }
 0x676   :  { %v18165_v25 = vpop.permute.xlu0 %18164 }
 0x677   :  { %v18167_v37 = vunpack.i.h.bf16 %v18165_v25  ;;  %v18166_v38 = vunpack.i.l.bf16 %v18165_v25  ;;  %v54_v25 = vld [vmem:[#allocation2 + $0x30] sm:$0xff] }
 0x679   :  { %v18766_v19 = vpop.eup %18765  ;;  %v17219_v43 = vpack.c.bf16 %v18167_v37, %v18166_v38 }
 0x67a   :  { %v904_v20 = vmul.f32 %v18766_v19, %v18762_v1  ;;  %v18180_v30 = vpop.permute.xlu0 %18179 }
 0x67b   :  { %v18182_v32 = vunpack.i.h.bf16 %v18180_v30  ;;  %v18181_v33 = vunpack.i.l.bf16 %v18180_v30 }
 0x67c   :  { %15855 = vmatprep.mubr.msk.f32.mxu1 %vm420_vm3, %v904_v20 }
 0x67d   :  { %v18768_v21 = vpop.eup %18767  ;;  %v17215_v36 = vpack.c.bf16 %v18182_v32, %v18181_v33 }
 0x67e   :  { %v906_v22 = vmul.f32 %v18768_v21, %v18764_v4  ;;  %v1163_v48 = vpop.permute.xlu0 %1162 }
 0x680   :  { %15856 = vmatmul.mubr.msk.f32.vlgmr.msra.gmra.mrb[10].mxu1 %vm420_vm3, %v906_v22 }
 0x681   :  { %15876 = vmatprep.mubr.msk.f32.mxu1 %vm61_vm0, %v19091_v5  ;;  %17214 = vmatpush3.bf16.msra.mxu1 %v17211_v31 }
 0x682   :  { %17216 = vmatprep.subr.bf16.mxu1 %v17215_v36  ;;  %v18190_v57 = vpop.permute.xlu0 %18189 }
 0x683   :  { %v18192_v60 = vunpack.i.h.bf16 %v18190_v57  ;;  %v18191_v61 = vunpack.i.l.bf16 %v18190_v57 }
 0x685   :  { %17218 = vmatpush3.bf16.msra.mxu1 %v17215_v36  ;;  %v17231_v63 = vpack.c.bf16 %v18192_v60, %v18191_v61 }
 0x688   :  { %15877 = vmatmul.mubr.msk.f32.vlgmr.msra.gmra.mrb[12].mxu1 %vm61_vm0, %v19113_v10 }
 0x689   :  { %15898 = vmatprep.mubr.msk.f32.mxu1 %vm61_vm0, %v19091_v5 }
 0x753   :  { %v15857_v40 = vpop.f32.mrb[10].mxu1 }
 0x754   :  { %v979_v41 = vpop.f32.mrb[11].mxu1 }
 0x755   :  { %15860 = vmatprep.mubr.msk.f32.mxu0 %vm328_vm1, %v979_v41 }
 0x756   :  { %15861 = vmatmul.mubr.msk.f32.vlgmr.msra.gmra.mrb[8].mxu0 %vm328_vm1, %v15857_v40 }
 0x757   :  { %15864 = vmatpush3.msra.mxu0 %v52_v23  ;;  %15865 = vmatprep.mubr.msk.f32.mxu0 %vm328_vm1, %v19193_v35 }
 0x758   :  { %17220 = vmatprep.subr.bf16.mxu0 %v17219_v43 }
 0x75b   :  { %v15878_v47 = vpop.f32.mrb[12].mxu1 }
 0x75c   :  { %v1231_v49 = vpop.f32.mrb[13].mxu1  ;;  %v1237_v55 = vadd.f32 %v15878_v47, %v1163_v48 }
 0x75d   :  { %v1232_v35 = vadd.f32 %v1231_v49, %v1163_v48 }
 0x75e   :  { %15866 = vmatmul.mubr.msk.f32.vlgmr.msra.gmra.mrb[8].mxu0 %vm328_vm1, %v19191_v34  ;;  %v1253_v34 = vpop.permute.xlu1 %1252 }
 0x75f   :  { %17222 = vmatpush3.bf16.msra.mxu0 %v17219_v43  ;;  %15887 = vmatprep.mubr.msk.f32.mxu0 %vm61_vm0, %v19091_v5 }
 0x760   :  { %17224 = vmatprep.subr.bf16.mxu0 %v17223_v46 }
 0x762   :  { %v18185_v56 = vpop.permute.xlu1 %18184 }
 0x763   :  { %17226 = vmatpush3.bf16.msra.mxu0 %v17223_v46  ;;  %v18187_v58 = vunpack.i.h.bf16 %v18185_v56  ;;  %v18186_v59 = vunpack.i.l.bf16 %v18185_v56 }
 0x765   :  { %v17227_v62 = vpack.c.bf16 %v18187_v58, %v18186_v59 }
 0x766   :  { %15888 = vmatmul.mubr.msk.f32.vlgmr.msra.gmra.mrb[10].mxu0 %vm61_vm0, %v19113_v10 }
 0x767   :  { %15905 = vmatprep.mubr.msk.f32.mxu0 %vm328_vm1, %v1232_v35  ;;  %17228 = vmatprep.subr.bf16.mxu1 %v17227_v62 }
 0x768   :  { %17230 = vmatpush3.bf16.msra.mxu1 %v17227_v62 }
 0x769   :  { %17232 = vmatprep.subr.bf16.mxu1 %v17231_v63 }
 0x76c   :  { %17234 = vmatpush3.bf16.msra.mxu1 %v17231_v63 }
 0x76f   :  { %15899 = vmatmul.mubr.msk.f32.vlgmr.msra.gmra.mrb[14].mxu1 %vm61_vm0, %v19113_v10 }
 0x839   :  { %v15889_v50 = vpop.f32.mrb[10].mxu0 }
 0x83a   :  { %v1327_v51 = vadd.f32 %v15889_v50, %v1253_v34  ;;  %v1321_v52 = vpop.f32.mrb[11].mxu0 }
 0x83b   :  { %v1322_v53 = vadd.f32 %v1321_v52, %v1253_v34 }
 0x83d   :  { %v17235_v54 = vpack.c.bf16 %v1327_v51, %v1322_v53 }
 0x83f   :  { %17237 = vmatprep.subr.msk.bf16.mxu0 %vm19129_vm2, %v17235_v54 }
 0x840   :  { %17240 = vmatpush3.bf16.xpose.msk.msra.mxu0 %vm19129_vm2, %v17235_v54 }
 0x841   :  { %15915 = vmatprep.subr.mxu0 %v54_v25 }
 0x842   :  { %v15900_v23 = vpop.f32.mrb[14].mxu1 }
 0x843   :  { %v1411_v24 = vpop.f32.mrb[15].mxu1 }
 0x847   :  { %15906 = vmatmul.mubr.msk.f32.vlgmr.msra.gmra.mrb[12].mxu0 %vm328_vm1, %v1237_v55 }
 0x848   :  { %15916 = vmatpush3.msra.mxu0 %v54_v25 }
 0x91a   :  { %v15907_v0 = vpop.f32.mrb[12].mxu0 }
 0x91b   :  { %v1508_v1 = vmul.f32 0.35355338, %v15907_v0  ;;  %v1498_v2 = vpop.f32.mrb[13].mxu0 }
 0x91c   :  { %v1507_v4 = vmul.f32 0.35355338, %v1498_v2 }
 0x91d   :  { %v1510_v6 = vadd.f32 %v1508_v1, %v19146_v39 }
 0x91e   :  { %v1509_v7 = vadd.f32 %v1507_v4, %v19151_v42 }
 0x91f   :  { %v1514_v11 = vsel %vm420_vm3, %v1510_v6, -inf }
 0x920   :  { %1515 = vmax.xlane.f32.xlu0 %v1514_v11  ;;  %v1511_v12 = vsel %vm420_vm3, %v1509_v7, -inf }
 0x921   :  { %1512 = vmax.xlane.f32.xlu1 %v1511_v12 }
 0x9ad   :  { %v1516_v13 = vpop.xlane.xlu0 %1515 }
 0x9ae   :  { %v1518_v14 = vsub.f32 %v1510_v6, %v1516_v13  ;;  %v1513_v15 = vpop.xlane.xlu1 %1512 }
 0x9af   :  { %v1517_v16 = vsub.f32 %v1509_v7, %v1513_v15 }
 0x9b0   :  { %v1521_v17 = vmul.f32 1.442695, %v1518_v14 }
 0x9b1   :  { %v1519_v18 = vmul.f32 1.442695, %v1517_v16 }
 0x9b2   :  { %18769 = vpow2.f32 %v1521_v17 }
 0x9b3   :  { %18771 = vpow2.f32 %v1519_v18 }
 0x9bc   :  { %v18770_v19 = vpop.eup %18769 }
 0x9bd   :  { %v18772_v20 = vpop.eup %18771  ;;  %v1526_v21 = vsel %vm420_vm3, %v18770_v19, 0.0 }
 0x9be   :  { %1527 = vadd.xlane.f32.xlu1 %v1526_v21  ;;  %v1523_v22 = vsel %vm420_vm3, %v18772_v20, 0.0 }
 0x9bf   :  { %1524 = vadd.xlane.f32.xlu0 %v1523_v22 }
 0x9cf   :  { %18194 = vrot.lane.b32.xlu1 %v19086_v3, %s19036_s28 }
 0x9d3   :  { %18199 = vrot.lane.b32.xlu1 %v19104_v9, %s19036_s28 }
 0x9d5   :  { %1342 = vrot.lane.b32.xlu0 %v19100_v8, %s19035_s27 }
 0x9d7   :  { %18209 = vrot.lane.b32.xlu1 %v19104_v9, %s19037_s29 }
 0x9d9   :  { %18204 = vrot.lane.b32.xlu0 %v19086_v3, %s19037_s29 }
 0x9db   :  { %1709 = vrot.lane.b32.xlu1 %v19100_v8, %s19037_s29 }
 0x9dd   :  { %1799 = vrot.lane.b32.xlu0 %v19100_v8, %s19036_s28 }
 0x9df   :  { %18219 = vrot.lane.b32.xlu1 %v19104_v9, %s19038_s30 }
 0x9e1   :  { %18214 = vrot.lane.b32.xlu0 %v19086_v3, %s19038_s30 }
 0xa4b   :  { %v1528_v26 = vpop.xlane.xlu1 %1527 }
 0xa4c   :  { %18773 = vrcp.f32 %v1528_v26  ;;  %v1525_v28 = vpop.xlane.xlu0 %1524 }
 0xa4d   :  { %18775 = vrcp.f32 %v1525_v28 }
 0xa4f   :  { %v18195_v40 = vpop.permute.xlu1 %18194 }
 0xa50   :  { %v1343_v29 = vpop.permute.xlu0 %1342  ;;  %v18197_v41 = vunpack.i.h.bf16 %v18195_v40  ;;  %v18196_v43 = vunpack.i.l.bf16 %v18195_v40  ;;  %v55_v40 = vld [vmem:[#allocation2 + $0x38] sm:$0xff] }
 0xa51   :  { %v1412_v30 = vadd.f32 %v1411_v24, %v1343_v29  ;;  %v1417_v31 = vadd.f32 %v15900_v23, %v1343_v29 }
 0xa52   :  { %v17253_v44 = vpack.c.bf16 %v18197_v41, %v18196_v43 }
 0xa53   :  { %v17241_v32 = vpack.c.bf16 %v1417_v31, %v1412_v30  ;;  %v18200_v45 = vpop.permute.xlu1 %18199 }
 0xa54   :  { %17254 = vmatprep.subr.bf16.mxu0 %v17253_v44  ;;  %v18205_v46 = vpop.permute.xlu0 %18204  ;;  %v18202_v52 = vunpack.i.h.bf16 %v18200_v45  ;;  %v18201_v53 = vunpack.i.l.bf16 %v18200_v45 }
 0xa55   :  { %17242 = vmatprep.subr.bf16.mxu1 %v17241_v32  ;;  %v18207_v47 = vunpack.i.h.bf16 %v18205_v46  ;;  %v18206_v48 = vunpack.i.l.bf16 %v18205_v46 }
 0xa56   :  { %v18774_v33 = vpop.eup %18773  ;;  %17244 = vmatpush3.bf16.msra.mxu1 %v17241_v32  ;;  %v17257_v56 = vpack.c.bf16 %v18202_v52, %v18201_v53 }
 0xa57   :  { %v18776_v36 = vpop.eup %18775  ;;  %v1532_v38 = vmul.f32 %v18774_v33, %v18770_v19  ;;  %v18210_v49 = vpop.permute.xlu1 %18209  ;;  %v17245_v35 = vpack.c.bf16 %v18207_v47, %v18206_v48 }
 0xa58   :  { %v1530_v37 = vmul.f32 %v18776_v36, %v18772_v20  ;;  %v18212_v34 = vunpack.i.h.bf16 %v18210_v49  ;;  %v18211_v50 = vunpack.i.l.bf16 %v18210_v49  ;;  %v1800_v61 = vpop.permute.xlu0 %1799 }
 0xa59   :  { %17246 = vmatprep.subr.bf16.mxu1 %v17245_v35 }
 0xa5a   :  { %15912 = vmatprep.mubr.msk.f32.mxu1 %vm420_vm3, %v1530_v37  ;;  %v17249_v51 = vpack.c.bf16 %v18212_v34, %v18211_v50 }
 0xa5b   :  { %15913 = vmatmul.mubr.msk.f32.vlgmr.msra.gmra.mrb[16].mxu1 %vm420_vm3, %v1532_v38  ;;  %v1710_v58 = vpop.permute.xlu1 %1709 }
 0xa5c   :  { %15928 = vmatprep.mubr.msk.f32.mxu1 %vm61_vm0, %v19091_v5  ;;  %17248 = vmatpush3.bf16.msra.mxu1 %v17245_v35  ;;  %v18215_v6 = vpop.permute.xlu0 %18214  ;;  %v14654_v35 = vld [vmem:[%s20644_s5 + $0x1] ss:$0 sm:$0xff] }
 0xa5d   :  { %17250 = vmatprep.subr.bf16.mxu1 %v17249_v51  ;;  %v18217_v7 = vunpack.i.h.bf16 %v18215_v6  ;;  %v18216_v11 = vunpack.i.l.bf16 %v18215_v6 }
 0xa5f   :  { %v18220_v9 = vpop.permute.xlu1 %18219  ;;  %v17261_v13 = vpack.c.bf16 %v18217_v7, %v18216_v11  ;;  %v2298_v11 = vld [vmem:[#allocation2 + $0x60] sm:$0xff] }
 0xa60   :  { %17252 = vmatpush3.bf16.msra.mxu1 %v17249_v51  ;;  %v18222_v3 = vunpack.i.h.bf16 %v18220_v9  ;;  %v18221_v12 = vunpack.i.l.bf16 %v18220_v9  ;;  %v2296_v9 = vld [vmem:[#allocation2 + $0x58] sm:$0xff] }
 0xa61   :  { %17262 = vmatprep.subr.bf16.mxu1 %v17261_v13 }
 0xa62   :  { %v17265_v14 = vpack.c.bf16 %v18222_v3, %v18221_v12  ;;  %v2299_v3 = vld [vmem:[#allocation2 + $0x68] sm:$0xff]  ;;  %v2300_v12 = vld [vmem:[#allocation2 + $0x70] sm:$0xff] }
 0xa63   :  { %15929 = vmatmul.mubr.msk.f32.vlgmr.msra.gmra.mrb[18].mxu1 %vm61_vm0, %v19113_v10 }
 0xa64   :  { %15950 = vmatprep.mubr.msk.f32.mxu1 %vm61_vm0, %v19091_v5  ;;  %17264 = vmatpush3.bf16.msra.mxu1 %v17261_v13  ;;  %v17287_v13 = vpack.c.bf16 %v2299_v3, %v2298_v11 }
 0xa65   :  { %17266 = vmatprep.subr.bf16.mxu1 %v17265_v14 }
 0xa68   :  { %17268 = vmatpush3.bf16.msra.mxu1 %v17265_v14  ;;  %v2301_v14 = vld [vmem:[#allocation2 + $0x78] sm:$0xff] }
 0xa6b   :  { %15951 = vmatmul.mubr.msk.f32.vlgmr.msra.gmra.mrb[20].mxu1 %vm61_vm0, %v19113_v10 }
 0xb2e   :  { %v15914_v54 = vpop.f32.mrb[16].mxu1 }
 0xb2f   :  { %v1605_v55 = vpop.f32.mrb[17].mxu1 }
 0xb30   :  { %15917 = vmatprep.mubr.msk.f32.mxu0 %vm328_vm1, %v1605_v55 }
 0xb31   :  { %15918 = vmatmul.mubr.msk.f32.vlgmr.msra.gmra.mrb[8].mxu0 %vm328_vm1, %v15914_v54 }
 0xb32   :  { %17256 = vmatpush3.bf16.msra.mxu0 %v17253_v44  ;;  %15939 = vmatprep.mubr.msk.f32.mxu0 %vm61_vm0, %v19091_v5 }
 0xb33   :  { %17258 = vmatprep.subr.bf16.mxu0 %v17257_v56 }
 0xb36   :  { %17260 = vmatpush3.bf16.msra.mxu0 %v17257_v56  ;;  %v15930_v57 = vpop.f32.mrb[18].mxu1 }
 0xb37   :  { %v1778_v59 = vpop.f32.mrb[19].mxu1  ;;  %v1784_v4 = vadd.f32 %v15930_v57, %v1710_v58 }
 0xb38   :  { %v1779_v60 = vadd.f32 %v1778_v59, %v1710_v58 }
 0xb39   :  { %15940 = vmatmul.mubr.msk.f32.vlgmr.msra.gmra.mrb[14].mxu0 %vm61_vm0, %v19113_v10 }
 0xb3a   :  { %15957 = vmatprep.mubr.msk.f32.mxu0 %vm328_vm1, %v1779_v60 }
 0xb3e   :  { %v15952_v32 = vpop.f32.mrb[20].mxu1 }
 0xb3f   :  { %v1958_v36 = vpop.f32.mrb[21].mxu1 }
 0xc0c   :  { %v15941_v62 = vpop.f32.mrb[14].mxu0 }
 0xc0d   :  { %v1874_v63 = vadd.f32 %v15941_v62, %v1800_v61  ;;  %v1868_v0 = vpop.f32.mrb[15].mxu0 }
 0xc0e   :  { %v1869_v1 = vadd.f32 %v1868_v0, %v1800_v61 }
 0xc10   :  { %v17269_v2 = vpack.c.bf16 %v1874_v63, %v1869_v1 }
 0xc12   :  { %17271 = vmatprep.subr.msk.bf16.mxu0 %vm19129_vm2, %v17269_v2 }
 0xc13   :  { %17274 = vmatpush3.bf16.xpose.msk.msra.mxu0 %vm19129_vm2, %v17269_v2  ;;  %v2293_v2 = vld [vmem:[#allocation2 + $0x40] sm:$0xff] }
 0xc14   :  { %15967 = vmatprep.subr.mxu0 %v55_v40 }
 0xc1a   :  { %15958 = vmatmul.mubr.msk.f32.vlgmr.msra.gmra.mrb[16].mxu0 %vm328_vm1, %v1784_v4  ;;  %v2295_v4 = vld [vmem:[#allocation2 + $0x50] sm:$0xff] }
 0xc1b   :  { %15968 = vmatpush3.msra.mxu0 %v55_v40  ;;  %v17283_v7 = vpack.c.bf16 %v2296_v9, %v2295_v4 }
 0xc1c   :  { %17288 = vmatprep.subr.bf16.mxu0 %v17287_v13 }
 0xced   :  { %v15959_v15 = vpop.f32.mrb[16].mxu0 }
 0xcee   :  { %v2055_v16 = vmul.f32 0.35355338, %v15959_v15  ;;  %v2045_v17 = vpop.f32.mrb[17].mxu0  ;;  %v17291_v15 = vpack.c.bf16 %v2301_v14, %v2300_v12 }
 0xcef   :  { %v2054_v18 = vmul.f32 0.35355338, %v2045_v17  ;;  %v2303_v17 = vld [vmem:[#allocation2 + $0x88] sm:$0xff] }
 0xcf0   :  { %v2057_v19 = vadd.f32 %v2055_v16, %v19146_v39  ;;  %v2302_v16 = vld [vmem:[#allocation2 + $0x80] sm:$0xff] }
 0xcf1   :  { %v2056_v20 = vadd.f32 %v2054_v18, %v19151_v42  ;;  %v17295_v18 = vpack.c.bf16 %v2303_v17, %v2302_v16 }
 0xcf2   :  { %v2061_v21 = vsel %vm420_vm3, %v2057_v19, -inf }
 0xcf3   :  { %2062 = vmax.xlane.f32.xlu1 %v2061_v21  ;;  %v2058_v22 = vsel %vm420_vm3, %v2056_v20, -inf }
 0xcf4   :  { %2059 = vmax.xlane.f32.xlu0 %v2058_v22 }
 0xd04   :  { %1889 = vrot.lane.b32.xlu1 %v19100_v8, %s19038_s30 }
 0xd80   :  { %v2063_v23 = vpop.xlane.xlu1 %2062 }
 0xd81   :  { %v2065_v24 = vsub.f32 %v2057_v19, %v2063_v23  ;;  %v2060_v25 = vpop.xlane.xlu0 %2059 }
 0xd82   :  { %v2064_v26 = vsub.f32 %v2056_v20, %v2060_v25 }
 0xd83   :  { %v2068_v28 = vmul.f32 1.442695, %v2065_v24 }
 0xd84   :  { %v2066_v29 = vmul.f32 1.442695, %v2064_v26  ;;  %v1890_v33 = vpop.permute.xlu1 %1889  ;;  %v14655_v26 = vld [vmem:[%s20644_s5 + $0x2] ss:$0 sm:$0xff] }
 0xd85   :  { %v1964_v8 = vadd.f32 %v15952_v32, %v1890_v33  ;;  %v1959_v37 = vadd.f32 %v1958_v36, %v1890_v33  ;;  %v2304_v36 = vld [vmem:[#allocation2 + $0x90] sm:$0xff] }
 0xd86   :  { %18777 = vpow2.f32 %v2066_v29  ;;  %v14656_v29 = vld [vmem:[%s20644_s5 + $0x3] ss:$0 sm:$0xff] }
 0xd87   :  { %18779 = vpow2.f32 %v2068_v28  ;;  %v17275_v38 = vpack.c.bf16 %v1964_v8, %v1959_v37  ;;  %v2305_v8 = vld [vmem:[#allocation2 + $0x98] sm:$0xff] }
 0xd88   :  { %v17299_v37 = vpack.c.bf16 %v2305_v8, %v2304_v36 }
 0xd89   :  { %17276 = vmatprep.subr.bf16.mxu1 %v17275_v38 }
 0xd8a   :  { %17278 = vmatpush3.bf16.msra.mxu1 %v17275_v38  ;;  %v14657_v38 = vld [vmem:[%s20644_s5 + $0x4] ss:$0 sm:$0xff] }
 0xd90   :  { %v18778_v39 = vpop.eup %18777 }
 0xd91   :  { %v2070_v42 = vsel %vm420_vm3, %v18778_v39, 0.0  ;;  %v18780_v30 = vpop.eup %18779 }
 0xd92   :  { %2071 = vadd.xlane.f32.xlu0 %v2070_v42  ;;  %v2073_v31 = vsel %vm420_vm3, %v18780_v30, 0.0 }
 0xd96   :  { %2074 = vadd.xlane.f32.xlu0 %v2073_v31 }
 0xe1f   :  { %v2072_v41 = vpop.xlane.xlu0 %2071 }
 0xe20   :  { %18781 = vrcp.f32 %v2072_v41 }
 0xe23   :  { %v2075_v43 = vpop.xlane.xlu0 %2074 }
 0xe24   :  { %18783 = vrcp.f32 %v2075_v43 }
 0xe2a   :  { %v18782_v44 = vpop.eup %18781 }
 0xe2b   :  { %v2077_v45 = vmul.f32 %v18782_v44, %v18778_v39 }
 0xe2d   :  { %15964 = vmatprep.mubr.msk.f32.mxu1 %vm420_vm3, %v2077_v45 }
 0xe2e   :  { %v18784_v46 = vpop.eup %18783 }
 0xe2f   :  { %v2079_v47 = vmul.f32 %v18784_v46, %v18780_v30 }
 0xe31   :  { %15965 = vmatmul.mubr.msk.f32.vlgmr.msra.gmra.mrb[22].mxu1 %vm420_vm3, %v2079_v47  ;;  %v14660_v47 = vld [vmem:[%s20644_s5 + $0x5] ss:$0 sm:$0xff] }
 0xf04   :  { %v15966_v48 = vpop.f32.mrb[22].mxu1 }
 0xf05   :  { %v2152_v49 = vpop.f32.mrb[23].mxu1 }
 0xf06   :  { %15969 = vmatprep.mubr.msk.f32.mxu0 %vm328_vm1, %v2152_v49 }
 0xf07   :  { %15970 = vmatmul.mubr.msk.f32.vlgmr.msra.gmra.mrb[8].mxu0 %vm328_vm1, %v15966_v48 }
 0xf08   :  { %17290 = vmatpush3.bf16.msra.mxu0 %v17287_v13 }
 0xf09   :  { %17292 = vmatprep.subr.bf16.mxu0 %v17291_v15 }
 0xf0c   :  { %17294 = vmatpush3.bf16.msra.mxu0 %v17291_v15 }
 0xf0d   :  { %17296 = vmatprep.subr.bf16.mxu0 %v17295_v18 }
 0xf10   :  { %17298 = vmatpush3.bf16.msra.mxu0 %v17295_v18 }
 0xf11   :  { %17300 = vmatprep.subr.bf16.mxu0 %v17299_v37 }
 0xf14   :  { %17302 = vmatpush3.bf16.msra.mxu0 %v17299_v37 }
 0xfda   :  { %v15971_v34 = vpop.f32.mrb[8].mxu0 }
 0xfdb   :  { %v2233_v50 = vpop.f32.mrb[9].mxu0  ;;  %v2249_v51 = vadd.f32 %v15971_v34, %v14654_v35 }
 0xfdc   :  { %v2248_v52 = vadd.f32 %v14654_v35, %v2233_v50 }
 0xfdd   :  { %v2251_v55 = vadd.f32 %v2249_v51, %v19113_v10  ;;  %v2294_v10 = vld [vmem:[#allocation2 + $0x48] sm:$0xff] }
 0xfde   :  { %v2250_v53 = vadd.f32 %v2248_v52, %v19091_v5  ;;  %v17279_v6 = vpack.c.bf16 %v2294_v10, %v2293_v2  ;;  %v2524_v2 = vld [vmem:[#allocation2 + $0xb0] sm:$0xff]  ;;  %v2525_v10 = vld [vmem:[#allocation2 + $0xb8] sm:$0xff] }
 0xfdf   :  { %v2257_v56 = vsel %vm61_vm0, %v2251_v55, 0.0  ;;  %v19340_v4 = vpack.i.bf16 %v2525_v10, %v2524_v2  ;;  %v17307_v9 = vpack.c.bf16 %v2525_v10, %v2524_v2 }
 0xfe0   :  { %v2254_v54 = vsel %vm61_vm0, %v2250_v53, 0.0  ;;  %17280 = vmatprep.subr.bf16.mxu1 %v17279_v6 }
 0xfe1   :  { %2255 = vadd.xlane.f32.xlu0 %v2254_v54  ;;  %17282 = vmatpush3.bf16.msra.mxu1 %v17279_v6 }
 0xfe2   :  { %17284 = vmatprep.subr.bf16.mxu1 %v17283_v7 }
 0xfe5   :  { %2258 = vadd.xlane.f32.xlu0 %v2257_v56  ;;  %17286 = vmatpush3.bf16.msra.mxu1 %v17283_v7  ;;  %v19351_v7 = vld [vmem:[%s20644_s5 + $0x8] ss:$0 sm:$0xff] }
0x106e   :  { %v2256_v57 = vpop.xlane.xlu0 %2255 }
0x106f   :  { %v2261_v58 = vmul.f32 0.03125, %v2256_v57 }
0x1071   :  { %v2263_v59 = vsub.f32 %v2250_v53, %v2261_v58 }
0x1072   :  { %v2259_v60 = vpop.xlane.xlu0 %2258 }
0x1073   :  { %v2262_v61 = vmul.f32 0.03125, %v2259_v60  ;;  %v2265_v62 = vmul.f32 %v2263_v59, %v2263_v59 }
0x1075   :  { %v2264_v63 = vsub.f32 %v2251_v55, %v2262_v61  ;;  %v2267_v0 = vsel %vm61_vm0, %v2265_v62, 0.0 }
0x1076   :  { %2268 = vadd.xlane.f32.xlu0 %v2267_v0  ;;  %v2522_v0 = vld [vmem:[#allocation2 + $0xa0] sm:$0xff] }
0x1077   :  { %v2266_v1 = vmul.f32 %v2264_v63, %v2264_v63 }
0x1079   :  { %v2270_v5 = vsel %vm61_vm0, %v2266_v1, 0.0  ;;  %v2523_v1 = vld [vmem:[#allocation2 + $0xa8] sm:$0xff] }
0x107a   :  { %2271 = vadd.xlane.f32.xlu0 %v2270_v5  ;;  %v19336_v5 = vpack.i.bf16 %v2523_v1, %v2522_v0  ;;  %v17303_v6 = vpack.c.bf16 %v2523_v1, %v2522_v0 }
0x107c   :  { %17304 = vmatprep.subr.bf16.mxu1 %v17303_v6 }
0x1103   :  { %v2269_v19 = vpop.xlane.xlu0 %2268 }
0x1104   :  { %v2273_v20 = vmul.f32 0.03125, %v2269_v19 }
0x1106   :  { %v2275_v21 = vadd.f32 1e-05, %v2273_v20 }
0x1107   :  { %v2272_v22 = vpop.xlane.xlu0 %2271 }
0x1108   :  { %18785 = vrsqrt.f32 %v2275_v21  ;;  %v2274_v23 = vmul.f32 0.03125, %v2272_v22  ;;  %v14663_v22 = vld [vmem:[%s20644_s5 + $0x6] ss:$0 sm:$0xff] }
0x110a   :  { %v2276_v24 = vadd.f32 1e-05, %v2274_v23 }
0x110c   :  { %18787 = vrsqrt.f32 %v2276_v24 }
0x1112   :  { %v18786_v25 = vpop.eup %18785 }
0x1113   :  { %v2279_v28 = vmul.f32 %v18786_v25, %v2263_v59  ;;  %v14664_v25 = vld [vmem:[%s20644_s5 + $0x7] ss:$0 sm:$0xff] }
0x1115   :  { %v2285_v39 = vmul.f32 %v14655_v26, %v2279_v28 }
0x1116   :  { %v18788_v42 = vpop.eup %18787 }
0x1117   :  { %v2280_v30 = vmul.f32 %v18788_v42, %v2264_v63  ;;  %v2291_v31 = vadd.f32 %v14656_v29, %v2285_v39 }
0x1119   :  { %v2286_v32 = vmul.f32 %v14655_v26, %v2280_v30  ;;  %15980 = vmatprep.mubr.msk.f32.mxu1 %vm61_vm0, %v2291_v31 }
0x111b   :  { %v2292_v33 = vadd.f32 %v14656_v29, %v2286_v32 }
0x111d   :  { %15981 = vmatmul.mubr.msk.f32.vlgmr.msra.gmra.mrb[24].mxu1 %vm61_vm0, %v2292_v33 }
0x111e   :  { %17306 = vmatpush3.bf16.msra.mxu1 %v17303_v6 }
0x111f   :  { %17308 = vmatprep.subr.bf16.mxu1 %v17307_v9 }
0x1122   :  { %17310 = vmatpush3.bf16.msra.mxu1 %v17307_v9 }
0x11f0   :  { %v15982_v40 = vpop.f32.mrb[24].mxu1 }
0x11f1   :  { %v2389_v41 = vadd.f32 %v15982_v40, %v14657_v38  ;;  %v2383_v43 = vpop.f32.mrb[25].mxu1 }
0x11f2   :  { %v2384_v44 = vadd.f32 %v14657_v38, %v2383_v43 }
0x11f3   :  { %v2393_v46 = vmax.f32 %v2389_v41, 0.0 }
0x11f4   :  { %v2392_v45 = vmax.f32 %v2384_v44, 0.0 }
0x11f6   :  { %15999 = vmatprep.mubr.msk.f32.mxu0 %vm2398_vm4, %v2392_v45 }
0x11f7   :  { %16000 = vmatmul.mubr.msk.f32.vlgmr.msra.gmra.mrb[18].mxu0 %vm2398_vm4, %v2393_v46 }
0x12ca   :  { %v16001_v48 = vpop.f32.mrb[18].mxu0 }
0x12cb   :  { %v2477_v49 = vadd.f32 %v16001_v48, %v14660_v47  ;;  %v2471_v35 = vpop.f32.mrb[19].mxu0 }
0x12cc   :  { %v2472_v34 = vadd.f32 %v14660_v47, %v2471_v35 }
0x12cd   :  { %v2481_v50 = vadd.f32 %v2477_v49, %v2292_v33 }
0x12ce   :  { %v2480_v51 = vadd.f32 %v2472_v34, %v2291_v31 }
0x12cf   :  { %v2487_v52 = vsel %vm61_vm0, %v2481_v50, 0.0 }
0x12d0   :  { %2488 = vadd.xlane.f32.xlu0 %v2487_v52  ;;  %v2484_v53 = vsel %vm61_vm0, %v2480_v51, 0.0 }
0x12d1   :  { %2485 = vadd.xlane.f32.xlu1 %v2484_v53 }
0x12e2   :  { %2634 = vrot.lane.b32.xlu1 %v19351_v7, %s19028_s14 }
0x135d   :  { %v2489_v54 = vpop.xlane.xlu0 %2488 }
0x135e   :  { %v2491_v55 = vmul.f32 0.03125, %v2489_v54  ;;  %v2486_v56 = vpop.xlane.xlu1 %2485 }
0x135f   :  { %v2490_v57 = vmul.f32 0.03125, %v2486_v56 }
0x1360   :  { %v2493_v58 = vsub.f32 %v2481_v50, %v2491_v55 }
0x1361   :  { %v2492_v59 = vsub.f32 %v2480_v51, %v2490_v57 }
0x1362   :  { %v2495_v62 = vmul.f32 %v2493_v58, %v2493_v58  ;;  %v2635_v49 = vpop.permute.xlu1 %2634 }
0x1363   :  { %v2494_v60 = vmul.f32 %v2492_v59, %v2492_v59 }
0x1364   :  { %v2499_v63 = vsel %vm61_vm0, %v2495_v62, 0.0 }
0x1365   :  { %v2496_v61 = vsel %vm61_vm0, %v2494_v60, 0.0  ;;  %v19396_v60 = vld [vmem:[%s20640_s1] sm:$0xff] }
0x1366   :  { %2497 = vadd.xlane.f32.xlu0 %v2496_v61 }
0x136a   :  { %2500 = vadd.xlane.f32.xlu0 %v2499_v63 }
0x1380   :  { %18224 = vrot.lane.b32.xlu0 %v19336_v5, %s19028_s14 }
0x1384   :  { %18229 = vrot.lane.b32.xlu0 %v19340_v4, %s19028_s14 }
0x1388   :  { %18234 = vrot.lane.b32.xlu0 %v19336_v5, %s19029_s17 }
0x138c   :  { %18239 = vrot.lane.b32.xlu0 %v19340_v4, %s19029_s17 }
0x13f3   :  { %v2498_v11 = vpop.xlane.xlu0 %2497 }
0x13f4   :  { %v2502_v3 = vmul.f32 0.03125, %v2498_v11 }
0x13f6   :  { %v2504_v12 = vadd.f32 1e-05, %v2502_v3 }
0x13f7   :  { %v2501_v13 = vpop.xlane.xlu0 %2500 }
0x13f8   :  { %18789 = vrsqrt.f32 %v2504_v12  ;;  %v2503_v14 = vmul.f32 0.03125, %v2501_v13 }
0x13fa   :  { %v2505_v15 = vadd.f32 1e-05, %v2503_v14 }
0x13fb   :  { %v18225_v16 = vpop.permute.xlu0 %18224 }
0x13fc   :  { %18791 = vrsqrt.f32 %v2505_v15  ;;  %v18227_v17 = vunpack.i.h.bf16 %v18225_v16  ;;  %v18226_v18 = vunpack.i.l.bf16 %v18225_v16 }
0x13fe   :  { %v17311_v19 = vpack.c.bf16 %v18227_v17, %v18226_v18 }
0x13ff   :  { %v18230_v20 = vpop.permute.xlu0 %18229 }
0x1400   :  { %17312 = vmatprep.subr.bf16.mxu1 %v17311_v19  ;;  %v18232_v32 = vunpack.i.h.bf16 %v18230_v20  ;;  %v18231_v33 = vunpack.i.l.bf16 %v18230_v20 }
0x1402   :  { %v18790_v21 = vpop.eup %18789  ;;  %v17315_v43 = vpack.c.bf16 %v18232_v32, %v18231_v33 }
0x1403   :  { %v2508_v23 = vmul.f32 %v18790_v21, %v2492_v59  ;;  %v18235_v24 = vpop.permute.xlu0 %18234 }
0x1404   :  { %v18237_v26 = vunpack.i.h.bf16 %v18235_v24  ;;  %v18236_v28 = vunpack.i.l.bf16 %v18235_v24 }
0x1405   :  { %v2514_v29 = vmul.f32 %v14663_v22, %v2508_v23 }
0x1406   :  { %v18792_v39 = vpop.eup %18791  ;;  %v17319_v42 = vpack.c.bf16 %v18237_v26, %v18236_v28 }
0x1407   :  { %v19361_v30 = vadd.f32 %v14664_v25, %v2514_v29  ;;  %v2509_v31 = vmul.f32 %v18792_v39, %v2493_v58  ;;  %v18240_v36 = vpop.permute.xlu0 %18239  ;;  %v19390_v58 = vld [vmem:[%s20640_s1 + $0x8] sm:$0xff] }
0x1408   :  { %v18242_v8 = vunpack.i.h.bf16 %v18240_v36  ;;  %v18241_v37 = vunpack.i.l.bf16 %v18240_v36  ;;  %17320 = vmatprep.subr.bf16.mxu0 %v17319_v42 }
0x1409   :  { %v2515_v38 = vmul.f32 %v14663_v22, %v2509_v31  ;;  %16010 = vmatprep.mubr.msk.f32.mxu1 %vm61_vm0, %v19361_v30  ;;  %17322 = vmatpush3.bf16.msra.mxu0 %v17319_v42 }
0x140a   :  { %16032 = vmatprep.mubr.msk.f32.mxu0 %vm61_vm0, %v19361_v30  ;;  %v17323_v40 = vpack.c.bf16 %v18242_v8, %v18241_v37 }
0x140b   :  { %v19367_v41 = vadd.f32 %v14664_v25, %v2515_v38 }
0x140c   :  { %17324 = vmatprep.subr.bf16.mxu0 %v17323_v40 }
0x140d   :  { %16011 = vmatmul.mubr.msk.f32.vlgmr.msra.gmra.mrb[26].mxu1 %vm61_vm0, %v19367_v41  ;;  %17326 = vmatpush3.bf16.msra.mxu0 %v17323_v40 }
0x140e   :  { %17314 = vmatpush3.bf16.msra.mxu1 %v17311_v19  ;;  %16021 = vmatprep.mubr.msk.f32.mxu1 %vm61_vm0, %v19361_v30 }
0x140f   :  { %17316 = vmatprep.subr.bf16.mxu1 %v17315_v43 }
0x1410   :  { %16033 = vmatmul.mubr.msk.f32.vlgmr.msra.gmra.mrb[20].mxu0 %vm61_vm0, %v19367_v41 }
0x1412   :  { %17318 = vmatpush3.bf16.msra.mxu1 %v17315_v43 }
0x1415   :  { %16022 = vmatmul.mubr.msk.f32.vlgmr.msra.gmra.mrb[28].mxu1 %vm61_vm0, %v19367_v41 }
0x14e0   :  { %v16012_v44 = vpop.f32.mrb[26].mxu1 }
0x14e1   :  { %v2608_v45 = vpop.f32.mrb[27].mxu1  ;;  %v2614_v53 = vadd.f32 %v16012_v44, %v19351_v7 }
0x14e2   :  { %v2609_v46 = vadd.f32 %v19351_v7, %v2608_v45 }
0x14e3   :  { %v16034_v47 = vpop.f32.mrb[20].mxu0 }
0x14e4   :  { %v2793_v48 = vpop.f32.mrb[21].mxu0  ;;  %16039 = vmatprep.mubr.msk.f32.mxu1 %vm328_vm1, %v2609_v46 }
0x14e8   :  { %v16023_v35 = vpop.f32.mrb[28].mxu1 }
0x14e9   :  { %v2709_v34 = vadd.f32 %v16023_v35, %v2635_v49  ;;  %v2703_v50 = vpop.f32.mrb[29].mxu1 }
0x14ea   :  { %v2704_v51 = vadd.f32 %v2703_v50, %v2635_v49 }
0x14ec   :  { %v17327_v52 = vpack.c.bf16 %v2709_v34, %v2704_v51 }
0x14ee   :  { %17329 = vmatprep.subr.msk.bf16.mxu1 %vm19129_vm2, %v17327_v52 }
0x14ef   :  { %17332 = vmatpush3.bf16.xpose.msk.msra.mxu1 %vm19129_vm2, %v17327_v52 }
0x14f6   :  { %16040 = vmatmul.mubr.msk.f32.vlgmr.msra.gmra.mrb[30].mxu1 %vm328_vm1, %v2614_v53 }
0x14f7   :  { %16057 = vmatprep.mubr.msk.f32.mxu1 %vm61_vm0, %v19361_v30 }
0x15c9   :  { %v16041_v54 = vpop.f32.mrb[30].mxu1 }
0x15ca   :  { %v2890_v55 = vmul.f32 0.35355338, %v16041_v54  ;;  %v2880_v56 = vpop.f32.mrb[31].mxu1 }
0x15cb   :  { %v2889_v57 = vmul.f32 0.35355338, %v2880_v56 }
0x15cc   :  { %v2892_v59 = vadd.f32 %v19390_v58, %v2890_v55 }
0x15cd   :  { %v2891_v61 = vadd.f32 %v19396_v60, %v2889_v57 }
0x15ce   :  { %v2896_v62 = vsel %vm420_vm3, %v2892_v59, -inf }
0x15cf   :  { %2897 = vmax.xlane.f32.xlu1 %v2896_v62  ;;  %v2893_v63 = vsel %vm420_vm3, %v2891_v61, -inf }
0x15d0   :  { %2894 = vmax.xlane.f32.xlu0 %v2893_v63 }
0x15e0   :  { %18244 = vrot.lane.b32.xlu1 %v19336_v5, %s19030_s22 }
0x15e4   :  { %18249 = vrot.lane.b32.xlu1 %v19340_v4, %s19030_s22 }
0x15e8   :  { %18259 = vrot.lane.b32.xlu1 %v19340_v4, %s19031_s23 }
0x15ec   :  { %3008 = vrot.lane.b32.xlu1 %v19351_v7, %s19031_s23 }
0x15f0   :  { %18269 = vrot.lane.b32.xlu1 %v19340_v4, %s19032_s24 }
0x165c   :  { %v2898_v0 = vpop.xlane.xlu1 %2897 }
0x165d   :  { %v2900_v1 = vsub.f32 %v2892_v59, %v2898_v0  ;;  %v2895_v2 = vpop.xlane.xlu0 %2894 }
0x165e   :  { %v2899_v10 = vsub.f32 %v2891_v61, %v2895_v2 }
0x165f   :  { %v2903_v6 = vmul.f32 1.442695, %v2900_v1 }
0x1660   :  { %v2901_v9 = vmul.f32 1.442695, %v2899_v10  ;;  %v18245_v14 = vpop.permute.xlu1 %18244 }
0x1661   :  { %18793 = vpow2.f32 %v2903_v6  ;;  %v18247_v19 = vunpack.i.h.bf16 %v18245_v14  ;;  %v18246_v20 = vunpack.i.l.bf16 %v18245_v14 }
0x1662   :  { %18795 = vpow2.f32 %v2901_v9 }
0x1663   :  { %v17345_v29 = vpack.c.bf16 %v18247_v19, %v18246_v20 }
0x1664   :  { %v18250_v15 = vpop.permute.xlu1 %18249 }
0x1665   :  { %v18252_v42 = vunpack.i.h.bf16 %v18250_v15  ;;  %v18251_v31 = vunpack.i.l.bf16 %v18250_v15 }
0x1667   :  { %v17349_v46 = vpack.c.bf16 %v18252_v42, %v18251_v31 }
0x1668   :  { %v18260_v18 = vpop.permute.xlu1 %18259 }
0x1669   :  { %v18262_v26 = vunpack.i.h.bf16 %v18260_v18  ;;  %v18261_v28 = vunpack.i.l.bf16 %v18260_v18 }
0x166b   :  { %v18794_v11 = vpop.eup %18793  ;;  %v17341_v38 = vpack.c.bf16 %v18262_v26, %v18261_v28 }
0x166c   :  { %v2908_v3 = vsel %vm420_vm3, %v18794_v11, 0.0  ;;  %v18796_v12 = vpop.eup %18795  ;;  %v3009_v24 = vpop.permute.xlu1 %3008 }
0x166d   :  { %2909 = vadd.xlane.f32.xlu0 %v2908_v3  ;;  %v2905_v13 = vsel %vm420_vm3, %v18796_v12, 0.0 }
0x1670   :  { %v18270_v44 = vpop.permute.xlu1 %18269 }
0x1671   :  { %2906 = vadd.xlane.f32.xlu0 %v2905_v13 }
0x1687   :  { %2724 = vrot.lane.b32.xlu0 %v19351_v7, %s19029_s17 }
0x168b   :  { %18254 = vrot.lane.b32.xlu0 %v19336_v5, %s19031_s23 }
0x168f   :  { %3098 = vrot.lane.b32.xlu0 %v19351_v7, %s19030_s22 }
0x1693   :  { %18264 = vrot.lane.b32.xlu0 %v19336_v5, %s19032_s24 }
0x16fa   :  { %v2910_v16 = vpop.xlane.xlu0 %2909 }
0x16fb   :  { %18797 = vrcp.f32 %v2910_v16 }
0x16fe   :  { %v2907_v17 = vpop.xlane.xlu0 %2906 }
0x16ff   :  { %18799 = vrcp.f32 %v2907_v17 }
0x1702   :  { %v2725_v21 = vpop.permute.xlu0 %2724 }
0x1703   :  { %v2794_v22 = vadd.f32 %v2793_v48, %v2725_v21  ;;  %v2799_v23 = vadd.f32 %v16034_v47, %v2725_v21  ;;  %v18272_v47 = vunpack.i.h.bf16 %v18270_v44  ;;  %v18271_v48 = vunpack.i.l.bf16 %v18270_v44 }
0x1705   :  { %v17333_v25 = vpack.c.bf16 %v2799_v23, %v2794_v22  ;;  %v18798_v36 = vpop.eup %18797  ;;  %v17357_v51 = vpack.c.bf16 %v18272_v47, %v18271_v48 }
0x1706   :  { %v18255_v39 = vpop.permute.xlu0 %18254  ;;  %v2914_v45 = vmul.f32 %v18798_v36, %v18794_v11  ;;  %v2528_v36 = vld [vmem:[#allocation2 + $0xc8] sm:$0xff] }
0x1707   :  { %v18257_v32 = vunpack.i.h.bf16 %v18255_v39  ;;  %v18256_v33 = vunpack.i.l.bf16 %v18255_v39  ;;  %17334 = vmatprep.subr.bf16.mxu0 %v17333_v25 }
0x1708   :  { %17336 = vmatpush3.bf16.msra.mxu0 %v17333_v25 }
0x1709   :  { %v18800_v8 = vpop.eup %18799  ;;  %v17337_v37 = vpack.c.bf16 %v18257_v32, %v18256_v33  ;;  %17346 = vmatprep.subr.bf16.mxu0 %v17345_v29 }
0x170a   :  { %v3099_v40 = vpop.permute.xlu0 %3098  ;;  %v2912_v43 = vmul.f32 %v18800_v8, %v18796_v12 }
0x170b   :  { %17338 = vmatprep.subr.bf16.mxu1 %v17337_v37 }
0x170c   :  { %16046 = vmatprep.mubr.msk.f32.mxu0 %vm420_vm3, %v2912_v43  ;;  %17340 = vmatpush3.bf16.msra.mxu1 %v17337_v37 }
0x170d   :  { %16047 = vmatmul.mubr.msk.f32.vlgmr.msra.gmra.mrb[22].mxu0 %vm420_vm3, %v2914_v45  ;;  %17342 = vmatprep.subr.bf16.mxu1 %v17341_v38 }
0x170e   :  { %17348 = vmatpush3.bf16.msra.mxu0 %v17345_v29  ;;  %16068 = vmatprep.mubr.msk.f32.mxu0 %vm61_vm0, %v19361_v30  ;;  %v18265_v49 = vpop.permute.xlu0 %18264 }
0x170f   :  { %v18267_v35 = vunpack.i.h.bf16 %v18265_v49  ;;  %v18266_v34 = vunpack.i.l.bf16 %v18265_v49  ;;  %17350 = vmatprep.subr.bf16.mxu0 %v17349_v46 }
0x1710   :  { %17344 = vmatpush3.bf16.msra.mxu1 %v17341_v38 }
0x1711   :  { %v17353_v50 = vpack.c.bf16 %v18267_v35, %v18266_v34 }
0x1712   :  { %17352 = vmatpush3.bf16.msra.mxu0 %v17349_v46 }
0x1713   :  { %16058 = vmatmul.mubr.msk.f32.vlgmr.msra.gmra.mrb[32].mxu1 %vm61_vm0, %v19367_v41  ;;  %17354 = vmatprep.subr.bf16.mxu1 %v17353_v50 }
0x1714   :  { %17356 = vmatpush3.bf16.msra.mxu1 %v17353_v50  ;;  %16079 = vmatprep.mubr.msk.f32.mxu1 %vm61_vm0, %v19361_v30 }
0x1715   :  { %16069 = vmatmul.mubr.msk.f32.vlgmr.msra.gmra.mrb[24].mxu0 %vm61_vm0, %v19367_v41  ;;  %17358 = vmatprep.subr.bf16.mxu1 %v17357_v51 }
0x1718   :  { %17360 = vmatpush3.bf16.msra.mxu1 %v17357_v51 }
0x171b   :  { %16080 = vmatmul.mubr.msk.f32.vlgmr.msra.gmra.mrb[34].mxu1 %vm61_vm0, %v19367_v41 }
0x17e0   :  { %v19433_v52 = vpop.f32.mrb[22].mxu0 }
0x17e1   :  { %v19435_v53 = vpop.f32.mrb[23].mxu0 }
0x17e6   :  { %v16059_v54 = vpop.f32.mrb[32].mxu1 }
0x17e7   :  { %v3077_v55 = vpop.f32.mrb[33].mxu1  ;;  %v3083_v2 = vadd.f32 %v16059_v54, %v3009_v24 }
0x17e8   :  { %v3078_v56 = vadd.f32 %v3077_v55, %v3009_v24  ;;  %v16070_v57 = vpop.f32.mrb[24].mxu0 }
0x17e9   :  { %v3173_v59 = vadd.f32 %v16070_v57, %v3099_v40  ;;  %v3167_v61 = vpop.f32.mrb[25].mxu0 }
0x17ea   :  { %v3168_v62 = vadd.f32 %v3167_v61, %v3099_v40  ;;  %16086 = vmatprep.mubr.msk.f32.mxu0 %vm328_vm1, %v3078_v56 }
0x17ec   :  { %v17361_v63 = vpack.c.bf16 %v3173_v59, %v3168_v62  ;;  %v2527_v62 = vld [vmem:[#allocation2 + $0xc0] sm:$0xff] }
0x17ee   :  { %17363 = vmatprep.subr.msk.bf16.mxu0 %vm19129_vm2, %v17361_v63  ;;  %v16081_v0 = vpop.f32.mrb[34].mxu1 }
0x17ef   :  { %17366 = vmatpush3.bf16.xpose.msk.msra.mxu0 %vm19129_vm2, %v17361_v63  ;;  %v3257_v1 = vpop.f32.mrb[35].mxu1 }
0x17f0   :  { %16096 = vmatprep.subr.mxu0 %v2528_v36 }
0x17f6   :  { %16087 = vmatmul.mubr.msk.f32.vlgmr.msra.gmra.mrb[26].mxu0 %vm328_vm1, %v3083_v2 }
0x17f7   :  { %16097 = vmatpush3.msra.mxu0 %v2528_v36 }
0x17f8   :  { %16101 = vmatprep.subr.mxu0 %v2527_v62 }
0x18c9   :  { %v16088_v10 = vpop.f32.mrb[26].mxu0 }
0x18ca   :  { %v3354_v6 = vmul.f32 0.35355338, %v16088_v10  ;;  %v3344_v9 = vpop.f32.mrb[27].mxu0 }
0x18cb   :  { %v3353_v11 = vmul.f32 0.35355338, %v3344_v9 }
0x18cc   :  { %v3356_v3 = vadd.f32 %v19390_v58, %v3354_v6 }
0x18cd   :  { %v3355_v12 = vadd.f32 %v19396_v60, %v3353_v11 }
0x18ce   :  { %v3360_v13 = vsel %vm420_vm3, %v3356_v3, -inf }
0x18cf   :  { %3361 = vmax.xlane.f32.xlu1 %v3360_v13  ;;  %v3357_v14 = vsel %vm420_vm3, %v3355_v12, -inf }
0x18d0   :  { %3358 = vmax.xlane.f32.xlu0 %v3357_v14 }
0x18e0   :  { %3188 = vrot.lane.b32.xlu1 %v19351_v7, %s19032_s24 }
0x18e4   :  { %18279 = vrot.lane.b32.xlu1 %v19340_v4, %s19033_s25 }
0x18e8   :  { %18284 = vrot.lane.b32.xlu1 %v19336_v5, %s19034_s26 }
0x18ec   :  { %3724 = vrot.lane.b32.xlu1 %v19351_v7, %s19033_s25 }
0x18f0   :  { %18294 = vrot.lane.b32.xlu1 %v19336_v5, %s19035_s27 }
0x195c   :  { %v3362_v15 = vpop.xlane.xlu1 %3361 }
0x195d   :  { %v3364_v16 = vsub.f32 %v3356_v3, %v3362_v15  ;;  %v3359_v17 = vpop.xlane.xlu0 %3358 }
0x195e   :  { %v3363_v18 = vsub.f32 %v3355_v12, %v3359_v17 }
0x195f   :  { %v3367_v19 = vmul.f32 1.442695, %v3364_v16 }
0x1960   :  { %v3365_v20 = vmul.f32 1.442695, %v3363_v18  ;;  %v3189_v21 = vpop.permute.xlu1 %3188 }
0x1961   :  { %v3258_v22 = vadd.f32 %v3257_v1, %v3189_v21  ;;  %v3263_v23 = vadd.f32 %v16081_v0, %v3189_v21 }
0x1962   :  { %18801 = vpow2.f32 %v3365_v20 }
0x1963   :  { %v17367_v24 = vpack.c.bf16 %v3263_v23, %v3258_v22  ;;  %18803 = vpow2.f32 %v3367_v19 }
0x1964   :  { %v19459_v39 = vpop.permute.xlu1 %18279 }
0x1965   :  { %17368 = vmatprep.subr.bf16.mxu1 %v17367_v24  ;;  %v18282_v6 = vunpack.i.h.bf16 %v19459_v39  ;;  %v18281_v9 = vunpack.i.l.bf16 %v19459_v39 }
0x1966   :  { %17370 = vmatpush3.bf16.msra.mxu1 %v17367_v24 }
0x1967   :  { %v17383_v12 = vpack.c.bf16 %v18282_v6, %v18281_v9 }
0x1968   :  { %v18285_v42 = vpop.permute.xlu1 %18284 }
0x1969   :  { %v18287_v31 = vunpack.i.h.bf16 %v18285_v42  ;;  %v18286_v32 = vunpack.i.l.bf16 %v18285_v42 }
0x196b   :  { %v17371_v33 = vpack.c.bf16 %v18287_v31, %v18286_v32 }
0x196c   :  { %v18802_v25 = vpop.eup %18801  ;;  %v3725_v38 = vpop.permute.xlu1 %3724 }
0x196d   :  { %v3369_v26 = vsel %vm420_vm3, %v18802_v25, 0.0  ;;  %v18804_v28 = vpop.eup %18803  ;;  %17372 = vmatprep.subr.bf16.mxu1 %v17371_v33 }
0x196e   :  { %3370 = vadd.xlane.f32.xlu0 %v3369_v26  ;;  %v3372_v29 = vsel %vm420_vm3, %v18804_v28, 0.0 }
0x1970   :  { %v18295_v48 = vpop.permute.xlu1 %18294 }
0x1971   :  { %v18297_v34 = vunpack.i.h.bf16 %v18295_v48  ;;  %v18296_v50 = vunpack.i.l.bf16 %v18295_v48 }
0x1972   :  { %3373 = vadd.xlane.f32.xlu0 %v3372_v29 }
0x1973   :  { %v17387_v56 = vpack.c.bf16 %v18297_v34, %v18296_v50 }
0x1988   :  { %18274 = vrot.lane.b32.xlu0 %v19336_v5, %s19033_s25 }
0x198c   :  { %18289 = vrot.lane.b32.xlu0 %v19340_v4, %s19034_s26 }
0x1990   :  { %3634 = vrot.lane.b32.xlu0 %v19351_v7, %s19034_s26 }
0x1994   :  { %18299 = vrot.lane.b32.xlu0 %v19340_v4, %s19035_s27 }
0x19fb   :  { %v3371_v8 = vpop.xlane.xlu0 %3370 }
0x19fc   :  { %18805 = vrcp.f32 %v3371_v8 }
0x19ff   :  { %v3374_v37 = vpop.xlane.xlu0 %3373 }
0x1a00   :  { %18807 = vrcp.f32 %v3374_v37 }
0x1a03   :  { %v18275_v40 = vpop.permute.xlu0 %18274 }
0x1a04   :  { %v18277_v63 = vunpack.i.h.bf16 %v18275_v40  ;;  %v18276_v0 = vunpack.i.l.bf16 %v18275_v40  ;;  %v2529_v40 = vld [vmem:[#allocation2 + $0xd0] sm:$0xff] }
0x1a06   :  { %v18806_v43 = vpop.eup %18805  ;;  %v17379_v10 = vpack.c.bf16 %v18277_v63, %v18276_v0 }
0x1a07   :  { %v3376_v44 = vmul.f32 %v18806_v43, %v18802_v25  ;;  %v18290_v45 = vpop.permute.xlu0 %18289 }
0x1a08   :  { %v18292_v46 = vunpack.i.h.bf16 %v18290_v45  ;;  %v18291_v47 = vunpack.i.l.bf16 %v18290_v45 }
0x1a09   :  { %16093 = vmatprep.mubr.msk.f32.mxu1 %vm420_vm3, %v3376_v44 }
0x1a0a   :  { %v18808_v49 = vpop.eup %18807  ;;  %v17375_v54 = vpack.c.bf16 %v18292_v46, %v18291_v47 }
0x1a0b   :  { %v3378_v35 = vmul.f32 %v18808_v49, %v18804_v28  ;;  %v3635_v51 = vpop.permute.xlu0 %3634 }
0x1a0d   :  { %16094 = vmatmul.mubr.msk.f32.vlgmr.msra.gmra.mrb[36].mxu1 %vm420_vm3, %v3378_v35 }
0x1a0e   :  { %17374 = vmatpush3.bf16.msra.mxu1 %v17371_v33  ;;  %16114 = vmatprep.mubr.msk.f32.mxu1 %vm61_vm0, %v19361_v30 }
0x1a0f   :  { %17376 = vmatprep.subr.bf16.mxu1 %v17375_v54  ;;  %v18300_v55 = vpop.permute.xlu0 %18299 }
0x1a10   :  { %v18302_v57 = vunpack.i.h.bf16 %v18300_v55  ;;  %v18301_v59 = vunpack.i.l.bf16 %v18300_v55 }
0x1a12   :  { %17378 = vmatpush3.bf16.msra.mxu1 %v17375_v54  ;;  %v17391_v61 = vpack.c.bf16 %v18302_v57, %v18301_v59 }
0x1a13   :  { %17388 = vmatprep.subr.bf16.mxu1 %v17387_v56 }
0x1a15   :  { %16115 = vmatmul.mubr.msk.f32.vlgmr.msra.gmra.mrb[38].mxu1 %vm61_vm0, %v19367_v41 }
0x1a16   :  { %17390 = vmatpush3.bf16.msra.mxu1 %v17387_v56  ;;  %16136 = vmatprep.mubr.msk.f32.mxu1 %vm61_vm0, %v19361_v30 }
0x1a17   :  { %17392 = vmatprep.subr.bf16.mxu1 %v17391_v61 }
0x1a1a   :  { %17394 = vmatpush3.bf16.msra.mxu1 %v17391_v61 }
0x1a1d   :  { %16137 = vmatmul.mubr.msk.f32.vlgmr.msra.gmra.mrb[40].mxu1 %vm61_vm0, %v19367_v41 }
0x1ae0   :  { %v16095_v1 = vpop.f32.mrb[36].mxu1 }
0x1ae1   :  { %v3451_v2 = vpop.f32.mrb[37].mxu1 }
0x1ae2   :  { %16098 = vmatprep.mubr.msk.f32.mxu0 %vm328_vm1, %v3451_v2 }
0x1ae3   :  { %16099 = vmatmul.mubr.msk.f32.vlgmr.msra.gmra.mrb[28].mxu0 %vm328_vm1, %v16095_v1 }
0x1ae4   :  { %16102 = vmatpush3.msra.mxu0 %v2527_v62  ;;  %16103 = vmatprep.mubr.msk.f32.mxu0 %vm328_vm1, %v19435_v53 }
0x1ae5   :  { %17380 = vmatprep.subr.bf16.mxu0 %v17379_v10 }
0x1ae8   :  { %v16116_v11 = vpop.f32.mrb[38].mxu1 }
0x1ae9   :  { %v3703_v3 = vpop.f32.mrb[39].mxu1 }
0x1aea   :  { %v3704_v53 = vadd.f32 %v3703_v3, %v3635_v51 }
0x1aeb   :  { %16104 = vmatmul.mubr.msk.f32.vlgmr.msra.gmra.mrb[28].mxu0 %vm328_vm1, %v19433_v52  ;;  %v3709_v52 = vadd.f32 %v16116_v11, %v3635_v51 }
0x1aec   :  { %17382 = vmatpush3.bf16.msra.mxu0 %v17379_v10  ;;  %16125 = vmatprep.mubr.msk.f32.mxu0 %vm61_vm0, %v19361_v30 }
0x1aed   :  { %17384 = vmatprep.subr.bf16.mxu0 %v17383_v12 }
0x1af0   :  { %17386 = vmatpush3.bf16.msra.mxu0 %v17383_v12  ;;  %v16138_v13 = vpop.f32.mrb[40].mxu1 }
0x1af1   :  { %v3883_v14 = vpop.f32.mrb[41].mxu1 }
0x1af3   :  { %16126 = vmatmul.mubr.msk.f32.vlgmr.msra.gmra.mrb[30].mxu0 %vm61_vm0, %v19367_v41 }
0x1af4   :  { %16143 = vmatprep.mubr.msk.f32.mxu0 %vm328_vm1, %v3704_v53 }
0x1bc6   :  { %v16127_v15 = vpop.f32.mrb[30].mxu0 }
0x1bc7   :  { %v3799_v16 = vadd.f32 %v16127_v15, %v3725_v38  ;;  %v3793_v17 = vpop.f32.mrb[31].mxu0 }
0x1bc8   :  { %v3794_v18 = vadd.f32 %v3793_v17, %v3725_v38 }
0x1bca   :  { %v17395_v19 = vpack.c.bf16 %v3799_v16, %v3794_v18 }
0x1bcc   :  { %17397 = vmatprep.subr.msk.bf16.mxu0 %vm19129_vm2, %v17395_v19 }
0x1bcd   :  { %17400 = vmatpush3.bf16.xpose.msk.msra.mxu0 %vm19129_vm2, %v17395_v19 }
0x1bce   :  { %16153 = vmatprep.subr.mxu0 %v2529_v40 }
0x1bd4   :  { %16144 = vmatmul.mubr.msk.f32.vlgmr.msra.gmra.mrb[32].mxu0 %vm328_vm1, %v3709_v52 }
0x1bd5   :  { %16154 = vmatpush3.msra.mxu0 %v2529_v40 }
0x1ca7   :  { %v16145_v20 = vpop.f32.mrb[32].mxu0 }
0x1ca8   :  { %v3980_v21 = vmul.f32 0.35355338, %v16145_v20  ;;  %v3970_v22 = vpop.f32.mrb[33].mxu0 }
0x1ca9   :  { %v3979_v23 = vmul.f32 0.35355338, %v3970_v22 }
0x1caa   :  { %v3982_v24 = vadd.f32 %v19390_v58, %v3980_v21 }
0x1cab   :  { %v3981_v25 = vadd.f32 %v19396_v60, %v3979_v23 }
0x1cac   :  { %v3986_v26 = vsel %vm420_vm3, %v3982_v24, -inf }
0x1cad   :  { %3987 = vmax.xlane.f32.xlu0 %v3986_v26  ;;  %v3983_v28 = vsel %vm420_vm3, %v3981_v25, -inf }
0x1cae   :  { %3984 = vmax.xlane.f32.xlu1 %v3983_v28 }
0x1d3a   :  { %v3988_v29 = vpop.xlane.xlu0 %3987 }
0x1d3b   :  { %v3990_v39 = vsub.f32 %v3982_v24, %v3988_v29  ;;  %v3985_v42 = vpop.xlane.xlu1 %3984 }
0x1d3c   :  { %v3989_v31 = vsub.f32 %v3981_v25, %v3985_v42 }
0x1d3d   :  { %v3993_v32 = vmul.f32 1.442695, %v3990_v39 }
0x1d3e   :  { %v3991_v33 = vmul.f32 1.442695, %v3989_v31 }
0x1d3f   :  { %18809 = vpow2.f32 %v3993_v32 }
0x1d40   :  { %18811 = vpow2.f32 %v3991_v33 }
0x1d49   :  { %v18810_v36 = vpop.eup %18809 }
0x1d4a   :  { %v18812_v8 = vpop.eup %18811  ;;  %v3998_v37 = vsel %vm420_vm3, %v18810_v36, 0.0 }
0x1d4b   :  { %3999 = vadd.xlane.f32.xlu1 %v3998_v37  ;;  %v3995_v38 = vsel %vm420_vm3, %v18812_v8, 0.0 }
0x1d4c   :  { %3996 = vadd.xlane.f32.xlu0 %v3995_v38 }
0x1d5c   :  { %18304 = vrot.lane.b32.xlu1 %v19336_v5, %s19036_s28 }
0x1d60   :  { %18309 = vrot.lane.b32.xlu1 %v19340_v4, %s19036_s28 }
0x1d62   :  { %3814 = vrot.lane.b32.xlu0 %v19351_v7, %s19035_s27 }
0x1d64   :  { %18319 = vrot.lane.b32.xlu1 %v19340_v4, %s19037_s29 }
0x1d66   :  { %18314 = vrot.lane.b32.xlu0 %v19336_v5, %s19037_s29 }
0x1d68   :  { %4181 = vrot.lane.b32.xlu1 %v19351_v7, %s19037_s29 }
0x1d6a   :  { %4271 = vrot.lane.b32.xlu0 %v19351_v7, %s19036_s28 }
0x1d6c   :  { %18329 = vrot.lane.b32.xlu1 %v19340_v4, %s19038_s30 }
0x1d6e   :  { %18324 = vrot.lane.b32.xlu0 %v19336_v5, %s19038_s30 }
0x1dd8   :  { %v4000_v43 = vpop.xlane.xlu1 %3999 }
0x1dd9   :  { %18813 = vrcp.f32 %v4000_v43  ;;  %v3997_v44 = vpop.xlane.xlu0 %3996 }
0x1dda   :  { %18815 = vrcp.f32 %v3997_v44 }
0x1ddc   :  { %v18305_v45 = vpop.permute.xlu1 %18304 }
0x1ddd   :  { %v3815_v46 = vpop.permute.xlu0 %3814 }
0x1dde   :  { %v3884_v47 = vadd.f32 %v3883_v14, %v3815_v46  ;;  %v3889_v48 = vadd.f32 %v16138_v13, %v3815_v46  ;;  %v18307_v13 = vunpack.i.h.bf16 %v18305_v45  ;;  %v18306_v14 = vunpack.i.l.bf16 %v18305_v45 }
0x1de0   :  { %v17401_v49 = vpack.c.bf16 %v3889_v48, %v3884_v47  ;;  %v18310_v35 = vpop.permute.xlu1 %18309  ;;  %v17413_v53 = vpack.c.bf16 %v18307_v13, %v18306_v14 }
0x1de1   :  { %v18315_v34 = vpop.permute.xlu0 %18314  ;;  %v18312_v15 = vunpack.i.h.bf16 %v18310_v35  ;;  %v18311_v16 = vunpack.i.l.bf16 %v18310_v35 }
0x1de2   :  { %17402 = vmatprep.subr.bf16.mxu1 %v17401_v49  ;;  %v18317_v50 = vunpack.i.h.bf16 %v18315_v34  ;;  %v18316_v4 = vunpack.i.l.bf16 %v18315_v34  ;;  %17414 = vmatprep.subr.bf16.mxu0 %v17413_v53 }
0x1de3   :  { %v18814_v51 = vpop.eup %18813  ;;  %17404 = vmatpush3.bf16.msra.mxu1 %v17401_v49  ;;  %v17417_v19 = vpack.c.bf16 %v18312_v15, %v18311_v16 }
0x1de4   :  { %v18816_v5 = vpop.eup %18815  ;;  %v18320_v54 = vpop.permute.xlu1 %18319  ;;  %v17405_v55 = vpack.c.bf16 %v18317_v50, %v18316_v4  ;;  %v4004_v62 = vmul.f32 %v18814_v51, %v18810_v36  ;;  %v2530_v4 = vld [vmem:[#allocation2 + $0xd8] sm:$0xff] }
0x1de5   :  { %v4272_v56 = vpop.permute.xlu0 %4271  ;;  %v18322_v57 = vunpack.i.h.bf16 %v18320_v54  ;;  %v18321_v59 = vunpack.i.l.bf16 %v18320_v54  ;;  %v4002_v61 = vmul.f32 %v18816_v5, %v18812_v8 }
0x1de6   :  { %17406 = vmatprep.subr.bf16.mxu1 %v17405_v55 }
0x1de7   :  { %16150 = vmatprep.mubr.msk.f32.mxu1 %vm420_vm3, %v4002_v61  ;;  %v17409_v63 = vpack.c.bf16 %v18322_v57, %v18321_v59 }
0x1de8   :  { %16151 = vmatmul.mubr.msk.f32.vlgmr.msra.gmra.mrb[42].mxu1 %vm420_vm3, %v4004_v62  ;;  %v4182_v0 = vpop.permute.xlu1 %4181  ;;  %v14722_v62 = vld [vmem:[%s20644_s5 + $0x9] ss:$0 sm:$0xff] }
0x1de9   :  { %17408 = vmatpush3.bf16.msra.mxu1 %v17405_v55  ;;  %16166 = vmatprep.mubr.msk.f32.mxu1 %vm61_vm0, %v19361_v30  ;;  %v18325_v1 = vpop.permute.xlu0 %18324 }
0x1dea   :  { %v18327_v2 = vunpack.i.h.bf16 %v18325_v1  ;;  %v18326_v10 = vunpack.i.l.bf16 %v18325_v1  ;;  %17410 = vmatprep.subr.bf16.mxu1 %v17409_v63 }
0x1dec   :  { %v18330_v6 = vpop.permute.xlu1 %18329  ;;  %v17421_v9 = vpack.c.bf16 %v18327_v2, %v18326_v10 }
0x1ded   :  { %17412 = vmatpush3.bf16.msra.mxu1 %v17409_v63  ;;  %v18332_v11 = vunpack.i.h.bf16 %v18330_v6  ;;  %v18331_v3 = vunpack.i.l.bf16 %v18330_v6 }
0x1dee   :  { %17422 = vmatprep.subr.bf16.mxu1 %v17421_v9 }
0x1def   :  { %v17425_v12 = vpack.c.bf16 %v18332_v11, %v18331_v3  ;;  %v5032_v3 = vld [vmem:[#allocation2 + $0x140] sm:$0xff] }
0x1df0   :  { %16167 = vmatmul.mubr.msk.f32.vlgmr.msra.gmra.mrb[44].mxu1 %vm61_vm0, %v19367_v41 }
0x1df1   :  { %17424 = vmatpush3.bf16.msra.mxu1 %v17421_v9  ;;  %16188 = vmatprep.mubr.msk.f32.mxu1 %vm61_vm0, %v19361_v30 }
0x1df2   :  { %17426 = vmatprep.subr.bf16.mxu1 %v17425_v12 }
0x1df5   :  { %17428 = vmatpush3.bf16.msra.mxu1 %v17425_v12  ;;  %v5033_v12 = vld [vmem:[#allocation2 + $0x148] sm:$0xff] }
0x1df6   :  { %v19562_v13 = vpack.i.bf16 %v5033_v12, %v5032_v3 }
0x1df8   :  { %16189 = vmatmul.mubr.msk.f32.vlgmr.msra.gmra.mrb[46].mxu1 %vm61_vm0, %v19367_v41 }
0x1ebb   :  { %v16152_v17 = vpop.f32.mrb[42].mxu1 }
0x1ebc   :  { %v4077_v18 = vpop.f32.mrb[43].mxu1 }
0x1ebd   :  { %16155 = vmatprep.mubr.msk.f32.mxu0 %vm328_vm1, %v4077_v18 }
0x1ebe   :  { %16156 = vmatmul.mubr.msk.f32.vlgmr.msra.gmra.mrb[28].mxu0 %vm328_vm1, %v16152_v17 }
0x1ebf   :  { %17416 = vmatpush3.bf16.msra.mxu0 %v17413_v53  ;;  %16177 = vmatprep.mubr.msk.f32.mxu0 %vm61_vm0, %v19361_v30 }
0x1ec0   :  { %17418 = vmatprep.subr.bf16.mxu0 %v17417_v19 }
0x1ec3   :  { %v16168_v52 = vpop.f32.mrb[44].mxu1  ;;  %17420 = vmatpush3.bf16.msra.mxu0 %v17417_v19 }
0x1ec4   :  { %v4250_v20 = vpop.f32.mrb[45].mxu1  ;;  %v4256_v39 = vadd.f32 %v16168_v52, %v4182_v0 }
0x1ec5   :  { %v4251_v21 = vadd.f32 %v4250_v20, %v4182_v0  ;;  %v5034_v20 = vld [vmem:[#allocation2 + $0x150] sm:$0xff] }
0x1ec6   :  { %16178 = vmatmul.mubr.msk.f32.vlgmr.msra.gmra.mrb[34].mxu0 %vm61_vm0, %v19367_v41 }
0x1ec7   :  { %16195 = vmatprep.mubr.msk.f32.mxu0 %vm328_vm1, %v4251_v21  ;;  %v5035_v21 = vld [vmem:[#allocation2 + $0x158] sm:$0xff] }
0x1ecb   :  { %v16190_v22 = vpop.f32.mrb[46].mxu1 }
0x1ecc   :  { %v4430_v23 = vpop.f32.mrb[47].mxu1 }
0x1f99   :  { %v16179_v24 = vpop.f32.mrb[34].mxu0 }
0x1f9a   :  { %v4346_v25 = vadd.f32 %v16179_v24, %v4272_v56  ;;  %v4340_v26 = vpop.f32.mrb[35].mxu0  ;;  %v4765_v24 = vld [vmem:[#allocation2 + $0xe8] sm:$0xff] }
0x1f9b   :  { %v4341_v28 = vadd.f32 %v4340_v26, %v4272_v56 }
0x1f9d   :  { %v17429_v29 = vpack.c.bf16 %v4346_v25, %v4341_v28  ;;  %v4766_v25 = vld [vmem:[#allocation2 + $0xf0] sm:$0xff]  ;;  %v4767_v28 = vld [vmem:[#allocation2 + $0xf8] sm:$0xff] }
0x1f9f   :  { %17431 = vmatprep.subr.msk.bf16.mxu0 %vm19129_vm2, %v17429_v29 }
0x1fa0   :  { %17434 = vmatpush3.bf16.xpose.msk.msra.mxu0 %vm19129_vm2, %v17429_v29  ;;  %v17443_v29 = vpack.c.bf16 %v4767_v28, %v4766_v25 }
0x1fa1   :  { %16205 = vmatprep.subr.mxu0 %v2530_v4 }
0x1fa7   :  { %16196 = vmatmul.mubr.msk.f32.vlgmr.msra.gmra.mrb[36].mxu0 %vm328_vm1, %v4256_v39  ;;  %v17463_v39 = vpack.c.bf16 %v5033_v12, %v5032_v3  ;;  %v14725_v3 = vld [vmem:[%s20644_s5 + $0xc] ss:$0 sm:$0xff] }
0x1fa8   :  { %16206 = vmatpush3.msra.mxu0 %v2530_v4 }
0x207a   :  { %v16197_v42 = vpop.f32.mrb[36].mxu0 }
0x207b   :  { %v4527_v31 = vmul.f32 0.35355338, %v16197_v42  ;;  %v4517_v32 = vpop.f32.mrb[37].mxu0  ;;  %v19575_v42 = vld [vmem:[%s20644_s5 + $0x10] ss:$0 sm:$0xff] }
0x207c   :  { %v4526_v33 = vmul.f32 0.35355338, %v4517_v32  ;;  %v4770_v32 = vld [vmem:[#allocation2 + $0x108] sm:$0xff] }
0x207d   :  { %v4529_v36 = vadd.f32 %v19390_v58, %v4527_v31  ;;  %v4769_v31 = vld [vmem:[#allocation2 + $0x100] sm:$0xff] }
0x207e   :  { %v4528_v8 = vadd.f32 %v19396_v60, %v4526_v33  ;;  %v17447_v33 = vpack.c.bf16 %v4770_v32, %v4769_v31 }
0x207f   :  { %v4533_v37 = vsel %vm420_vm3, %v4529_v36, -inf }
0x2080   :  { %4534 = vmax.xlane.f32.xlu1 %v4533_v37  ;;  %v4530_v38 = vsel %vm420_vm3, %v4528_v8, -inf  ;;  %17448 = vmatprep.subr.bf16.mxu0 %v17447_v33 }
0x2081   :  { %4531 = vmax.xlane.f32.xlu0 %v4530_v38  ;;  %v4773_v38 = vld [vmem:[#allocation2 + $0x120] sm:$0xff] }
0x2091   :  { %4361 = vrot.lane.b32.xlu1 %v19351_v7, %s19038_s30 }
0x2095   :  { %18334 = vrot.lane.b32.xlu1 %v19562_v13, %s19028_s14 }
0x2099   :  { %5144 = vrot.lane.b32.xlu1 %v19575_v42, %s19028_s14 }
0x209d   :  { %18344 = vrot.lane.b32.xlu1 %v19562_v13, %s19029_s17 }
0x210d   :  { %v4535_v40 = vpop.xlane.xlu1 %4534 }
0x210e   :  { %v4537_v43 = vsub.f32 %v4529_v36, %v4535_v40  ;;  %v4532_v44 = vpop.xlane.xlu0 %4531  ;;  %v4771_v36 = vld [vmem:[#allocation2 + $0x110] sm:$0xff]  ;;  %v4774_v40 = vld [vmem:[#allocation2 + $0x128] sm:$0xff] }
0x210f   :  { %v4536_v45 = vsub.f32 %v4528_v8, %v4532_v44  ;;  %v4772_v8 = vld [vmem:[#allocation2 + $0x118] sm:$0xff] }
0x2110   :  { %v4540_v46 = vmul.f32 1.442695, %v4537_v43  ;;  %v17451_v37 = vpack.c.bf16 %v4772_v8, %v4771_v36  ;;  %v17455_v43 = vpack.c.bf16 %v4774_v40, %v4773_v38  ;;  %v19641_v38 = vld [vmem:[%s20641_s2 + $0x8] sm:$0xff] }
0x2111   :  { %v4538_v47 = vmul.f32 1.442695, %v4536_v45  ;;  %v4362_v48 = vpop.permute.xlu1 %4361 }
0x2112   :  { %v4431_v49 = vadd.f32 %v4430_v23, %v4362_v48  ;;  %v4436_v58 = vadd.f32 %v16190_v22, %v4362_v48  ;;  %v19568_v22 = vpack.i.bf16 %v5035_v21, %v5034_v20  ;;  %v4764_v23 = vld [vmem:[#allocation2 + $0xe0] sm:$0xff] }
0x2113   :  { %18817 = vpow2.f32 %v4538_v47  ;;  %v17439_v26 = vpack.c.bf16 %v4765_v24, %v4764_v23 }
0x2114   :  { %v17435_v60 = vpack.c.bf16 %v4436_v58, %v4431_v49  ;;  %18819 = vpow2.f32 %v4540_v46  ;;  %18349 = vrot.lane.b32.xlu1 %v19568_v22, %s19029_s17 }
0x2116   :  { %17436 = vmatprep.subr.bf16.mxu1 %v17435_v60 }
0x2117   :  { %17438 = vmatpush3.bf16.msra.mxu1 %v17435_v60  ;;  %v14723_v60 = vld [vmem:[%s20644_s5 + $0xa] ss:$0 sm:$0xff] }
0x2118   :  { %17440 = vmatprep.subr.bf16.mxu1 %v17439_v26 }
0x211d   :  { %v18818_v35 = vpop.eup %18817 }
0x211e   :  { %v4542_v34 = vsel %vm420_vm3, %v18818_v35, 0.0  ;;  %v18820_v50 = vpop.eup %18819 }
0x211f   :  { %4543 = vadd.xlane.f32.xlu0 %v4542_v34  ;;  %v4545_v7 = vsel %vm420_vm3, %v18820_v50, 0.0  ;;  %v14724_v34 = vld [vmem:[%s20644_s5 + $0xb] ss:$0 sm:$0xff] }
0x2123   :  { %4546 = vadd.xlane.f32.xlu0 %v4545_v7 }
0x21ac   :  { %v4544_v51 = vpop.xlane.xlu0 %4543 }
0x21ad   :  { %18821 = vrcp.f32 %v4544_v51 }
0x21b0   :  { %v4547_v5 = vpop.xlane.xlu0 %4546 }
0x21b1   :  { %18823 = vrcp.f32 %v4547_v5  ;;  %v18335_v5 = vpop.permute.xlu1 %18334 }
0x21b7   :  { %v18822_v54 = vpop.eup %18821 }
0x21b8   :  { %v4549_v55 = vmul.f32 %v18822_v54, %v18818_v35 }
0x21ba   :  { %16202 = vmatprep.mubr.msk.f32.mxu1 %vm420_vm3, %v4549_v55 }
0x21bb   :  { %v18824_v56 = vpop.eup %18823 }
0x21bc   :  { %v4551_v57 = vmul.f32 %v18824_v56, %v18820_v50  ;;  %v18337_v56 = vunpack.i.h.bf16 %v18335_v5 }
0x21be   :  { %16203 = vmatmul.mubr.msk.f32.vlgmr.msra.gmra.mrb[48].mxu1 %vm420_vm3, %v4551_v57  ;;  %v18336_v57 = vunpack.i.l.bf16 %v18335_v5 }
0x21bf   :  { %17442 = vmatpush3.bf16.msra.mxu1 %v17439_v26 }
0x21c0   :  { %17444 = vmatprep.subr.bf16.mxu1 %v17443_v29 }
0x21c3   :  { %17446 = vmatpush3.bf16.msra.mxu1 %v17443_v29 }
0x21c4   :  { %17464 = vmatprep.subr.bf16.mxu1 %v17463_v39 }
0x2291   :  { %v16204_v59 = vpop.f32.mrb[48].mxu1 }
0x2292   :  { %v4624_v61 = vpop.f32.mrb[49].mxu1 }
0x2293   :  { %16207 = vmatprep.mubr.msk.f32.mxu0 %vm328_vm1, %v4624_v61  ;;  %v19594_v61 = vld [vmem:[%s20639_s0 + $0x10] sm:$0xff] }
0x2294   :  { %16208 = vmatmul.mubr.msk.f32.vlgmr.msra.gmra.mrb[28].mxu0 %vm328_vm1, %v16204_v59  ;;  %v17467_v59 = vpack.c.bf16 %v5035_v21, %v5034_v20 }
0x2295   :  { %17450 = vmatpush3.bf16.msra.mxu0 %v17447_v33 }
0x2296   :  { %17452 = vmatprep.subr.bf16.mxu0 %v17451_v37 }
0x2299   :  { %17454 = vmatpush3.bf16.msra.mxu0 %v17451_v37 }
0x229a   :  { %17456 = vmatprep.subr.bf16.mxu0 %v17455_v43 }
0x229d   :  { %17458 = vmatpush3.bf16.msra.mxu0 %v17455_v43 }
0x2367   :  { %v16209_v63 = vpop.f32.mrb[28].mxu0 }
0x2368   :  { %v4705_v0 = vpop.f32.mrb[29].mxu0  ;;  %v4721_v1 = vadd.f32 %v16209_v63, %v14722_v62 }
0x2369   :  { %v4720_v2 = vadd.f32 %v14722_v62, %v4705_v0 }
0x236a   :  { %v4723_v6 = vadd.f32 %v4721_v1, %v19367_v41  ;;  %v17471_v1 = vpack.c.bf16 %v18337_v56, %v18336_v57 }
0x236b   :  { %v4722_v10 = vadd.f32 %v4720_v2, %v19361_v30  ;;  %v19603_v2 = vld [vmem:[%s20639_s0 + $0x18] sm:$0xff] }
0x236c   :  { %v4729_v11 = vsel %vm61_vm0, %v4723_v6, 0.0 }
0x236d   :  { %v4726_v9 = vsel %vm61_vm0, %v4722_v10, 0.0 }
0x236e   :  { %4727 = vadd.xlane.f32.xlu0 %v4726_v9  ;;  %v4776_v9 = vld [vmem:[#allocation2 + $0x138] sm:$0xff] }
0x2372   :  { %4730 = vadd.xlane.f32.xlu0 %v4729_v11 }
0x23fb   :  { %v4728_v14 = vpop.xlane.xlu0 %4727 }
0x23fc   :  { %v4732_v53 = vmul.f32 0.03125, %v4728_v14 }
0x23fe   :  { %v4734_v15 = vsub.f32 %v4722_v10, %v4732_v53 }
0x23ff   :  { %v4731_v16 = vpop.xlane.xlu0 %4730 }
0x2400   :  { %v4733_v30 = vmul.f32 0.03125, %v4731_v16  ;;  %v4736_v17 = vmul.f32 %v4734_v15, %v4734_v15 }
0x2402   :  { %v4735_v41 = vsub.f32 %v4723_v6, %v4733_v30  ;;  %v4738_v18 = vsel %vm61_vm0, %v4736_v17, 0.0  ;;  %v4775_v6 = vld [vmem:[#allocation2 + $0x130] sm:$0xff] }
0x2403   :  { %4739 = vadd.xlane.f32.xlu0 %v4738_v18  ;;  %v17459_v11 = vpack.c.bf16 %v4776_v9, %v4775_v6 }
0x2404   :  { %v4737_v19 = vmul.f32 %v4735_v41, %v4735_v41 }
0x2405   :  { %17460 = vmatprep.subr.bf16.mxu0 %v17459_v11 }
0x2406   :  { %v4741_v52 = vsel %vm61_vm0, %v4737_v19, 0.0  ;;  %17462 = vmatpush3.bf16.msra.mxu0 %v17459_v11  ;;  %v5145_v19 = vpop.permute.xlu1 %5144 }
0x2407   :  { %4742 = vadd.xlane.f32.xlu0 %v4741_v52 }
0x240a   :  { %v18345_v26 = vpop.permute.xlu1 %18344 }
0x240b   :  { %v18347_v28 = vunpack.i.h.bf16 %v18345_v26  ;;  %v18346_v29 = vunpack.i.l.bf16 %v18345_v26 }
0x240e   :  { %v18350_v31 = vpop.permute.xlu1 %18349 }
0x240f   :  { %v18352_v32 = vunpack.i.h.bf16 %v18350_v31  ;;  %v18351_v33 = vunpack.i.l.bf16 %v18350_v31 }
0x2411   :  { %v17483_v36 = vpack.c.bf16 %v18352_v32, %v18351_v33 }
0x241d   :  { %18339 = vrot.lane.b32.xlu0 %v19568_v22, %s19028_s14 }
0x2490   :  { %v4740_v44 = vpop.xlane.xlu0 %4739 }
0x2491   :  { %v4744_v45 = vmul.f32 0.03125, %v4740_v44  ;;  %v19646_v44 = vld [vmem:[%s20641_s2] sm:$0xff] }
0x2493   :  { %v4746_v46 = vadd.f32 1e-05, %v4744_v45 }
0x2494   :  { %v4743_v47 = vpop.xlane.xlu0 %4742 }
0x2495   :  { %18825 = vrsqrt.f32 %v4746_v46  ;;  %v4745_v48 = vmul.f32 0.03125, %v4743_v47 }
0x2497   :  { %v4747_v49 = vadd.f32 1e-05, %v4745_v48 }
0x2498   :  { %v18340_v62 = vpop.permute.xlu0 %18339 }
0x2499   :  { %18827 = vrsqrt.f32 %v4747_v49  ;;  %v18342_v63 = vunpack.i.h.bf16 %v18340_v62  ;;  %v18341_v0 = vunpack.i.l.bf16 %v18340_v62 }
0x249b   :  { %v17475_v10 = vpack.c.bf16 %v18342_v63, %v18341_v0 }
0x249f   :  { %v18826_v58 = vpop.eup %18825 }
0x24a0   :  { %v4750_v35 = vmul.f32 %v18826_v58, %v4734_v15 }
0x24a2   :  { %v4756_v50 = vmul.f32 %v14723_v60, %v4750_v35 }
0x24a3   :  { %v18828_v7 = vpop.eup %18827 }
0x24a4   :  { %v4751_v4 = vmul.f32 %v18828_v7, %v4735_v41  ;;  %v19585_v51 = vadd.f32 %v14724_v34, %v4756_v50 }
0x24a6   :  { %v4757_v54 = vmul.f32 %v14723_v60, %v4751_v4  ;;  %16218 = vmatprep.mubr.msk.f32.mxu1 %vm61_vm0, %v19585_v51 }
0x24a8   :  { %v19589_v55 = vadd.f32 %v14724_v34, %v4757_v54 }
0x24aa   :  { %16219 = vmatmul.mubr.msk.f32.vlgmr.msra.gmra.mrb[50].mxu1 %vm61_vm0, %v19589_v55 }
0x24ab   :  { %17466 = vmatpush3.bf16.msra.mxu1 %v17463_v39  ;;  %16248 = vmatprep.mubr.msk.f32.mxu1 %vm61_vm0, %v19594_v61  ;;  %v17479_v39 = vpack.c.bf16 %v18347_v28, %v18346_v29 }
0x24ac   :  { %17468 = vmatprep.subr.bf16.mxu1 %v17467_v59 }
0x24ad   :  { %17480 = vmatprep.subr.bf16.mxu0 %v17479_v39 }
0x24af   :  { %17470 = vmatpush3.bf16.msra.mxu1 %v17467_v59 }
0x24b0   :  { %17472 = vmatprep.subr.bf16.mxu1 %v17471_v1 }
0x24b2   :  { %16249 = vmatmul.mubr.msk.f32.vlgmr.msra.gmra.mrb[52].mxu1 %vm61_vm0, %v19603_v2 }
0x24b3   :  { %17474 = vmatpush3.bf16.msra.mxu1 %v17471_v1  ;;  %16259 = vmatprep.mubr.msk.f32.mxu1 %vm61_vm0, %v19594_v61 }
0x24b4   :  { %17476 = vmatprep.subr.bf16.mxu1 %v17475_v10 }
0x24b7   :  { %17478 = vmatpush3.bf16.msra.mxu1 %v17475_v10 }
0x24ba   :  { %16260 = vmatmul.mubr.msk.f32.vlgmr.msra.gmra.mrb[54].mxu1 %vm61_vm0, %v19603_v2 }
0x257d   :  { %v16220_v12 = vpop.f32.mrb[50].mxu1 }
0x257e   :  { %v4860_v14 = vadd.f32 %v16220_v12, %v14725_v3  ;;  %v4854_v53 = vpop.f32.mrb[51].mxu1 }
0x257f   :  { %v4855_v15 = vadd.f32 %v14725_v3, %v4854_v53 }
0x2580   :  { %v4864_v30 = vmax.f32 %v4860_v14, 0.0 }
0x2581   :  { %v4863_v16 = vmax.f32 %v4855_v15, 0.0 }
0x2583   :  { %16237 = vmatprep.mubr.msk.f32.mxu0 %vm2398_vm4, %v4863_v16 }
0x2584   :  { %16238 = vmatmul.mubr.msk.f32.vlgmr.msra.gmra.mrb[38].mxu0 %vm2398_vm4, %v4864_v30 }
0x2585   :  { %v16250_v17 = vpop.f32.mrb[52].mxu1  ;;  %16270 = vmatprep.mubr.msk.f32.mxu0 %vm61_vm0, %v19594_v61  ;;  %17482 = vmatpush3.bf16.msra.mxu0 %v17479_v39 }
0x2586   :  { %v5118_v41 = vpop.f32.mrb[53].mxu1  ;;  %v5124_v25 = vadd.f32 %v16250_v17, %v19575_v42  ;;  %17484 = vmatprep.subr.bf16.mxu0 %v17483_v36 }
0x2587   :  { %v5119_v18 = vadd.f32 %v19575_v42, %v5118_v41 }
0x2589   :  { %16277 = vmatprep.mubr.msk.f32.mxu1 %vm328_vm1, %v5119_v18  ;;  %17486 = vmatpush3.bf16.msra.mxu0 %v17483_v36 }
0x258c   :  { %16271 = vmatmul.mubr.msk.f32.vlgmr.msra.gmra.mrb[40].mxu0 %vm61_vm0, %v19603_v2 }
0x258d   :  { %v16261_v52 = vpop.f32.mrb[54].mxu1 }
0x258e   :  { %v5219_v20 = vadd.f32 %v16261_v52, %v5145_v19  ;;  %v5213_v21 = vpop.f32.mrb[55].mxu1 }
0x258f   :  { %v5214_v23 = vadd.f32 %v5213_v21, %v5145_v19 }
0x2591   :  { %v17487_v24 = vpack.c.bf16 %v5219_v20, %v5214_v23 }
0x2593   :  { %17489 = vmatprep.subr.msk.bf16.mxu1 %vm19129_vm2, %v17487_v24 }
0x2594   :  { %17492 = vmatpush3.bf16.xpose.msk.msra.mxu1 %vm19129_vm2, %v17487_v24 }
0x259b   :  { %16278 = vmatmul.mubr.msk.f32.vlgmr.msra.gmra.mrb[56].mxu1 %vm328_vm1, %v5124_v25 }
0x259c   :  { %16295 = vmatprep.mubr.msk.f32.mxu1 %vm61_vm0, %v19594_v61 }
0x2657   :  { %v19634_v8 = vpop.f32.mrb[38].mxu0 }
0x2658   :  { %v19636_v37 = vpop.f32.mrb[39].mxu0 }
0x265f   :  { %v16272_v60 = vpop.f32.mrb[40].mxu0 }
0x2660   :  { %v5303_v35 = vpop.f32.mrb[41].mxu0 }
0x266e   :  { %v16279_v40 = vpop.f32.mrb[56].mxu1 }
0x266f   :  { %v5400_v43 = vmul.f32 0.35355338, %v16279_v40  ;;  %v5390_v45 = vpop.f32.mrb[57].mxu1 }
0x2670   :  { %v5399_v46 = vmul.f32 0.35355338, %v5390_v45 }
0x2671   :  { %v5402_v47 = vadd.f32 %v5400_v43, %v19641_v38 }
0x2672   :  { %v5401_v48 = vadd.f32 %v5399_v46, %v19646_v44 }
0x2673   :  { %v5406_v49 = vsel %vm420_vm3, %v5402_v47, -inf }
0x2674   :  { %5407 = vmax.xlane.f32.xlu0 %v5406_v49  ;;  %v5403_v58 = vsel %vm420_vm3, %v5401_v48, -inf }
0x2675   :  { %5404 = vmax.xlane.f32.xlu1 %v5403_v58 }
0x2686   :  { %5234 = vrot.lane.b32.xlu1 %v19575_v42, %s19029_s17 }
0x268a   :  { %18359 = vrot.lane.b32.xlu1 %v19568_v22, %s19030_s22 }
0x2701   :  { %v5408_v34 = vpop.xlane.xlu0 %5407 }
0x2702   :  { %v5410_v50 = vsub.f32 %v5402_v47, %v5408_v34  ;;  %v5405_v7 = vpop.xlane.xlu1 %5404 }
0x2703   :  { %v5409_v4 = vsub.f32 %v5401_v48, %v5405_v7 }
0x2704   :  { %v5413_v5 = vmul.f32 1.442695, %v5410_v50 }
0x2705   :  { %v5411_v54 = vmul.f32 1.442695, %v5409_v4 }
0x2706   :  { %18829 = vpow2.f32 %v5413_v5  ;;  %v5235_v56 = vpop.permute.xlu1 %5234 }
0x2707   :  { %18831 = vpow2.f32 %v5411_v54  ;;  %v5304_v57 = vadd.f32 %v5303_v35, %v5235_v56  ;;  %v5309_v59 = vadd.f32 %v16272_v60, %v5235_v56 }
0x2709   :  { %v17493_v62 = vpack.c.bf16 %v5309_v59, %v5304_v57 }
0x270a   :  { %v18360_v6 = vpop.permute.xlu1 %18359 }
0x270b   :  { %17494 = vmatprep.subr.bf16.mxu0 %v17493_v62  ;;  %v18362_v23 = vunpack.i.h.bf16 %v18360_v6  ;;  %v18361_v24 = vunpack.i.l.bf16 %v18360_v6 }
0x270c   :  { %17496 = vmatpush3.bf16.msra.mxu0 %v17493_v62 }
0x270d   :  { %v17509_v28 = vpack.c.bf16 %v18362_v23, %v18361_v24 }
0x2710   :  { %v18830_v63 = vpop.eup %18829 }
0x2711   :  { %v18832_v0 = vpop.eup %18831  ;;  %v5418_v1 = vsel %vm420_vm3, %v18830_v63, 0.0 }
0x2712   :  { %5419 = vadd.xlane.f32.xlu0 %v5418_v1  ;;  %v5415_v10 = vsel %vm420_vm3, %v18832_v0, 0.0 }
0x2713   :  { %5416 = vadd.xlane.f32.xlu1 %v5415_v10 }
0x2724   :  { %18364 = vrot.lane.b32.xlu1 %v19562_v13, %s19031_s23 }
0x2728   :  { %18354 = vrot.lane.b32.xlu0 %v19562_v13, %s19030_s22  ;;  %5608 = vrot.lane.b32.xlu1 %v19575_v42, %s19030_s22 }
0x272c   :  { %18369 = vrot.lane.b32.xlu0 %v19568_v22, %s19031_s23  ;;  %18374 = vrot.lane.b32.xlu1 %v19562_v13, %s19032_s24 }
0x2730   :  { %5518 = vrot.lane.b32.xlu0 %v19575_v42, %s19031_s23 }
0x2734   :  { %18379 = vrot.lane.b32.xlu0 %v19568_v22, %s19032_s24 }
0x279f   :  { %v5420_v9 = vpop.xlane.xlu0 %5419 }
0x27a0   :  { %18833 = vrcp.f32 %v5420_v9  ;;  %v5417_v11 = vpop.xlane.xlu1 %5416 }
0x27a1   :  { %18835 = vrcp.f32 %v5417_v11 }
0x27a3   :  { %v18355_v3 = vpop.permute.xlu0 %18354 }
0x27a4   :  { %v18357_v12 = vunpack.i.h.bf16 %v18355_v3  ;;  %v18356_v14 = vunpack.i.l.bf16 %v18355_v3  ;;  %v18365_v53 = vpop.permute.xlu1 %18364 }
0x27a5   :  { %v18367_v15 = vunpack.i.h.bf16 %v18365_v53  ;;  %v18366_v16 = vunpack.i.l.bf16 %v18365_v53 }
0x27a6   :  { %v17505_v30 = vpack.c.bf16 %v18357_v12, %v18356_v14 }
0x27a7   :  { %v18370_v17 = vpop.permute.xlu0 %18369  ;;  %v17497_v41 = vpack.c.bf16 %v18367_v15, %v18366_v16 }
0x27a8   :  { %17506 = vmatprep.subr.bf16.mxu0 %v17505_v30  ;;  %v18372_v18 = vunpack.i.h.bf16 %v18370_v17  ;;  %v18371_v19 = vunpack.i.l.bf16 %v18370_v17  ;;  %v5609_v40 = vpop.permute.xlu1 %5608 }
0x27a9   :  { %17498 = vmatprep.subr.bf16.mxu1 %v17497_v41 }
0x27aa   :  { %v18834_v52 = vpop.eup %18833  ;;  %17500 = vmatpush3.bf16.msra.mxu1 %v17497_v41  ;;  %v17501_v20 = vpack.c.bf16 %v18372_v18, %v18371_v19  ;;  %v5038_v41 = vld [vmem:[#allocation2 + $0x168] sm:$0xff] }
0x27ab   :  { %v18836_v21 = vpop.eup %18835  ;;  %v5424_v26 = vmul.f32 %v18834_v52, %v18830_v63  ;;  %v5519_v31 = vpop.permute.xlu0 %5518 }
0x27ac   :  { %v5422_v25 = vmul.f32 %v18836_v21, %v18832_v0  ;;  %17502 = vmatprep.subr.bf16.mxu1 %v17501_v20  ;;  %v18375_v58 = vpop.permute.xlu1 %18374 }
0x27ad   :  { %v18377_v35 = vunpack.i.h.bf16 %v18375_v58  ;;  %v18376_v34 = vunpack.i.l.bf16 %v18375_v58 }
0x27ae   :  { %16284 = vmatprep.mubr.msk.f32.mxu0 %vm420_vm3, %v5422_v25  ;;  %17504 = vmatpush3.bf16.msra.mxu1 %v17501_v20 }
0x27af   :  { %16285 = vmatmul.mubr.msk.f32.vlgmr.msra.gmra.mrb[42].mxu0 %vm420_vm3, %v5424_v26  ;;  %v18380_v60 = vpop.permute.xlu0 %18379  ;;  %v17513_v4 = vpack.c.bf16 %v18377_v35, %v18376_v34 }
0x27b0   :  { %17508 = vmatpush3.bf16.msra.mxu0 %v17505_v30  ;;  %16306 = vmatprep.mubr.msk.f32.mxu0 %vm61_vm0, %v19594_v61  ;;  %v18382_v50 = vunpack.i.h.bf16 %v18380_v60  ;;  %v18381_v7 = vunpack.i.l.bf16 %v18380_v60 }
0x27b1   :  { %17510 = vmatprep.subr.bf16.mxu0 %v17509_v28  ;;  %16296 = vmatmul.mubr.msk.f32.vlgmr.msra.gmra.mrb[58].mxu1 %vm61_vm0, %v19603_v2 }
0x27b2   :  { %16317 = vmatprep.mubr.msk.f32.mxu1 %vm61_vm0, %v19594_v61  ;;  %v17517_v5 = vpack.c.bf16 %v18382_v50, %v18381_v7  ;;  %17514 = vmatprep.subr.bf16.mxu1 %v17513_v4 }
0x27b3   :  { %17516 = vmatpush3.bf16.msra.mxu1 %v17513_v4 }
0x27b4   :  { %17512 = vmatpush3.bf16.msra.mxu0 %v17509_v28  ;;  %17518 = vmatprep.subr.bf16.mxu1 %v17517_v5 }
0x27b7   :  { %16307 = vmatmul.mubr.msk.f32.vlgmr.msra.gmra.mrb[44].mxu0 %vm61_vm0, %v19603_v2  ;;  %17520 = vmatpush3.bf16.msra.mxu1 %v17517_v5 }
0x27ba   :  { %16318 = vmatmul.mubr.msk.f32.vlgmr.msra.gmra.mrb[60].mxu1 %vm61_vm0, %v19603_v2 }
0x2882   :  { %v19682_v29 = vpop.f32.mrb[42].mxu0 }
0x2883   :  { %v19684_v39 = vpop.f32.mrb[43].mxu0 }
0x2884   :  { %v16297_v32 = vpop.f32.mrb[58].mxu1 }
0x2885   :  { %v5587_v33 = vpop.f32.mrb[59].mxu1  ;;  %v5593_v49 = vadd.f32 %v16297_v32, %v5519_v31 }
0x2886   :  { %v5588_v36 = vadd.f32 %v5587_v33, %v5519_v31  ;;  %v5037_v31 = vld [vmem:[#allocation2 + $0x160] sm:$0xff] }
0x2888   :  { %16324 = vmatprep.mubr.msk.f32.mxu0 %vm328_vm1, %v5588_v36 }
0x288a   :  { %v16308_v43 = vpop.f32.mrb[44].mxu0 }
0x288b   :  { %v5683_v45 = vadd.f32 %v16308_v43, %v5609_v40  ;;  %v5677_v46 = vpop.f32.mrb[45].mxu0 }
0x288c   :  { %v5678_v47 = vadd.f32 %v5677_v46, %v5609_v40 }
0x288d   :  { %v16319_v30 = vpop.f32.mrb[60].mxu1 }
0x288e   :  { %v17521_v48 = vpack.c.bf16 %v5683_v45, %v5678_v47  ;;  %v5767_v17 = vpop.f32.mrb[61].mxu1 }
0x2890   :  { %17523 = vmatprep.subr.msk.bf16.mxu0 %vm19129_vm2, %v17521_v48 }
0x2891   :  { %17526 = vmatpush3.bf16.xpose.msk.msra.mxu0 %vm19129_vm2, %v17521_v48 }
0x2892   :  { %16334 = vmatprep.subr.mxu0 %v5038_v41 }
0x2898   :  { %16325 = vmatmul.mubr.msk.f32.vlgmr.msra.gmra.mrb[46].mxu0 %vm328_vm1, %v5593_v49 }
0x2899   :  { %16335 = vmatpush3.msra.mxu0 %v5038_v41 }
0x289a   :  { %16339 = vmatprep.subr.mxu0 %v5037_v31 }
0x296b   :  { %v16326_v54 = vpop.f32.mrb[46].mxu0 }
0x296c   :  { %v5864_v56 = vmul.f32 0.35355338, %v16326_v54  ;;  %v5854_v57 = vpop.f32.mrb[47].mxu0 }
0x296d   :  { %v5863_v59 = vmul.f32 0.35355338, %v5854_v57 }
0x296e   :  { %v5866_v62 = vadd.f32 %v5864_v56, %v19641_v38 }
0x296f   :  { %v5865_v63 = vadd.f32 %v5863_v59, %v19646_v44 }
0x2970   :  { %v5870_v0 = vsel %vm420_vm3, %v5866_v62, -inf }
0x2971   :  { %5871 = vmax.xlane.f32.xlu0 %v5870_v0  ;;  %v5867_v1 = vsel %vm420_vm3, %v5865_v63, -inf }
0x2972   :  { %5868 = vmax.xlane.f32.xlu1 %v5867_v1 }
0x29fe   :  { %v5872_v10 = vpop.xlane.xlu0 %5871 }
0x29ff   :  { %v5874_v6 = vsub.f32 %v5866_v62, %v5872_v10  ;;  %v5869_v9 = vpop.xlane.xlu1 %5868 }
0x2a00   :  { %v5873_v11 = vsub.f32 %v5865_v63, %v5869_v9 }
0x2a01   :  { %v5877_v3 = vmul.f32 1.442695, %v5874_v6 }
0x2a02   :  { %v5875_v12 = vmul.f32 1.442695, %v5873_v11 }
0x2a03   :  { %18837 = vpow2.f32 %v5877_v3 }
0x2a04   :  { %18839 = vpow2.f32 %v5875_v12 }
0x2a0d   :  { %v18838_v14 = vpop.eup %18837 }
0x2a0e   :  { %v18840_v53 = vpop.eup %18839  ;;  %v5882_v15 = vsel %vm420_vm3, %v18838_v14, 0.0 }
0x2a0f   :  { %5883 = vadd.xlane.f32.xlu1 %v5882_v15  ;;  %v5879_v16 = vsel %vm420_vm3, %v18840_v53, 0.0 }
0x2a10   :  { %5880 = vadd.xlane.f32.xlu0 %v5879_v16 }
0x2a20   :  { %18384 = vrot.lane.b32.xlu1 %v19562_v13, %s19033_s25 }
0x2a24   :  { %18389 = vrot.lane.b32.xlu1 %v19568_v22, %s19033_s25 }
0x2a26   :  { %5698 = vrot.lane.b32.xlu0 %v19575_v42, %s19032_s24 }
0x2a28   :  { %18399 = vrot.lane.b32.xlu1 %v19568_v22, %s19034_s26 }
0x2a2a   :  { %18394 = vrot.lane.b32.xlu0 %v19562_v13, %s19034_s26 }
0x2a2c   :  { %6144 = vrot.lane.b32.xlu1 %v19575_v42, %s19034_s26 }
0x2a2e   :  { %6234 = vrot.lane.b32.xlu0 %v19575_v42, %s19033_s25 }
0x2a30   :  { %18409 = vrot.lane.b32.xlu1 %v19568_v22, %s19035_s27 }
0x2a32   :  { %18404 = vrot.lane.b32.xlu0 %v19562_v13, %s19035_s27 }
0x2a9c   :  { %v5884_v18 = vpop.xlane.xlu1 %5883 }
0x2a9d   :  { %18841 = vrcp.f32 %v5884_v18  ;;  %v5881_v19 = vpop.xlane.xlu0 %5880 }
0x2a9e   :  { %18843 = vrcp.f32 %v5881_v19 }
0x2aa0   :  { %v18385_v32 = vpop.permute.xlu1 %18384 }
0x2aa1   :  { %v5699_v52 = vpop.permute.xlu0 %5698  ;;  %v18387_v58 = vunpack.i.h.bf16 %v18385_v32  ;;  %v18386_v60 = vunpack.i.l.bf16 %v18385_v32 }
0x2aa2   :  { %v5768_v20 = vadd.f32 %v5767_v17, %v5699_v52  ;;  %v5773_v21 = vadd.f32 %v16319_v30, %v5699_v52 }
0x2aa3   :  { %v17539_v50 = vpack.c.bf16 %v18387_v58, %v18386_v60 }
0x2aa4   :  { %v17527_v23 = vpack.c.bf16 %v5773_v21, %v5768_v20  ;;  %v18390_v33 = vpop.permute.xlu1 %18389 }
0x2aa5   :  { %v18395_v36 = vpop.permute.xlu0 %18394  ;;  %v18392_v7 = vunpack.i.h.bf16 %v18390_v33  ;;  %v18391_v4 = vunpack.i.l.bf16 %v18390_v33 }
0x2aa6   :  { %17528 = vmatprep.subr.bf16.mxu1 %v17527_v23  ;;  %v18397_v40 = vunpack.i.h.bf16 %v18395_v36  ;;  %v18396_v43 = vunpack.i.l.bf16 %v18395_v36 }
0x2aa7   :  { %v18842_v24 = vpop.eup %18841  ;;  %17530 = vmatpush3.bf16.msra.mxu1 %v17527_v23  ;;  %v17543_v5 = vpack.c.bf16 %v18392_v7, %v18391_v4 }
0x2aa8   :  { %v18844_v25 = vpop.eup %18843  ;;  %v5888_v28 = vmul.f32 %v18842_v24, %v18838_v14  ;;  %v18400_v45 = vpop.permute.xlu1 %18399  ;;  %v17531_v46 = vpack.c.bf16 %v18397_v40, %v18396_v43 }
0x2aa9   :  { %v5886_v26 = vmul.f32 %v18844_v25, %v18840_v53  ;;  %v18402_v47 = vunpack.i.h.bf16 %v18400_v45  ;;  %v18401_v48 = vunpack.i.l.bf16 %v18400_v45 }
0x2aaa   :  { %17532 = vmatprep.subr.bf16.mxu1 %v17531_v46 }
0x2aab   :  { %16331 = vmatprep.mubr.msk.f32.mxu1 %vm420_vm3, %v5886_v26  ;;  %v17535_v49 = vpack.c.bf16 %v18402_v47, %v18401_v48 }
0x2aac   :  { %16332 = vmatmul.mubr.msk.f32.vlgmr.msra.gmra.mrb[62].mxu1 %vm420_vm3, %v5888_v28  ;;  %v6145_v56 = vpop.permute.xlu1 %6144 }
0x2aad   :  { %16352 = vmatprep.mubr.msk.f32.mxu1 %vm61_vm0, %v19594_v61  ;;  %17534 = vmatpush3.bf16.msra.mxu1 %v17531_v46 }
0x2aae   :  { %17536 = vmatprep.subr.bf16.mxu1 %v17535_v49 }
0x2ab0   :  { %v18410_v9 = vpop.permute.xlu1 %18409 }
0x2ab1   :  { %17538 = vmatpush3.bf16.msra.mxu1 %v17535_v49  ;;  %v18412_v12 = vunpack.i.h.bf16 %v18410_v9  ;;  %v18411_v14 = vunpack.i.l.bf16 %v18410_v9  ;;  %v5039_v49 = vld [vmem:[#allocation2 + $0x170] sm:$0xff] }
0x2ab3   :  { %v17551_v15 = vpack.c.bf16 %v18412_v12, %v18411_v14 }
0x2ab4   :  { %16353 = vmatmul.mubr.msk.f32.vlgmr.msra.gmra.mrb[64].mxu1 %vm61_vm0, %v19603_v2 }
0x2ab5   :  { %16374 = vmatprep.mubr.msk.f32.mxu1 %vm61_vm0, %v19594_v61 }
0x2b7f   :  { %v16333_v35 = vpop.f32.mrb[62].mxu1 }
0x2b80   :  { %v5961_v34 = vpop.f32.mrb[63].mxu1 }
0x2b81   :  { %16336 = vmatprep.mubr.msk.f32.mxu0 %vm328_vm1, %v5961_v34 }
0x2b82   :  { %16337 = vmatmul.mubr.msk.f32.vlgmr.msra.gmra.mrb[48].mxu0 %vm328_vm1, %v16333_v35 }
0x2b83   :  { %16340 = vmatpush3.msra.mxu0 %v5037_v31  ;;  %16341 = vmatprep.mubr.msk.f32.mxu0 %vm328_vm1, %v19684_v39 }
0x2b84   :  { %17540 = vmatprep.subr.bf16.mxu0 %v17539_v50 }
0x2b87   :  { %v16354_v54 = vpop.f32.mrb[64].mxu1 }
0x2b88   :  { %v6213_v57 = vpop.f32.mrb[65].mxu1  ;;  %v6219_v10 = vadd.f32 %v16354_v54, %v6145_v56 }
0x2b89   :  { %v6214_v39 = vadd.f32 %v6213_v57, %v6145_v56 }
0x2b8a   :  { %16342 = vmatmul.mubr.msk.f32.vlgmr.msra.gmra.mrb[48].mxu0 %vm328_vm1, %v19682_v29  ;;  %v6235_v29 = vpop.permute.xlu0 %6234 }
0x2b8b   :  { %17542 = vmatpush3.bf16.msra.mxu0 %v17539_v50  ;;  %16363 = vmatprep.mubr.msk.f32.mxu0 %vm61_vm0, %v19594_v61 }
0x2b8c   :  { %17544 = vmatprep.subr.bf16.mxu0 %v17543_v5 }
0x2b8e   :  { %v18405_v6 = vpop.permute.xlu0 %18404 }
0x2b8f   :  { %17546 = vmatpush3.bf16.msra.mxu0 %v17543_v5  ;;  %v18407_v11 = vunpack.i.h.bf16 %v18405_v6  ;;  %v18406_v3 = vunpack.i.l.bf16 %v18405_v6 }
0x2b91   :  { %v17547_v53 = vpack.c.bf16 %v18407_v11, %v18406_v3 }
0x2b92   :  { %16364 = vmatmul.mubr.msk.f32.vlgmr.msra.gmra.mrb[50].mxu0 %vm61_vm0, %v19603_v2 }
0x2b93   :  { %16381 = vmatprep.mubr.msk.f32.mxu0 %vm328_vm1, %v6214_v39  ;;  %17548 = vmatprep.subr.bf16.mxu1 %v17547_v53 }
0x2b94   :  { %17550 = vmatpush3.bf16.msra.mxu1 %v17547_v53 }
0x2b95   :  { %17552 = vmatprep.subr.bf16.mxu1 %v17551_v15 }
0x2b98   :  { %17554 = vmatpush3.bf16.msra.mxu1 %v17551_v15 }
0x2b9b   :  { %16375 = vmatmul.mubr.msk.f32.vlgmr.msra.gmra.mrb[66].mxu1 %vm61_vm0, %v19603_v2 }
0x2c65   :  { %v16365_v59 = vpop.f32.mrb[50].mxu0 }
0x2c66   :  { %v6309_v62 = vadd.f32 %v16365_v59, %v6235_v29  ;;  %v6303_v63 = vpop.f32.mrb[51].mxu0 }
0x2c67   :  { %v6304_v0 = vadd.f32 %v6303_v63, %v6235_v29 }
0x2c69   :  { %v17555_v1 = vpack.c.bf16 %v6309_v62, %v6304_v0 }
0x2c6b   :  { %17557 = vmatprep.subr.msk.bf16.mxu0 %vm19129_vm2, %v17555_v1 }
0x2c6c   :  { %17560 = vmatpush3.bf16.xpose.msk.msra.mxu0 %vm19129_vm2, %v17555_v1 }
0x2c6d   :  { %16391 = vmatprep.subr.mxu0 %v5039_v49 }
0x2c6e   :  { %v16376_v40 = vpop.f32.mrb[66].mxu1 }
0x2c6f   :  { %v6393_v45 = vpop.f32.mrb[67].mxu1 }
0x2c73   :  { %16382 = vmatmul.mubr.msk.f32.vlgmr.msra.gmra.mrb[52].mxu0 %vm328_vm1, %v6219_v10 }
0x2c74   :  { %16392 = vmatpush3.msra.mxu0 %v5039_v49 }
0x2d46   :  { %v16383_v16 = vpop.f32.mrb[52].mxu0 }
0x2d47   :  { %v6490_v30 = vmul.f32 0.35355338, %v16383_v16  ;;  %v6480_v17 = vpop.f32.mrb[53].mxu0 }
0x2d48   :  { %v6489_v41 = vmul.f32 0.35355338, %v6480_v17 }
0x2d49   :  { %v6492_v18 = vadd.f32 %v6490_v30, %v19641_v38 }
0x2d4a   :  { %v6491_v19 = vadd.f32 %v6489_v41, %v19646_v44 }
0x2d4b   :  { %v6496_v52 = vsel %vm420_vm3, %v6492_v18, -inf }
0x2d4c   :  { %6497 = vmax.xlane.f32.xlu1 %v6496_v52  ;;  %v6493_v20 = vsel %vm420_vm3, %v6491_v19, -inf }
0x2d4d   :  { %6494 = vmax.xlane.f32.xlu0 %v6493_v20 }
0x2d5d   :  { %6324 = vrot.lane.b32.xlu1 %v19575_v42, %s19035_s27 }
0x2d61   :  { %18419 = vrot.lane.b32.xlu1 %v19568_v22, %s19036_s28 }
0x2d65   :  { %18424 = vrot.lane.b32.xlu1 %v19562_v13, %s19037_s29 }
0x2d69   :  { %6781 = vrot.lane.b32.xlu1 %v19575_v42, %s19036_s28 }
0x2d6d   :  { %18434 = vrot.lane.b32.xlu1 %v19562_v13, %s19038_s30 }
0x2dd9   :  { %v6498_v21 = vpop.xlane.xlu1 %6497 }
0x2dda   :  { %v6500_v23 = vsub.f32 %v6492_v18, %v6498_v21  ;;  %v6495_v24 = vpop.xlane.xlu0 %6494 }
0x2ddb   :  { %v6499_v25 = vsub.f32 %v6491_v19, %v6495_v24 }
0x2ddc   :  { %v6503_v26 = vmul.f32 1.442695, %v6500_v23 }
0x2ddd   :  { %v6501_v28 = vmul.f32 1.442695, %v6499_v25  ;;  %v6325_v43 = vpop.permute.xlu1 %6324 }
0x2dde   :  { %v6399_v46 = vadd.f32 %v16376_v40, %v6325_v43  ;;  %v6394_v47 = vadd.f32 %v6393_v45, %v6325_v43 }
0x2ddf   :  { %18845 = vpow2.f32 %v6501_v28 }
0x2de0   :  { %18847 = vpow2.f32 %v6503_v26  ;;  %v17561_v48 = vpack.c.bf16 %v6399_v46, %v6394_v47 }
0x2de1   :  { %v18420_v56 = vpop.permute.xlu1 %18419 }
0x2de2   :  { %17562 = vmatprep.subr.bf16.mxu1 %v17561_v48  ;;  %v18422_v6 = vunpack.i.h.bf16 %v18420_v56  ;;  %v18421_v9 = vunpack.i.l.bf16 %v18420_v56 }
0x2de3   :  { %17564 = vmatpush3.bf16.msra.mxu1 %v17561_v48 }
0x2de4   :  { %v17577_v12 = vpack.c.bf16 %v18422_v6, %v18421_v9 }
0x2de5   :  { %v18425_v39 = vpop.permute.xlu1 %18424 }
0x2de6   :  { %v18427_v29 = vunpack.i.h.bf16 %v18425_v39  ;;  %v18426_v59 = vunpack.i.l.bf16 %v18425_v39 }
0x2de8   :  { %v17565_v63 = vpack.c.bf16 %v18427_v29, %v18426_v59 }
0x2de9   :  { %v18846_v31 = vpop.eup %18845  ;;  %v6782_v30 = vpop.permute.xlu1 %6781 }
0x2dea   :  { %v6505_v32 = vsel %vm420_vm3, %v18846_v31, 0.0  ;;  %v18848_v33 = vpop.eup %18847  ;;  %17566 = vmatprep.subr.bf16.mxu1 %v17565_v63 }
0x2deb   :  { %6506 = vadd.xlane.f32.xlu0 %v6505_v32  ;;  %v6508_v36 = vsel %vm420_vm3, %v18848_v33, 0.0 }
0x2ded   :  { %v18435_v20 = vpop.permute.xlu1 %18434 }
0x2dee   :  { %v18437_v21 = vunpack.i.h.bf16 %v18435_v20  ;;  %v18436_v23 = vunpack.i.l.bf16 %v18435_v20  ;;  %v14731_v20 = vld [vmem:[%s20644_s5 + $0xe] ss:$0 sm:$0xff] }
0x2def   :  { %6509 = vadd.xlane.f32.xlu0 %v6508_v36 }
0x2df0   :  { %v17581_v25 = vpack.c.bf16 %v18437_v21, %v18436_v23  ;;  %v14732_v21 = vld [vmem:[%s20644_s5 + $0xf] ss:$0 sm:$0xff] }
0x2e05   :  { %18414 = vrot.lane.b32.xlu0 %v19562_v13, %s19036_s28 }
0x2e09   :  { %18429 = vrot.lane.b32.xlu0 %v19568_v22, %s19037_s29 }
0x2e0d   :  { %6691 = vrot.lane.b32.xlu0 %v19575_v42, %s19037_s29 }
0x2e11   :  { %18439 = vrot.lane.b32.xlu0 %v19568_v22, %s19038_s30 }
0x2e78   :  { %v6507_v58 = vpop.xlane.xlu0 %6506 }
0x2e79   :  { %18849 = vrcp.f32 %v6507_v58 }
0x2e7c   :  { %v6510_v60 = vpop.xlane.xlu0 %6509 }
0x2e7d   :  { %18851 = vrcp.f32 %v6510_v60 }
0x2e80   :  { %v18415_v4 = vpop.permute.xlu0 %18414 }
0x2e81   :  { %v18417_v5 = vunpack.i.h.bf16 %v18415_v4  ;;  %v18416_v54 = vunpack.i.l.bf16 %v18415_v4 }
0x2e83   :  { %v18850_v35 = vpop.eup %18849  ;;  %v17573_v57 = vpack.c.bf16 %v18417_v5, %v18416_v54 }
0x2e84   :  { %v6512_v34 = vmul.f32 %v18850_v35, %v18846_v31  ;;  %v18430_v62 = vpop.permute.xlu0 %18429 }
0x2e85   :  { %17574 = vmatprep.subr.bf16.mxu0 %v17573_v57  ;;  %v18432_v0 = vunpack.i.h.bf16 %v18430_v62  ;;  %v18431_v1 = vunpack.i.l.bf16 %v18430_v62 }
0x2e86   :  { %16388 = vmatprep.mubr.msk.f32.mxu1 %vm420_vm3, %v6512_v34 }
0x2e87   :  { %v18852_v50 = vpop.eup %18851  ;;  %v17569_v10 = vpack.c.bf16 %v18432_v0, %v18431_v1 }
0x2e88   :  { %v6514_v7 = vmul.f32 %v18852_v50, %v18848_v33  ;;  %v6692_v53 = vpop.permute.xlu0 %6691 }
0x2e8a   :  { %16389 = vmatmul.mubr.msk.f32.vlgmr.msra.gmra.mrb[68].mxu1 %vm420_vm3, %v6514_v7 }
0x2e8b   :  { %16404 = vmatprep.mubr.msk.f32.mxu1 %vm61_vm0, %v19594_v61  ;;  %17568 = vmatpush3.bf16.msra.mxu1 %v17565_v63 }
0x2e8c   :  { %17570 = vmatprep.subr.bf16.mxu1 %v17569_v10  ;;  %v18440_v13 = vpop.permute.xlu0 %18439 }
0x2e8d   :  { %v18442_v22 = vunpack.i.h.bf16 %v18440_v13  ;;  %v18441_v24 = vunpack.i.l.bf16 %v18440_v13 }
0x2e8f   :  { %17572 = vmatpush3.bf16.msra.mxu1 %v17569_v10  ;;  %v17585_v26 = vpack.c.bf16 %v18442_v22, %v18441_v24 }
0x2e90   :  { %17582 = vmatprep.subr.bf16.mxu1 %v17581_v25 }
0x2e92   :  { %16405 = vmatmul.mubr.msk.f32.vlgmr.msra.gmra.mrb[70].mxu1 %vm61_vm0, %v19603_v2 }
0x2e93   :  { %16426 = vmatprep.mubr.msk.f32.mxu1 %vm61_vm0, %v19594_v61  ;;  %17584 = vmatpush3.bf16.msra.mxu1 %v17581_v25 }
0x2e94   :  { %17586 = vmatprep.subr.bf16.mxu1 %v17585_v26 }
0x2e97   :  { %17588 = vmatpush3.bf16.msra.mxu1 %v17585_v26 }
0x2e9a   :  { %16427 = vmatmul.mubr.msk.f32.vlgmr.msra.gmra.mrb[72].mxu1 %vm61_vm0, %v19603_v2 }
0x2f5d   :  { %v16390_v11 = vpop.f32.mrb[68].mxu1 }
0x2f5e   :  { %v6587_v3 = vpop.f32.mrb[69].mxu1 }
0x2f5f   :  { %16393 = vmatprep.mubr.msk.f32.mxu0 %vm328_vm1, %v6587_v3 }
0x2f60   :  { %16394 = vmatmul.mubr.msk.f32.vlgmr.msra.gmra.mrb[48].mxu0 %vm328_vm1, %v16390_v11 }
0x2f61   :  { %17576 = vmatpush3.bf16.msra.mxu0 %v17573_v57  ;;  %16415 = vmatprep.mubr.msk.f32.mxu0 %vm61_vm0, %v19594_v61 }
0x2f62   :  { %17578 = vmatprep.subr.bf16.mxu0 %v17577_v12 }
0x2f65   :  { %17580 = vmatpush3.bf16.msra.mxu0 %v17577_v12  ;;  %v16406_v14 = vpop.f32.mrb[70].mxu1 }
0x2f66   :  { %v6760_v15 = vpop.f32.mrb[71].mxu1  ;;  %v6766_v52 = vadd.f32 %v16406_v14, %v6692_v53 }
0x2f67   :  { %v6761_v16 = vadd.f32 %v6760_v15, %v6692_v53 }
0x2f68   :  { %16416 = vmatmul.mubr.msk.f32.vlgmr.msra.gmra.mrb[54].mxu0 %vm61_vm0, %v19603_v2 }
0x2f69   :  { %16433 = vmatprep.mubr.msk.f32.mxu0 %vm328_vm1, %v6761_v16  ;;  %v5040_v16 = vld [vmem:[#allocation2 + $0x178] sm:$0xff] }
0x303b   :  { %v16417_v17 = vpop.f32.mrb[54].mxu0 }
0x303c   :  { %v6856_v61 = vadd.f32 %v16417_v17, %v6782_v30  ;;  %v6850_v41 = vpop.f32.mrb[55].mxu0 }
0x303d   :  { %v6851_v18 = vadd.f32 %v6850_v41, %v6782_v30 }
0x303f   :  { %v17589_v19 = vpack.c.bf16 %v6856_v61, %v6851_v18 }
0x3041   :  { %17591 = vmatprep.subr.msk.bf16.mxu0 %vm19129_vm2, %v17589_v19 }
0x3042   :  { %17594 = vmatpush3.bf16.xpose.msk.msra.mxu0 %vm19129_vm2, %v17589_v19 }
0x3043   :  { %16443 = vmatprep.subr.mxu0 %v5040_v16 }
0x3049   :  { %16434 = vmatmul.mubr.msk.f32.vlgmr.msra.gmra.mrb[56].mxu0 %vm328_vm1, %v6766_v52 }
0x304a   :  { %16444 = vmatpush3.msra.mxu0 %v5040_v16 }
0x311c   :  { %v16435_v28 = vpop.f32.mrb[56].mxu0 }
0x311d   :  { %v7037_v31 = vmul.f32 0.35355338, %v16435_v28  ;;  %v7027_v32 = vpop.f32.mrb[57].mxu0 }
0x311e   :  { %v7036_v33 = vmul.f32 0.35355338, %v7027_v32 }
0x311f   :  { %v7039_v36 = vadd.f32 %v7037_v31, %v19641_v38  ;;  %v14728_v38 = vld [vmem:[%s20644_s5 + $0xd] ss:$0 sm:$0xff] }
0x3120   :  { %v7038_v40 = vadd.f32 %v7036_v33, %v19646_v44  ;;  %v4942_v44 = vadd.f32 %v14728_v38, %v19636_v37  ;;  %v4947_v34 = vadd.f32 %v19634_v8, %v14728_v38  ;;  %v16428_v37 = vpop.f32.mrb[72].mxu1 }
0x3121   :  { %v7043_v43 = vsel %vm420_vm3, %v7039_v36, -inf  ;;  %v6940_v57 = vpop.f32.mrb[73].mxu1 }
0x3122   :  { %7044 = vmax.xlane.f32.xlu0 %v7043_v43  ;;  %v7040_v45 = vsel %vm420_vm3, %v7038_v40, -inf  ;;  %v4950_v50 = vadd.f32 %v4942_v44, %v19585_v51  ;;  %v4951_v5 = vadd.f32 %v4947_v34, %v19589_v55  ;;  %v14792_v43 = vld [vmem:[%s20644_s5 + $0x11] ss:$0 sm:$0xff] }
0x3123   :  { %7041 = vmax.xlane.f32.xlu1 %v7040_v45 }
0x3124   :  { %v4954_v54 = vsel %vm61_vm0, %v4950_v50, 0.0  ;;  %v4957_v56 = vsel %vm61_vm0, %v4951_v5, 0.0 }
0x31af   :  { %v7045_v46 = vpop.xlane.xlu0 %7044 }
0x31b0   :  { %v7047_v47 = vsub.f32 %v7039_v36, %v7045_v46  ;;  %v7042_v48 = vpop.xlane.xlu1 %7041 }
0x31b1   :  { %v7046_v49 = vsub.f32 %v7038_v40, %v7042_v48 }
0x31b2   :  { %v7050_v58 = vmul.f32 1.442695, %v7047_v47 }
0x31b3   :  { %v7048_v2 = vmul.f32 1.442695, %v7046_v49 }
0x31b4   :  { %18853 = vpow2.f32 %v7050_v58 }
0x31b5   :  { %18855 = vpow2.f32 %v7048_v2  ;;  %v18995_v2 = vld [vmem:[%s20639_s0 + $0x10] sm:$0xff] }
0x31be   :  { %v18854_v60 = vpop.eup %18853 }
0x31bf   :  { %v18856_v35 = vpop.eup %18855  ;;  %v7055_v7 = vsel %vm420_vm3, %v18854_v60, 0.0 }
0x31c0   :  { %7056 = vadd.xlane.f32.xlu1 %v7055_v7  ;;  %v7052_v4 = vsel %vm420_vm3, %v18856_v35, 0.0 }
0x31c1   :  { %7053 = vadd.xlane.f32.xlu0 %v7052_v4 }
0x31c4   :  { %4955 = vadd.xlane.f32.xlu1 %v4954_v54 }
0x31c8   :  { %4958 = vadd.xlane.f32.xlu1 %v4957_v56 }
0x31d7   :  { %6871 = vrot.lane.b32.xlu0 %v19575_v42, %s19038_s30 }
0x324d   :  { %v7057_v51 = vpop.xlane.xlu1 %7056 }
0x324e   :  { %18857 = vrcp.f32 %v7057_v51  ;;  %v7054_v8 = vpop.xlane.xlu0 %7053  ;;  %v7275_v51 = vld [vmem:[#allocation2 + $0x1a8] sm:$0xff] }
0x324f   :  { %18859 = vrcp.f32 %v7054_v8 }
0x3251   :  { %v4956_v39 = vpop.xlane.xlu1 %4955 }
0x3252   :  { %v4960_v29 = vmul.f32 0.03125, %v4956_v39  ;;  %v6872_v59 = vpop.permute.xlu0 %6871  ;;  %v7276_v39 = vld [vmem:[#allocation2 + $0x1b0] sm:$0xff] }
0x3253   :  { %v6941_v62 = vadd.f32 %v6940_v57, %v6872_v59  ;;  %v6946_v55 = vadd.f32 %v16428_v37, %v6872_v59  ;;  %v7274_v57 = vld [vmem:[#allocation2 + $0x1a0] sm:$0xff] }
0x3254   :  { %v4962_v63 = vsub.f32 %v4950_v50, %v4960_v29  ;;  %v17607_v8 = vpack.c.bf16 %v7275_v51, %v7274_v57  ;;  %v7277_v29 = vld [vmem:[#allocation2 + $0x1b8] sm:$0xff] }
0x3255   :  { %v4959_v0 = vpop.xlane.xlu1 %4958  ;;  %v17595_v1 = vpack.c.bf16 %v6946_v55, %v6941_v62  ;;  %v17611_v59 = vpack.c.bf16 %v7277_v29, %v7276_v39  ;;  %v19834_v62 = vpack.i.bf16 %v7277_v29, %v7276_v39 }
0x3256   :  { %v4961_v10 = vmul.f32 0.03125, %v4959_v0  ;;  %v4964_v6 = vmul.f32 %v4962_v63, %v4962_v63  ;;  %17608 = vmatprep.subr.bf16.mxu0 %v17607_v8 }
0x3257   :  { %17596 = vmatprep.subr.bf16.mxu1 %v17595_v1 }
0x3258   :  { %v18858_v9 = vpop.eup %18857  ;;  %v4963_v11 = vsub.f32 %v4951_v5, %v4961_v10  ;;  %17598 = vmatpush3.bf16.msra.mxu1 %v17595_v1  ;;  %v4966_v42 = vsel %vm61_vm0, %v4964_v6, 0.0 }
0x3259   :  { %v18860_v3 = vpop.eup %18859  ;;  %4967 = vadd.xlane.f32.xlu1 %v4966_v42  ;;  %v7061_v53 = vmul.f32 %v18858_v9, %v18854_v60 }
0x325a   :  { %v7059_v12 = vmul.f32 %v18860_v3, %v18856_v35  ;;  %v4965_v14 = vmul.f32 %v4963_v11, %v4963_v11  ;;  %v18996_v35 = vld [vmem:[%s20639_s0 + $0x18] sm:$0xff] }
0x325c   :  { %16440 = vmatprep.mubr.msk.f32.mxu1 %vm420_vm3, %v7059_v12  ;;  %v4969_v15 = vsel %vm61_vm0, %v4965_v14, 0.0 }
0x325d   :  { %16441 = vmatmul.mubr.msk.f32.vlgmr.msra.gmra.mrb[74].mxu1 %vm420_vm3, %v7061_v53  ;;  %4970 = vadd.xlane.f32.xlu1 %v4969_v15 }
0x32e6   :  { %v4968_v30 = vpop.xlane.xlu1 %4967 }
0x32e7   :  { %v4972_v17 = vmul.f32 0.03125, %v4968_v30 }
0x32e9   :  { %v4974_v61 = vadd.f32 1e-05, %v4972_v17 }
0x32ea   :  { %v4971_v41 = vpop.xlane.xlu1 %4970 }
0x32eb   :  { %18861 = vrsqrt.f32 %v4974_v61  ;;  %v4973_v18 = vmul.f32 0.03125, %v4971_v41  ;;  %v14733_v61 = vld [vmem:[%s20644_s5 + $0x2a] ss:$0 sm:$0xff] }
0x32ed   :  { %v4975_v19 = vadd.f32 1e-05, %v4973_v18  ;;  %v14734_v18 = vld [vmem:[%s20644_s5 + $0x2b] ss:$0 sm:$0xff] }
0x32ef   :  { %18863 = vrsqrt.f32 %v4975_v19  ;;  %v19846_v19 = vpack.i.bf16 %v7275_v51, %v7274_v57  ;;  %v19891_v51 = vld [vmem:[%s20644_s5 + $0x15] ss:$0 sm:$0xff] }
0x32f5   :  { %v18862_v52 = vpop.eup %18861 }
0x32f6   :  { %v4978_v13 = vmul.f32 %v18862_v52, %v4962_v63 }
0x32f8   :  { %v4984_v23 = vmul.f32 %v14731_v20, %v4978_v13 }
0x32f9   :  { %v18864_v22 = vpop.eup %18863 }
0x32fa   :  { %v4990_v24 = vadd.f32 %v14732_v21, %v4984_v23  ;;  %v4979_v25 = vmul.f32 %v18864_v22, %v4963_v11 }
0x32fc   :  { %v4994_v26 = vsel %vm61_vm0, %v4990_v24, 0.0  ;;  %v4985_v28 = vmul.f32 %v14731_v20, %v4979_v25  ;;  %v19860_v25 = vld [vmem:[#allocation2 + $0x188] sm:$0xff] }
0x32fd   :  { %4995 = vadd.xlane.f32.xlu1 %v4994_v26 }
0x32fe   :  { %v4991_v31 = vadd.f32 %v14732_v21, %v4985_v28  ;;  %v19864_v28 = vld [vmem:[#allocation2 + $0x190] sm:$0xff] }
0x3300   :  { %v4997_v32 = vsel %vm61_vm0, %v4991_v31, 0.0 }
0x3301   :  { %4998 = vadd.xlane.f32.xlu0 %v4997_v32 }
0x3317   :  { %18449 = vrot.lane.b32.xlu0 %v19834_v62, %s19028_s14 }
0x3330   :  { %v16442_v33 = vpop.f32.mrb[74].mxu1 }
0x3331   :  { %v7134_v36 = vpop.f32.mrb[75].mxu1 }
0x3332   :  { %16445 = vmatprep.mubr.msk.f32.mxu0 %vm328_vm1, %v7134_v36 }
0x3333   :  { %16446 = vmatmul.mubr.msk.f32.vlgmr.msra.gmra.mrb[48].mxu0 %vm328_vm1, %v16442_v33 }
0x3334   :  { %17610 = vmatpush3.bf16.msra.mxu0 %v17607_v8 }
0x3335   :  { %17612 = vmatprep.subr.bf16.mxu0 %v17611_v59 }
0x3338   :  { %17614 = vmatpush3.bf16.msra.mxu0 %v17611_v59 }
0x338a   :  { %v4996_v40 = vpop.xlane.xlu1 %4995 }
0x338b   :  { %v5000_v47 = vmul.f32 0.03125, %v4996_v40 }
0x338d   :  { %v5002_v44 = vsub.f32 %v4990_v24, %v5000_v47  ;;  %v19858_v24 = vld [vmem:[#allocation2 + $0x180] sm:$0xff] }
0x338e   :  { %v4999_v58 = vpop.xlane.xlu0 %4998  ;;  %v17599_v26 = vpack.c.bf16 %v19860_v25, %v19858_v24 }
0x338f   :  { %v5001_v60 = vmul.f32 0.03125, %v4999_v58  ;;  %v5004_v5 = vmul.f32 %v5002_v44, %v5002_v44 }
0x3390   :  { %17600 = vmatprep.subr.bf16.mxu1 %v17599_v26 }
0x3391   :  { %v5003_v7 = vsub.f32 %v4991_v31, %v5001_v60  ;;  %v5006_v54 = vsel %vm61_vm0, %v5004_v5, 0.0  ;;  %17602 = vmatpush3.bf16.msra.mxu1 %v17599_v26  ;;  %v19866_v31 = vld [vmem:[#allocation2 + $0x198] sm:$0xff]  ;;  %v14794_v60 = vld [vmem:[%s20644_s5 + $0x13] ss:$0 sm:$0xff] }
0x3392   :  { %v17603_v32 = vpack.c.bf16 %v19866_v31, %v19864_v28 }
0x3393   :  { %v5005_v56 = vmul.f32 %v5003_v7, %v5003_v7 }
0x3394   :  { %17604 = vmatprep.subr.bf16.mxu1 %v17603_v32 }
0x3395   :  { %v5009_v37 = vsel %vm61_vm0, %v5005_v56, 0.0  ;;  %17606 = vmatpush3.bf16.msra.mxu1 %v17603_v32 }
0x3406   :  { %v16447_v45 = vpop.f32.mrb[48].mxu0 }
0x3407   :  { %v7215_v46 = vpop.f32.mrb[49].mxu0  ;;  %v7231_v48 = vadd.f32 %v16447_v45, %v14792_v43 }
0x3408   :  { %v7230_v49 = vadd.f32 %v14792_v43, %v7215_v46 }
0x3409   :  { %v7233_v34 = vadd.f32 %v18996_v35, %v7231_v48  ;;  %v18450_v35 = vpop.permute.xlu0 %18449 }
0x340a   :  { %v7232_v38 = vadd.f32 %v18995_v2, %v7230_v49  ;;  %v18452_v5 = vunpack.i.h.bf16 %v18450_v35 }
0x340b   :  { %v7239_v4 = vsel %vm61_vm0, %v7233_v34, 0.0 }
0x340c   :  { %v7236_v50 = vsel %vm61_vm0, %v7232_v38, 0.0 }
0x340d   :  { %7237 = vadd.xlane.f32.xlu1 %v7236_v50 }
0x3411   :  { %7240 = vadd.xlane.f32.xlu1 %v7239_v4 }
0x3415   :  { %5007 = vadd.xlane.f32.xlu1 %v5006_v54  ;;  %v18451_v54 = vunpack.i.l.bf16 %v18450_v35 }
0x3417   :  { %v17619_v57 = vpack.c.bf16 %v18452_v5, %v18451_v54 }
0x3419   :  { %5010 = vadd.xlane.f32.xlu1 %v5009_v37 }
0x349a   :  { %v7238_v55 = vpop.xlane.xlu1 %7237 }
0x349b   :  { %v7242_v63 = vmul.f32 0.03125, %v7238_v55 }
0x349d   :  { %v7244_v0 = vsub.f32 %v7232_v38, %v7242_v63  ;;  %v14793_v38 = vld [vmem:[%s20644_s5 + $0x12] ss:$0 sm:$0xff]  ;;  %v19902_v63 = vld [vmem:[%s20644_s5 + $0x14] ss:$0 sm:$0xff] }
0x349e   :  { %v7241_v1 = vpop.xlane.xlu1 %7240 }
0x349f   :  { %v7243_v10 = vmul.f32 0.03125, %v7241_v1  ;;  %v7246_v6 = vmul.f32 %v7244_v0, %v7244_v0 }
0x34a1   :  { %v7245_v9 = vsub.f32 %v7233_v34, %v7243_v10  ;;  %v7248_v11 = vsel %vm61_vm0, %v7246_v6, 0.0 }
0x34a2   :  { %7249 = vadd.xlane.f32.xlu1 %v7248_v11  ;;  %v5008_v42 = vpop.xlane.xlu1 %5007 }
0x34a3   :  { %v5012_v3 = vmul.f32 0.03125, %v5008_v42  ;;  %v7247_v12 = vmul.f32 %v7245_v9, %v7245_v9  ;;  %v19913_v42 = vld [vmem:[%s20642_s3 + $0x8] sm:$0xff] }
0x34a5   :  { %v5014_v14 = vadd.f32 1e-05, %v5012_v3  ;;  %v7251_v53 = vsel %vm61_vm0, %v7247_v12, 0.0 }
0x34a6   :  { %7252 = vadd.xlane.f32.xlu1 %v7251_v53  ;;  %v5011_v15 = vpop.xlane.xlu1 %5010 }
0x34a7   :  { %18865 = vrsqrt.f32 %v5014_v14  ;;  %v5013_v16 = vmul.f32 0.03125, %v5011_v15  ;;  %v19918_v14 = vld [vmem:[%s20642_s3] sm:$0xff] }
0x34a9   :  { %v5015_v30 = vadd.f32 1e-05, %v5013_v16 }
0x34ab   :  { %18867 = vrsqrt.f32 %v5015_v30 }
0x34b1   :  { %v18866_v17 = vpop.eup %18865 }
0x34b2   :  { %v5018_v41 = vmul.f32 %v18866_v17, %v5002_v44 }
0x34b4   :  { %v5024_v52 = vmul.f32 %v14733_v61, %v5018_v41  ;;  %v19932_v41 = vpack.i.bf16 %v19860_v25, %v19858_v24 }
0x34b5   :  { %v18868_v20 = vpop.eup %18867 }
0x34b6   :  { %v19848_v13 = vadd.f32 %v14734_v18, %v5024_v52  ;;  %v5019_v21 = vmul.f32 %v18868_v20, %v5003_v7 }
0x34b7   :  { %18444 = vrot.lane.b32.xlu1 %v19846_v19, %s19028_s14 }
0x34b8   :  { %v5025_v23 = vmul.f32 %v14733_v61, %v5019_v21  ;;  %16467 = vmatprep.mubr.msk.f32.mxu0 %vm61_vm0, %v19848_v13 }
0x34ba   :  { %v19854_v22 = vadd.f32 %v14734_v18, %v5025_v23 }
0x34bc   :  { %16468 = vmatmul.mubr.msk.f32.vlgmr.msra.gmra.mrb[58].mxu0 %vm61_vm0, %v19854_v22 }
0x352f   :  { %v7250_v33 = vpop.xlane.xlu1 %7249 }
0x3530   :  { %v7254_v36 = vmul.f32 0.03125, %v7250_v33 }
0x3532   :  { %v7256_v40 = vadd.f32 1e-05, %v7254_v36 }
0x3533   :  { %v7253_v43 = vpop.xlane.xlu1 %7252 }
0x3534   :  { %18869 = vrsqrt.f32 %v7256_v40  ;;  %v7255_v45 = vmul.f32 0.03125, %v7253_v43 }
0x3536   :  { %v7257_v46 = vadd.f32 1e-05, %v7255_v45 }
0x3537   :  { %v18445_v47 = vpop.permute.xlu1 %18444 }
0x3538   :  { %18871 = vrsqrt.f32 %v7257_v46  ;;  %v18447_v48 = vunpack.i.h.bf16 %v18445_v47  ;;  %v18446_v49 = vunpack.i.l.bf16 %v18445_v47 }
0x353a   :  { %v17615_v58 = vpack.c.bf16 %v18447_v48, %v18446_v49 }
0x353c   :  { %17616 = vmatprep.subr.bf16.mxu1 %v17615_v58 }
0x353e   :  { %v18870_v2 = vpop.eup %18869 }
0x353f   :  { %v7260_v44 = vmul.f32 %v18870_v2, %v7244_v0 }
0x3541   :  { %v7266_v34 = vmul.f32 %v14793_v38, %v7260_v44 }
0x3542   :  { %v18872_v50 = vpop.eup %18871 }
0x3543   :  { %v7261_v7 = vmul.f32 %v18872_v50, %v7245_v9  ;;  %v19876_v4 = vadd.f32 %v14794_v60, %v7266_v34 }
0x3545   :  { %16456 = vmatprep.mubr.msk.f32.mxu1 %vm61_vm0, %v19876_v4  ;;  %v7267_v56 = vmul.f32 %v14793_v38, %v7261_v7 }
0x3547   :  { %v19880_v37 = vadd.f32 %v14794_v60, %v7267_v56  ;;  %v19946_v60 = vpack.i.bf16 %v19866_v31, %v19864_v28 }
0x3549   :  { %16457 = vmatmul.mubr.msk.f32.vlgmr.msra.gmra.mrb[76].mxu1 %vm61_vm0, %v19880_v37 }
0x354a   :  { %17618 = vmatpush3.bf16.msra.mxu1 %v17615_v58  ;;  %16478 = vmatprep.mubr.msk.f32.mxu1 %vm61_vm0, %v19848_v13 }
0x354b   :  { %17620 = vmatprep.subr.bf16.mxu1 %v17619_v57 }
0x354e   :  { %17622 = vmatpush3.bf16.msra.mxu1 %v17619_v57 }
0x3551   :  { %16479 = vmatmul.mubr.msk.f32.vlgmr.msra.gmra.mrb[78].mxu1 %vm61_vm0, %v19854_v22 }
0x358f   :  { %v16469_v8 = vpop.f32.mrb[58].mxu0 }
0x3590   :  { %v7456_v39 = vadd.f32 %v16469_v8, %v19891_v51  ;;  %v7450_v29 = vpop.f32.mrb[59].mxu0 }
0x3591   :  { %v7451_v59 = vadd.f32 %v19891_v51, %v7450_v29 }
0x3593   :  { %v17623_v55 = vpack.c.bf16 %v7456_v39, %v7451_v59 }
0x3595   :  { %17625 = vmatprep.subr.msk.bf16.mxu0 %vm19129_vm2, %v17623_v55 }
0x3596   :  { %17628 = vmatpush3.bf16.xpose.msk.msra.mxu0 %vm19129_vm2, %v17623_v55 }
0x361c   :  { %v16458_v0 = vpop.f32.mrb[76].mxu1 }
0x361d   :  { %v7365_v1 = vpop.f32.mrb[77].mxu1  ;;  %v7371_v6 = vadd.f32 %v16458_v0, %v19902_v63 }
0x361e   :  { %v7366_v10 = vadd.f32 %v19902_v63, %v7365_v1 }
0x3620   :  { %16485 = vmatprep.mubr.msk.f32.mxu0 %vm328_vm1, %v7366_v10 }
0x3621   :  { %16486 = vmatmul.mubr.msk.f32.vlgmr.msra.gmra.mrb[60].mxu0 %vm328_vm1, %v7371_v6 }
0x3622   :  { %16514 = vmatprep.mubr.msk.f32.mxu0 %vm61_vm0, %v19848_v13 }
0x3624   :  { %v16480_v9 = vpop.f32.mrb[78].mxu1 }
0x3625   :  { %v7545_v11 = vpop.f32.mrb[79].mxu1 }
0x36f4   :  { %v16487_v3 = vpop.f32.mrb[60].mxu0 }
0x36f5   :  { %v7642_v12 = vmul.f32 0.35355338, %v16487_v3  ;;  %v7632_v53 = vpop.f32.mrb[61].mxu0 }
0x36f6   :  { %v7641_v15 = vmul.f32 0.35355338, %v7632_v53 }
0x36f7   :  { %v7644_v16 = vadd.f32 %v7642_v12, %v19913_v42 }
0x36f8   :  { %v7643_v30 = vadd.f32 %v7641_v15, %v19918_v14 }
0x36f9   :  { %v7648_v17 = vsel %vm420_vm3, %v7644_v16, -inf }
0x36fa   :  { %7649 = vmax.xlane.f32.xlu0 %v7648_v17  ;;  %v7645_v61 = vsel %vm420_vm3, %v7643_v30, -inf }
0x36fb   :  { %7646 = vmax.xlane.f32.xlu1 %v7645_v61 }
0x370c   :  { %7476 = vrot.lane.b32.xlu1 %v19891_v51, %s19028_s14 }
0x3710   :  { %18454 = vrot.lane.b32.xlu0 %v19846_v19, %s19031_s23  ;;  %18459 = vrot.lane.b32.xlu1 %v19834_v62, %s19031_s23 }
0x3714   :  { %18464 = vrot.lane.b32.xlu0 %v19932_v41, %s19031_s23 }
0x3718   :  { %7855 = vrot.lane.b32.xlu0 %v19891_v51, %s19031_s23 }
0x371c   :  { %18474 = vrot.lane.b32.xlu0 %v19846_v19, %s19030_s22 }
0x3787   :  { %v7650_v18 = vpop.xlane.xlu0 %7649 }
0x3788   :  { %v7652_v52 = vsub.f32 %v7644_v16, %v7650_v18  ;;  %v7647_v20 = vpop.xlane.xlu1 %7646 }
0x3789   :  { %v7651_v21 = vsub.f32 %v7643_v30, %v7647_v20 }
0x378a   :  { %v7655_v23 = vmul.f32 1.442695, %v7652_v52 }
0x378b   :  { %v7653_v26 = vmul.f32 1.442695, %v7651_v21  ;;  %v18455_v32 = vpop.permute.xlu0 %18454 }
0x378c   :  { %18873 = vpow2.f32 %v7655_v23  ;;  %v18457_v33 = vunpack.i.h.bf16 %v18455_v32  ;;  %v18456_v24 = vunpack.i.l.bf16 %v18455_v32  ;;  %v7477_v25 = vpop.permute.xlu1 %7476 }
0x378d   :  { %v7546_v36 = vadd.f32 %v7545_v11, %v7477_v25  ;;  %v7551_v40 = vadd.f32 %v16480_v9, %v7477_v25  ;;  %18875 = vpow2.f32 %v7653_v26 }
0x378e   :  { %v17641_v43 = vpack.c.bf16 %v18457_v33, %v18456_v24 }
0x378f   :  { %v17629_v45 = vpack.c.bf16 %v7551_v40, %v7546_v36  ;;  %v18465_v35 = vpop.permute.xlu0 %18464 }
0x3790   :  { %v18460_v46 = vpop.permute.xlu1 %18459  ;;  %17642 = vmatprep.subr.bf16.mxu0 %v17641_v43  ;;  %v18467_v34 = vunpack.i.h.bf16 %v18465_v35  ;;  %v18466_v50 = vunpack.i.l.bf16 %v18465_v35 }
0x3791   :  { %v18462_v47 = vunpack.i.h.bf16 %v18460_v46  ;;  %v18461_v48 = vunpack.i.l.bf16 %v18460_v46  ;;  %17630 = vmatprep.subr.bf16.mxu1 %v17629_v45  ;;  %17644 = vmatpush3.bf16.msra.mxu0 %v17641_v43 }
0x3792   :  { %17632 = vmatpush3.bf16.msra.mxu1 %v17629_v45  ;;  %v17633_v7 = vpack.c.bf16 %v18467_v34, %v18466_v50 }
0x3793   :  { %v17645_v49 = vpack.c.bf16 %v18462_v47, %v18461_v48  ;;  %v7856_v28 = vpop.permute.xlu0 %7855 }
0x3794   :  { %17634 = vmatprep.subr.bf16.mxu1 %v17633_v7 }
0x3795   :  { %17646 = vmatprep.subr.bf16.mxu0 %v17645_v49 }
0x3796   :  { %v18874_v58 = vpop.eup %18873  ;;  %17648 = vmatpush3.bf16.msra.mxu0 %v17645_v49 }
0x3797   :  { %v7660_v2 = vsel %vm420_vm3, %v18874_v58, 0.0  ;;  %v18876_v38 = vpop.eup %18875  ;;  %v18475_v29 = vpop.permute.xlu0 %18474 }
0x3798   :  { %7661 = vadd.xlane.f32.xlu1 %v7660_v2  ;;  %v7657_v44 = vsel %vm420_vm3, %v18876_v38, 0.0  ;;  %v18477_v1 = vunpack.i.h.bf16 %v18475_v29  ;;  %v18476_v10 = vunpack.i.l.bf16 %v18475_v29 }
0x3799   :  { %16515 = vmatmul.mubr.msk.f32.vlgmr.msra.gmra.mrb[62].mxu0 %vm61_vm0, %v19854_v22 }
0x379a   :  { %v17649_v12 = vpack.c.bf16 %v18477_v1, %v18476_v10 }
0x379c   :  { %7658 = vadd.xlane.f32.xlu1 %v7657_v44 }
0x37ad   :  { %18469 = vrot.lane.b32.xlu1 %v19946_v60, %s19031_s23 }
0x37b1   :  { %7765 = vrot.lane.b32.xlu1 %v19902_v63, %s19031_s23 }
0x37b5   :  { %18479 = vrot.lane.b32.xlu1 %v19834_v62, %s19030_s22 }
0x3825   :  { %v7662_v5 = vpop.xlane.xlu1 %7661 }
0x3826   :  { %18877 = vrcp.f32 %v7662_v5 }
0x3829   :  { %v7659_v54 = vpop.xlane.xlu1 %7658 }
0x382a   :  { %18879 = vrcp.f32 %v7659_v54 }
0x382d   :  { %v18470_v31 = vpop.permute.xlu1 %18469 }
0x382e   :  { %v18472_v57 = vunpack.i.h.bf16 %v18470_v31  ;;  %v18471_v8 = vunpack.i.l.bf16 %v18470_v31 }
0x3830   :  { %v18878_v39 = vpop.eup %18877  ;;  %v17637_v6 = vpack.c.bf16 %v18472_v57, %v18471_v8 }
0x3831   :  { %v7766_v56 = vpop.permute.xlu1 %7765  ;;  %v7666_v0 = vmul.f32 %v18878_v39, %v18874_v58 }
0x3834   :  { %v18880_v59 = vpop.eup %18879 }
0x3835   :  { %v7664_v55 = vmul.f32 %v18880_v59, %v18876_v38  ;;  %v18480_v9 = vpop.permute.xlu1 %18479  ;;  %v7285_v59 = vld [vmem:[#allocation2 + $0x1c8] sm:$0xff] }
0x3836   :  { %v18482_v11 = vunpack.i.h.bf16 %v18480_v9  ;;  %v18481_v3 = vunpack.i.l.bf16 %v18480_v9 }
0x3837   :  { %16492 = vmatprep.mubr.msk.f32.mxu1 %vm420_vm3, %v7664_v55 }
0x3838   :  { %16493 = vmatmul.mubr.msk.f32.vlgmr.msra.gmra.mrb[80].mxu1 %vm420_vm3, %v7666_v0  ;;  %v17653_v53 = vpack.c.bf16 %v18482_v11, %v18481_v3 }
0x3839   :  { %17636 = vmatpush3.bf16.msra.mxu1 %v17633_v7  ;;  %16503 = vmatprep.mubr.msk.f32.mxu1 %vm61_vm0, %v19876_v4 }
0x383a   :  { %17638 = vmatprep.subr.bf16.mxu1 %v17637_v6 }
0x383d   :  { %17640 = vmatpush3.bf16.msra.mxu1 %v17637_v6 }
0x383e   :  { %17650 = vmatprep.subr.bf16.mxu1 %v17649_v12 }
0x3840   :  { %16504 = vmatmul.mubr.msk.f32.vlgmr.msra.gmra.mrb[82].mxu1 %vm61_vm0, %v19880_v37 }
0x3841   :  { %17652 = vmatpush3.bf16.msra.mxu1 %v17649_v12  ;;  %16525 = vmatprep.mubr.msk.f32.mxu1 %vm61_vm0, %v19848_v13 }
0x3842   :  { %17654 = vmatprep.subr.bf16.mxu1 %v17653_v53 }
0x3845   :  { %17656 = vmatpush3.bf16.msra.mxu1 %v17653_v53 }
0x3848   :  { %16526 = vmatmul.mubr.msk.f32.vlgmr.msra.gmra.mrb[84].mxu1 %vm61_vm0, %v19854_v22 }
0x386c   :  { %v16516_v15 = vpop.f32.mrb[62].mxu0 }
0x386d   :  { %v7930_v16 = vadd.f32 %v16516_v15, %v7856_v28  ;;  %v7924_v30 = vpop.f32.mrb[63].mxu0 }
0x386e   :  { %v7925_v17 = vadd.f32 %v7924_v30, %v7856_v28 }
0x3870   :  { %v17657_v61 = vpack.c.bf16 %v7930_v16, %v7925_v17 }
0x3872   :  { %17659 = vmatprep.subr.msk.bf16.mxu0 %vm19129_vm2, %v17657_v61 }
0x3873   :  { %17662 = vmatpush3.bf16.xpose.msk.msra.mxu0 %vm19129_vm2, %v17657_v61 }
0x3874   :  { %16542 = vmatprep.subr.mxu0 %v7285_v59 }
0x390b   :  { %v19968_v18 = vpop.f32.mrb[80].mxu1 }
0x390c   :  { %v19970_v52 = vpop.f32.mrb[81].mxu1 }
0x3913   :  { %v16505_v20 = vpop.f32.mrb[82].mxu1 }
0x3914   :  { %v7834_v21 = vpop.f32.mrb[83].mxu1  ;;  %v7840_v26 = vadd.f32 %v16505_v20, %v7766_v56 }
0x3915   :  { %v7835_v23 = vadd.f32 %v7834_v21, %v7766_v56 }
0x3917   :  { %16532 = vmatprep.mubr.msk.f32.mxu0 %vm328_vm1, %v7835_v23 }
0x3918   :  { %16533 = vmatmul.mubr.msk.f32.vlgmr.msra.gmra.mrb[64].mxu0 %vm328_vm1, %v7840_v26 }
0x3919   :  { %16543 = vmatpush3.msra.mxu0 %v7285_v59 }
0x391b   :  { %v16527_v32 = vpop.f32.mrb[84].mxu1 }
0x391c   :  { %v8014_v33 = vpop.f32.mrb[85].mxu1 }
0x39eb   :  { %v16534_v24 = vpop.f32.mrb[64].mxu0 }
0x39ec   :  { %v8111_v25 = vmul.f32 0.35355338, %v16534_v24  ;;  %v8101_v36 = vpop.f32.mrb[65].mxu0  ;;  %v7284_v24 = vld [vmem:[#allocation2 + $0x1c0] sm:$0xff] }
0x39ed   :  { %v8110_v40 = vmul.f32 0.35355338, %v8101_v36  ;;  %16547 = vmatprep.subr.mxu0 %v7284_v24 }
0x39ee   :  { %v8113_v43 = vadd.f32 %v8111_v25, %v19913_v42 }
0x39ef   :  { %v8112_v45 = vadd.f32 %v8110_v40, %v19918_v14 }
0x39f0   :  { %v8117_v46 = vsel %vm420_vm3, %v8113_v43, -inf }
0x39f1   :  { %8118 = vmax.xlane.f32.xlu1 %v8117_v46  ;;  %v8114_v47 = vsel %vm420_vm3, %v8112_v45, -inf }
0x39f2   :  { %8115 = vmax.xlane.f32.xlu0 %v8114_v47 }
0x3a02   :  { %7945 = vrot.lane.b32.xlu1 %v19891_v51, %s19030_s22 }
0x3a06   :  { %18489 = vrot.lane.b32.xlu1 %v19834_v62, %s19034_s26 }
0x3a0a   :  { %18494 = vrot.lane.b32.xlu1 %v19932_v41, %s19034_s26 }
0x3a0e   :  { %8481 = vrot.lane.b32.xlu1 %v19891_v51, %s19034_s26 }
0x3a12   :  { %18504 = vrot.lane.b32.xlu1 %v19846_v19, %s19033_s25 }
0x3a7e   :  { %v8119_v48 = vpop.xlane.xlu1 %8118 }
0x3a7f   :  { %v8121_v49 = vsub.f32 %v8113_v43, %v8119_v48  ;;  %v8116_v58 = vpop.xlane.xlu0 %8115 }
0x3a80   :  { %v8120_v2 = vsub.f32 %v8112_v45, %v8116_v58 }
0x3a81   :  { %v8124_v38 = vmul.f32 1.442695, %v8121_v49 }
0x3a82   :  { %v8122_v44 = vmul.f32 1.442695, %v8120_v2  ;;  %v7946_v35 = vpop.permute.xlu1 %7945 }
0x3a83   :  { %v8015_v34 = vadd.f32 %v8014_v33, %v7946_v35  ;;  %v8020_v50 = vadd.f32 %v16527_v32, %v7946_v35 }
0x3a84   :  { %18881 = vpow2.f32 %v8122_v44 }
0x3a85   :  { %v17663_v7 = vpack.c.bf16 %v8020_v50, %v8015_v34  ;;  %18883 = vpow2.f32 %v8124_v38 }
0x3a86   :  { %v19990_v56 = vpop.permute.xlu1 %18489 }
0x3a87   :  { %17664 = vmatprep.subr.bf16.mxu1 %v17663_v7  ;;  %v18492_v46 = vunpack.i.h.bf16 %v19990_v56  ;;  %v18491_v47 = vunpack.i.l.bf16 %v19990_v56 }
0x3a88   :  { %17666 = vmatpush3.bf16.msra.mxu1 %v17663_v7 }
0x3a89   :  { %v17679_v58 = vpack.c.bf16 %v18492_v46, %v18491_v47 }
0x3a8a   :  { %v18495_v57 = vpop.permute.xlu1 %18494 }
0x3a8b   :  { %v18497_v8 = vunpack.i.h.bf16 %v18495_v57  ;;  %v18496_v39 = vunpack.i.l.bf16 %v18495_v57 }
0x3a8d   :  { %v17667_v29 = vpack.c.bf16 %v18497_v8, %v18496_v39 }
0x3a8e   :  { %v18882_v5 = vpop.eup %18881  ;;  %v8482_v1 = vpop.permute.xlu1 %8481 }
0x3a8f   :  { %v8126_v54 = vsel %vm420_vm3, %v18882_v5, 0.0  ;;  %v18884_v28 = vpop.eup %18883  ;;  %17668 = vmatprep.subr.bf16.mxu1 %v17667_v29 }
0x3a90   :  { %8127 = vadd.xlane.f32.xlu0 %v8126_v54  ;;  %v8129_v31 = vsel %vm420_vm3, %v18884_v28, 0.0 }
0x3a92   :  { %v18505_v53 = vpop.permute.xlu1 %18504 }
0x3a93   :  { %v18507_v30 = vunpack.i.h.bf16 %v18505_v53  ;;  %v18506_v17 = vunpack.i.l.bf16 %v18505_v53 }
0x3a94   :  { %8130 = vadd.xlane.f32.xlu0 %v8129_v31 }
0x3a95   :  { %v17683_v23 = vpack.c.bf16 %v18507_v30, %v18506_v17 }
0x3aaa   :  { %18484 = vrot.lane.b32.xlu0 %v19846_v19, %s19034_s26 }
0x3aae   :  { %18499 = vrot.lane.b32.xlu0 %v19946_v60, %s19034_s26 }
0x3ab2   :  { %8391 = vrot.lane.b32.xlu0 %v19902_v63, %s19034_s26 }
0x3ab6   :  { %18509 = vrot.lane.b32.xlu0 %v19834_v62, %s19033_s25 }
0x3b1d   :  { %v8128_v55 = vpop.xlane.xlu0 %8127 }
0x3b1e   :  { %18885 = vrcp.f32 %v8128_v55 }
0x3b21   :  { %v8131_v0 = vpop.xlane.xlu0 %8130 }
0x3b22   :  { %18887 = vrcp.f32 %v8131_v0 }
0x3b25   :  { %v18485_v10 = vpop.permute.xlu0 %18484 }
0x3b26   :  { %v18487_v25 = vunpack.i.h.bf16 %v18485_v10  ;;  %v18486_v36 = vunpack.i.l.bf16 %v18485_v10 }
0x3b28   :  { %v18886_v6 = vpop.eup %18885  ;;  %v17675_v45 = vpack.c.bf16 %v18487_v25, %v18486_v36 }
0x3b29   :  { %v8133_v9 = vmul.f32 %v18886_v6, %v18882_v5  ;;  %v18500_v11 = vpop.permute.xlu0 %18499 }
0x3b2a   :  { %v18502_v3 = vunpack.i.h.bf16 %v18500_v11  ;;  %v18501_v12 = vunpack.i.l.bf16 %v18500_v11 }
0x3b2b   :  { %16539 = vmatprep.mubr.msk.f32.mxu1 %vm420_vm3, %v8133_v9 }
0x3b2c   :  { %v18888_v15 = vpop.eup %18887  ;;  %v17671_v20 = vpack.c.bf16 %v18502_v3, %v18501_v12  ;;  %v7286_v12 = vld [vmem:[#allocation2 + $0x1d0] sm:$0xff] }
0x3b2d   :  { %v8135_v16 = vmul.f32 %v18888_v15, %v18884_v28  ;;  %v8392_v61 = vpop.permute.xlu0 %8391 }
0x3b2f   :  { %16540 = vmatmul.mubr.msk.f32.vlgmr.msra.gmra.mrb[86].mxu1 %vm420_vm3, %v8135_v16 }
0x3b30   :  { %17670 = vmatpush3.bf16.msra.mxu1 %v17667_v29  ;;  %16560 = vmatprep.mubr.msk.f32.mxu1 %vm61_vm0, %v19876_v4 }
0x3b31   :  { %17672 = vmatprep.subr.bf16.mxu1 %v17671_v20  ;;  %v18510_v21 = vpop.permute.xlu0 %18509 }
0x3b32   :  { %v18512_v26 = vunpack.i.h.bf16 %v18510_v21  ;;  %v18511_v32 = vunpack.i.l.bf16 %v18510_v21 }
0x3b34   :  { %17674 = vmatpush3.bf16.msra.mxu1 %v17671_v20  ;;  %v17687_v33 = vpack.c.bf16 %v18512_v26, %v18511_v32 }
0x3b35   :  { %17684 = vmatprep.subr.bf16.mxu1 %v17683_v23 }
0x3b37   :  { %16561 = vmatmul.mubr.msk.f32.vlgmr.msra.gmra.mrb[88].mxu1 %vm61_vm0, %v19880_v37 }
0x3b38   :  { %17686 = vmatpush3.bf16.msra.mxu1 %v17683_v23  ;;  %16582 = vmatprep.mubr.msk.f32.mxu1 %vm61_vm0, %v19848_v13 }
0x3b39   :  { %17688 = vmatprep.subr.bf16.mxu1 %v17687_v33 }
0x3b3c   :  { %17690 = vmatpush3.bf16.msra.mxu1 %v17687_v33 }
0x3b3f   :  { %16583 = vmatmul.mubr.msk.f32.vlgmr.msra.gmra.mrb[90].mxu1 %vm61_vm0, %v19854_v22 }
0x3c02   :  { %v16541_v40 = vpop.f32.mrb[86].mxu1 }
0x3c03   :  { %v8208_v43 = vpop.f32.mrb[87].mxu1 }
0x3c04   :  { %16544 = vmatprep.mubr.msk.f32.mxu0 %vm328_vm1, %v8208_v43 }
0x3c05   :  { %16545 = vmatmul.mubr.msk.f32.vlgmr.msra.gmra.mrb[66].mxu0 %vm328_vm1, %v16541_v40 }
0x3c06   :  { %16548 = vmatpush3.msra.mxu0 %v7284_v24  ;;  %16549 = vmatprep.mubr.msk.f32.mxu0 %vm328_vm1, %v19970_v52 }
0x3c07   :  { %17676 = vmatprep.subr.bf16.mxu0 %v17675_v45 }
0x3c0a   :  { %v16562_v48 = vpop.f32.mrb[88].mxu1 }
0x3c0b   :  { %v8460_v49 = vpop.f32.mrb[89].mxu1 }
0x3c0c   :  { %v8461_v52 = vadd.f32 %v8460_v49, %v8392_v61 }
0x3c0d   :  { %16550 = vmatmul.mubr.msk.f32.vlgmr.msra.gmra.mrb[66].mxu0 %vm328_vm1, %v19968_v18  ;;  %v8466_v18 = vadd.f32 %v16562_v48, %v8392_v61 }
0x3c0e   :  { %17678 = vmatpush3.bf16.msra.mxu0 %v17675_v45  ;;  %16571 = vmatprep.mubr.msk.f32.mxu0 %vm61_vm0, %v19848_v13 }
0x3c0f   :  { %17680 = vmatprep.subr.bf16.mxu0 %v17679_v58 }
0x3c12   :  { %17682 = vmatpush3.bf16.msra.mxu0 %v17679_v58  ;;  %v16584_v2 = vpop.f32.mrb[90].mxu1 }
0x3c13   :  { %v8640_v38 = vpop.f32.mrb[91].mxu1 }
0x3c15   :  { %16572 = vmatmul.mubr.msk.f32.vlgmr.msra.gmra.mrb[68].mxu0 %vm61_vm0, %v19854_v22 }
0x3c16   :  { %16589 = vmatprep.mubr.msk.f32.mxu0 %vm328_vm1, %v8461_v52 }
0x3ce8   :  { %v16573_v44 = vpop.f32.mrb[68].mxu0 }
0x3ce9   :  { %v8556_v35 = vadd.f32 %v16573_v44, %v8482_v1  ;;  %v8550_v34 = vpop.f32.mrb[69].mxu0 }
0x3cea   :  { %v8551_v50 = vadd.f32 %v8550_v34, %v8482_v1 }
0x3cec   :  { %v17691_v7 = vpack.c.bf16 %v8556_v35, %v8551_v50 }
0x3cee   :  { %17693 = vmatprep.subr.msk.bf16.mxu0 %vm19129_vm2, %v17691_v7 }
0x3cef   :  { %17696 = vmatpush3.bf16.xpose.msk.msra.mxu0 %vm19129_vm2, %v17691_v7 }
0x3cf0   :  { %16599 = vmatprep.subr.mxu0 %v7286_v12 }
0x3cf6   :  { %16590 = vmatmul.mubr.msk.f32.vlgmr.msra.gmra.mrb[70].mxu0 %vm328_vm1, %v8466_v18 }
0x3cf7   :  { %16600 = vmatpush3.msra.mxu0 %v7286_v12 }
0x3dc9   :  { %v16591_v5 = vpop.f32.mrb[70].mxu0 }
0x3dca   :  { %v8737_v54 = vmul.f32 0.35355338, %v16591_v5  ;;  %v8727_v28 = vpop.f32.mrb[71].mxu0 }
0x3dcb   :  { %v8736_v31 = vmul.f32 0.35355338, %v8727_v28 }
0x3dcc   :  { %v8739_v56 = vadd.f32 %v8737_v54, %v19913_v42 }
0x3dcd   :  { %v8738_v57 = vadd.f32 %v8736_v31, %v19918_v14 }
0x3dce   :  { %v8743_v8 = vsel %vm420_vm3, %v8739_v56, -inf }
0x3dcf   :  { %8744 = vmax.xlane.f32.xlu0 %v8743_v8  ;;  %v8740_v39 = vsel %vm420_vm3, %v8738_v57, -inf }
0x3dd0   :  { %8741 = vmax.xlane.f32.xlu1 %v8740_v39 }
0x3e5c   :  { %v8745_v29 = vpop.xlane.xlu0 %8744 }
0x3e5d   :  { %v8747_v59 = vsub.f32 %v8739_v56, %v8745_v29  ;;  %v8742_v55 = vpop.xlane.xlu1 %8741 }
0x3e5e   :  { %v8746_v0 = vsub.f32 %v8738_v57, %v8742_v55 }
0x3e5f   :  { %v8750_v1 = vmul.f32 1.442695, %v8747_v59 }
0x3e60   :  { %v8748_v10 = vmul.f32 1.442695, %v8746_v0 }
0x3e61   :  { %18889 = vpow2.f32 %v8750_v1 }
0x3e62   :  { %18891 = vpow2.f32 %v8748_v10 }
0x3e6b   :  { %v18890_v6 = vpop.eup %18889 }
0x3e6c   :  { %v18892_v9 = vpop.eup %18891  ;;  %v8755_v11 = vsel %vm420_vm3, %v18890_v6, 0.0 }
0x3e6d   :  { %8756 = vadd.xlane.f32.xlu1 %v8755_v11  ;;  %v8752_v3 = vsel %vm420_vm3, %v18892_v9, 0.0 }
0x3e6e   :  { %8753 = vadd.xlane.f32.xlu0 %v8752_v3 }
0x3e7e   :  { %18514 = vrot.lane.b32.xlu1 %v19846_v19, %s19037_s29 }
0x3e82   :  { %18519 = vrot.lane.b32.xlu1 %v19834_v62, %s19037_s29 }
0x3e84   :  { %8571 = vrot.lane.b32.xlu0 %v19891_v51, %s19033_s25 }
0x3e86   :  { %18529 = vrot.lane.b32.xlu1 %v19946_v60, %s19037_s29 }
0x3e88   :  { %18524 = vrot.lane.b32.xlu0 %v19932_v41, %s19037_s29 }
0x3e8a   :  { %8938 = vrot.lane.b32.xlu1 %v19902_v63, %s19037_s29 }
0x3e8c   :  { %9028 = vrot.lane.b32.xlu0 %v19891_v51, %s19037_s29 }
0x3e8e   :  { %18539 = vrot.lane.b32.xlu1 %v19834_v62, %s19036_s28 }
0x3e90   :  { %18534 = vrot.lane.b32.xlu0 %v19846_v19, %s19036_s28 }
0x3efa   :  { %v8757_v53 = vpop.xlane.xlu1 %8756 }
0x3efb   :  { %18893 = vrcp.f32 %v8757_v53  ;;  %v8754_v60 = vpop.xlane.xlu0 %8753 }
0x3efc   :  { %18895 = vrcp.f32 %v8754_v60 }
0x3efe   :  { %v18515_v41 = vpop.permute.xlu1 %18514 }
0x3eff   :  { %v8572_v15 = vpop.permute.xlu0 %8571  ;;  %v18517_v52 = vunpack.i.h.bf16 %v18515_v41  ;;  %v18516_v44 = vunpack.i.l.bf16 %v18515_v41 }
0x3f00   :  { %v8641_v16 = vadd.f32 %v8640_v38, %v8572_v15  ;;  %v8646_v63 = vadd.f32 %v16584_v2, %v8572_v15 }
0x3f01   :  { %v17709_v35 = vpack.c.bf16 %v18517_v52, %v18516_v44 }
0x3f02   :  { %v17697_v30 = vpack.c.bf16 %v8646_v63, %v8641_v16  ;;  %v18520_v17 = vpop.permute.xlu1 %18519 }
0x3f03   :  { %v18525_v61 = vpop.permute.xlu0 %18524  ;;  %17710 = vmatprep.subr.bf16.mxu0 %v17709_v35  ;;  %v18522_v34 = vunpack.i.h.bf16 %v18520_v17  ;;  %v18521_v50 = vunpack.i.l.bf16 %v18520_v17 }
0x3f04   :  { %17698 = vmatprep.subr.bf16.mxu1 %v17697_v30  ;;  %v18527_v20 = vunpack.i.h.bf16 %v18525_v61  ;;  %v18526_v62 = vunpack.i.l.bf16 %v18525_v61 }
0x3f05   :  { %v18894_v21 = vpop.eup %18893  ;;  %17700 = vmatpush3.bf16.msra.mxu1 %v17697_v30  ;;  %v17713_v5 = vpack.c.bf16 %v18522_v34, %v18521_v50 }
0x3f06   :  { %v18896_v19 = vpop.eup %18895  ;;  %v18530_v23 = vpop.permute.xlu1 %18529  ;;  %v17701_v26 = vpack.c.bf16 %v18527_v20, %v18526_v62  ;;  %v8761_v36 = vmul.f32 %v18894_v21, %v18890_v6 }
0x3f07   :  { %v9029_v32 = vpop.permute.xlu0 %9028  ;;  %v18532_v33 = vunpack.i.h.bf16 %v18530_v23  ;;  %v18531_v24 = vunpack.i.l.bf16 %v18530_v23  ;;  %v8759_v25 = vmul.f32 %v18896_v19, %v18892_v9  ;;  %v7287_v19 = vld [vmem:[#allocation2 + $0x1d8] sm:$0xff] }
0x3f08   :  { %17702 = vmatprep.subr.bf16.mxu1 %v17701_v26 }
0x3f09   :  { %16596 = vmatprep.mubr.msk.f32.mxu1 %vm420_vm3, %v8759_v25  ;;  %v17705_v40 = vpack.c.bf16 %v18532_v33, %v18531_v24 }
0x3f0a   :  { %16597 = vmatmul.mubr.msk.f32.vlgmr.msra.gmra.mrb[92].mxu1 %vm420_vm3, %v8761_v36  ;;  %v8939_v43 = vpop.permute.xlu1 %8938 }
0x3f0b   :  { %17704 = vmatpush3.bf16.msra.mxu1 %v17701_v26  ;;  %16612 = vmatprep.mubr.msk.f32.mxu1 %vm61_vm0, %v19876_v4  ;;  %v18535_v45 = vpop.permute.xlu0 %18534 }
0x3f0c   :  { %v18537_v46 = vunpack.i.h.bf16 %v18535_v45  ;;  %v18536_v47 = vunpack.i.l.bf16 %v18535_v45  ;;  %17706 = vmatprep.subr.bf16.mxu1 %v17705_v40 }
0x3f0e   :  { %v18540_v48 = vpop.permute.xlu1 %18539  ;;  %v17717_v49 = vpack.c.bf16 %v18537_v46, %v18536_v47 }
0x3f0f   :  { %17708 = vmatpush3.bf16.msra.mxu1 %v17705_v40  ;;  %v18542_v58 = vunpack.i.h.bf16 %v18540_v48  ;;  %v18541_v2 = vunpack.i.l.bf16 %v18540_v48 }
0x3f10   :  { %17718 = vmatprep.subr.bf16.mxu1 %v17717_v49 }
0x3f11   :  { %v17721_v38 = vpack.c.bf16 %v18542_v58, %v18541_v2 }
0x3f12   :  { %16613 = vmatmul.mubr.msk.f32.vlgmr.msra.gmra.mrb[94].mxu1 %vm61_vm0, %v19880_v37 }
0x3f13   :  { %17720 = vmatpush3.bf16.msra.mxu1 %v17717_v49  ;;  %16634 = vmatprep.mubr.msk.f32.mxu1 %vm61_vm0, %v19848_v13 }
0x3f14   :  { %17722 = vmatprep.subr.bf16.mxu1 %v17721_v38 }
0x3f17   :  { %17724 = vmatpush3.bf16.msra.mxu1 %v17721_v38 }
0x3f1a   :  { %16635 = vmatmul.mubr.msk.f32.vlgmr.msra.gmra.mrb[96].mxu1 %vm61_vm0, %v19854_v22 }
0x3fdd   :  { %v16598_v7 = vpop.f32.mrb[92].mxu1 }
0x3fde   :  { %v8834_v18 = vpop.f32.mrb[93].mxu1 }
0x3fdf   :  { %16601 = vmatprep.mubr.msk.f32.mxu0 %vm328_vm1, %v8834_v18 }
0x3fe0   :  { %16602 = vmatmul.mubr.msk.f32.vlgmr.msra.gmra.mrb[66].mxu0 %vm328_vm1, %v16598_v7 }
0x3fe1   :  { %17712 = vmatpush3.bf16.msra.mxu0 %v17709_v35  ;;  %16623 = vmatprep.mubr.msk.f32.mxu0 %vm61_vm0, %v19848_v13 }
0x3fe2   :  { %17714 = vmatprep.subr.bf16.mxu0 %v17713_v5 }
0x3fe5   :  { %v16614_v54 = vpop.f32.mrb[94].mxu1  ;;  %17716 = vmatpush3.bf16.msra.mxu0 %v17713_v5 }
0x3fe6   :  { %v9007_v28 = vpop.f32.mrb[95].mxu1  ;;  %v9013_v0 = vadd.f32 %v16614_v54, %v8939_v43 }
0x3fe7   :  { %v9008_v31 = vadd.f32 %v9007_v28, %v8939_v43  ;;  %v14853_v43 = vld [vmem:[%s20644_s5 + $0x16] ss:$0 sm:$0xff]  ;;  %v9522_v28 = vld [vmem:[#allocation2 + $0x1e8] sm:$0xff] }
0x3fe8   :  { %16624 = vmatmul.mubr.msk.f32.vlgmr.msra.gmra.mrb[72].mxu0 %vm61_vm0, %v19854_v22 }
0x3fe9   :  { %16641 = vmatprep.mubr.msk.f32.mxu0 %vm328_vm1, %v9008_v31  ;;  %v9523_v31 = vld [vmem:[#allocation2 + $0x1f0] sm:$0xff] }
0x3fed   :  { %v16636_v56 = vpop.f32.mrb[96].mxu1 }
0x3fee   :  { %v9187_v57 = vpop.f32.mrb[97].mxu1 }
0x40bb   :  { %v16625_v8 = vpop.f32.mrb[72].mxu0 }
0x40bc   :  { %v9103_v39 = vadd.f32 %v16625_v8, %v9029_v32  ;;  %v9097_v29 = vpop.f32.mrb[73].mxu0 }
0x40bd   :  { %v9098_v59 = vadd.f32 %v9097_v29, %v9029_v32  ;;  %v9527_v29 = vld [vmem:[#allocation2 + $0x208] sm:$0xff] }
0x40bf   :  { %v17725_v55 = vpack.c.bf16 %v9103_v39, %v9098_v59  ;;  %v9526_v39 = vld [vmem:[#allocation2 + $0x200] sm:$0xff]  ;;  %v9528_v59 = vld [vmem:[#allocation2 + $0x210] sm:$0xff] }
0x40c1   :  { %17727 = vmatprep.subr.msk.bf16.mxu0 %vm19129_vm2, %v17725_v55 }
0x40c2   :  { %17730 = vmatpush3.bf16.xpose.msk.msra.mxu0 %vm19129_vm2, %v17725_v55  ;;  %v17743_v55 = vpack.c.bf16 %v9527_v29, %v9526_v39  ;;  %v20130_v29 = vld [vmem:[%s20644_s5 + $0x1d] ss:$0 sm:$0xff] }
0x40c3   :  { %16651 = vmatprep.subr.mxu0 %v7287_v19 }
0x40c9   :  { %16642 = vmatmul.mubr.msk.f32.vlgmr.msra.gmra.mrb[74].mxu0 %vm328_vm1, %v9013_v0  ;;  %v9529_v0 = vld [vmem:[#allocation2 + $0x218] sm:$0xff] }
0x40ca   :  { %16652 = vmatpush3.msra.mxu0 %v7287_v19 }
0x40cb   :  { %17744 = vmatprep.subr.bf16.mxu0 %v17743_v55 }
0x419c   :  { %v16643_v1 = vpop.f32.mrb[74].mxu0 }
0x419d   :  { %v9284_v10 = vmul.f32 0.35355338, %v16643_v1  ;;  %v9274_v6 = vpop.f32.mrb[75].mxu0  ;;  %v17747_v1 = vpack.c.bf16 %v9529_v0, %v9528_v59 }
0x419e   :  { %v9283_v9 = vmul.f32 0.35355338, %v9274_v6  ;;  %v9531_v6 = vld [vmem:[#allocation2 + $0x228] sm:$0xff] }
0x419f   :  { %v9286_v11 = vadd.f32 %v9284_v10, %v19913_v42  ;;  %v9530_v10 = vld [vmem:[#allocation2 + $0x220] sm:$0xff] }
0x41a0   :  { %v9285_v3 = vadd.f32 %v9283_v9, %v19918_v14  ;;  %v17751_v9 = vpack.c.bf16 %v9531_v6, %v9530_v10 }
0x41a1   :  { %v9290_v12 = vsel %vm420_vm3, %v9286_v11, -inf }
0x41a2   :  { %9291 = vmax.xlane.f32.xlu1 %v9290_v12  ;;  %v9287_v53 = vsel %vm420_vm3, %v9285_v3, -inf }
0x41a3   :  { %9288 = vmax.xlane.f32.xlu0 %v9287_v53 }
0x41b3   :  { %9118 = vrot.lane.b32.xlu1 %v19891_v51, %s19036_s28 }
0x422f   :  { %v9292_v60 = vpop.xlane.xlu1 %9291 }
0x4230   :  { %v9294_v41 = vsub.f32 %v9286_v11, %v9292_v60  ;;  %v9289_v15 = vpop.xlane.xlu0 %9288 }
0x4231   :  { %v9293_v16 = vsub.f32 %v9285_v3, %v9289_v15 }
0x4232   :  { %v9297_v63 = vmul.f32 1.442695, %v9294_v41 }
0x4233   :  { %v9295_v30 = vmul.f32 1.442695, %v9293_v16  ;;  %v9119_v17 = vpop.permute.xlu1 %9118  ;;  %v14854_v16 = vld [vmem:[%s20644_s5 + $0x17] ss:$0 sm:$0xff] }
0x4234   :  { %v9188_v61 = vadd.f32 %v9187_v57, %v9119_v17  ;;  %v9193_v42 = vadd.f32 %v16636_v56, %v9119_v17  ;;  %v9524_v57 = vld [vmem:[#allocation2 + $0x1f8] sm:$0xff] }
0x4235   :  { %18897 = vpow2.f32 %v9295_v30  ;;  %v17739_v8 = vpack.c.bf16 %v9524_v57, %v9523_v31  ;;  %v14855_v30 = vld [vmem:[%s20644_s5 + $0x18] ss:$0 sm:$0xff]  ;;  %v9751_v31 = vld [vmem:[#allocation2 + $0x250] sm:$0xff] }
0x4236   :  { %v17731_v14 = vpack.c.bf16 %v9193_v42, %v9188_v61  ;;  %18899 = vpow2.f32 %v9297_v63 }
0x4238   :  { %17732 = vmatprep.subr.bf16.mxu1 %v17731_v14 }
0x4239   :  { %17734 = vmatpush3.bf16.msra.mxu1 %v17731_v14 }
0x423f   :  { %v18898_v20 = vpop.eup %18897 }
0x4240   :  { %v9299_v62 = vsel %vm420_vm3, %v18898_v20, 0.0  ;;  %v18900_v21 = vpop.eup %18899 }
0x4241   :  { %9300 = vadd.xlane.f32.xlu0 %v9299_v62  ;;  %v9302_v51 = vsel %vm420_vm3, %v18900_v21, 0.0 }
0x4245   :  { %9303 = vadd.xlane.f32.xlu0 %v9302_v51  ;;  %v9533_v51 = vld [vmem:[#allocation2 + $0x238] sm:$0xff] }
0x42ce   :  { %v9301_v23 = vpop.xlane.xlu0 %9300 }
0x42cf   :  { %18901 = vrcp.f32 %v9301_v23  ;;  %v14856_v23 = vld [vmem:[%s20644_s5 + $0x19] ss:$0 sm:$0xff] }
0x42d2   :  { %v9304_v26 = vpop.xlane.xlu0 %9303 }
0x42d3   :  { %18903 = vrcp.f32 %v9304_v26 }
0x42d9   :  { %v18902_v32 = vpop.eup %18901 }
0x42da   :  { %v9306_v33 = vmul.f32 %v18902_v32, %v18898_v20 }
0x42dc   :  { %16648 = vmatprep.mubr.msk.f32.mxu1 %vm420_vm3, %v9306_v33 }
0x42dd   :  { %v18904_v24 = vpop.eup %18903 }
0x42de   :  { %v9308_v25 = vmul.f32 %v18904_v24, %v18900_v21  ;;  %v9532_v21 = vld [vmem:[#allocation2 + $0x230] sm:$0xff] }
0x42df   :  { %v17755_v19 = vpack.c.bf16 %v9533_v51, %v9532_v21 }
0x42e0   :  { %16649 = vmatmul.mubr.msk.f32.vlgmr.msra.gmra.mrb[98].mxu1 %vm420_vm3, %v9308_v25 }
0x43b3   :  { %v16650_v36 = vpop.f32.mrb[98].mxu1 }
0x43b4   :  { %v9381_v40 = vpop.f32.mrb[99].mxu1 }
0x43b5   :  { %16653 = vmatprep.mubr.msk.f32.mxu0 %vm328_vm1, %v9381_v40  ;;  %v14859_v40 = vld [vmem:[%s20644_s5 + $0x1a] ss:$0 sm:$0xff] }
0x43b6   :  { %16654 = vmatmul.mubr.msk.f32.vlgmr.msra.gmra.mrb[66].mxu0 %vm328_vm1, %v16650_v36 }
0x43b7   :  { %17746 = vmatpush3.bf16.msra.mxu0 %v17743_v55 }
0x43b8   :  { %17748 = vmatprep.subr.bf16.mxu0 %v17747_v1 }
0x43bb   :  { %17750 = vmatpush3.bf16.msra.mxu0 %v17747_v1 }
0x43bc   :  { %17752 = vmatprep.subr.bf16.mxu0 %v17751_v9 }
0x43bf   :  { %17754 = vmatpush3.bf16.msra.mxu0 %v17751_v9 }
0x43c0   :  { %17756 = vmatprep.subr.bf16.mxu0 %v17755_v19 }
0x43c3   :  { %17758 = vmatpush3.bf16.msra.mxu0 %v17755_v19 }
0x4489   :  { %v16655_v45 = vpop.f32.mrb[66].mxu0 }
0x448a   :  { %v9462_v46 = vpop.f32.mrb[67].mxu0  ;;  %v9478_v47 = vadd.f32 %v16655_v45, %v14853_v43 }
0x448b   :  { %v9477_v48 = vadd.f32 %v14853_v43, %v9462_v46 }
0x448c   :  { %v9480_v58 = vadd.f32 %v9478_v47, %v19880_v37  ;;  %v9521_v37 = vld [vmem:[#allocation2 + $0x1e0] sm:$0xff] }
0x448d   :  { %v9479_v49 = vadd.f32 %v9477_v48, %v19876_v4  ;;  %v17735_v56 = vpack.c.bf16 %v9522_v28, %v9521_v37  ;;  %v9750_v37 = vld [vmem:[#allocation2 + $0x248] sm:$0xff] }
0x448e   :  { %v9486_v38 = vsel %vm61_vm0, %v9480_v58, 0.0 }
0x448f   :  { %v9483_v2 = vsel %vm61_vm0, %v9479_v49, 0.0  ;;  %17736 = vmatprep.subr.bf16.mxu1 %v17735_v56 }
0x4490   :  { %9484 = vadd.xlane.f32.xlu0 %v9483_v2  ;;  %17738 = vmatpush3.bf16.msra.mxu1 %v17735_v56  ;;  %v9752_v56 = vld [vmem:[#allocation2 + $0x258] sm:$0xff] }
0x4491   :  { %17740 = vmatprep.subr.bf16.mxu1 %v17739_v8  ;;  %v20119_v57 = vpack.i.bf16 %v9752_v56, %v9751_v31  ;;  %v17763_v39 = vpack.c.bf16 %v9752_v56, %v9751_v31 }
0x4494   :  { %9487 = vadd.xlane.f32.xlu0 %v9486_v38  ;;  %17742 = vmatpush3.bf16.msra.mxu1 %v17739_v8 }
0x451d   :  { %v9485_v52 = vpop.xlane.xlu0 %9484 }
0x451e   :  { %v9489_v44 = vmul.f32 0.03125, %v9485_v52 }
0x4520   :  { %v9491_v35 = vsub.f32 %v9479_v49, %v9489_v44 }
0x4521   :  { %v9488_v34 = vpop.xlane.xlu0 %9487 }
0x4522   :  { %v9490_v50 = vmul.f32 0.03125, %v9488_v34  ;;  %v9493_v7 = vmul.f32 %v9491_v35, %v9491_v35 }
0x4524   :  { %v9492_v18 = vsub.f32 %v9480_v58, %v9490_v50  ;;  %v9495_v5 = vsel %vm61_vm0, %v9493_v7, 0.0 }
0x4525   :  { %9496 = vadd.xlane.f32.xlu0 %v9495_v5 }
0x4526   :  { %v9494_v54 = vmul.f32 %v9492_v18, %v9492_v18 }
0x4528   :  { %v9498_v4 = vsel %vm61_vm0, %v9494_v54, 0.0 }
0x4529   :  { %9499 = vadd.xlane.f32.xlu0 %v9498_v4  ;;  %v9749_v4 = vld [vmem:[#allocation2 + $0x240] sm:$0xff] }
0x452a   :  { %v20115_v28 = vpack.i.bf16 %v9750_v37, %v9749_v4  ;;  %v17759_v8 = vpack.c.bf16 %v9750_v37, %v9749_v4 }
0x452c   :  { %17760 = vmatprep.subr.bf16.mxu1 %v17759_v8 }
0x45b2   :  { %v9497_v11 = vpop.xlane.xlu0 %9496 }
0x45b3   :  { %v9501_v3 = vmul.f32 0.03125, %v9497_v11 }
0x45b5   :  { %v9503_v12 = vadd.f32 1e-05, %v9501_v3 }
0x45b6   :  { %v9500_v53 = vpop.xlane.xlu0 %9499 }
0x45b7   :  { %18905 = vrsqrt.f32 %v9503_v12  ;;  %v9502_v60 = vmul.f32 0.03125, %v9500_v53 }
0x45b9   :  { %v9504_v41 = vadd.f32 1e-05, %v9502_v60 }
0x45bb   :  { %18907 = vrsqrt.f32 %v9504_v41  ;;  %v14862_v41 = vld [vmem:[%s20644_s5 + $0x1b] ss:$0 sm:$0xff] }
0x45c1   :  { %v18906_v15 = vpop.eup %18905 }
0x45c2   :  { %v9507_v63 = vmul.f32 %v18906_v15, %v9491_v35 }
0x45c4   :  { %v9513_v17 = vmul.f32 %v14854_v16, %v9507_v63  ;;  %v14863_v63 = vld [vmem:[%s20644_s5 + $0x1c] ss:$0 sm:$0xff] }
0x45c5   :  { %v18908_v61 = vpop.eup %18907 }
0x45c6   :  { %v9508_v42 = vmul.f32 %v18908_v61, %v9492_v18  ;;  %v9519_v14 = vadd.f32 %v14855_v30, %v9513_v17 }
0x45c8   :  { %v9514_v20 = vmul.f32 %v14854_v16, %v9508_v42  ;;  %16664 = vmatprep.mubr.msk.f32.mxu1 %vm61_vm0, %v9519_v14 }
0x45ca   :  { %v9520_v62 = vadd.f32 %v14855_v30, %v9514_v20 }
0x45cc   :  { %16665 = vmatmul.mubr.msk.f32.vlgmr.msra.gmra.mrb[100].mxu1 %vm61_vm0, %v9520_v62 }
0x45cd   :  { %17762 = vmatpush3.bf16.msra.mxu1 %v17759_v8 }
0x45ce   :  { %17764 = vmatprep.subr.bf16.mxu1 %v17763_v39 }
0x45d1   :  { %17766 = vmatpush3.bf16.msra.mxu1 %v17763_v39 }
0x469f   :  { %v16666_v26 = vpop.f32.mrb[100].mxu1 }
0x46a0   :  { %v9617_v32 = vadd.f32 %v16666_v26, %v14856_v23  ;;  %v9611_v33 = vpop.f32.mrb[101].mxu1 }
0x46a1   :  { %v9612_v24 = vadd.f32 %v14856_v23, %v9611_v33 }
0x46a2   :  { %v9621_v36 = vmax.f32 %v9617_v32, 0.0 }
0x46a3   :  { %v9620_v25 = vmax.f32 %v9612_v24, 0.0 }
0x46a5   :  { %16683 = vmatprep.mubr.msk.f32.mxu0 %vm2398_vm4, %v9620_v25 }
0x46a6   :  { %16684 = vmatmul.mubr.msk.f32.vlgmr.msra.gmra.mrb[76].mxu0 %vm2398_vm4, %v9621_v36 }
0x4779   :  { %v16685_v43 = vpop.f32.mrb[76].mxu0 }
0x477a   :  { %v9704_v45 = vadd.f32 %v16685_v43, %v14859_v40  ;;  %v9698_v46 = vpop.f32.mrb[77].mxu0 }
0x477b   :  { %v9699_v47 = vadd.f32 %v14859_v40, %v9698_v46 }
0x477c   :  { %v9708_v48 = vadd.f32 %v9704_v45, %v9520_v62 }
0x477d   :  { %v9707_v49 = vadd.f32 %v9699_v47, %v9519_v14 }
0x477e   :  { %v9714_v58 = vsel %vm61_vm0, %v9708_v48, 0.0 }
0x477f   :  { %9715 = vadd.xlane.f32.xlu0 %v9714_v58  ;;  %v9711_v2 = vsel %vm61_vm0, %v9707_v49, 0.0 }
0x4780   :  { %9712 = vadd.xlane.f32.xlu1 %v9711_v2 }
0x4791   :  { %9861 = vrot.lane.b32.xlu1 %v20130_v29, %s19028_s14 }
0x480c   :  { %v9716_v38 = vpop.xlane.xlu0 %9715 }
0x480d   :  { %v9718_v52 = vmul.f32 0.03125, %v9716_v38  ;;  %v9713_v44 = vpop.xlane.xlu1 %9712 }
0x480e   :  { %v9717_v35 = vmul.f32 0.03125, %v9713_v44 }
0x480f   :  { %v9720_v34 = vsub.f32 %v9708_v48, %v9718_v52 }
0x4810   :  { %v9719_v50 = vsub.f32 %v9707_v49, %v9717_v35 }
0x4811   :  { %v9722_v5 = vmul.f32 %v9720_v34, %v9720_v34  ;;  %v9862_v47 = vpop.permute.xlu1 %9861 }
0x4812   :  { %v9721_v7 = vmul.f32 %v9719_v50, %v9719_v50 }
0x4813   :  { %v9726_v54 = vsel %vm61_vm0, %v9722_v5, 0.0  ;;  %v20175_v5 = vld [vmem:[%s20641_s2] sm:$0xff] }
0x4814   :  { %v9723_v18 = vsel %vm61_vm0, %v9721_v7, 0.0  ;;  %v20169_v7 = vld [vmem:[%s20641_s2 + $0x8] sm:$0xff] }
0x4815   :  { %9724 = vadd.xlane.f32.xlu0 %v9723_v18 }
0x4819   :  { %9727 = vadd.xlane.f32.xlu0 %v9726_v54 }
0x482f   :  { %18544 = vrot.lane.b32.xlu0 %v20115_v28, %s19028_s14 }
0x4833   :  { %18549 = vrot.lane.b32.xlu0 %v20119_v57, %s19028_s14 }
0x4837   :  { %18554 = vrot.lane.b32.xlu0 %v20115_v28, %s19029_s17 }
0x483b   :  { %18559 = vrot.lane.b32.xlu0 %v20119_v57, %s19029_s17 }
0x48a2   :  { %v9725_v59 = vpop.xlane.xlu0 %9724 }
0x48a3   :  { %v9729_v55 = vmul.f32 0.03125, %v9725_v59 }
0x48a5   :  { %v9731_v0 = vadd.f32 1e-05, %v9729_v55 }
0x48a6   :  { %v9728_v1 = vpop.xlane.xlu0 %9727 }
0x48a7   :  { %18909 = vrsqrt.f32 %v9731_v0  ;;  %v9730_v10 = vmul.f32 0.03125, %v9728_v1 }
0x48a9   :  { %v9732_v6 = vadd.f32 1e-05, %v9730_v10 }
0x48aa   :  { %v18545_v9 = vpop.permute.xlu0 %18544 }
0x48ab   :  { %18911 = vrsqrt.f32 %v9732_v6  ;;  %v18547_v11 = vunpack.i.h.bf16 %v18545_v9  ;;  %v18546_v3 = vunpack.i.l.bf16 %v18545_v9 }
0x48ad   :  { %v17767_v12 = vpack.c.bf16 %v18547_v11, %v18546_v3 }
0x48ae   :  { %v18550_v53 = vpop.permute.xlu0 %18549 }
0x48af   :  { %17768 = vmatprep.subr.bf16.mxu1 %v17767_v12  ;;  %v18552_v21 = vunpack.i.h.bf16 %v18550_v53  ;;  %v18551_v51 = vunpack.i.l.bf16 %v18550_v53 }
0x48b1   :  { %v18910_v60 = vpop.eup %18909  ;;  %v17771_v25 = vpack.c.bf16 %v18552_v21, %v18551_v51 }
0x48b2   :  { %v9735_v15 = vmul.f32 %v18910_v60, %v9719_v50  ;;  %v18555_v16 = vpop.permute.xlu0 %18554 }
0x48b3   :  { %v18557_v30 = vunpack.i.h.bf16 %v18555_v16  ;;  %v18556_v17 = vunpack.i.l.bf16 %v18555_v16 }
0x48b4   :  { %v9741_v61 = vmul.f32 %v14862_v41, %v9735_v15 }
0x48b5   :  { %v18912_v42 = vpop.eup %18911  ;;  %v17775_v14 = vpack.c.bf16 %v18557_v30, %v18556_v17 }
0x48b6   :  { %v20140_v20 = vadd.f32 %v14863_v63, %v9741_v61  ;;  %v9736_v62 = vmul.f32 %v18912_v42, %v9720_v34  ;;  %v18560_v19 = vpop.permute.xlu0 %18559 }
0x48b7   :  { %v18562_v23 = vunpack.i.h.bf16 %v18560_v19  ;;  %v18561_v26 = vunpack.i.l.bf16 %v18560_v19  ;;  %17776 = vmatprep.subr.bf16.mxu0 %v17775_v14 }
0x48b8   :  { %v9742_v32 = vmul.f32 %v14862_v41, %v9736_v62  ;;  %16694 = vmatprep.mubr.msk.f32.mxu1 %vm61_vm0, %v20140_v20  ;;  %17778 = vmatpush3.bf16.msra.mxu0 %v17775_v14 }
0x48b9   :  { %16716 = vmatprep.mubr.msk.f32.mxu0 %vm61_vm0, %v20140_v20  ;;  %v17779_v33 = vpack.c.bf16 %v18562_v23, %v18561_v26 }
0x48ba   :  { %v20146_v24 = vadd.f32 %v14863_v63, %v9742_v32 }
0x48bb   :  { %17780 = vmatprep.subr.bf16.mxu0 %v17779_v33 }
0x48bc   :  { %16695 = vmatmul.mubr.msk.f32.vlgmr.msra.gmra.mrb[102].mxu1 %vm61_vm0, %v20146_v24  ;;  %17782 = vmatpush3.bf16.msra.mxu0 %v17779_v33 }
0x48bd   :  { %17770 = vmatpush3.bf16.msra.mxu1 %v17767_v12  ;;  %16705 = vmatprep.mubr.msk.f32.mxu1 %vm61_vm0, %v20140_v20 }
0x48be   :  { %17772 = vmatprep.subr.bf16.mxu1 %v17771_v25 }
0x48bf   :  { %16717 = vmatmul.mubr.msk.f32.vlgmr.msra.gmra.mrb[78].mxu0 %vm61_vm0, %v20146_v24 }
0x48c1   :  { %17774 = vmatpush3.bf16.msra.mxu1 %v17771_v25 }
0x48c4   :  { %16706 = vmatmul.mubr.msk.f32.vlgmr.msra.gmra.mrb[104].mxu1 %vm61_vm0, %v20146_v24 }
0x498f   :  { %v16696_v36 = vpop.f32.mrb[102].mxu1 }
0x4990   :  { %v9835_v40 = vpop.f32.mrb[103].mxu1  ;;  %v9841_v52 = vadd.f32 %v16696_v36, %v20130_v29 }
0x4991   :  { %v9836_v43 = vadd.f32 %v20130_v29, %v9835_v40 }
0x4992   :  { %v16718_v45 = vpop.f32.mrb[78].mxu0 }
0x4993   :  { %v10020_v46 = vpop.f32.mrb[79].mxu0  ;;  %16723 = vmatprep.mubr.msk.f32.mxu1 %vm328_vm1, %v9836_v43 }
0x4997   :  { %v16707_v48 = vpop.f32.mrb[104].mxu1 }
0x4998   :  { %v9936_v49 = vadd.f32 %v16707_v48, %v9862_v47  ;;  %v9930_v58 = vpop.f32.mrb[105].mxu1 }
0x4999   :  { %v9931_v2 = vadd.f32 %v9930_v58, %v9862_v47 }
0x499b   :  { %v17783_v38 = vpack.c.bf16 %v9936_v49, %v9931_v2 }
0x499d   :  { %17785 = vmatprep.subr.msk.bf16.mxu1 %vm19129_vm2, %v17783_v38 }
0x499e   :  { %17788 = vmatpush3.bf16.xpose.msk.msra.mxu1 %vm19129_vm2, %v17783_v38 }
0x49a5   :  { %16724 = vmatmul.mubr.msk.f32.vlgmr.msra.gmra.mrb[106].mxu1 %vm328_vm1, %v9841_v52 }
0x49a6   :  { %16741 = vmatprep.mubr.msk.f32.mxu1 %vm61_vm0, %v20140_v20 }
0x4a78   :  { %v16725_v44 = vpop.f32.mrb[106].mxu1 }
0x4a79   :  { %v10117_v35 = vmul.f32 0.35355338, %v16725_v44  ;;  %v10107_v34 = vpop.f32.mrb[107].mxu1 }
0x4a7a   :  { %v10116_v50 = vmul.f32 0.35355338, %v10107_v34 }
0x4a7b   :  { %v10119_v18 = vadd.f32 %v20169_v7, %v10117_v35 }
0x4a7c   :  { %v10118_v54 = vadd.f32 %v20175_v5, %v10116_v50 }
0x4a7d   :  { %v10123_v4 = vsel %vm420_vm3, %v10119_v18, -inf }
0x4a7e   :  { %10124 = vmax.xlane.f32.xlu1 %v10123_v4  ;;  %v10120_v37 = vsel %vm420_vm3, %v10118_v54, -inf }
0x4a7f   :  { %10121 = vmax.xlane.f32.xlu0 %v10120_v37 }
0x4a8f   :  { %18564 = vrot.lane.b32.xlu1 %v20115_v28, %s19030_s22 }
0x4a93   :  { %18569 = vrot.lane.b32.xlu1 %v20119_v57, %s19030_s22 }
0x4a97   :  { %18579 = vrot.lane.b32.xlu1 %v20119_v57, %s19031_s23 }
0x4a9b   :  { %10235 = vrot.lane.b32.xlu1 %v20130_v29, %s19031_s23 }
0x4a9f   :  { %18589 = vrot.lane.b32.xlu1 %v20119_v57, %s19032_s24 }
0x4b0b   :  { %v10125_v31 = vpop.xlane.xlu1 %10124 }
0x4b0c   :  { %v10127_v56 = vsub.f32 %v10119_v18, %v10125_v31  ;;  %v10122_v8 = vpop.xlane.xlu0 %10121 }
0x4b0d   :  { %v10126_v39 = vsub.f32 %v10118_v54, %v10122_v8 }
0x4b0e   :  { %v10130_v59 = vmul.f32 1.442695, %v10127_v56 }
0x4b0f   :  { %v10128_v55 = vmul.f32 1.442695, %v10126_v39  ;;  %v18565_v9 = vpop.permute.xlu1 %18564 }
0x4b10   :  { %18913 = vpow2.f32 %v10130_v59  ;;  %v18567_v60 = vunpack.i.h.bf16 %v18565_v9  ;;  %v18566_v41 = vunpack.i.l.bf16 %v18565_v9 }
0x4b11   :  { %18915 = vpow2.f32 %v10128_v55 }
0x4b12   :  { %v17801_v17 = vpack.c.bf16 %v18567_v60, %v18566_v41 }
0x4b13   :  { %v18570_v11 = vpop.permute.xlu1 %18569 }
0x4b14   :  { %v18572_v21 = vunpack.i.h.bf16 %v18570_v11  ;;  %v18571_v51 = vunpack.i.l.bf16 %v18570_v11 }
0x4b17   :  { %v18580_v53 = vpop.permute.xlu1 %18579 }
0x4b18   :  { %v18582_v42 = vunpack.i.h.bf16 %v18580_v53  ;;  %v18581_v14 = vunpack.i.l.bf16 %v18580_v53 }
0x4b1a   :  { %v18914_v0 = vpop.eup %18913  ;;  %v17797_v33 = vpack.c.bf16 %v18582_v42, %v18581_v14 }
0x4b1b   :  { %v10135_v1 = vsel %vm420_vm3, %v18914_v0, 0.0  ;;  %v18916_v10 = vpop.eup %18915  ;;  %v10236_v30 = vpop.permute.xlu1 %10235 }
0x4b1c   :  { %10136 = vadd.xlane.f32.xlu0 %v10135_v1  ;;  %v10132_v6 = vsel %vm420_vm3, %v18916_v10, 0.0 }
0x4b1f   :  { %v18590_v43 = vpop.permute.xlu1 %18589 }
0x4b20   :  { %10133 = vadd.xlane.f32.xlu0 %v10132_v6  ;;  %v18592_v47 = vunpack.i.h.bf16 %v18590_v43  ;;  %v18591_v48 = vunpack.i.l.bf16 %v18590_v43 }
0x4b22   :  { %v17813_v38 = vpack.c.bf16 %v18592_v47, %v18591_v48 }
0x4b36   :  { %9951 = vrot.lane.b32.xlu0 %v20130_v29, %s19029_s17 }
0x4b3a   :  { %18574 = vrot.lane.b32.xlu0 %v20115_v28, %s19031_s23 }
0x4b3e   :  { %10325 = vrot.lane.b32.xlu0 %v20130_v29, %s19030_s22 }
0x4b42   :  { %18584 = vrot.lane.b32.xlu0 %v20115_v28, %s19032_s24 }
0x4ba9   :  { %v10137_v3 = vpop.xlane.xlu0 %10136 }
0x4baa   :  { %18917 = vrcp.f32 %v10137_v3 }
0x4bad   :  { %v10134_v12 = vpop.xlane.xlu0 %10133 }
0x4bae   :  { %18919 = vrcp.f32 %v10134_v12 }
0x4bb1   :  { %v9952_v15 = vpop.permute.xlu0 %9951 }
0x4bb2   :  { %v10021_v16 = vadd.f32 %v10020_v46, %v9952_v15  ;;  %v10026_v63 = vadd.f32 %v16718_v45, %v9952_v15  ;;  %v17805_v45 = vpack.c.bf16 %v18572_v21, %v18571_v51 }
0x4bb4   :  { %v17789_v61 = vpack.c.bf16 %v10026_v63, %v10021_v16  ;;  %v18918_v26 = vpop.eup %18917 }
0x4bb5   :  { %v18575_v62 = vpop.permute.xlu0 %18574  ;;  %v10141_v46 = vmul.f32 %v18918_v26, %v18914_v0 }
0x4bb6   :  { %v18577_v19 = vunpack.i.h.bf16 %v18575_v62  ;;  %v18576_v23 = vunpack.i.l.bf16 %v18575_v62  ;;  %17790 = vmatprep.subr.bf16.mxu0 %v17789_v61 }
0x4bb7   :  { %17792 = vmatpush3.bf16.msra.mxu0 %v17789_v61 }
0x4bb8   :  { %v18920_v32 = vpop.eup %18919  ;;  %v17793_v25 = vpack.c.bf16 %v18577_v19, %v18576_v23  ;;  %17802 = vmatprep.subr.bf16.mxu0 %v17801_v17 }
0x4bb9   :  { %v10326_v36 = vpop.permute.xlu0 %10325  ;;  %v10139_v40 = vmul.f32 %v18920_v32, %v18916_v10 }
0x4bba   :  { %17794 = vmatprep.subr.bf16.mxu1 %v17793_v25 }
0x4bbb   :  { %16730 = vmatprep.mubr.msk.f32.mxu0 %vm420_vm3, %v10139_v40  ;;  %17796 = vmatpush3.bf16.msra.mxu1 %v17793_v25 }
0x4bbc   :  { %16731 = vmatmul.mubr.msk.f32.vlgmr.msra.gmra.mrb[80].mxu0 %vm420_vm3, %v10141_v46  ;;  %17798 = vmatprep.subr.bf16.mxu1 %v17797_v33 }
0x4bbd   :  { %17804 = vmatpush3.bf16.msra.mxu0 %v17801_v17  ;;  %16752 = vmatprep.mubr.msk.f32.mxu0 %vm61_vm0, %v20140_v20  ;;  %v18585_v49 = vpop.permute.xlu0 %18584 }
0x4bbe   :  { %v18587_v58 = vunpack.i.h.bf16 %v18585_v49  ;;  %v18586_v2 = vunpack.i.l.bf16 %v18585_v49  ;;  %17806 = vmatprep.subr.bf16.mxu0 %v17805_v45 }
0x4bbf   :  { %17800 = vmatpush3.bf16.msra.mxu1 %v17797_v33  ;;  %v9755_v33 = vld [vmem:[#allocation2 + $0x268] sm:$0xff] }
0x4bc0   :  { %v17809_v52 = vpack.c.bf16 %v18587_v58, %v18586_v2 }
0x4bc1   :  { %17808 = vmatpush3.bf16.msra.mxu0 %v17805_v45 }
0x4bc2   :  { %16742 = vmatmul.mubr.msk.f32.vlgmr.msra.gmra.mrb[108].mxu1 %vm61_vm0, %v20146_v24  ;;  %17810 = vmatprep.subr.bf16.mxu1 %v17809_v52 }
0x4bc3   :  { %17812 = vmatpush3.bf16.msra.mxu1 %v17809_v52  ;;  %16763 = vmatprep.mubr.msk.f32.mxu1 %vm61_vm0, %v20140_v20 }
0x4bc4   :  { %16753 = vmatmul.mubr.msk.f32.vlgmr.msra.gmra.mrb[82].mxu0 %vm61_vm0, %v20146_v24  ;;  %17814 = vmatprep.subr.bf16.mxu1 %v17813_v38 }
0x4bc7   :  { %17816 = vmatpush3.bf16.msra.mxu1 %v17813_v38 }
0x4bca   :  { %16764 = vmatmul.mubr.msk.f32.vlgmr.msra.gmra.mrb[110].mxu1 %vm61_vm0, %v20146_v24 }
0x4c8f   :  { %v20212_v44 = vpop.f32.mrb[80].mxu0 }
0x4c90   :  { %v20214_v35 = vpop.f32.mrb[81].mxu0 }
0x4c95   :  { %v16743_v34 = vpop.f32.mrb[108].mxu1 }
0x4c96   :  { %v10304_v50 = vpop.f32.mrb[109].mxu1  ;;  %v10310_v59 = vadd.f32 %v16743_v34, %v10236_v30 }
0x4c97   :  { %v10305_v18 = vadd.f32 %v10304_v50, %v10236_v30  ;;  %v16754_v54 = vpop.f32.mrb[82].mxu0 }
0x4c98   :  { %v10400_v4 = vadd.f32 %v16754_v54, %v10326_v36  ;;  %v10394_v37 = vpop.f32.mrb[83].mxu0 }
0x4c99   :  { %v10395_v31 = vadd.f32 %v10394_v37, %v10326_v36  ;;  %16770 = vmatprep.mubr.msk.f32.mxu0 %vm328_vm1, %v10305_v18 }
0x4c9b   :  { %v17817_v56 = vpack.c.bf16 %v10400_v4, %v10395_v31 }
0x4c9d   :  { %17819 = vmatprep.subr.msk.bf16.mxu0 %vm19129_vm2, %v17817_v56  ;;  %v16765_v8 = vpop.f32.mrb[110].mxu1 }
0x4c9e   :  { %17822 = vmatpush3.bf16.xpose.msk.msra.mxu0 %vm19129_vm2, %v17817_v56  ;;  %v10484_v39 = vpop.f32.mrb[111].mxu1 }
0x4c9f   :  { %16780 = vmatprep.subr.mxu0 %v9755_v33 }
0x4ca5   :  { %16771 = vmatmul.mubr.msk.f32.vlgmr.msra.gmra.mrb[84].mxu0 %vm328_vm1, %v10310_v59 }
0x4ca6   :  { %16781 = vmatpush3.msra.mxu0 %v9755_v33 }
0x4d78   :  { %v16772_v55 = vpop.f32.mrb[84].mxu0 }
0x4d79   :  { %v10581_v0 = vmul.f32 0.35355338, %v16772_v55  ;;  %v10571_v1 = vpop.f32.mrb[85].mxu0 }
0x4d7a   :  { %v10580_v10 = vmul.f32 0.35355338, %v10571_v1 }
0x4d7b   :  { %v10583_v6 = vadd.f32 %v20169_v7, %v10581_v0 }
0x4d7c   :  { %v10582_v9 = vadd.f32 %v20175_v5, %v10580_v10 }
0x4d7d   :  { %v10587_v11 = vsel %vm420_vm3, %v10583_v6, -inf }
0x4d7e   :  { %10588 = vmax.xlane.f32.xlu1 %v10587_v11  ;;  %v10584_v3 = vsel %vm420_vm3, %v10582_v9, -inf }
0x4d7f   :  { %10585 = vmax.xlane.f32.xlu0 %v10584_v3 }
0x4d8f   :  { %10415 = vrot.lane.b32.xlu1 %v20130_v29, %s19032_s24 }
0x4d93   :  { %18599 = vrot.lane.b32.xlu1 %v20119_v57, %s19033_s25 }
0x4d97   :  { %18604 = vrot.lane.b32.xlu1 %v20115_v28, %s19034_s26 }
0x4d9b   :  { %10951 = vrot.lane.b32.xlu1 %v20130_v29, %s19033_s25 }
0x4d9f   :  { %18614 = vrot.lane.b32.xlu1 %v20115_v28, %s19035_s27 }
0x4e0b   :  { %v10589_v12 = vpop.xlane.xlu1 %10588 }
0x4e0c   :  { %v10591_v53 = vsub.f32 %v10583_v6, %v10589_v12  ;;  %v10586_v60 = vpop.xlane.xlu0 %10585 }
0x4e0d   :  { %v10590_v41 = vsub.f32 %v10582_v9, %v10586_v60 }
0x4e0e   :  { %v10594_v15 = vmul.f32 1.442695, %v10591_v53 }
0x4e0f   :  { %v10592_v16 = vmul.f32 1.442695, %v10590_v41  ;;  %v10416_v63 = vpop.permute.xlu1 %10415 }
0x4e10   :  { %v10485_v30 = vadd.f32 %v10484_v39, %v10416_v63  ;;  %v10490_v17 = vadd.f32 %v16765_v8, %v10416_v63  ;;  %v9754_v8 = vld [vmem:[#allocation2 + $0x260] sm:$0xff] }
0x4e11   :  { %18921 = vpow2.f32 %v10592_v16  ;;  %16785 = vmatprep.subr.mxu0 %v9754_v8 }
0x4e12   :  { %v17823_v61 = vpack.c.bf16 %v10490_v17, %v10485_v30  ;;  %18923 = vpow2.f32 %v10594_v15 }
0x4e13   :  { %v20238_v51 = vpop.permute.xlu1 %18599 }
0x4e14   :  { %17824 = vmatprep.subr.bf16.mxu1 %v17823_v61  ;;  %v18602_v10 = vunpack.i.h.bf16 %v20238_v51  ;;  %v18601_v6 = vunpack.i.l.bf16 %v20238_v51 }
0x4e15   :  { %17826 = vmatpush3.bf16.msra.mxu1 %v17823_v61 }
0x4e16   :  { %v17839_v11 = vpack.c.bf16 %v18602_v10, %v18601_v6 }
0x4e17   :  { %v18605_v19 = vpop.permute.xlu1 %18604 }
0x4e18   :  { %v18607_v23 = vunpack.i.h.bf16 %v18605_v19  ;;  %v18606_v26 = vunpack.i.l.bf16 %v18605_v19 }
0x4e1a   :  { %v17827_v32 = vpack.c.bf16 %v18607_v23, %v18606_v26 }
0x4e1b   :  { %v18922_v42 = vpop.eup %18921  ;;  %v10952_v40 = vpop.permute.xlu1 %10951 }
0x4e1c   :  { %v10596_v14 = vsel %vm420_vm3, %v18922_v42, 0.0  ;;  %v18924_v62 = vpop.eup %18923  ;;  %17828 = vmatprep.subr.bf16.mxu1 %v17827_v32 }
0x4e1d   :  { %10597 = vadd.xlane.f32.xlu0 %v10596_v14  ;;  %v10599_v21 = vsel %vm420_vm3, %v18924_v62, 0.0 }
0x4e1f   :  { %v18615_v58 = vpop.permute.xlu1 %18614 }
0x4e20   :  { %v18617_v34 = vunpack.i.h.bf16 %v18615_v58  ;;  %v18616_v50 = vunpack.i.l.bf16 %v18615_v58 }
0x4e21   :  { %10600 = vadd.xlane.f32.xlu0 %v10599_v21 }
0x4e22   :  { %v17843_v54 = vpack.c.bf16 %v18617_v34, %v18616_v50 }
0x4e37   :  { %18594 = vrot.lane.b32.xlu0 %v20115_v28, %s19033_s25 }
0x4e3b   :  { %18609 = vrot.lane.b32.xlu0 %v20119_v57, %s19034_s26 }
0x4e3f   :  { %10861 = vrot.lane.b32.xlu0 %v20130_v29, %s19034_s26 }
0x4e43   :  { %18619 = vrot.lane.b32.xlu0 %v20119_v57, %s19035_s27 }
0x4eaa   :  { %v10598_v25 = vpop.xlane.xlu0 %10597 }
0x4eab   :  { %18925 = vrcp.f32 %v10598_v25 }
0x4eae   :  { %v10601_v36 = vpop.xlane.xlu0 %10600 }
0x4eaf   :  { %18927 = vrcp.f32 %v10601_v36 }
0x4eb2   :  { %v18595_v43 = vpop.permute.xlu0 %18594 }
0x4eb3   :  { %v18597_v39 = vunpack.i.h.bf16 %v18595_v43  ;;  %v18596_v59 = vunpack.i.l.bf16 %v18595_v43 }
0x4eb5   :  { %v18926_v45 = vpop.eup %18925  ;;  %v17835_v0 = vpack.c.bf16 %v18597_v39, %v18596_v59 }
0x4eb6   :  { %v10603_v46 = vmul.f32 %v18926_v45, %v18922_v42  ;;  %v18610_v47 = vpop.permute.xlu0 %18609 }
0x4eb7   :  { %v18612_v48 = vunpack.i.h.bf16 %v18610_v47  ;;  %v18611_v49 = vunpack.i.l.bf16 %v18610_v47 }
0x4eb8   :  { %16777 = vmatprep.mubr.msk.f32.mxu1 %vm420_vm3, %v10603_v46  ;;  %v9756_v46 = vld [vmem:[#allocation2 + $0x270] sm:$0xff] }
0x4eb9   :  { %v18928_v2 = vpop.eup %18927  ;;  %v17831_v38 = vpack.c.bf16 %v18612_v48, %v18611_v49 }
0x4eba   :  { %v10605_v52 = vmul.f32 %v18928_v2, %v18924_v62  ;;  %v10862_v18 = vpop.permute.xlu0 %10861 }
0x4ebc   :  { %16778 = vmatmul.mubr.msk.f32.vlgmr.msra.gmra.mrb[112].mxu1 %vm420_vm3, %v10605_v52 }
0x4ebd   :  { %17830 = vmatpush3.bf16.msra.mxu1 %v17827_v32  ;;  %16798 = vmatprep.mubr.msk.f32.mxu1 %vm61_vm0, %v20140_v20 }
0x4ebe   :  { %17832 = vmatprep.subr.bf16.mxu1 %v17831_v38  ;;  %v18620_v4 = vpop.permute.xlu0 %18619 }
0x4ebf   :  { %v18622_v37 = vunpack.i.h.bf16 %v18620_v4  ;;  %v18621_v31 = vunpack.i.l.bf16 %v18620_v4 }
0x4ec1   :  { %17834 = vmatpush3.bf16.msra.mxu1 %v17831_v38  ;;  %v17847_v56 = vpack.c.bf16 %v18622_v37, %v18621_v31 }
0x4ec2   :  { %17844 = vmatprep.subr.bf16.mxu1 %v17843_v54 }
0x4ec4   :  { %16799 = vmatmul.mubr.msk.f32.vlgmr.msra.gmra.mrb[114].mxu1 %vm61_vm0, %v20146_v24 }
0x4ec5   :  { %17846 = vmatpush3.bf16.msra.mxu1 %v17843_v54  ;;  %16820 = vmatprep.mubr.msk.f32.mxu1 %vm61_vm0, %v20140_v20 }
0x4ec6   :  { %17848 = vmatprep.subr.bf16.mxu1 %v17847_v56 }
0x4ec9   :  { %17850 = vmatpush3.bf16.msra.mxu1 %v17847_v56 }
0x4ecc   :  { %16821 = vmatmul.mubr.msk.f32.vlgmr.msra.gmra.mrb[116].mxu1 %vm61_vm0, %v20146_v24 }
0x4f8f   :  { %v16779_v55 = vpop.f32.mrb[112].mxu1 }
0x4f90   :  { %v10678_v1 = vpop.f32.mrb[113].mxu1 }
0x4f91   :  { %16782 = vmatprep.mubr.msk.f32.mxu0 %vm328_vm1, %v10678_v1 }
0x4f92   :  { %16783 = vmatmul.mubr.msk.f32.vlgmr.msra.gmra.mrb[86].mxu0 %vm328_vm1, %v16779_v55 }
0x4f93   :  { %16786 = vmatpush3.msra.mxu0 %v9754_v8  ;;  %16787 = vmatprep.mubr.msk.f32.mxu0 %vm328_vm1, %v20214_v35 }
0x4f94   :  { %17836 = vmatprep.subr.bf16.mxu0 %v17835_v0 }
0x4f97   :  { %v16800_v9 = vpop.f32.mrb[114].mxu1 }
0x4f98   :  { %v10930_v3 = vpop.f32.mrb[115].mxu1 }
0x4f99   :  { %v10931_v35 = vadd.f32 %v10930_v3, %v10862_v18 }
0x4f9a   :  { %16788 = vmatmul.mubr.msk.f32.vlgmr.msra.gmra.mrb[86].mxu0 %vm328_vm1, %v20212_v44  ;;  %v10936_v44 = vadd.f32 %v16800_v9, %v10862_v18 }
0x4f9b   :  { %17838 = vmatpush3.bf16.msra.mxu0 %v17835_v0  ;;  %16809 = vmatprep.mubr.msk.f32.mxu0 %vm61_vm0, %v20140_v20 }
0x4f9c   :  { %17840 = vmatprep.subr.bf16.mxu0 %v17839_v11 }
0x4f9f   :  { %17842 = vmatpush3.bf16.msra.mxu0 %v17839_v11  ;;  %v16822_v12 = vpop.f32.mrb[116].mxu1 }
0x4fa0   :  { %v11110_v53 = vpop.f32.mrb[117].mxu1 }
0x4fa2   :  { %16810 = vmatmul.mubr.msk.f32.vlgmr.msra.gmra.mrb[88].mxu0 %vm61_vm0, %v20146_v24 }
0x4fa3   :  { %16827 = vmatprep.mubr.msk.f32.mxu0 %vm328_vm1, %v10931_v35 }
0x5075   :  { %v16811_v60 = vpop.f32.mrb[88].mxu0 }
0x5076   :  { %v11026_v41 = vadd.f32 %v16811_v60, %v10952_v40  ;;  %v11020_v15 = vpop.f32.mrb[89].mxu0 }
0x5077   :  { %v11021_v16 = vadd.f32 %v11020_v15, %v10952_v40 }
0x5079   :  { %v17851_v63 = vpack.c.bf16 %v11026_v41, %v11021_v16 }
0x507b   :  { %17853 = vmatprep.subr.msk.bf16.mxu0 %vm19129_vm2, %v17851_v63 }
0x507c   :  { %17856 = vmatpush3.bf16.xpose.msk.msra.mxu0 %vm19129_vm2, %v17851_v63 }
0x507d   :  { %16837 = vmatprep.subr.mxu0 %v9756_v46 }
0x5083   :  { %16828 = vmatmul.mubr.msk.f32.vlgmr.msra.gmra.mrb[90].mxu0 %vm328_vm1, %v10936_v44 }
0x5084   :  { %16838 = vmatpush3.msra.mxu0 %v9756_v46 }
0x5156   :  { %v16829_v30 = vpop.f32.mrb[90].mxu0 }
0x5157   :  { %v11207_v17 = vmul.f32 0.35355338, %v16829_v30  ;;  %v11197_v61 = vpop.f32.mrb[91].mxu0 }
0x5158   :  { %v11206_v42 = vmul.f32 0.35355338, %v11197_v61 }
0x5159   :  { %v11209_v14 = vadd.f32 %v20169_v7, %v11207_v17 }
0x515a   :  { %v11208_v62 = vadd.f32 %v20175_v5, %v11206_v42 }
0x515b   :  { %v11213_v21 = vsel %vm420_vm3, %v11209_v14, -inf }
0x515c   :  { %11214 = vmax.xlane.f32.xlu0 %v11213_v21  ;;  %v11210_v51 = vsel %vm420_vm3, %v11208_v62, -inf }
0x515d   :  { %11211 = vmax.xlane.f32.xlu1 %v11210_v51 }
0x51e9   :  { %v11215_v19 = vpop.xlane.xlu0 %11214 }
0x51ea   :  { %v11217_v23 = vsub.f32 %v11209_v14, %v11215_v19  ;;  %v11212_v26 = vpop.xlane.xlu1 %11211 }
0x51eb   :  { %v11216_v32 = vsub.f32 %v11208_v62, %v11212_v26 }
0x51ec   :  { %v11220_v33 = vmul.f32 1.442695, %v11217_v23 }
0x51ed   :  { %v11218_v25 = vmul.f32 1.442695, %v11216_v32 }
0x51ee   :  { %18929 = vpow2.f32 %v11220_v33 }
0x51ef   :  { %18931 = vpow2.f32 %v11218_v25 }
0x51f8   :  { %v18930_v36 = vpop.eup %18929 }
0x51f9   :  { %v18932_v40 = vpop.eup %18931  ;;  %v11225_v43 = vsel %vm420_vm3, %v18930_v36, 0.0 }
0x51fa   :  { %11226 = vadd.xlane.f32.xlu1 %v11225_v43  ;;  %v11222_v45 = vsel %vm420_vm3, %v18932_v40, 0.0 }
0x51fb   :  { %11223 = vadd.xlane.f32.xlu0 %v11222_v45 }
0x520b   :  { %18624 = vrot.lane.b32.xlu1 %v20115_v28, %s19036_s28 }
0x520f   :  { %18629 = vrot.lane.b32.xlu1 %v20119_v57, %s19036_s28 }
0x5211   :  { %11041 = vrot.lane.b32.xlu0 %v20130_v29, %s19035_s27 }
0x5213   :  { %18639 = vrot.lane.b32.xlu1 %v20119_v57, %s19037_s29 }
0x5215   :  { %18634 = vrot.lane.b32.xlu0 %v20115_v28, %s19037_s29 }
0x5217   :  { %11408 = vrot.lane.b32.xlu1 %v20130_v29, %s19037_s29 }
0x5219   :  { %11498 = vrot.lane.b32.xlu0 %v20130_v29, %s19036_s28 }
0x521b   :  { %18649 = vrot.lane.b32.xlu1 %v20119_v57, %s19038_s30 }
0x521d   :  { %18644 = vrot.lane.b32.xlu0 %v20115_v28, %s19038_s30 }
0x5287   :  { %v11227_v47 = vpop.xlane.xlu1 %11226 }
0x5288   :  { %18933 = vrcp.f32 %v11227_v47  ;;  %v11224_v48 = vpop.xlane.xlu0 %11223 }
0x5289   :  { %18935 = vrcp.f32 %v11224_v48 }
0x528b   :  { %v18625_v49 = vpop.permute.xlu1 %18624 }
0x528c   :  { %v11042_v58 = vpop.permute.xlu0 %11041  ;;  %v18627_v2 = vunpack.i.h.bf16 %v18625_v49  ;;  %v18626_v38 = vunpack.i.l.bf16 %v18625_v49 }
0x528d   :  { %v11111_v52 = vadd.f32 %v11110_v53, %v11042_v58  ;;  %v11116_v34 = vadd.f32 %v16822_v12, %v11042_v58 }
0x528e   :  { %v17869_v50 = vpack.c.bf16 %v18627_v2, %v18626_v38 }
0x528f   :  { %v17857_v18 = vpack.c.bf16 %v11116_v34, %v11111_v52  ;;  %v18630_v54 = vpop.permute.xlu1 %18629 }
0x5290   :  { %v18635_v57 = vpop.permute.xlu0 %18634  ;;  %17870 = vmatprep.subr.bf16.mxu0 %v17869_v50  ;;  %v18632_v15 = vunpack.i.h.bf16 %v18630_v54  ;;  %v18631_v16 = vunpack.i.l.bf16 %v18630_v54 }
0x5291   :  { %17858 = vmatprep.subr.bf16.mxu1 %v17857_v18  ;;  %v18637_v28 = vunpack.i.h.bf16 %v18635_v57  ;;  %v18636_v4 = vunpack.i.l.bf16 %v18635_v57 }
0x5292   :  { %v18934_v37 = vpop.eup %18933  ;;  %17860 = vmatpush3.bf16.msra.mxu1 %v17857_v18  ;;  %v17873_v44 = vpack.c.bf16 %v18632_v15, %v18631_v16  ;;  %v20346_v16 = vld [vmem:[%s20644_s5 + $0x22] ss:$0 sm:$0xff] }
0x5293   :  { %v18936_v31 = vpop.eup %18935  ;;  %v17861_v56 = vpack.c.bf16 %v18637_v28, %v18636_v4  ;;  %v18640_v8 = vpop.permute.xlu1 %18639  ;;  %v11231_v1 = vmul.f32 %v18934_v37, %v18930_v36  ;;  %v9757_v28 = vld [vmem:[#allocation2 + $0x278] sm:$0xff] }
0x5294   :  { %v11499_v39 = vpop.permute.xlu0 %11498  ;;  %v18642_v59 = vunpack.i.h.bf16 %v18640_v8  ;;  %v18641_v55 = vunpack.i.l.bf16 %v18640_v8  ;;  %v11229_v0 = vmul.f32 %v18936_v31, %v18932_v40 }
0x5295   :  { %17862 = vmatprep.subr.bf16.mxu1 %v17861_v56 }
0x5296   :  { %v17865_v10 = vpack.c.bf16 %v18642_v59, %v18641_v55  ;;  %16834 = vmatprep.mubr.msk.f32.mxu1 %vm420_vm3, %v11229_v0  ;;  %v11991_v59 = vld [vmem:[#allocation2 + $0x2a0] sm:$0xff]  ;;  %v11992_v55 = vld [vmem:[#allocation2 + $0x2a8] sm:$0xff] }
0x5297   :  { %16835 = vmatmul.mubr.msk.f32.vlgmr.msra.gmra.mrb[118].mxu1 %vm420_vm3, %v11231_v1  ;;  %v11409_v6 = vpop.permute.xlu1 %11408  ;;  %v17903_v0 = vpack.c.bf16 %v11992_v55, %v11991_v59  ;;  %v11993_v1 = vld [vmem:[#allocation2 + $0x2b0] sm:$0xff] }
0x5298   :  { %17864 = vmatpush3.bf16.msra.mxu1 %v17861_v56  ;;  %16850 = vmatprep.mubr.msk.f32.mxu1 %vm61_vm0, %v20140_v20  ;;  %v18645_v9 = vpop.permute.xlu0 %18644 }
0x5299   :  { %v18647_v11 = vunpack.i.h.bf16 %v18645_v9  ;;  %v18646_v3 = vunpack.i.l.bf16 %v18645_v9  ;;  %17866 = vmatprep.subr.bf16.mxu1 %v17865_v10 }
0x529b   :  { %v17877_v12 = vpack.c.bf16 %v18647_v11, %v18646_v3  ;;  %v18650_v53 = vpop.permute.xlu1 %18649  ;;  %v14921_v3 = vld [vmem:[%s20644_s5 + $0x1e] ss:$0 sm:$0xff] }
0x529c   :  { %17868 = vmatpush3.bf16.msra.mxu1 %v17865_v10  ;;  %v18652_v35 = vunpack.i.h.bf16 %v18650_v53  ;;  %v18651_v60 = vunpack.i.l.bf16 %v18650_v53  ;;  %v11994_v10 = vld [vmem:[#allocation2 + $0x2b8] sm:$0xff] }
0x529d   :  { %17878 = vmatprep.subr.bf16.mxu1 %v17877_v12  ;;  %v17907_v11 = vpack.c.bf16 %v11994_v10, %v11993_v1 }
0x529e   :  { %v17881_v41 = vpack.c.bf16 %v18652_v35, %v18651_v60 }
0x529f   :  { %16851 = vmatmul.mubr.msk.f32.vlgmr.msra.gmra.mrb[120].mxu1 %vm61_vm0, %v20146_v24 }
0x52a0   :  { %17880 = vmatpush3.bf16.msra.mxu1 %v17877_v12  ;;  %16872 = vmatprep.mubr.msk.f32.mxu1 %vm61_vm0, %v20140_v20 }
0x52a1   :  { %17882 = vmatprep.subr.bf16.mxu1 %v17881_v41 }
0x52a4   :  { %17884 = vmatpush3.bf16.msra.mxu1 %v17881_v41 }
0x52a7   :  { %16873 = vmatmul.mubr.msk.f32.vlgmr.msra.gmra.mrb[122].mxu1 %vm61_vm0, %v20146_v24 }
0x536a   :  { %v16836_v63 = vpop.f32.mrb[118].mxu1 }
0x536b   :  { %v11304_v30 = vpop.f32.mrb[119].mxu1 }
0x536c   :  { %16839 = vmatprep.mubr.msk.f32.mxu0 %vm328_vm1, %v11304_v30 }
0x536d   :  { %16840 = vmatmul.mubr.msk.f32.vlgmr.msra.gmra.mrb[86].mxu0 %vm328_vm1, %v16836_v63 }
0x536e   :  { %17872 = vmatpush3.bf16.msra.mxu0 %v17869_v50  ;;  %16861 = vmatprep.mubr.msk.f32.mxu0 %vm61_vm0, %v20140_v20 }
0x536f   :  { %17874 = vmatprep.subr.bf16.mxu0 %v17873_v44 }
0x5372   :  { %v16852_v17 = vpop.f32.mrb[120].mxu1  ;;  %17876 = vmatpush3.bf16.msra.mxu0 %v17873_v44 }
0x5373   :  { %v11477_v61 = vpop.f32.mrb[121].mxu1  ;;  %v11483_v32 = vadd.f32 %v16852_v17, %v11409_v6 }
0x5374   :  { %v11478_v42 = vadd.f32 %v11477_v61, %v11409_v6 }
0x5375   :  { %16862 = vmatmul.mubr.msk.f32.vlgmr.msra.gmra.mrb[92].mxu0 %vm61_vm0, %v20146_v24 }
0x5376   :  { %16879 = vmatprep.mubr.msk.f32.mxu0 %vm328_vm1, %v11478_v42 }
0x537a   :  { %v16874_v14 = vpop.f32.mrb[122].mxu1 }
0x537b   :  { %v11657_v62 = vpop.f32.mrb[123].mxu1 }
0x5448   :  { %v16863_v21 = vpop.f32.mrb[92].mxu0 }
0x5449   :  { %v11573_v51 = vadd.f32 %v16863_v21, %v11499_v39  ;;  %v11567_v19 = vpop.f32.mrb[93].mxu0 }
0x544a   :  { %v11568_v23 = vadd.f32 %v11567_v19, %v11499_v39 }
0x544c   :  { %v17885_v26 = vpack.c.bf16 %v11573_v51, %v11568_v23 }
0x544e   :  { %17887 = vmatprep.subr.msk.bf16.mxu0 %vm19129_vm2, %v17885_v26 }
0x544f   :  { %17890 = vmatpush3.bf16.xpose.msk.msra.mxu0 %vm19129_vm2, %v17885_v26 }
0x5450   :  { %16889 = vmatprep.subr.mxu0 %v9757_v28 }
0x5456   :  { %16880 = vmatmul.mubr.msk.f32.vlgmr.msra.gmra.mrb[94].mxu0 %vm328_vm1, %v11483_v32 }
0x5457   :  { %16890 = vmatpush3.msra.mxu0 %v9757_v28  ;;  %v14923_v28 = vld [vmem:[%s20644_s5 + $0x20] ss:$0 sm:$0xff] }
0x5458   :  { %17904 = vmatprep.subr.bf16.mxu0 %v17903_v0 }
0x5529   :  { %v16881_v33 = vpop.f32.mrb[94].mxu0 }
0x552a   :  { %v11754_v25 = vmul.f32 0.35355338, %v16881_v33  ;;  %v11744_v36 = vpop.f32.mrb[95].mxu0 }
0x552b   :  { %v11753_v40 = vmul.f32 0.35355338, %v11744_v36  ;;  %v20362_v36 = vpack.i.bf16 %v11994_v10, %v11993_v1  ;;  %v20399_v10 = vld [vmem:[%s20644_s5 + $0x21] ss:$0 sm:$0xff] }
0x552c   :  { %v11756_v43 = vadd.f32 %v20169_v7, %v11754_v25 }
0x552d   :  { %v11755_v45 = vadd.f32 %v20175_v5, %v11753_v40  ;;  %v20366_v40 = vld [vmem:[#allocation2 + $0x280] sm:$0xff] }
0x552e   :  { %v11760_v46 = vsel %vm420_vm3, %v11756_v43, -inf }
0x552f   :  { %11761 = vmax.xlane.f32.xlu1 %v11760_v46  ;;  %v11757_v47 = vsel %vm420_vm3, %v11755_v45, -inf  ;;  %v20372_v46 = vld [vmem:[#allocation2 + $0x290] sm:$0xff] }
0x5530   :  { %11758 = vmax.xlane.f32.xlu0 %v11757_v47  ;;  %v20374_v47 = vld [vmem:[#allocation2 + $0x298] sm:$0xff] }
0x5540   :  { %11588 = vrot.lane.b32.xlu1 %v20130_v29, %s19038_s30 }
0x55bc   :  { %v11762_v48 = vpop.xlane.xlu1 %11761 }
0x55bd   :  { %v11764_v49 = vsub.f32 %v11756_v43, %v11762_v48  ;;  %v11759_v58 = vpop.xlane.xlu0 %11758  ;;  %v20368_v43 = vld [vmem:[#allocation2 + $0x288] sm:$0xff] }
0x55be   :  { %v11763_v2 = vsub.f32 %v11755_v45, %v11759_v58  ;;  %v17895_v45 = vpack.c.bf16 %v20368_v43, %v20366_v40 }
0x55bf   :  { %v11767_v38 = vmul.f32 1.442695, %v11764_v49  ;;  %v17899_v49 = vpack.c.bf16 %v20374_v47, %v20372_v46 }
0x55c0   :  { %v11765_v52 = vmul.f32 1.442695, %v11763_v2  ;;  %v11589_v34 = vpop.permute.xlu1 %11588 }
0x55c1   :  { %v11658_v50 = vadd.f32 %v11657_v62, %v11589_v34  ;;  %v11663_v7 = vadd.f32 %v16874_v14, %v11589_v34 }
0x55c2   :  { %18937 = vpow2.f32 %v11765_v52 }
0x55c3   :  { %v17891_v5 = vpack.c.bf16 %v11663_v7, %v11658_v50  ;;  %18939 = vpow2.f32 %v11767_v38 }
0x55c5   :  { %17892 = vmatprep.subr.bf16.mxu1 %v17891_v5 }
0x55c6   :  { %17894 = vmatpush3.bf16.msra.mxu1 %v17891_v5 }
0x55c7   :  { %17896 = vmatprep.subr.bf16.mxu1 %v17895_v45 }
0x55cc   :  { %v18938_v18 = vpop.eup %18937 }
0x55cd   :  { %v11769_v54 = vsel %vm420_vm3, %v18938_v18, 0.0  ;;  %v18940_v57 = vpop.eup %18939 }
0x55ce   :  { %11770 = vadd.xlane.f32.xlu0 %v11769_v54  ;;  %v11772_v29 = vsel %vm420_vm3, %v18940_v57, 0.0 }
0x55d2   :  { %11773 = vadd.xlane.f32.xlu0 %v11772_v29 }
0x565b   :  { %v11771_v4 = vpop.xlane.xlu0 %11770 }
0x565c   :  { %18941 = vrcp.f32 %v11771_v4 }
0x565f   :  { %v11774_v37 = vpop.xlane.xlu0 %11773 }
0x5660   :  { %18943 = vrcp.f32 %v11774_v37 }
0x5666   :  { %v18942_v31 = vpop.eup %18941 }
0x5667   :  { %v11776_v56 = vmul.f32 %v18942_v31, %v18938_v18 }
0x5669   :  { %16886 = vmatprep.mubr.msk.f32.mxu1 %vm420_vm3, %v11776_v56 }
0x566a   :  { %v18944_v8 = vpop.eup %18943 }
0x566b   :  { %v11778_v39 = vmul.f32 %v18944_v8, %v18940_v57  ;;  %v14922_v57 = vld [vmem:[%s20644_s5 + $0x1f] ss:$0 sm:$0xff] }
0x566d   :  { %16887 = vmatmul.mubr.msk.f32.vlgmr.msra.gmra.mrb[124].mxu1 %vm420_vm3, %v11778_v39 }
0x566e   :  { %17898 = vmatpush3.bf16.msra.mxu1 %v17895_v45 }
0x566f   :  { %17900 = vmatprep.subr.bf16.mxu1 %v17899_v49 }
0x5672   :  { %17902 = vmatpush3.bf16.msra.mxu1 %v17899_v49 }
0x5740   :  { %v16888_v6 = vpop.f32.mrb[124].mxu1 }
0x5741   :  { %v11851_v9 = vpop.f32.mrb[125].mxu1 }
0x5742   :  { %16891 = vmatprep.mubr.msk.f32.mxu0 %vm328_vm1, %v11851_v9 }
0x5743   :  { %16892 = vmatmul.mubr.msk.f32.vlgmr.msra.gmra.mrb[86].mxu0 %vm328_vm1, %v16888_v6 }
0x5744   :  { %17906 = vmatpush3.bf16.msra.mxu0 %v17903_v0  ;;  %16913 = vmatprep.mubr.msk.f32.mxu0 %vm61_vm0, %v19848_v13 }
0x5745   :  { %17908 = vmatprep.subr.bf16.mxu0 %v17907_v11 }
0x5748   :  { %17910 = vmatpush3.bf16.msra.mxu0 %v17907_v11 }
0x574b   :  { %16914 = vmatmul.mubr.msk.f32.vlgmr.msra.gmra.mrb[96].mxu0 %vm61_vm0, %v19854_v22 }
0x5816   :  { %v16893_v12 = vpop.f32.mrb[86].mxu0 }
0x5817   :  { %v11932_v53 = vpop.f32.mrb[87].mxu0  ;;  %v11948_v35 = vadd.f32 %v16893_v12, %v14921_v3 }
0x5818   :  { %v11947_v60 = vadd.f32 %v14921_v3, %v11932_v53 }
0x5819   :  { %v11950_v15 = vadd.f32 %v11948_v35, %v20146_v24  ;;  %v20356_v24 = vpack.i.bf16 %v11992_v55, %v11991_v59 }
0x581a   :  { %v11949_v41 = vadd.f32 %v11947_v60, %v20140_v20 }
0x581b   :  { %v11956_v42 = vsel %vm61_vm0, %v11950_v15, 0.0  ;;  %18654 = vrot.lane.b32.xlu1 %v20356_v24, %s19028_s14 }
0x581c   :  { %v11953_v63 = vsel %vm61_vm0, %v11949_v41, 0.0 }
0x581d   :  { %11954 = vadd.xlane.f32.xlu0 %v11953_v63  ;;  %v20410_v63 = vld [vmem:[%s20642_s3 + $0x8] sm:$0xff] }
0x581e   :  { %v16915_v44 = vpop.f32.mrb[96].mxu0 }
0x581f   :  { %v12167_v30 = vadd.f32 %v16915_v44, %v20346_v16  ;;  %v12161_v17 = vpop.f32.mrb[97].mxu0 }
0x5820   :  { %v12162_v61 = vadd.f32 %v20346_v16, %v12161_v17 }
0x5821   :  { %11957 = vadd.xlane.f32.xlu0 %v11956_v42 }
0x5822   :  { %v17919_v20 = vpack.c.bf16 %v12167_v30, %v12162_v61  ;;  %v20416_v30 = vld [vmem:[%s20642_s3] sm:$0xff] }
0x5824   :  { %17921 = vmatprep.subr.msk.bf16.mxu0 %vm19129_vm2, %v17919_v20 }
0x5825   :  { %17924 = vmatpush3.bf16.xpose.msk.msra.mxu0 %vm19129_vm2, %v17919_v20  ;;  %v20429_v20 = vpack.i.bf16 %v20368_v43, %v20366_v40 }
0x588d   :  { %v18655_v48 = vpop.permute.xlu1 %18654 }
0x588e   :  { %v18657_v58 = vunpack.i.h.bf16 %v18655_v48  ;;  %v18656_v2 = vunpack.i.l.bf16 %v18655_v48 }
0x5890   :  { %v17911_v38 = vpack.c.bf16 %v18657_v58, %v18656_v2 }
0x5892   :  { %17912 = vmatprep.subr.bf16.mxu1 %v17911_v38 }
0x58aa   :  { %v11955_v14 = vpop.xlane.xlu0 %11954 }
0x58ab   :  { %v11959_v62 = vmul.f32 0.03125, %v11955_v14 }
0x58ad   :  { %v11961_v21 = vsub.f32 %v11949_v41, %v11959_v62 }
0x58ae   :  { %v11958_v51 = vpop.xlane.xlu0 %11957 }
0x58af   :  { %v11960_v19 = vmul.f32 0.03125, %v11958_v51  ;;  %v11963_v23 = vmul.f32 %v11961_v21, %v11961_v21 }
0x58b1   :  { %v11962_v26 = vsub.f32 %v11950_v15, %v11960_v19  ;;  %v11965_v32 = vsel %vm61_vm0, %v11963_v23, 0.0 }
0x58b2   :  { %11966 = vadd.xlane.f32.xlu0 %v11965_v32 }
0x58b3   :  { %v11964_v33 = vmul.f32 %v11962_v26, %v11962_v26 }
0x58b5   :  { %v11968_v25 = vsel %vm61_vm0, %v11964_v33, 0.0 }
0x58b6   :  { %11969 = vadd.xlane.f32.xlu0 %v11968_v25 }
0x58cc   :  { %18659 = vrot.lane.b32.xlu0 %v20362_v36, %s19028_s14 }
0x593f   :  { %v11967_v52 = vpop.xlane.xlu0 %11966 }
0x5940   :  { %v11971_v34 = vmul.f32 0.03125, %v11967_v52 }
0x5942   :  { %v11973_v50 = vadd.f32 1e-05, %v11971_v34 }
0x5943   :  { %v11970_v7 = vpop.xlane.xlu0 %11969 }
0x5944   :  { %18945 = vrsqrt.f32 %v11973_v50  ;;  %v11972_v5 = vmul.f32 0.03125, %v11970_v7 }
0x5946   :  { %v11974_v18 = vadd.f32 1e-05, %v11972_v5 }
0x5947   :  { %v18660_v4 = vpop.permute.xlu0 %18659 }
0x5948   :  { %18947 = vrsqrt.f32 %v11974_v18  ;;  %v18662_v39 = vunpack.i.h.bf16 %v18660_v4  ;;  %v18661_v59 = vunpack.i.l.bf16 %v18660_v4 }
0x594a   :  { %v17915_v0 = vpack.c.bf16 %v18662_v39, %v18661_v59 }
0x594e   :  { %v18946_v54 = vpop.eup %18945 }
0x594f   :  { %v11977_v29 = vmul.f32 %v18946_v54, %v11961_v21 }
0x5951   :  { %v11983_v37 = vmul.f32 %v14922_v57, %v11977_v29  ;;  %v20443_v29 = vpack.i.bf16 %v20374_v47, %v20372_v46 }
0x5952   :  { %v18948_v31 = vpop.eup %18947 }
0x5953   :  { %v11978_v56 = vmul.f32 %v18948_v31, %v11962_v26  ;;  %v20384_v8 = vadd.f32 %v14923_v28, %v11983_v37 }
0x5955   :  { %16902 = vmatprep.mubr.msk.f32.mxu1 %vm61_vm0, %v20384_v8  ;;  %v11984_v55 = vmul.f32 %v14922_v57, %v11978_v56 }
0x5957   :  { %v20388_v1 = vadd.f32 %v14923_v28, %v11984_v55 }
0x5959   :  { %16903 = vmatmul.mubr.msk.f32.vlgmr.msra.gmra.mrb[126].mxu1 %vm61_vm0, %v20388_v1 }
0x595a   :  { %17914 = vmatpush3.bf16.msra.mxu1 %v17911_v38  ;;  %16924 = vmatprep.mubr.msk.f32.mxu1 %vm61_vm0, %v19848_v13 }
0x595b   :  { %17916 = vmatprep.subr.bf16.mxu1 %v17915_v0 }
0x595e   :  { %17918 = vmatpush3.bf16.msra.mxu1 %v17915_v0 }
0x5961   :  { %16925 = vmatmul.mubr.msk.f32.vlgmr.msra.gmra.mrb[128].mxu1 %vm61_vm0, %v19854_v22 }
0x5a2c   :  { %v16904_v6 = vpop.f32.mrb[126].mxu1 }
0x5a2d   :  { %v12082_v9 = vpop.f32.mrb[127].mxu1  ;;  %v12088_v3 = vadd.f32 %v16904_v6, %v20399_v10 }
0x5a2e   :  { %v12083_v11 = vadd.f32 %v20399_v10, %v12082_v9 }
0x5a30   :  { %16931 = vmatprep.mubr.msk.f32.mxu0 %vm328_vm1, %v12083_v11 }
0x5a31   :  { %16932 = vmatmul.mubr.msk.f32.vlgmr.msra.gmra.mrb[98].mxu0 %vm328_vm1, %v12088_v3 }
0x5a32   :  { %16960 = vmatprep.mubr.msk.f32.mxu0 %vm61_vm0, %v19848_v13 }
0x5a34   :  { %v16926_v12 = vpop.f32.mrb[128].mxu1 }
0x5a35   :  { %v12256_v53 = vpop.f32.mrb[129].mxu1 }
0x5b04   :  { %v16933_v35 = vpop.f32.mrb[98].mxu0 }
0x5b05   :  { %v12353_v60 = vmul.f32 0.35355338, %v16933_v35  ;;  %v12343_v41 = vpop.f32.mrb[99].mxu0 }
0x5b06   :  { %v12352_v15 = vmul.f32 0.35355338, %v12343_v41 }
0x5b07   :  { %v12355_v44 = vadd.f32 %v20410_v63, %v12353_v60 }
0x5b08   :  { %v12354_v17 = vadd.f32 %v20416_v30, %v12352_v15 }
0x5b09   :  { %v12359_v61 = vsel %vm420_vm3, %v12355_v44, -inf }
0x5b0a   :  { %12360 = vmax.xlane.f32.xlu0 %v12359_v61  ;;  %v12356_v42 = vsel %vm420_vm3, %v12354_v17, -inf }
0x5b0b   :  { %12357 = vmax.xlane.f32.xlu1 %v12356_v42 }
0x5b1c   :  { %18664 = vrot.lane.b32.xlu1 %v20356_v24, %s19031_s23 }
0x5b20   :  { %12187 = vrot.lane.b32.xlu0 %v20346_v16, %s19028_s14  ;;  %18669 = vrot.lane.b32.xlu1 %v20362_v36, %s19031_s23 }
0x5b24   :  { %18674 = vrot.lane.b32.xlu1 %v20429_v20, %s19031_s23  ;;  %12566 = vrot.lane.b32.xlu0 %v20346_v16, %s19031_s23 }
0x5b28   :  { %18684 = vrot.lane.b32.xlu0 %v20356_v24, %s19030_s22 }
0x5b97   :  { %v12361_v14 = vpop.xlane.xlu0 %12360 }
0x5b98   :  { %v12363_v62 = vsub.f32 %v12355_v44, %v12361_v14  ;;  %v12358_v21 = vpop.xlane.xlu1 %12357 }
0x5b99   :  { %v12362_v51 = vsub.f32 %v12354_v17, %v12358_v21 }
0x5b9a   :  { %v12366_v19 = vmul.f32 1.442695, %v12363_v62 }
0x5b9b   :  { %v12364_v23 = vmul.f32 1.442695, %v12362_v51  ;;  %v12188_v26 = vpop.permute.xlu0 %12187 }
0x5b9c   :  { %18949 = vpow2.f32 %v12366_v19  ;;  %v12257_v32 = vadd.f32 %v12256_v53, %v12188_v26  ;;  %v12262_v33 = vadd.f32 %v16926_v12, %v12188_v26  ;;  %v18665_v25 = vpop.permute.xlu1 %18664 }
0x5b9d   :  { %v18667_v40 = vunpack.i.h.bf16 %v18665_v25  ;;  %v18666_v43 = vunpack.i.l.bf16 %v18665_v25  ;;  %18951 = vpow2.f32 %v12364_v23 }
0x5b9e   :  { %v17925_v45 = vpack.c.bf16 %v12262_v33, %v12257_v32 }
0x5b9f   :  { %v17937_v48 = vpack.c.bf16 %v18667_v40, %v18666_v43  ;;  %v12567_v31 = vpop.permute.xlu0 %12566 }
0x5ba0   :  { %v18670_v49 = vpop.permute.xlu1 %18669  ;;  %17926 = vmatprep.subr.bf16.mxu1 %v17925_v45 }
0x5ba1   :  { %v18672_v58 = vunpack.i.h.bf16 %v18670_v49  ;;  %v18671_v2 = vunpack.i.l.bf16 %v18670_v49  ;;  %17928 = vmatpush3.bf16.msra.mxu1 %v17925_v45  ;;  %17938 = vmatprep.subr.bf16.mxu0 %v17937_v48 }
0x5ba2   :  { %17940 = vmatpush3.bf16.msra.mxu0 %v17937_v48 }
0x5ba3   :  { %v17941_v38 = vpack.c.bf16 %v18672_v58, %v18671_v2  ;;  %v18685_v47 = vpop.permute.xlu0 %18684 }
0x5ba4   :  { %v18675_v52 = vpop.permute.xlu1 %18674  ;;  %v18687_v11 = vunpack.i.h.bf16 %v18685_v47  ;;  %v18686_v3 = vunpack.i.l.bf16 %v18685_v47 }
0x5ba5   :  { %17942 = vmatprep.subr.bf16.mxu0 %v17941_v38  ;;  %v18677_v34 = vunpack.i.h.bf16 %v18675_v52  ;;  %v18676_v50 = vunpack.i.l.bf16 %v18675_v52 }
0x5ba6   :  { %v18950_v7 = vpop.eup %18949  ;;  %17944 = vmatpush3.bf16.msra.mxu0 %v17941_v38  ;;  %v17945_v53 = vpack.c.bf16 %v18687_v11, %v18686_v3 }
0x5ba7   :  { %v12371_v5 = vsel %vm420_vm3, %v18950_v7, 0.0  ;;  %v17929_v18 = vpack.c.bf16 %v18677_v34, %v18676_v50  ;;  %v18952_v54 = vpop.eup %18951 }
0x5ba8   :  { %12372 = vadd.xlane.f32.xlu1 %v12371_v5  ;;  %v12368_v57 = vsel %vm420_vm3, %v18952_v54, 0.0 }
0x5ba9   :  { %16961 = vmatmul.mubr.msk.f32.vlgmr.msra.gmra.mrb[100].mxu0 %vm61_vm0, %v19854_v22  ;;  %17930 = vmatprep.subr.bf16.mxu1 %v17929_v18 }
0x5bac   :  { %12369 = vadd.xlane.f32.xlu1 %v12368_v57 }
0x5bbd   :  { %18679 = vrot.lane.b32.xlu1 %v20443_v29, %s19031_s23 }
0x5bc1   :  { %12476 = vrot.lane.b32.xlu1 %v20399_v10, %s19031_s23 }
0x5bc5   :  { %18689 = vrot.lane.b32.xlu1 %v20362_v36, %s19030_s22 }
0x5c35   :  { %v12373_v28 = vpop.xlane.xlu1 %12372 }
0x5c36   :  { %18953 = vrcp.f32 %v12373_v28 }
0x5c39   :  { %v12370_v4 = vpop.xlane.xlu1 %12369 }
0x5c3a   :  { %18955 = vrcp.f32 %v12370_v4 }
0x5c3d   :  { %v18680_v37 = vpop.permute.xlu1 %18679 }
0x5c3e   :  { %v18682_v39 = vunpack.i.h.bf16 %v18680_v37  ;;  %v18681_v59 = vunpack.i.l.bf16 %v18680_v37 }
0x5c40   :  { %v18954_v46 = vpop.eup %18953  ;;  %v17933_v9 = vpack.c.bf16 %v18682_v39, %v18681_v59 }
0x5c41   :  { %v12477_v56 = vpop.permute.xlu1 %12476  ;;  %v12377_v6 = vmul.f32 %v18954_v46, %v18950_v7 }
0x5c44   :  { %v18956_v55 = vpop.eup %18955 }
0x5c45   :  { %v12375_v0 = vmul.f32 %v18956_v55, %v18952_v54  ;;  %v18690_v12 = vpop.permute.xlu1 %18689  ;;  %v12002_v55 = vld [vmem:[#allocation2 + $0x2c8] sm:$0xff] }
0x5c46   :  { %v18692_v35 = vunpack.i.h.bf16 %v18690_v12  ;;  %v18691_v60 = vunpack.i.l.bf16 %v18690_v12 }
0x5c47   :  { %16938 = vmatprep.mubr.msk.f32.mxu1 %vm420_vm3, %v12375_v0 }
0x5c48   :  { %16939 = vmatmul.mubr.msk.f32.vlgmr.msra.gmra.mrb[130].mxu1 %vm420_vm3, %v12377_v6  ;;  %v17949_v41 = vpack.c.bf16 %v18692_v35, %v18691_v60 }
0x5c49   :  { %17932 = vmatpush3.bf16.msra.mxu1 %v17929_v18  ;;  %16949 = vmatprep.mubr.msk.f32.mxu1 %vm61_vm0, %v20384_v8 }
0x5c4a   :  { %17934 = vmatprep.subr.bf16.mxu1 %v17933_v9 }
0x5c4d   :  { %17936 = vmatpush3.bf16.msra.mxu1 %v17933_v9 }
0x5c4e   :  { %17946 = vmatprep.subr.bf16.mxu1 %v17945_v53 }
0x5c50   :  { %16950 = vmatmul.mubr.msk.f32.vlgmr.msra.gmra.mrb[132].mxu1 %vm61_vm0, %v20388_v1 }
0x5c51   :  { %17948 = vmatpush3.bf16.msra.mxu1 %v17945_v53  ;;  %16971 = vmatprep.mubr.msk.f32.mxu1 %vm61_vm0, %v19848_v13 }
0x5c52   :  { %17950 = vmatprep.subr.bf16.mxu1 %v17949_v41 }
0x5c55   :  { %17952 = vmatpush3.bf16.msra.mxu1 %v17949_v41 }
0x5c58   :  { %16972 = vmatmul.mubr.msk.f32.vlgmr.msra.gmra.mrb[134].mxu1 %vm61_vm0, %v19854_v22 }
0x5c7c   :  { %v16962_v15 = vpop.f32.mrb[100].mxu0 }
0x5c7d   :  { %v12641_v44 = vadd.f32 %v16962_v15, %v12567_v31  ;;  %v12635_v17 = vpop.f32.mrb[101].mxu0 }
0x5c7e   :  { %v12636_v61 = vadd.f32 %v12635_v17, %v12567_v31 }
0x5c80   :  { %v17953_v42 = vpack.c.bf16 %v12641_v44, %v12636_v61 }
0x5c82   :  { %17955 = vmatprep.subr.msk.bf16.mxu0 %vm19129_vm2, %v17953_v42 }
0x5c83   :  { %17958 = vmatpush3.bf16.xpose.msk.msra.mxu0 %vm19129_vm2, %v17953_v42 }
0x5c84   :  { %16988 = vmatprep.subr.mxu0 %v12002_v55 }
0x5d1b   :  { %v20465_v14 = vpop.f32.mrb[130].mxu1 }
0x5d1c   :  { %v20467_v62 = vpop.f32.mrb[131].mxu1 }
0x5d23   :  { %v16951_v21 = vpop.f32.mrb[132].mxu1 }
0x5d24   :  { %v12545_v51 = vpop.f32.mrb[133].mxu1  ;;  %v12551_v23 = vadd.f32 %v16951_v21, %v12477_v56 }
0x5d25   :  { %v12546_v19 = vadd.f32 %v12545_v51, %v12477_v56 }
0x5d27   :  { %16978 = vmatprep.mubr.msk.f32.mxu0 %vm328_vm1, %v12546_v19 }
0x5d28   :  { %16979 = vmatmul.mubr.msk.f32.vlgmr.msra.gmra.mrb[102].mxu0 %vm328_vm1, %v12551_v23 }
0x5d29   :  { %16989 = vmatpush3.msra.mxu0 %v12002_v55 }
0x5d2b   :  { %v16973_v26 = vpop.f32.mrb[134].mxu1 }
0x5d2c   :  { %v12725_v32 = vpop.f32.mrb[135].mxu1 }
0x5dfb   :  { %v16980_v33 = vpop.f32.mrb[102].mxu0 }
0x5dfc   :  { %v12822_v25 = vmul.f32 0.35355338, %v16980_v33  ;;  %v12812_v40 = vpop.f32.mrb[103].mxu0  ;;  %v12001_v33 = vld [vmem:[#allocation2 + $0x2c0] sm:$0xff] }
0x5dfd   :  { %v12821_v43 = vmul.f32 0.35355338, %v12812_v40  ;;  %16993 = vmatprep.subr.mxu0 %v12001_v33 }
0x5dfe   :  { %v12824_v45 = vadd.f32 %v20410_v63, %v12822_v25 }
0x5dff   :  { %v12823_v48 = vadd.f32 %v20416_v30, %v12821_v43 }
0x5e00   :  { %v12828_v49 = vsel %vm420_vm3, %v12824_v45, -inf }
0x5e01   :  { %12829 = vmax.xlane.f32.xlu1 %v12828_v49  ;;  %v12825_v58 = vsel %vm420_vm3, %v12823_v48, -inf }
0x5e02   :  { %12826 = vmax.xlane.f32.xlu0 %v12825_v58 }
0x5e12   :  { %12656 = vrot.lane.b32.xlu1 %v20346_v16, %s19030_s22 }
0x5e16   :  { %18699 = vrot.lane.b32.xlu1 %v20362_v36, %s19034_s26 }
0x5e1a   :  { %18704 = vrot.lane.b32.xlu1 %v20429_v20, %s19034_s26 }
0x5e1e   :  { %13192 = vrot.lane.b32.xlu1 %v20346_v16, %s19034_s26 }
0x5e22   :  { %18714 = vrot.lane.b32.xlu1 %v20356_v24, %s19033_s25 }
0x5e8e   :  { %v12830_v2 = vpop.xlane.xlu1 %12829 }
0x5e8f   :  { %v12832_v38 = vsub.f32 %v12824_v45, %v12830_v2  ;;  %v12827_v52 = vpop.xlane.xlu0 %12826 }
0x5e90   :  { %v12831_v34 = vsub.f32 %v12823_v48, %v12827_v52 }
0x5e91   :  { %v12835_v50 = vmul.f32 1.442695, %v12832_v38 }
0x5e92   :  { %v12833_v7 = vmul.f32 1.442695, %v12831_v34  ;;  %v12657_v5 = vpop.permute.xlu1 %12656 }
0x5e93   :  { %v12726_v18 = vadd.f32 %v12725_v32, %v12657_v5  ;;  %v12731_v54 = vadd.f32 %v16973_v26, %v12657_v5 }
0x5e94   :  { %18957 = vpow2.f32 %v12833_v7 }
0x5e95   :  { %v17959_v57 = vpack.c.bf16 %v12731_v54, %v12726_v18  ;;  %18959 = vpow2.f32 %v12835_v50 }
0x5e96   :  { %v20487_v56 = vpop.permute.xlu1 %18699 }
0x5e97   :  { %17960 = vmatprep.subr.bf16.mxu1 %v17959_v57  ;;  %v18702_v49 = vunpack.i.h.bf16 %v20487_v56  ;;  %v18701_v58 = vunpack.i.l.bf16 %v20487_v56 }
0x5e98   :  { %17962 = vmatpush3.bf16.msra.mxu1 %v17959_v57 }
0x5e99   :  { %v17975_v38 = vpack.c.bf16 %v18702_v49, %v18701_v58 }
0x5e9a   :  { %v18705_v39 = vpop.permute.xlu1 %18704 }
0x5e9b   :  { %v18707_v59 = vunpack.i.h.bf16 %v18705_v39  ;;  %v18706_v46 = vunpack.i.l.bf16 %v18705_v39 }
0x5e9d   :  { %v17963_v47 = vpack.c.bf16 %v18707_v59, %v18706_v46 }
0x5e9e   :  { %v18958_v28 = vpop.eup %18957  ;;  %v13193_v9 = vpop.permute.xlu1 %13192 }
0x5e9f   :  { %v12837_v4 = vsel %vm420_vm3, %v18958_v28, 0.0  ;;  %v18960_v37 = vpop.eup %18959  ;;  %17964 = vmatprep.subr.bf16.mxu1 %v17963_v47 }
0x5ea0   :  { %12838 = vadd.xlane.f32.xlu0 %v12837_v4  ;;  %v12840_v31 = vsel %vm420_vm3, %v18960_v37, 0.0 }
0x5ea2   :  { %v18715_v41 = vpop.permute.xlu1 %18714 }
0x5ea3   :  { %v18717_v61 = vunpack.i.h.bf16 %v18715_v41  ;;  %v18716_v42 = vunpack.i.l.bf16 %v18715_v41 }
0x5ea4   :  { %12841 = vadd.xlane.f32.xlu0 %v12840_v31 }
0x5ea5   :  { %v17979_v51 = vpack.c.bf16 %v18717_v61, %v18716_v42 }
0x5eba   :  { %18694 = vrot.lane.b32.xlu0 %v20356_v24, %s19034_s26 }
0x5ebe   :  { %18709 = vrot.lane.b32.xlu0 %v20443_v29, %s19034_s26 }
0x5ec2   :  { %13102 = vrot.lane.b32.xlu0 %v20399_v10, %s19034_s26 }
0x5ec6   :  { %18719 = vrot.lane.b32.xlu0 %v20362_v36, %s19033_s25 }
0x5f2d   :  { %v12839_v0 = vpop.xlane.xlu0 %12838 }
0x5f2e   :  { %18961 = vrcp.f32 %v12839_v0 }
0x5f31   :  { %v12842_v6 = vpop.xlane.xlu0 %12841 }
0x5f32   :  { %18963 = vrcp.f32 %v12842_v6 }
0x5f35   :  { %v18695_v11 = vpop.permute.xlu0 %18694 }
0x5f36   :  { %v18697_v25 = vunpack.i.h.bf16 %v18695_v11  ;;  %v18696_v40 = vunpack.i.l.bf16 %v18695_v11 }
0x5f38   :  { %v18962_v3 = vpop.eup %18961  ;;  %v17971_v45 = vpack.c.bf16 %v18697_v25, %v18696_v40 }
0x5f39   :  { %v12844_v12 = vmul.f32 %v18962_v3, %v18958_v28  ;;  %v18710_v53 = vpop.permute.xlu0 %18709 }
0x5f3a   :  { %v18712_v35 = vunpack.i.h.bf16 %v18710_v53  ;;  %v18711_v60 = vunpack.i.l.bf16 %v18710_v53 }
0x5f3b   :  { %16985 = vmatprep.mubr.msk.f32.mxu1 %vm420_vm3, %v12844_v12 }
0x5f3c   :  { %v18964_v15 = vpop.eup %18963  ;;  %v17967_v17 = vpack.c.bf16 %v18712_v35, %v18711_v60  ;;  %v12003_v60 = vld [vmem:[#allocation2 + $0x2d0] sm:$0xff] }
0x5f3d   :  { %v12846_v44 = vmul.f32 %v18964_v15, %v18960_v37  ;;  %v13103_v21 = vpop.permute.xlu0 %13102 }
0x5f3f   :  { %16986 = vmatmul.mubr.msk.f32.vlgmr.msra.gmra.mrb[136].mxu1 %vm420_vm3, %v12846_v44 }
0x5f40   :  { %17966 = vmatpush3.bf16.msra.mxu1 %v17963_v47  ;;  %17006 = vmatprep.mubr.msk.f32.mxu1 %vm61_vm0, %v20384_v8 }
0x5f41   :  { %17968 = vmatprep.subr.bf16.mxu1 %v17967_v17  ;;  %v18720_v19 = vpop.permute.xlu0 %18719 }
0x5f42   :  { %v18722_v23 = vunpack.i.h.bf16 %v18720_v19  ;;  %v18721_v26 = vunpack.i.l.bf16 %v18720_v19 }
0x5f44   :  { %17970 = vmatpush3.bf16.msra.mxu1 %v17967_v17  ;;  %v17983_v32 = vpack.c.bf16 %v18722_v23, %v18721_v26 }
0x5f45   :  { %17980 = vmatprep.subr.bf16.mxu1 %v17979_v51 }
0x5f47   :  { %17007 = vmatmul.mubr.msk.f32.vlgmr.msra.gmra.mrb[138].mxu1 %vm61_vm0, %v20388_v1 }
0x5f48   :  { %17982 = vmatpush3.bf16.msra.mxu1 %v17979_v51  ;;  %17028 = vmatprep.mubr.msk.f32.mxu1 %vm61_vm0, %v19848_v13 }
0x5f49   :  { %17984 = vmatprep.subr.bf16.mxu1 %v17983_v32 }
0x5f4c   :  { %17986 = vmatpush3.bf16.msra.mxu1 %v17983_v32 }
0x5f4f   :  { %17029 = vmatmul.mubr.msk.f32.vlgmr.msra.gmra.mrb[140].mxu1 %vm61_vm0, %v19854_v22 }
0x6012   :  { %v16987_v43 = vpop.f32.mrb[136].mxu1 }
0x6013   :  { %v12919_v48 = vpop.f32.mrb[137].mxu1 }
0x6014   :  { %16990 = vmatprep.mubr.msk.f32.mxu0 %vm328_vm1, %v12919_v48 }
0x6015   :  { %16991 = vmatmul.mubr.msk.f32.vlgmr.msra.gmra.mrb[104].mxu0 %vm328_vm1, %v16987_v43 }
0x6016   :  { %16994 = vmatpush3.msra.mxu0 %v12001_v33  ;;  %16995 = vmatprep.mubr.msk.f32.mxu0 %vm328_vm1, %v20467_v62 }
0x6017   :  { %17972 = vmatprep.subr.bf16.mxu0 %v17971_v45 }
0x601a   :  { %v17008_v2 = vpop.f32.mrb[138].mxu1 }
0x601b   :  { %v13171_v52 = vpop.f32.mrb[139].mxu1 }
0x601c   :  { %v13172_v62 = vadd.f32 %v13171_v52, %v13103_v21 }
0x601d   :  { %16996 = vmatmul.mubr.msk.f32.vlgmr.msra.gmra.mrb[104].mxu0 %vm328_vm1, %v20465_v14  ;;  %v13177_v14 = vadd.f32 %v17008_v2, %v13103_v21 }
0x601e   :  { %17974 = vmatpush3.bf16.msra.mxu0 %v17971_v45  ;;  %17017 = vmatprep.mubr.msk.f32.mxu0 %vm61_vm0, %v19848_v13 }
0x601f   :  { %17976 = vmatprep.subr.bf16.mxu0 %v17975_v38 }
0x6022   :  { %17978 = vmatpush3.bf16.msra.mxu0 %v17975_v38  ;;  %v17030_v34 = vpop.f32.mrb[140].mxu1 }
0x6023   :  { %v13351_v50 = vpop.f32.mrb[141].mxu1 }
0x6025   :  { %17018 = vmatmul.mubr.msk.f32.vlgmr.msra.gmra.mrb[106].mxu0 %vm61_vm0, %v19854_v22 }
0x6026   :  { %17035 = vmatprep.mubr.msk.f32.mxu0 %vm328_vm1, %v13172_v62 }
0x60f8   :  { %v17019_v7 = vpop.f32.mrb[106].mxu0 }
0x60f9   :  { %v13267_v5 = vadd.f32 %v17019_v7, %v13193_v9  ;;  %v13261_v18 = vpop.f32.mrb[107].mxu0 }
0x60fa   :  { %v13262_v54 = vadd.f32 %v13261_v18, %v13193_v9 }
0x60fc   :  { %v17987_v57 = vpack.c.bf16 %v13267_v5, %v13262_v54 }
0x60fe   :  { %17989 = vmatprep.subr.msk.bf16.mxu0 %vm19129_vm2, %v17987_v57 }
0x60ff   :  { %17992 = vmatpush3.bf16.xpose.msk.msra.mxu0 %vm19129_vm2, %v17987_v57 }
0x6100   :  { %17045 = vmatprep.subr.mxu0 %v12003_v60 }
0x6106   :  { %17036 = vmatmul.mubr.msk.f32.vlgmr.msra.gmra.mrb[108].mxu0 %vm328_vm1, %v13177_v14 }
0x6107   :  { %17046 = vmatpush3.msra.mxu0 %v12003_v60 }
0x61d9   :  { %v17037_v28 = vpop.f32.mrb[108].mxu0 }
0x61da   :  { %v13448_v4 = vmul.f32 0.35355338, %v17037_v28  ;;  %v13438_v37 = vpop.f32.mrb[109].mxu0 }
0x61db   :  { %v13447_v31 = vmul.f32 0.35355338, %v13438_v37 }
0x61dc   :  { %v13450_v56 = vadd.f32 %v20410_v63, %v13448_v4 }
0x61dd   :  { %v13449_v39 = vadd.f32 %v20416_v30, %v13447_v31 }
0x61de   :  { %v13454_v59 = vsel %vm420_vm3, %v13450_v56, -inf }
0x61df   :  { %13455 = vmax.xlane.f32.xlu0 %v13454_v59  ;;  %v13451_v46 = vsel %vm420_vm3, %v13449_v39, -inf }
0x61e0   :  { %13452 = vmax.xlane.f32.xlu1 %v13451_v46 }
0x626c   :  { %v13456_v47 = vpop.xlane.xlu0 %13455 }
0x626d   :  { %v13458_v55 = vsub.f32 %v13450_v56, %v13456_v47  ;;  %v13453_v0 = vpop.xlane.xlu1 %13452 }
0x626e   :  { %v13457_v6 = vsub.f32 %v13449_v39, %v13453_v0 }
0x626f   :  { %v13461_v9 = vmul.f32 1.442695, %v13458_v55 }
0x6270   :  { %v13459_v11 = vmul.f32 1.442695, %v13457_v6 }
0x6271   :  { %18965 = vpow2.f32 %v13461_v9 }
0x6272   :  { %18967 = vpow2.f32 %v13459_v11 }
0x627b   :  { %v18966_v3 = vpop.eup %18965 }
0x627c   :  { %v18968_v12 = vpop.eup %18967  ;;  %v13466_v53 = vsel %vm420_vm3, %v18966_v3, 0.0 }
0x627d   :  { %13467 = vadd.xlane.f32.xlu1 %v13466_v53  ;;  %v13463_v35 = vsel %vm420_vm3, %v18968_v12, 0.0 }
0x627e   :  { %13464 = vadd.xlane.f32.xlu0 %v13463_v35 }
0x628e   :  { %18724 = vrot.lane.b32.xlu1 %v20356_v24, %s19037_s29 }
0x6292   :  { %18729 = vrot.lane.b32.xlu1 %v20362_v36, %s19037_s29 }
0x6294   :  { %13282 = vrot.lane.b32.xlu0 %v20346_v16, %s19033_s25 }
0x6296   :  { %18739 = vrot.lane.b32.xlu1 %v20443_v29, %s19037_s29 }
0x6298   :  { %18734 = vrot.lane.b32.xlu0 %v20429_v20, %s19037_s29 }
0x629a   :  { %13649 = vrot.lane.b32.xlu1 %v20399_v10, %s19037_s29 }
0x629c   :  { %13739 = vrot.lane.b32.xlu0 %v20346_v16, %s19037_s29 }
0x629e   :  { %18749 = vrot.lane.b32.xlu1 %v20362_v36, %s19036_s28 }
0x62a0   :  { %18744 = vrot.lane.b32.xlu0 %v20356_v24, %s19036_s28 }
0x630a   :  { %v13468_v41 = vpop.xlane.xlu1 %13467 }
0x630b   :  { %18969 = vrcp.f32 %v13468_v41  ;;  %v13465_v29 = vpop.xlane.xlu0 %13464 }
0x630c   :  { %18971 = vrcp.f32 %v13465_v29 }
0x630e   :  { %v18725_v20 = vpop.permute.xlu1 %18724 }
0x630f   :  { %v13283_v15 = vpop.permute.xlu0 %13282  ;;  %v18727_v44 = vunpack.i.h.bf16 %v18725_v20  ;;  %v18726_v10 = vunpack.i.l.bf16 %v18725_v20 }
0x6310   :  { %v13352_v17 = vadd.f32 %v13351_v50, %v13283_v15  ;;  %v13357_v61 = vadd.f32 %v17030_v34, %v13283_v15 }
0x6311   :  { %v18005_v42 = vpack.c.bf16 %v18727_v44, %v18726_v10 }
0x6312   :  { %v17993_v21 = vpack.c.bf16 %v13357_v61, %v13352_v17  ;;  %v18730_v51 = vpop.permute.xlu1 %18729 }
0x6313   :  { %v18735_v36 = vpop.permute.xlu0 %18734  ;;  %18006 = vmatprep.subr.bf16.mxu0 %v18005_v42  ;;  %v18732_v18 = vunpack.i.h.bf16 %v18730_v51  ;;  %v18731_v54 = vunpack.i.l.bf16 %v18730_v51 }
0x6314   :  { %17994 = vmatprep.subr.bf16.mxu1 %v17993_v21  ;;  %v18737_v24 = vunpack.i.h.bf16 %v18735_v36  ;;  %v18736_v19 = vunpack.i.l.bf16 %v18735_v36 }
0x6315   :  { %v18970_v23 = vpop.eup %18969  ;;  %17996 = vmatpush3.bf16.msra.mxu1 %v17993_v21  ;;  %v18009_v14 = vpack.c.bf16 %v18732_v18, %v18731_v54  ;;  %v12004_v21 = vld [vmem:[#allocation2 + $0x2d8] sm:$0xff] }
0x6316   :  { %v18972_v26 = vpop.eup %18971  ;;  %v17997_v32 = vpack.c.bf16 %v18737_v24, %v18736_v19  ;;  %v18740_v33 = vpop.permute.xlu1 %18739  ;;  %v13472_v48 = vmul.f32 %v18970_v23, %v18966_v3 }
0x6317   :  { %v13740_v25 = vpop.permute.xlu0 %13739  ;;  %v18742_v40 = vunpack.i.h.bf16 %v18740_v33  ;;  %v18741_v43 = vunpack.i.l.bf16 %v18740_v33  ;;  %v13470_v45 = vmul.f32 %v18972_v26, %v18968_v12 }
0x6318   :  { %17998 = vmatprep.subr.bf16.mxu1 %v17997_v32 }
0x6319   :  { %v18001_v49 = vpack.c.bf16 %v18742_v40, %v18741_v43  ;;  %17042 = vmatprep.mubr.msk.f32.mxu1 %vm420_vm3, %v13470_v45 }
0x631a   :  { %17043 = vmatmul.mubr.msk.f32.vlgmr.msra.gmra.mrb[142].mxu1 %vm420_vm3, %v13472_v48  ;;  %v13650_v58 = vpop.permute.xlu1 %13649 }
0x631b   :  { %18000 = vmatpush3.bf16.msra.mxu1 %v17997_v32  ;;  %17058 = vmatprep.mubr.msk.f32.mxu1 %vm61_vm0, %v20384_v8  ;;  %v18745_v2 = vpop.permute.xlu0 %18744 }
0x631c   :  { %v18747_v38 = vunpack.i.h.bf16 %v18745_v2  ;;  %v18746_v52 = vunpack.i.l.bf16 %v18745_v2  ;;  %18002 = vmatprep.subr.bf16.mxu1 %v18001_v49 }
0x631e   :  { %v18013_v34 = vpack.c.bf16 %v18747_v38, %v18746_v52  ;;  %v18750_v50 = vpop.permute.xlu1 %18749 }
0x631f   :  { %18004 = vmatpush3.bf16.msra.mxu1 %v18001_v49  ;;  %v18752_v62 = vunpack.i.h.bf16 %v18750_v50  ;;  %v18751_v7 = vunpack.i.l.bf16 %v18750_v50 }
0x6320   :  { %18014 = vmatprep.subr.bf16.mxu1 %v18013_v34 }
0x6321   :  { %v18017_v5 = vpack.c.bf16 %v18752_v62, %v18751_v7 }
0x6322   :  { %17059 = vmatmul.mubr.msk.f32.vlgmr.msra.gmra.mrb[144].mxu1 %vm61_vm0, %v20388_v1 }
0x6323   :  { %18016 = vmatpush3.bf16.msra.mxu1 %v18013_v34  ;;  %17080 = vmatprep.mubr.msk.f32.mxu1 %vm61_vm0, %v19848_v13 }
0x6324   :  { %18018 = vmatprep.subr.bf16.mxu1 %v18017_v5 }
0x6327   :  { %18020 = vmatpush3.bf16.msra.mxu1 %v18017_v5 }
0x632a   :  { %17081 = vmatmul.mubr.msk.f32.vlgmr.msra.gmra.mrb[146].mxu1 %vm61_vm0, %v19854_v22 }
0x63ed   :  { %v17044_v57 = vpop.f32.mrb[142].mxu1 }
0x63ee   :  { %v13545_v28 = vpop.f32.mrb[143].mxu1 }
0x63ef   :  { %17047 = vmatprep.mubr.msk.f32.mxu0 %vm328_vm1, %v13545_v28 }
0x63f0   :  { %17048 = vmatmul.mubr.msk.f32.vlgmr.msra.gmra.mrb[104].mxu0 %vm328_vm1, %v17044_v57 }
0x63f1   :  { %18008 = vmatpush3.bf16.msra.mxu0 %v18005_v42  ;;  %17069 = vmatprep.mubr.msk.f32.mxu0 %vm61_vm0, %v19848_v13 }
0x63f2   :  { %18010 = vmatprep.subr.bf16.mxu0 %v18009_v14 }
0x63f5   :  { %v17060_v4 = vpop.f32.mrb[144].mxu1  ;;  %18012 = vmatpush3.bf16.msra.mxu0 %v18009_v14  ;;  %v14233_v14 = vld [vmem:[#allocation2 + $0x2e8] sm:$0xff] }
0x63f6   :  { %v13718_v37 = vpop.f32.mrb[145].mxu1  ;;  %v13724_v13 = vadd.f32 %v17060_v4, %v13650_v58  ;;  %v14234_v4 = vld [vmem:[#allocation2 + $0x2f0] sm:$0xff] }
0x63f7   :  { %v13719_v31 = vadd.f32 %v13718_v37, %v13650_v58  ;;  %v14235_v37 = vld [vmem:[#allocation2 + $0x2f8] sm:$0xff] }
0x63f8   :  { %17070 = vmatmul.mubr.msk.f32.vlgmr.msra.gmra.mrb[110].mxu0 %vm61_vm0, %v19854_v22 }
0x63f9   :  { %17087 = vmatprep.mubr.msk.f32.mxu0 %vm328_vm1, %v13719_v31  ;;  %v18035_v31 = vpack.c.bf16 %v14235_v37, %v14234_v4  ;;  %v14991_v4 = vld [vmem:[%s20644_s5 + $0x28] ss:$0 sm:$0xff] }
0x63fd   :  { %v17082_v56 = vpop.f32.mrb[146].mxu1 }
0x63fe   :  { %v13898_v39 = vpop.f32.mrb[147].mxu1 }
0x64cb   :  { %v17071_v59 = vpop.f32.mrb[110].mxu0 }
0x64cc   :  { %v13814_v46 = vadd.f32 %v17071_v59, %v13740_v25  ;;  %v13808_v47 = vpop.f32.mrb[111].mxu0  ;;  %v14239_v59 = vld [vmem:[#allocation2 + $0x310] sm:$0xff] }
0x64cd   :  { %v13809_v55 = vadd.f32 %v13808_v47, %v13740_v25  ;;  %v14982_v25 = vld [vmem:[%s20644_s5 + $0x23] ss:$0 sm:$0xff]  ;;  %v14240_v47 = vld [vmem:[#allocation2 + $0x318] sm:$0xff] }
0x64cf   :  { %v18021_v0 = vpack.c.bf16 %v13814_v46, %v13809_v55  ;;  %v18043_v55 = vpack.c.bf16 %v14240_v47, %v14239_v59 }
0x64d1   :  { %18023 = vmatprep.subr.msk.bf16.mxu0 %vm19129_vm2, %v18021_v0 }
0x64d2   :  { %18026 = vmatpush3.bf16.xpose.msk.msra.mxu0 %vm19129_vm2, %v18021_v0  ;;  %v14241_v0 = vld [vmem:[#allocation2 + $0x320] sm:$0xff] }
0x64d3   :  { %17097 = vmatprep.subr.mxu0 %v12004_v21 }
0x64d9   :  { %17088 = vmatmul.mubr.msk.f32.vlgmr.msra.gmra.mrb[112].mxu0 %vm328_vm1, %v13724_v13  ;;  %v14242_v13 = vld [vmem:[#allocation2 + $0x328] sm:$0xff] }
0x64da   :  { %17098 = vmatpush3.msra.mxu0 %v12004_v21 }
0x65ac   :  { %v17089_v6 = vpop.f32.mrb[112].mxu0 }
0x65ad   :  { %v13995_v22 = vmul.f32 0.35355338, %v17089_v6  ;;  %v13985_v9 = vpop.f32.mrb[113].mxu0  ;;  %v18047_v6 = vpack.c.bf16 %v14242_v13, %v14241_v0 }
0x65ae   :  { %v13994_v11 = vmul.f32 0.35355338, %v13985_v9 }
0x65af   :  { %v13997_v3 = vadd.f32 %v20410_v63, %v13995_v22 }
0x65b0   :  { %v13996_v12 = vadd.f32 %v20416_v30, %v13994_v11 }
0x65b1   :  { %v14001_v53 = vsel %vm420_vm3, %v13997_v3, -inf }
0x65b2   :  { %14002 = vmax.xlane.f32.xlu1 %v14001_v53  ;;  %v13998_v35 = vsel %vm420_vm3, %v13996_v12, -inf }
0x65b3   :  { %13999 = vmax.xlane.f32.xlu0 %v13998_v35 }
0x65c3   :  { %13829 = vrot.lane.b32.xlu1 %v20346_v16, %s19036_s28 }
0x663f   :  { %v14003_v27 = vpop.xlane.xlu1 %14002 }
0x6640   :  { %v14005_v60 = vsub.f32 %v13997_v3, %v14003_v27  ;;  %v14000_v41 = vpop.xlane.xlu0 %13999  ;;  %v14983_v27 = vld [vmem:[%s20644_s5 + $0x24] ss:$0 sm:$0xff] }
0x6641   :  { %v14004_v29 = vsub.f32 %v13996_v12, %v14000_v41  ;;  %v14984_v41 = vld [vmem:[%s20644_s5 + $0x25] ss:$0 sm:$0xff] }
0x6642   :  { %v14008_v20 = vmul.f32 1.442695, %v14005_v60 }
0x6643   :  { %v14006_v15 = vmul.f32 1.442695, %v14004_v29  ;;  %v13830_v44 = vpop.permute.xlu1 %13829 }
0x6644   :  { %v13899_v10 = vadd.f32 %v13898_v39, %v13830_v44  ;;  %v13904_v63 = vadd.f32 %v17082_v56, %v13830_v44  ;;  %v14237_v56 = vld [vmem:[#allocation2 + $0x300] sm:$0xff]  ;;  %v14238_v39 = vld [vmem:[#allocation2 + $0x308] sm:$0xff] }
0x6645   :  { %18973 = vpow2.f32 %v14006_v15  ;;  %v18039_v46 = vpack.c.bf16 %v14238_v39, %v14237_v56 }
0x6646   :  { %v18027_v30 = vpack.c.bf16 %v13904_v63, %v13899_v10  ;;  %18975 = vpow2.f32 %v14008_v20 }
0x6647   :  { %18040 = vmatprep.subr.bf16.mxu0 %v18039_v46 }
0x6648   :  { %18028 = vmatprep.subr.bf16.mxu1 %v18027_v30 }
0x6649   :  { %18030 = vmatpush3.bf16.msra.mxu1 %v18027_v30  ;;  %v14243_v30 = vld [vmem:[#allocation2 + $0x330] sm:$0xff] }
0x664f   :  { %v18974_v17 = vpop.eup %18973 }
0x6650   :  { %v14010_v61 = vsel %vm420_vm3, %v18974_v17, 0.0  ;;  %v18976_v42 = vpop.eup %18975 }
0x6651   :  { %14011 = vadd.xlane.f32.xlu0 %v14010_v61  ;;  %v14013_v16 = vsel %vm420_vm3, %v18976_v42, 0.0 }
0x6655   :  { %14014 = vadd.xlane.f32.xlu0 %v14013_v16 }
0x66de   :  { %v14012_v51 = vpop.xlane.xlu0 %14011 }
0x66df   :  { %18977 = vrcp.f32 %v14012_v51 }
0x66e2   :  { %v14015_v36 = vpop.xlane.xlu0 %14014 }
0x66e3   :  { %18979 = vrcp.f32 %v14015_v36 }
0x66e9   :  { %v18978_v24 = vpop.eup %18977 }
0x66ea   :  { %v14017_v19 = vmul.f32 %v18978_v24, %v18974_v17  ;;  %v14244_v17 = vld [vmem:[#allocation2 + $0x338] sm:$0xff] }
0x66eb   :  { %v18051_v61 = vpack.c.bf16 %v14244_v17, %v14243_v30 }
0x66ec   :  { %17094 = vmatprep.mubr.msk.f32.mxu1 %vm420_vm3, %v14017_v19 }
0x66ed   :  { %v18980_v23 = vpop.eup %18979 }
0x66ee   :  { %v14019_v26 = vmul.f32 %v18980_v23, %v18976_v42  ;;  %v14985_v42 = vld [vmem:[%s20644_s5 + $0x26] ss:$0 sm:$0xff]  ;;  %v14988_v23 = vld [vmem:[%s20644_s5 + $0x27] ss:$0 sm:$0xff] }
0x66f0   :  { %17095 = vmatmul.mubr.msk.f32.vlgmr.msra.gmra.mrb[148].mxu1 %vm420_vm3, %v14019_v26 }
0x67c3   :  { %v17096_v32 = vpop.f32.mrb[148].mxu1 }
0x67c4   :  { %v14092_v33 = vpop.f32.mrb[149].mxu1 }
0x67c5   :  { %17099 = vmatprep.mubr.msk.f32.mxu0 %vm328_vm1, %v14092_v33 }
0x67c6   :  { %17100 = vmatmul.mubr.msk.f32.vlgmr.msra.gmra.mrb[104].mxu0 %vm328_vm1, %v17096_v32 }
0x67c7   :  { %18042 = vmatpush3.bf16.msra.mxu0 %v18039_v46 }
0x67c8   :  { %18044 = vmatprep.subr.bf16.mxu0 %v18043_v55 }
0x67cb   :  { %18046 = vmatpush3.bf16.msra.mxu0 %v18043_v55 }
0x67cc   :  { %18048 = vmatprep.subr.bf16.mxu0 %v18047_v6 }
0x67cf   :  { %18050 = vmatpush3.bf16.msra.mxu0 %v18047_v6 }
0x67d0   :  { %18052 = vmatprep.subr.bf16.mxu0 %v18051_v61 }
0x67d3   :  { %18054 = vmatpush3.bf16.msra.mxu0 %v18051_v61 }
0x6899   :  { %v17101_v40 = vpop.f32.mrb[104].mxu0 }
0x689a   :  { %v14173_v43 = vpop.f32.mrb[105].mxu0  ;;  %v14189_v45 = vadd.f32 %v17101_v40, %v14982_v25 }
0x689b   :  { %v14188_v48 = vadd.f32 %v14982_v25, %v14173_v43 }
0x689c   :  { %v14191_v58 = vadd.f32 %v14189_v45, %v20388_v1  ;;  %v14232_v1 = vld [vmem:[#allocation2 + $0x2e0] sm:$0xff] }
0x689d   :  { %v14190_v49 = vadd.f32 %v14188_v48, %v20384_v8  ;;  %v18031_v28 = vpack.c.bf16 %v14233_v14, %v14232_v1 }
0x689e   :  { %v14197_v38 = vsel %vm61_vm0, %v14191_v58, 0.0 }
0x689f   :  { %v14194_v2 = vsel %vm61_vm0, %v14190_v49, 0.0  ;;  %18032 = vmatprep.subr.bf16.mxu1 %v18031_v28 }
0x68a0   :  { %14195 = vadd.xlane.f32.xlu0 %v14194_v2  ;;  %18034 = vmatpush3.bf16.msra.mxu1 %v18031_v28 }
0x68a1   :  { %18036 = vmatprep.subr.bf16.mxu1 %v18035_v31 }
0x68a4   :  { %14198 = vadd.xlane.f32.xlu0 %v14197_v38  ;;  %18038 = vmatpush3.bf16.msra.mxu1 %v18035_v31  ;;  %v14992_v31 = vld [vmem:[%s20644_s5 + $0x29] ss:$0 sm:$0xff] }
0x692d   :  { %v14196_v52 = vpop.xlane.xlu0 %14195 }
0x692e   :  { %v14200_v34 = vmul.f32 0.03125, %v14196_v52 }
0x6930   :  { %v14202_v50 = vsub.f32 %v14190_v49, %v14200_v34 }
0x6931   :  { %v14199_v62 = vpop.xlane.xlu0 %14198 }
0x6932   :  { %v14201_v7 = vmul.f32 0.03125, %v14199_v62  ;;  %v14204_v5 = vmul.f32 %v14202_v50, %v14202_v50 }
0x6934   :  { %v14203_v18 = vsub.f32 %v14191_v58, %v14201_v7  ;;  %v14206_v54 = vsel %vm61_vm0, %v14204_v5, 0.0 }
0x6935   :  { %14207 = vadd.xlane.f32.xlu0 %v14206_v54 }
0x6936   :  { %v14205_v57 = vmul.f32 %v14203_v18, %v14203_v18 }
0x6938   :  { %v14209_v8 = vsel %vm61_vm0, %v14205_v57, 0.0 }
0x6939   :  { %14210 = vadd.xlane.f32.xlu0 %v14209_v8 }
0x69c2   :  { %v14208_v22 = vpop.xlane.xlu0 %14207 }
0x69c3   :  { %v14212_v9 = vmul.f32 0.03125, %v14208_v22 }
0x69c5   :  { %v14214_v11 = vadd.f32 1e-05, %v14212_v9 }
0x69c6   :  { %v14211_v3 = vpop.xlane.xlu0 %14210 }
0x69c7   :  { %18981 = vrsqrt.f32 %v14214_v11  ;;  %v14213_v12 = vmul.f32 0.03125, %v14211_v3 }
0x69c9   :  { %v14215_v53 = vadd.f32 1e-05, %v14213_v12 }
0x69cb   :  { %18983 = vrsqrt.f32 %v14215_v53 }
0x69d1   :  { %v18982_v35 = vpop.eup %18981 }
0x69d2   :  { %v14218_v60 = vmul.f32 %v18982_v35, %v14202_v50 }
0x69d4   :  { %v14224_v29 = vmul.f32 %v14983_v27, %v14218_v60 }
0x69d5   :  { %v18984_v20 = vpop.eup %18983 }
0x69d6   :  { %v14219_v15 = vmul.f32 %v18984_v20, %v14203_v18  ;;  %v14230_v44 = vadd.f32 %v14984_v41, %v14224_v29  ;;  %v14501_v29 = vld [vmem:[#allocation2 + $0x348] sm:$0xff] }
0x69d8   :  { %v14225_v10 = vmul.f32 %v14983_v27, %v14219_v15  ;;  %17110 = vmatprep.mubr.msk.f32.mxu1 %vm61_vm0, %v14230_v44  ;;  %v14502_v15 = vld [vmem:[#allocation2 + $0x350] sm:$0xff] }
0x69da   :  { %v14231_v63 = vadd.f32 %v14984_v41, %v14225_v10  ;;  %v14500_v41 = vld [vmem:[#allocation2 + $0x340] sm:$0xff] }
0x69db   :  { %v18055_v20 = vpack.c.bf16 %v14501_v29, %v14500_v41 }
0x69dc   :  { %17111 = vmatmul.mubr.msk.f32.vlgmr.msra.gmra.mrb[150].mxu1 %vm61_vm0, %v14231_v63 }
0x69dd   :  { %18056 = vmatprep.subr.bf16.mxu1 %v18055_v20 }
0x69de   :  { %18058 = vmatpush3.bf16.msra.mxu1 %v18055_v20 }
0x6aaf   :  { %v17112_v16 = vpop.f32.mrb[150].mxu1 }
0x6ab0   :  { %v14328_v21 = vadd.f32 %v17112_v16, %v14985_v42  ;;  %v14322_v51 = vpop.f32.mrb[151].mxu1 }
0x6ab1   :  { %v14323_v36 = vadd.f32 %v14985_v42, %v14322_v51  ;;  %v14993_v51 = vld [vmem:[%s20644_s5 + $0x2c] ss:$0 sm:$0xff] }
0x6ab2   :  { %v14332_v19 = vmax.f32 %v14328_v21, 0.0 }
0x6ab3   :  { %v14331_v24 = vmax.f32 %v14323_v36, 0.0 }
0x6ab5   :  { %17129 = vmatprep.mubr.msk.f32.mxu0 %vm2398_vm4, %v14331_v24  ;;  %v14994_v24 = vld [vmem:[%s20644_s5 + $0x2d] ss:$0 sm:$0xff] }
0x6ab6   :  { %17130 = vmatmul.mubr.msk.f32.vlgmr.msra.gmra.mrb[114].mxu0 %vm2398_vm4, %v14332_v19 }
0x6b89   :  { %v17131_v26 = vpop.f32.mrb[114].mxu0 }
0x6b8a   :  { %v14415_v32 = vadd.f32 %v17131_v26, %v14988_v23  ;;  %v14409_v33 = vpop.f32.mrb[115].mxu0 }
0x6b8b   :  { %v14410_v25 = vadd.f32 %v14988_v23, %v14409_v33 }
0x6b8c   :  { %v14419_v40 = vadd.f32 %v14415_v32, %v14231_v63 }
0x6b8d   :  { %v14418_v43 = vadd.f32 %v14410_v25, %v14230_v44  ;;  %v14503_v44 = vld [vmem:[#allocation2 + $0x358] sm:$0xff] }
0x6b8e   :  { %v14425_v45 = vsel %vm61_vm0, %v14419_v40, 0.0  ;;  %v18059_v10 = vpack.c.bf16 %v14503_v44, %v14502_v15 }
0x6b8f   :  { %14426 = vadd.xlane.f32.xlu0 %v14425_v45  ;;  %v14422_v48 = vsel %vm61_vm0, %v14418_v43, 0.0 }
0x6b90   :  { %14423 = vadd.xlane.f32.xlu1 %v14422_v48  ;;  %18060 = vmatprep.subr.bf16.mxu1 %v18059_v10 }
0x6b91   :  { %18062 = vmatpush3.bf16.msra.mxu1 %v18059_v10 }
0x6c1c   :  { %v14427_v49 = vpop.xlane.xlu0 %14426 }
0x6c1d   :  { %v14429_v58 = vmul.f32 0.03125, %v14427_v49  ;;  %v14424_v2 = vpop.xlane.xlu1 %14423 }
0x6c1e   :  { %v14428_v38 = vmul.f32 0.03125, %v14424_v2 }
0x6c1f   :  { %v14431_v52 = vsub.f32 %v14419_v40, %v14429_v58  ;;  %v14995_v40 = vld [vmem:[%s20644_s5 + $0x2e] ss:$0 sm:$0xff] }
0x6c20   :  { %v14430_v34 = vsub.f32 %v14418_v43, %v14428_v38 }
0x6c21   :  { %v14433_v7 = vmul.f32 %v14431_v52, %v14431_v52 }
0x6c22   :  { %v14432_v50 = vmul.f32 %v14430_v34, %v14430_v34 }
0x6c23   :  { %v14437_v5 = vsel %vm61_vm0, %v14433_v7, 0.0 }
0x6c24   :  { %v14434_v62 = vsel %vm61_vm0, %v14432_v50, 0.0 }
0x6c25   :  { %14435 = vadd.xlane.f32.xlu0 %v14434_v62 }
0x6c29   :  { %14438 = vadd.xlane.f32.xlu0 %v14437_v5 }
0x6cb2   :  { %v14436_v18 = vpop.xlane.xlu0 %14435 }
0x6cb3   :  { %v14440_v54 = vmul.f32 0.03125, %v14436_v18 }
0x6cb5   :  { %v14442_v57 = vadd.f32 1e-05, %v14440_v54 }
0x6cb6   :  { %v14439_v8 = vpop.xlane.xlu0 %14438 }
0x6cb7   :  { %18985 = vrsqrt.f32 %v14442_v57  ;;  %v14441_v1 = vmul.f32 0.03125, %v14439_v8 }
0x6cb9   :  { %v14443_v14 = vadd.f32 1e-05, %v14441_v1 }
0x6cbb   :  { %18987 = vrsqrt.f32 %v14443_v14 }
0x6cc1   :  { %v18986_v28 = vpop.eup %18985 }
0x6cc2   :  { %v14446_v37 = vmul.f32 %v18986_v28, %v14430_v34 }
0x6cc4   :  { %v14452_v56 = vmul.f32 %v14991_v4, %v14446_v37 }
0x6cc5   :  { %v18988_v39 = vpop.eup %18987 }
0x6cc6   :  { %v14458_v59 = vadd.f32 %v14992_v31, %v14452_v56  ;;  %v14447_v46 = vmul.f32 %v18988_v39, %v14431_v52 }
0x6cc8   :  { %v14462_v47 = vsel %vm61_vm0, %v14458_v59, 0.0  ;;  %v14453_v55 = vmul.f32 %v14991_v4, %v14447_v46 }
0x6cc9   :  { %14463 = vadd.xlane.f32.xlu0 %v14462_v47 }
0x6cca   :  { %v14459_v0 = vadd.f32 %v14992_v31, %v14453_v55 }
0x6ccc   :  { %v14465_v13 = vsel %vm61_vm0, %v14459_v0, 0.0 }
0x6ccd   :  { %14466 = vadd.xlane.f32.xlu0 %v14465_v13 }
0x6d56   :  { %v14464_v6 = vpop.xlane.xlu0 %14463 }
0x6d57   :  { %v14468_v22 = vmul.f32 0.03125, %v14464_v6 }
0x6d59   :  { %v14470_v9 = vsub.f32 %v14458_v59, %v14468_v22 }
0x6d5a   :  { %v14467_v11 = vpop.xlane.xlu0 %14466 }
0x6d5b   :  { %v14469_v3 = vmul.f32 0.03125, %v14467_v11  ;;  %v14472_v12 = vmul.f32 %v14470_v9, %v14470_v9 }
0x6d5d   :  { %v14471_v53 = vsub.f32 %v14459_v0, %v14469_v3  ;;  %v14474_v35 = vsel %vm61_vm0, %v14472_v12, 0.0 }
0x6d5e   :  { %14475 = vadd.xlane.f32.xlu0 %v14474_v35 }
0x6d5f   :  { %v14473_v27 = vmul.f32 %v14471_v53, %v14471_v53 }
0x6d61   :  { %v14477_v60 = vsel %vm61_vm0, %v14473_v27, 0.0 }
0x6d62   :  { %14478 = vadd.xlane.f32.xlu0 %v14477_v60 }
0x6deb   :  { %v14476_v63 = vpop.xlane.xlu0 %14475 }
0x6dec   :  { %v14480_v30 = vmul.f32 0.03125, %v14476_v63 }
0x6dee   :  { %v14482_v17 = vadd.f32 1e-05, %v14480_v30 }
0x6def   :  { %v14479_v61 = vpop.xlane.xlu0 %14478 }
0x6df0   :  { %18989 = vrsqrt.f32 %v14482_v17  ;;  %v14481_v42 = vmul.f32 0.03125, %v14479_v61 }
0x6df2   :  { %v14483_v16 = vadd.f32 1e-05, %v14481_v42 }
0x6df4   :  { %18991 = vrsqrt.f32 %v14483_v16 }
0x6dfa   :  { %v18990_v21 = vpop.eup %18989 }
0x6dfb   :  { %v14486_v36 = vmul.f32 %v18990_v21, %v14470_v9 }
0x6dfd   :  { %v14492_v19 = vmul.f32 %v14993_v51, %v14486_v36 }
0x6dfe   :  { %v18992_v23 = vpop.eup %18991 }
0x6dff   :  { %v14487_v26 = vmul.f32 %v18992_v23, %v14471_v53  ;;  %v14498_v32 = vadd.f32 %v14994_v24, %v14492_v19 }
0x6e01   :  { %v14493_v33 = vmul.f32 %v14993_v51, %v14487_v26  ;;  %17140 = vmatprep.mubr.msk.f32.mxu1 %vm61_vm0, %v14498_v32 }
0x6e03   :  { %v14499_v25 = vadd.f32 %v14994_v24, %v14493_v33 }
0x6e05   :  { %17141 = vmatmul.mubr.msk.f32.vlgmr.msra.gmra.mrb[152].mxu1 %vm61_vm0, %v14499_v25 }
0x6ed8   :  { %v17142_v43 = vpop.f32.mrb[152].mxu1 }
0x6ed9   :  { %v14587_v45 = vadd.f32 %v17142_v43, %v14995_v40  ;;  %v14581_v48 = vpop.f32.mrb[153].mxu1 }
0x6eda   :  { %v14582_v49 = vadd.f32 %v14995_v40, %v14581_v48 }
0x6edb   :  { %14591 = vst [vmem:[%s20645_s6 + $0x8] sm:$0xff] %v14587_v45 }
0x6edc   :  { %14590 = vst [vmem:[%s20645_s6] sm:$0xff] %v14582_v49 }
0x6edd   :  { %14596 = vsyncpa [#allocation3], 1 }

</bundles_post_ra>
